<compile_context>
chip_gen: v6e
topology: v6e:2x2x1
jax: 0.10.0
libtpu: 0.0.40
codegen_flags: <defaults>
</compile_context>

<pallas_src>
import numpy as np
import jax
import jax.numpy as jnp
from jax import lax
from jax.experimental import pallas as pl
from jax.experimental.pallas import tpu as pltpu


# ---------------------------------------------------------------------------
# Wrapper-side weight preparation (tiny, one-time)
# ---------------------------------------------------------------------------

def build_banded_conv_mats(wk, H, W):
    """Fold a 3x3x3 'same' conv over (kh, kw, ci) into 3 banded matrices (one per depth tap kd).

    wk: (3, 3, 3, Cin, Cout)   [kd, kh, kw, ci, co]
    returns (3, H*W*Cin, H*W*Cout), rows flattened as (hi, wi, ci), cols as (ho, wo, co).
    H/W zero-padding is encoded as zero entries.
    """
    hi = jnp.arange(H)[:, None]
    ho = jnp.arange(H)[None, :]
    wi = jnp.arange(W)[:, None]
    wo = jnp.arange(W)[None, :]
    dh = hi - ho + 1                       # (H, H) kernel offset along H
    dw = wi - wo + 1                       # (W, W) kernel offset along W
    vh = (dh >= 0) & (dh <= 2)
    vw = (dw >= 0) & (dw <= 2)
    m = wk[:, jnp.clip(dh, 0, 2)]          # (3, Hi, Ho, 3, Cin, Cout)
    m = m[:, :, :, jnp.clip(dw, 0, 2)]     # (3, Hi, Ho, Wi, Wo, Cin, Cout)
    mask = (vh[:, :, None, None] & vw[None, None, :, :]).astype(wk.dtype)
    m = m * mask[None, :, :, :, :, None, None]
    m = jnp.transpose(m, (0, 1, 3, 5, 2, 4, 6))   # (kd, hi, wi, ci, ho, wo, co)
    Cin, Cout = wk.shape[3], wk.shape[4]
    return m.reshape(3, H * W * Cin, H * W * Cout)


# ---------------------------------------------------------------------------
# Pallas kernels
# ---------------------------------------------------------------------------

def _shift_mats(D):
    """(D, D) depth-shift matrices: (up @ x)[d] = x[d-1] (0 at d=0), (dn @ x)[d] = x[d+1]."""
    r = lax.broadcasted_iota(jnp.int32, (D, D), 0)
    c = lax.broadcasted_iota(jnp.int32, (D, D), 1)
    up = (c == r - 1).astype(jnp.float32)
    dn = (c == r + 1).astype(jnp.float32)
    return up, dn


def _conv_taps(a, wm_ref):
    """3-tap depth conv of rows a: (D, L) against banded matrices wm_ref: (3, L, L)."""
    D = a.shape[0]
    up, dn = _shift_mats(D)
    a_up = jnp.dot(up, a, preferred_element_type=jnp.float32)   # rows x[d-1], zero-padded
    a_dn = jnp.dot(dn, a, preferred_element_type=jnp.float32)   # rows x[d+1], zero-padded
    acc = jnp.dot(a_up, wm_ref[0], preferred_element_type=jnp.float32)
    acc = acc + jnp.dot(a, wm_ref[1], preferred_element_type=jnp.float32)
    acc = acc + jnp.dot(a_dn, wm_ref[2], preferred_element_type=jnp.float32)
    return acc


def conv_stats_kernel(x_ref, wm_ref, b_ref, y_ref, s_ref, q_ref):
    """y = conv3x3x3(x) + b; also accumulate per-lane batch sum / sum-of-squares of y."""
    @pl.when(pl.program_id(0) == 0)
    def _():
        s_ref[...] = jnp.zeros_like(s_ref)
        q_ref[...] = jnp.zeros_like(q_ref)

    x = x_ref[0].astype(jnp.float32)                  # (D, L)
    acc = _conv_taps(x, wm_ref) + b_ref[...]
    s_ref[...] += jnp.sum(acc, axis=0, keepdims=True)
    q_ref[...] += jnp.sum(acc * acc, axis=0, keepdims=True)
    y_ref[0] = acc.astype(y_ref.dtype)


def bnrelu_conv_stats_kernel(y1_ref, wm_ref, b_ref, sc_ref, sh_ref, y_ref, s_ref, q_ref):
    """y = conv3x3x3(relu(bn1(y1))) + b; also accumulate batch sum / sum-of-squares of y."""
    @pl.when(pl.program_id(0) == 0)
    def _():
        s_ref[...] = jnp.zeros_like(s_ref)
        q_ref[...] = jnp.zeros_like(q_ref)

    a = jnp.maximum(y1_ref[0].astype(jnp.float32) * sc_ref[...] + sh_ref[...], 0.0)
    acc = _conv_taps(a, wm_ref) + b_ref[...]
    s_ref[...] += jnp.sum(acc, axis=0, keepdims=True)
    q_ref[...] += jnp.sum(acc * acc, axis=0, keepdims=True)
    y_ref[0] = acc.astype(y_ref.dtype)


def epilogue_kernel(y2_ref, x_ref, wres_ref, bres_ref, sc_ref, sh_ref, o_ref):
    """out = relu( relu(bn2(y2)) + conv1x1(x) )."""
    a2 = jnp.maximum(y2_ref[0].astype(jnp.float32) * sc_ref[...] + sh_ref[...], 0.0)
    res = jnp.dot(x_ref[0].astype(jnp.float32), wres_ref[...],
                  preferred_element_type=jnp.float32) + bres_ref[...]
    o_ref[0] = jnp.maximum(a2 + res, 0.0).astype(o_ref.dtype)


# ---------------------------------------------------------------------------
# ResDecoder forward (Pallas) and pure-JAX reference
# ---------------------------------------------------------------------------

def _bn_scale_shift(s, q, gamma, beta, count, H, W, C, eps=1e-5):
    """Fold per-lane (h,w,c) sums to per-channel BN scale/shift, tiled back to lane layout."""
    s_c = s.reshape(H * W, C).sum(axis=0)
    q_c = q.reshape(H * W, C).sum(axis=0)
    mean = s_c / count
    # NOTE: E[x^2]-E[x]^2 in f32; fine for these well-centered activations.
    var = q_c / count - mean * mean
    scale = gamma * lax.rsqrt(var + eps)
    shift = beta - mean * scale
    L = H * W * C
    return jnp.tile(scale, H * W).reshape(1, L), jnp.tile(shift, H * W).reshape(1, L)


def res_decoder_forward(x_ncdhw, p, eps=1e-5):
    N, C, D, H, W = x_ncdhw.shape
    L = H * W * C

    # NCDHW -> (N, D, H*W*C): channel on the (dense) lane axis, depth on sublanes.
    xf = jnp.transpose(x_ncdhw, (0, 2, 3, 4, 1)).reshape(N, D, L)

    wm1 = build_banded_conv_mats(p["w1"], H, W)                       # (3, L, L)
    wm2 = build_banded_conv_mats(p["w2"], H, W)                       # (3, L, L)
    wres = jnp.kron(jnp.eye(H * W, dtype=p["w1x1"].dtype), p["w1x1"])  # (L, L) block-diag 1x1 conv

    def tile_c(v):
        return jnp.tile(v, H * W).reshape(1, L)

    b1t, b2t, brt = tile_c(p["b1"]), tile_c(p["b2"]), tile_c(p["b1x1"])

    row_spec = pl.BlockSpec((1, D, L), lambda n: (n, 0, 0))
    vec_spec = pl.BlockSpec((1, L), lambda n: (0, 0))
    w3_spec = pl.BlockSpec((3, L, L), lambda n: (0, 0, 0))
    w1_spec = pl.BlockSpec((L, L), lambda n: (0, 0))
    f_rows = jax.ShapeDtypeStruct((N, D, L), jnp.float32)
    f_stats = jax.ShapeDtypeStruct((1, L), jnp.float32)

    # ---- stage 1: y1 = conv1(x) + BN1 batch sums (fused) --------------------
    y1, s1, q1 = pl.pallas_call(
        conv_stats_kernel,
        out_shape=(f_rows, f_stats, f_stats),
        grid=(N,),
        in_specs=[row_spec, w3_spec, vec_spec],
        out_specs=(row_spec, vec_spec, vec_spec),
        compiler_params=pltpu.CompilerParams(dimension_semantics=("arbitrary",)),
    )(xf, wm1, b1t)

    sc1, sh1 = _bn_scale_shift(s1, q1, p["g1"], p["be1"], N * D * H * W, H, W, C, eps)

    # ---- stage 2: y2 = conv2(relu(bn1(y1))) + BN2 batch sums (fused) --------
    y2, s2, q2 = pl.pallas_call(
        bnrelu_conv_stats_kernel,
        out_shape=(f_rows, f_stats, f_stats),
        grid=(N,),
        in_specs=[row_spec, w3_spec, vec_spec, vec_spec, vec_spec],
        out_specs=(row_spec, vec_spec, vec_spec),
        compiler_params=pltpu.CompilerParams(dimension_semantics=("arbitrary",)),
    )(y1, wm2, b2t, sc1, sh1)

    sc2, sh2 = _bn_scale_shift(s2, q2, p["g2"], p["be2"], N * D * H * W, H, W, C, eps)

    # ---- stage 3: out = relu(relu(bn2(y2)) + conv1x1(x)) (fused) ------------
    outf = pl.pallas_call(
        epilogue_kernel,
        out_shape=f_rows,
        grid=(N,),
        in_specs=[row_spec, row_spec, w1_spec, vec_spec, vec_spec, vec_spec],
        out_specs=row_spec,
        compiler_params=pltpu.CompilerParams(dimension_semantics=("parallel",)),
    )(y2, xf, wres, brt, sc2, sh2)

    out = outf.reshape(N, D, H, W, C)
    return jnp.transpose(out, (0, 4, 1, 2, 3))                        # -> NCDHW


def res_decoder_reference(x, p):
    """Pure-JAX reference in NCDHW, matching the PyTorch module (training-mode BN)."""
    def conv3(x, w_oi, b):
        y = lax.conv_general_dilated(x, w_oi, (1, 1, 1), [(1, 1)] * 3,
                                     dimension_numbers=("NCDHW", "OIDHW", "NCDHW"))
        return y + b[None, :, None, None, None]

    def conv1(x, w_oi, b):
        y = lax.conv_general_dilated(x, w_oi, (1, 1, 1), [(0, 0)] * 3,
                                     dimension_numbers=("NCDHW", "OIDHW", "NCDHW"))
        return y + b[None, :, None, None, None]

    def bn(x, g, b, eps=1e-5):
        mean = jnp.mean(x, axis=(0, 2, 3, 4), keepdims=True)
        var = jnp.mean((x - mean) ** 2, axis=(0, 2, 3, 4), keepdims=True)
        return (x - mean) / jnp.sqrt(var + eps) * g[None, :, None, None, None] \
               + b[None, :, None, None, None]

    residual = conv1(x, p["w1x1_oi"], p["b1x1"])
    out = jax.nn.relu(bn(conv3(x, p["w1_oi"], p["b1"]), p["g1"], p["be1"]))
    out = jax.nn.relu(bn(conv3(out, p["w2_oi"], p["b2"]), p["g2"], p["be2"]))
    return jax.nn.relu(out + residual)


def init_params(key, C):
    ks = jax.random.split(key, 10)
    w1_oi = jax.random.normal(ks[0], (C, C, 3, 3, 3), jnp.float32) * 0.1
    w2_oi = jax.random.normal(ks[1], (C, C, 3, 3, 3), jnp.float32) * 0.1
    w1x1_oi = jax.random.normal(ks[2], (C, C, 1, 1, 1), jnp.float32) * 0.1
    return {
        # PyTorch OIDHW layouts (for the reference)
        "w1_oi": w1_oi, "w2_oi": w2_oi, "w1x1_oi": w1x1_oi,
        # kernel layouts: (kd, kh, kw, Cin, Cout) and (Cin, Cout)
        "w1": jnp.transpose(w1_oi, (2, 3, 4, 1, 0)),
        "w2": jnp.transpose(w2_oi, (2, 3, 4, 1, 0)),
        "w1x1": w1x1_oi[:, :, 0, 0, 0].T,
        "b1": jax.random.normal(ks[3], (C,), jnp.float32) * 0.1,
        "b2": jax.random.normal(ks[4], (C,), jnp.float32) * 0.1,
        "b1x1": jax.random.normal(ks[5], (C,), jnp.float32) * 0.1,
        "g1": 1.0 + 0.1 * jax.random.normal(ks[6], (C,), jnp.float32),
        "be1": 0.1 * jax.random.normal(ks[7], (C,), jnp.float32),
        "g2": 1.0 + 0.1 * jax.random.normal(ks[8], (C,), jnp.float32),
        "be2": 0.1 * jax.random.normal(ks[9], (C,), jnp.float32),
    }


if __name__ == "__main__":
    N, C, D, H, W = 2, 8, 8, 8, 8
    key = jax.random.PRNGKey(0)
    kx, kp = jax.random.split(key)
    x = jax.random.normal(kx, (N, C, D, H, W), jnp.float32)
    params = init_params(kp, C)

    out = jax.block_until_ready(jax.jit(res_decoder_forward)(x, params))
    ref = jax.block_until_ready(res_decoder_reference(x, params))
    np.testing.assert_allclose(np.asarray(out), np.asarray(ref), rtol=5e-3, atol=5e-3)

    print("KERNEL_OK")
</pallas_src>

<mosaic_0001>
module attributes {stable_mosaic.version = 11 : i64} {
  func.func @conv_stats_kernel(%arg0: i32, %arg1: memref<1x8x512xf32, #tpu.memory_space<vmem>>, %arg2: memref<3x512x512xf32, #tpu.memory_space<vmem>>, %arg3: memref<1x512xf32, #tpu.memory_space<vmem>>, %arg4: memref<1x8x512xf32, #tpu.memory_space<vmem>>, %arg5: memref<1x512xf32, #tpu.memory_space<vmem>>, %arg6: memref<1x512xf32, #tpu.memory_space<vmem>>) attributes {dimension_semantics = [#tpu.dimension_semantics<arbitrary>], iteration_bounds = array<i64: 2>, scalar_prefetch = 0 : i64, scratch_operands = 0 : i64, tpu.core_type = #tpu.core_type<tc>, window_params = [{transform_indices = @transform_0, window_bounds = array<i64: 1, 8, 512>}, {pipeline_mode = #tpu.pipeline_mode<synchronous>, transform_indices = @transform_1, window_bounds = array<i64: 3, 512, 512>}, {pipeline_mode = #tpu.pipeline_mode<synchronous>, transform_indices = @transform_2, window_bounds = array<i64: 1, 512>}, {transform_indices = @transform_3, window_bounds = array<i64: 1, 8, 512>}, {pipeline_mode = #tpu.pipeline_mode<synchronous>, transform_indices = @transform_4, window_bounds = array<i64: 1, 512>}, {pipeline_mode = #tpu.pipeline_mode<synchronous>, transform_indices = @transform_5, window_bounds = array<i64: 1, 512>}]} {
    %c0_i32 = arith.constant 0 : i32
    %0 = arith.cmpi eq, %arg0, %c0_i32 : i32
    %1 = arith.extui %0 : i1 to i32
    %c0_i32_0 = arith.constant 0 : i32
    %2 = arith.cmpi ne, %1, %c0_i32_0 : i32
    scf.if %2 {
      %cst_30 = arith.constant 0.000000e+00 : f32
      %47 = vector.broadcast %cst_30 : f32 to vector<1x512xf32>
      %c0_31 = arith.constant 0 : index
      %c0_32 = arith.constant 0 : index
      %48 = vector.load %arg5[%c0_31, %c0_32] : memref<1x512xf32, #tpu.memory_space<vmem>>, vector<1x512xf32>
      tpu.vector_store %arg5[%c0_31, %c0_32], %47 {strides = array<i32>} : memref<1x512xf32, #tpu.memory_space<vmem>>, vector<1x512xf32>,
      %cst_33 = arith.constant 0.000000e+00 : f32
      %49 = vector.broadcast %cst_33 : f32 to vector<1x512xf32>
      %c0_34 = arith.constant 0 : index
      %c0_35 = arith.constant 0 : index
      %50 = vector.load %arg6[%c0_34, %c0_35] : memref<1x512xf32, #tpu.memory_space<vmem>>, vector<1x512xf32>
      tpu.vector_store %arg6[%c0_34, %c0_35], %49 {strides = array<i32>} : memref<1x512xf32, #tpu.memory_space<vmem>>, vector<1x512xf32>,
    } else {
    }
    %c0 = arith.constant 0 : index
    %c0_1 = arith.constant 0 : index
    %c0_2 = arith.constant 0 : index
    %3 = vector.load %arg1[%c0, %c0_1, %c0_2] : memref<1x8x512xf32, #tpu.memory_space<vmem>>, vector<1x8x512xf32>
    %4 = vector.shape_cast %3 : vector<1x8x512xf32> to vector<8x512xf32>
    %5 = tpu.iota {dimensions = array<i32: 0>} : vector<8x8xi32>
    %6 = tpu.iota {dimensions = array<i32: 1>} : vector<8x8xi32>
    %c1_i32 = arith.constant 1 : i32
    %7 = vector.broadcast %c1_i32 : i32 to vector<8x8xi32>
    %8 = arith.subi %5, %7 : vector<8x8xi32>
    %9 = arith.cmpi eq, %6, %8 : vector<8x8xi32>
    %10 = arith.extui %9 : vector<8x8xi1> to vector<8x8xi32>
    %11 = arith.sitofp %10 : vector<8x8xi32> to vector<8x8xf32>
    %c1_i32_3 = arith.constant 1 : i32
    %12 = vector.broadcast %c1_i32_3 : i32 to vector<8x8xi32>
    %13 = arith.addi %5, %12 : vector<8x8xi32>
    %14 = arith.cmpi eq, %6, %13 : vector<8x8xi32>
    %15 = arith.extui %14 : vector<8x8xi1> to vector<8x8xi32>
    %16 = arith.sitofp %15 : vector<8x8xi32> to vector<8x8xf32>
    %cst = arith.constant dense<0.000000e+00> : vector<8x512xf32>
    %17 = tpu.matmul %11, %4, %cst {dimension_numbers = #tpu.dot_dimension_numbers<[1], [0], [0], [1], [0, 0, 1, 1], [], []>} : vector<8x8xf32>, vector<8x512xf32>, vector<8x512xf32> -> vector<8x512xf32>
    %cst_4 = arith.constant dense<0.000000e+00> : vector<8x512xf32>
    %18 = tpu.matmul %16, %4, %cst_4 {dimension_numbers = #tpu.dot_dimension_numbers<[1], [0], [0], [1], [0, 0, 1, 1], [], []>} : vector<8x8xf32>, vector<8x512xf32>, vector<8x512xf32> -> vector<8x512xf32>
    %c0_5 = arith.constant 0 : index
    %c0_6 = arith.constant 0 : index
    %c0_7 = arith.constant 0 : index
    %19 = vector.load %arg2[%c0_5, %c0_6, %c0_7] : memref<3x512x512xf32, #tpu.memory_space<vmem>>, vector<1x512x512xf32>
    %20 = vector.shape_cast %19 : vector<1x512x512xf32> to vector<512x512xf32>
    %cst_8 = arith.constant dense<0.000000e+00> : vector<8x512xf32>
    %21 = tpu.matmul %17, %20, %cst_8 {dimension_numbers = #tpu.dot_dimension_numbers<[1], [0], [0], [1], [0, 0, 1, 1], [], []>} : vector<8x512xf32>, vector<512x512xf32>, vector<8x512xf32> -> vector<8x512xf32>
    %c1 = arith.constant 1 : index
    %c0_9 = arith.constant 0 : index
    %c0_10 = arith.constant 0 : index
    %22 = vector.load %arg2[%c1, %c0_9, %c0_10] : memref<3x512x512xf32, #tpu.memory_space<vmem>>, vector<1x512x512xf32>
    %23 = vector.shape_cast %22 : vector<1x512x512xf32> to vector<512x512xf32>
    %cst_11 = arith.constant dense<0.000000e+00> : vector<8x512xf32>
    %24 = tpu.matmul %4, %23, %cst_11 {dimension_numbers = #tpu.dot_dimension_numbers<[1], [0], [0], [1], [0, 0, 1, 1], [], []>} : vector<8x512xf32>, vector<512x512xf32>, vector<8x512xf32> -> vector<8x512xf32>
    %25 = arith.addf %21, %24 : vector<8x512xf32>
    %c2 = arith.constant 2 : index
    %c0_12 = arith.constant 0 : index
    %c0_13 = arith.constant 0 : index
    %26 = vector.load %arg2[%c2, %c0_12, %c0_13] : memref<3x512x512xf32, #tpu.memory_space<vmem>>, vector<1x512x512xf32>
    %27 = vector.shape_cast %26 : vector<1x512x512xf32> to vector<512x512xf32>
    %cst_14 = arith.constant dense<0.000000e+00> : vector<8x512xf32>
    %28 = tpu.matmul %18, %27, %cst_14 {dimension_numbers = #tpu.dot_dimension_numbers<[1], [0], [0], [1], [0, 0, 1, 1], [], []>} : vector<8x512xf32>, vector<512x512xf32>, vector<8x512xf32> -> vector<8x512xf32>
    %29 = arith.addf %25, %28 : vector<8x512xf32>
    %c0_15 = arith.constant 0 : index
    %c0_16 = arith.constant 0 : index
    %30 = vector.load %arg3[%c0_15, %c0_16] : memref<1x512xf32, #tpu.memory_space<vmem>>, vector<1x512xf32>
    %31 = vector.broadcast %30 : vector<1x512xf32> to vector<8x512xf32>
    %32 = arith.addf %29, %31 : vector<8x512xf32>
    %c0_17 = arith.constant 0 : index
    %c0_18 = arith.constant 0 : index
    %33 = vector.load %arg5[%c0_17, %c0_18] : memref<1x512xf32, #tpu.memory_space<vmem>>, vector<1x512xf32>
    %cst_19 = arith.constant dense<0.000000e+00> : vector<512xf32>
    %34 = vector.multi_reduction <add>, %32, %cst_19 [0] : vector<8x512xf32> to vector<512xf32>
    %35 = vector.shape_cast %34 : vector<512xf32> to vector<1x512xf32>
    %36 = arith.addf %33, %35 : vector<1x512xf32>
    %c0_20 = arith.constant 0 : index
    %c0_21 = arith.constant 0 : index
    %37 = vector.load %arg5[%c0_20, %c0_21] : memref<1x512xf32, #tpu.memory_space<vmem>>, vector<1x512xf32>
    tpu.vector_store %arg5[%c0_20, %c0_21], %36 {strides = array<i32>} : memref<1x512xf32, #tpu.memory_space<vmem>>, vector<1x512xf32>,
    %c0_22 = arith.constant 0 : index
    %c0_23 = arith.constant 0 : index
    %38 = vector.load %arg6[%c0_22, %c0_23] : memref<1x512xf32, #tpu.memory_space<vmem>>, vector<1x512xf32>
    %39 = arith.mulf %32, %32 : vector<8x512xf32>
    %cst_24 = arith.constant dense<0.000000e+00> : vector<512xf32>
    %40 = vector.multi_reduction <add>, %39, %cst_24 [0] : vector<8x512xf32> to vector<512xf32>
    %41 = vector.shape_cast %40 : vector<512xf32> to vector<1x512xf32>
    %42 = arith.addf %38, %41 : vector<1x512xf32>
    %c0_25 = arith.constant 0 : index
    %c0_26 = arith.constant 0 : index
    %43 = vector.load %arg6[%c0_25, %c0_26] : memref<1x512xf32, #tpu.memory_space<vmem>>, vector<1x512xf32>
    tpu.vector_store %arg6[%c0_25, %c0_26], %42 {strides = array<i32>} : memref<1x512xf32, #tpu.memory_space<vmem>>, vector<1x512xf32>,
    %c0_27 = arith.constant 0 : index
    %c0_28 = arith.constant 0 : index
    %c0_29 = arith.constant 0 : index
    %44 = vector.load %arg4[%c0_27, %c0_28, %c0_29] : memref<1x8x512xf32, #tpu.memory_space<vmem>>, vector<1x8x512xf32>
    %45 = vector.shape_cast %44 : vector<1x8x512xf32> to vector<8x512xf32>
    %46 = vector.shape_cast %32 : vector<8x512xf32> to vector<1x8x512xf32>
    tpu.vector_store %arg4[%c0_27, %c0_28, %c0_29], %46 {strides = array<i32>} : memref<1x8x512xf32, #tpu.memory_space<vmem>>, vector<1x8x512xf32>,
    return
  }
  func.func @transform_0(%arg0: i32) -> (i32, i32, i32) {
    %c0_i32 = arith.constant 0 : i32
    %c0_i32_0 = arith.constant 0 : i32
    %c0_i32_1 = arith.constant 0 : i32
    return %arg0, %c0_i32, %c0_i32_0 : i32, i32, i32
  }
  func.func @transform_1(%arg0: i32) -> (i32, i32, i32) {
    %c0_i32 = arith.constant 0 : i32
    %c0_i32_0 = arith.constant 0 : i32
    %c0_i32_1 = arith.constant 0 : i32
    %c0_i32_2 = arith.constant 0 : i32
    return %c0_i32, %c0_i32_0, %c0_i32_1 : i32, i32, i32
  }
  func.func @transform_2(%arg0: i32) -> (i32, i32) {
    %c0_i32 = arith.constant 0 : i32
    %c0_i32_0 = arith.constant 0 : i32
    %c0_i32_1 = arith.constant 0 : i32
    return %c0_i32, %c0_i32_0 : i32, i32
  }
  func.func @transform_3(%arg0: i32) -> (i32, i32, i32) {
    %c0_i32 = arith.constant 0 : i32
    %c0_i32_0 = arith.constant 0 : i32
    %c0_i32_1 = arith.constant 0 : i32
    return %arg0, %c0_i32, %c0_i32_0 : i32, i32, i32
  }
  func.func @transform_4(%arg0: i32) -> (i32, i32) {
    %c0_i32 = arith.constant 0 : i32
    %c0_i32_0 = arith.constant 0 : i32
    %c0_i32_1 = arith.constant 0 : i32
    return %c0_i32, %c0_i32_0 : i32, i32
  }
  func.func @transform_5(%arg0: i32) -> (i32, i32) {
    %c0_i32 = arith.constant 0 : i32
    %c0_i32_0 = arith.constant 0 : i32
    %c0_i32_1 = arith.constant 0 : i32
    return %c0_i32, %c0_i32_0 : i32, i32
  }
}

module attributes {stable_mosaic.version = 11 : i64} {
  func.func @bnrelu_conv_stats_kernel(%arg0: i32, %arg1: memref<1x8x512xf32, #tpu.memory_space<vmem>>, %arg2: memref<3x512x512xf32, #tpu.memory_space<vmem>>, %arg3: memref<1x512xf32, #tpu.memory_space<vmem>>, %arg4: memref<1x512xf32, #tpu.memory_space<vmem>>, %arg5: memref<1x512xf32, #tpu.memory_space<vmem>>, %arg6: memref<1x8x512xf32, #tpu.memory_space<vmem>>, %arg7: memref<1x512xf32, #tpu.memory_space<vmem>>, %arg8: memref<1x512xf32, #tpu.memory_space<vmem>>) attributes {dimension_semantics = [#tpu.dimension_semantics<arbitrary>], iteration_bounds = array<i64: 2>, scalar_prefetch = 0 : i64, scratch_operands = 0 : i64, tpu.core_type = #tpu.core_type<tc>, window_params = [{transform_indices = @transform_0, window_bounds = array<i64: 1, 8, 512>}, {pipeline_mode = #tpu.pipeline_mode<synchronous>, transform_indices = @transform_1, window_bounds = array<i64: 3, 512, 512>}, {pipeline_mode = #tpu.pipeline_mode<synchronous>, transform_indices = @transform_2, window_bounds = array<i64: 1, 512>}, {pipeline_mode = #tpu.pipeline_mode<synchronous>, transform_indices = @transform_3, window_bounds = array<i64: 1, 512>}, {pipeline_mode = #tpu.pipeline_mode<synchronous>, transform_indices = @transform_4, window_bounds = array<i64: 1, 512>}, {transform_indices = @transform_5, window_bounds = array<i64: 1, 8, 512>}, {pipeline_mode = #tpu.pipeline_mode<synchronous>, transform_indices = @transform_6, window_bounds = array<i64: 1, 512>}, {pipeline_mode = #tpu.pipeline_mode<synchronous>, transform_indices = @transform_7, window_bounds = array<i64: 1, 512>}]} {
    %c0_i32 = arith.constant 0 : i32
    %0 = arith.cmpi eq, %arg0, %c0_i32 : i32
    %1 = arith.extui %0 : i1 to i32
    %c0_i32_0 = arith.constant 0 : i32
    %2 = arith.cmpi ne, %1, %c0_i32_0 : i32
    scf.if %2 {
      %cst_35 = arith.constant 0.000000e+00 : f32
      %55 = vector.broadcast %cst_35 : f32 to vector<1x512xf32>
      %c0_36 = arith.constant 0 : index
      %c0_37 = arith.constant 0 : index
      %56 = vector.load %arg7[%c0_36, %c0_37] : memref<1x512xf32, #tpu.memory_space<vmem>>, vector<1x512xf32>
      tpu.vector_store %arg7[%c0_36, %c0_37], %55 {strides = array<i32>} : memref<1x512xf32, #tpu.memory_space<vmem>>, vector<1x512xf32>,
      %cst_38 = arith.constant 0.000000e+00 : f32
      %57 = vector.broadcast %cst_38 : f32 to vector<1x512xf32>
      %c0_39 = arith.constant 0 : index
      %c0_40 = arith.constant 0 : index
      %58 = vector.load %arg8[%c0_39, %c0_40] : memref<1x512xf32, #tpu.memory_space<vmem>>, vector<1x512xf32>
      tpu.vector_store %arg8[%c0_39, %c0_40], %57 {strides = array<i32>} : memref<1x512xf32, #tpu.memory_space<vmem>>, vector<1x512xf32>,
    } else {
    }
    %c0 = arith.constant 0 : index
    %c0_1 = arith.constant 0 : index
    %c0_2 = arith.constant 0 : index
    %3 = vector.load %arg1[%c0, %c0_1, %c0_2] : memref<1x8x512xf32, #tpu.memory_space<vmem>>, vector<1x8x512xf32>
    %4 = vector.shape_cast %3 : vector<1x8x512xf32> to vector<8x512xf32>
    %c0_3 = arith.constant 0 : index
    %c0_4 = arith.constant 0 : index
    %5 = vector.load %arg4[%c0_3, %c0_4] : memref<1x512xf32, #tpu.memory_space<vmem>>, vector<1x512xf32>
    %6 = vector.broadcast %5 : vector<1x512xf32> to vector<8x512xf32>
    %7 = arith.mulf %4, %6 : vector<8x512xf32>
    %c0_5 = arith.constant 0 : index
    %c0_6 = arith.constant 0 : index
    %8 = vector.load %arg5[%c0_5, %c0_6] : memref<1x512xf32, #tpu.memory_space<vmem>>, vector<1x512xf32>
    %9 = vector.broadcast %8 : vector<1x512xf32> to vector<8x512xf32>
    %10 = arith.addf %7, %9 : vector<8x512xf32>
    %cst = arith.constant 0.000000e+00 : f32
    %11 = vector.broadcast %cst : f32 to vector<8x512xf32>
    %12 = arith.maximumf %10, %11 : vector<8x512xf32>
    %13 = tpu.iota {dimensions = array<i32: 0>} : vector<8x8xi32>
    %14 = tpu.iota {dimensions = array<i32: 1>} : vector<8x8xi32>
    %c1_i32 = arith.constant 1 : i32
    %15 = vector.broadcast %c1_i32 : i32 to vector<8x8xi32>
    %16 = arith.subi %13, %15 : vector<8x8xi32>
    %17 = arith.cmpi eq, %14, %16 : vector<8x8xi32>
    %18 = arith.extui %17 : vector<8x8xi1> to vector<8x8xi32>
    %19 = arith.sitofp %18 : vector<8x8xi32> to vector<8x8xf32>
    %c1_i32_7 = arith.constant 1 : i32
    %20 = vector.broadcast %c1_i32_7 : i32 to vector<8x8xi32>
    %21 = arith.addi %13, %20 : vector<8x8xi32>
    %22 = arith.cmpi eq, %14, %21 : vector<8x8xi32>
    %23 = arith.extui %22 : vector<8x8xi1> to vector<8x8xi32>
    %24 = arith.sitofp %23 : vector<8x8xi32> to vector<8x8xf32>
    %cst_8 = arith.constant dense<0.000000e+00> : vector<8x512xf32>
    %25 = tpu.matmul %19, %12, %cst_8 {dimension_numbers = #tpu.dot_dimension_numbers<[1], [0], [0], [1], [0, 0, 1, 1], [], []>} : vector<8x8xf32>, vector<8x512xf32>, vector<8x512xf32> -> vector<8x512xf32>
    %cst_9 = arith.constant dense<0.000000e+00> : vector<8x512xf32>
    %26 = tpu.matmul %24, %12, %cst_9 {dimension_numbers = #tpu.dot_dimension_numbers<[1], [0], [0], [1], [0, 0, 1, 1], [], []>} : vector<8x8xf32>, vector<8x512xf32>, vector<8x512xf32> -> vector<8x512xf32>
    %c0_10 = arith.constant 0 : index
    %c0_11 = arith.constant 0 : index
    %c0_12 = arith.constant 0 : index
    %27 = vector.load %arg2[%c0_10, %c0_11, %c0_12] : memref<3x512x512xf32, #tpu.memory_space<vmem>>, vector<1x512x512xf32>
    %28 = vector.shape_cast %27 : vector<1x512x512xf32> to vector<512x512xf32>
    %cst_13 = arith.constant dense<0.000000e+00> : vector<8x512xf32>
    %29 = tpu.matmul %25, %28, %cst_13 {dimension_numbers = #tpu.dot_dimension_numbers<[1], [0], [0], [1], [0, 0, 1, 1], [], []>} : vector<8x512xf32>, vector<512x512xf32>, vector<8x512xf32> -> vector<8x512xf32>
    %c1 = arith.constant 1 : index
    %c0_14 = arith.constant 0 : index
    %c0_15 = arith.constant 0 : index
    %30 = vector.load %arg2[%c1, %c0_14, %c0_15] : memref<3x512x512xf32, #tpu.memory_space<vmem>>, vector<1x512x512xf32>
    %31 = vector.shape_cast %30 : vector<1x512x512xf32> to vector<512x512xf32>
    %cst_16 = arith.constant dense<0.000000e+00> : vector<8x512xf32>
    %32 = tpu.matmul %12, %31, %cst_16 {dimension_numbers = #tpu.dot_dimension_numbers<[1], [0], [0], [1], [0, 0, 1, 1], [], []>} : vector<8x512xf32>, vector<512x512xf32>, vector<8x512xf32> -> vector<8x512xf32>
    %33 = arith.addf %29, %32 : vector<8x512xf32>
    %c2 = arith.constant 2 : index
    %c0_17 = arith.constant 0 : index
    %c0_18 = arith.constant 0 : index
    %34 = vector.load %arg2[%c2, %c0_17, %c0_18] : memref<3x512x512xf32, #tpu.memory_space<vmem>>, vector<1x512x512xf32>
    %35 = vector.shape_cast %34 : vector<1x512x512xf32> to vector<512x512xf32>
    %cst_19 = arith.constant dense<0.000000e+00> : vector<8x512xf32>
    %36 = tpu.matmul %26, %35, %cst_19 {dimension_numbers = #tpu.dot_dimension_numbers<[1], [0], [0], [1], [0, 0, 1, 1], [], []>} : vector<8x512xf32>, vector<512x512xf32>, vector<8x512xf32> -> vector<8x512xf32>
    %37 = arith.addf %33, %36 : vector<8x512xf32>
    %c0_20 = arith.constant 0 : index
    %c0_21 = arith.constant 0 : index
    %38 = vector.load %arg3[%c0_20, %c0_21] : memref<1x512xf32, #tpu.memory_space<vmem>>, vector<1x512xf32>
    %39 = vector.broadcast %38 : vector<1x512xf32> to vector<8x512xf32>
    %40 = arith.addf %37, %39 : vector<8x512xf32>
    %c0_22 = arith.constant 0 : index
    %c0_23 = arith.constant 0 : index
    %41 = vector.load %arg7[%c0_22, %c0_23] : memref<1x512xf32, #tpu.memory_space<vmem>>, vector<1x512xf32>
    %cst_24 = arith.constant dense<0.000000e+00> : vector<512xf32>
    %42 = vector.multi_reduction <add>, %40, %cst_24 [0] : vector<8x512xf32> to vector<512xf32>
    %43 = vector.shape_cast %42 : vector<512xf32> to vector<1x512xf32>
    %44 = arith.addf %41, %43 : vector<1x512xf32>
    %c0_25 = arith.constant 0 : index
    %c0_26 = arith.constant 0 : index
    %45 = vector.load %arg7[%c0_25, %c0_26] : memref<1x512xf32, #tpu.memory_space<vmem>>, vector<1x512xf32>
    tpu.vector_store %arg7[%c0_25, %c0_26], %44 {strides = array<i32>} : memref<1x512xf32, #tpu.memory_space<vmem>>, vector<1x512xf32>,
    %c0_27 = arith.constant 0 : index
    %c0_28 = arith.constant 0 : index
    %46 = vector.load %arg8[%c0_27, %c0_28] : memref<1x512xf32, #tpu.memory_space<vmem>>, vector<1x512xf32>
    %47 = arith.mulf %40, %40 : vector<8x512xf32>
    %cst_29 = arith.constant dense<0.000000e+00> : vector<512xf32>
    %48 = vector.multi_reduction <add>, %47, %cst_29 [0] : vector<8x512xf32> to vector<512xf32>
    %49 = vector.shape_cast %48 : vector<512xf32> to vector<1x512xf32>
    %50 = arith.addf %46, %49 : vector<1x512xf32>
    %c0_30 = arith.constant 0 : index
    %c0_31 = arith.constant 0 : index
    %51 = vector.load %arg8[%c0_30, %c0_31] : memref<1x512xf32, #tpu.memory_space<vmem>>, vector<1x512xf32>
    tpu.vector_store %arg8[%c0_30, %c0_31], %50 {strides = array<i32>} : memref<1x512xf32, #tpu.memory_space<vmem>>, vector<1x512xf32>,
    %c0_32 = arith.constant 0 : index
    %c0_33 = arith.constant 0 : index
    %c0_34 = arith.constant 0 : index
    %52 = vector.load %arg6[%c0_32, %c0_33, %c0_34] : memref<1x8x512xf32, #tpu.memory_space<vmem>>, vector<1x8x512xf32>
    %53 = vector.shape_cast %52 : vector<1x8x512xf32> to vector<8x512xf32>
    %54 = vector.shape_cast %40 : vector<8x512xf32> to vector<1x8x512xf32>
    tpu.vector_store %arg6[%c0_32, %c0_33, %c0_34], %54 {strides = array<i32>} : memref<1x8x512xf32, #tpu.memory_space<vmem>>, vector<1x8x512xf32>,
    return
  }
  func.func @transform_0(%arg0: i32) -> (i32, i32, i32) {
    %c0_i32 = arith.constant 0 : i32
    %c0_i32_0 = arith.constant 0 : i32
    %c0_i32_1 = arith.constant 0 : i32
    return %arg0, %c0_i32, %c0_i32_0 : i32, i32, i32
  }
  func.func @transform_1(%arg0: i32) -> (i32, i32, i32) {
    %c0_i32 = arith.constant 0 : i32
    %c0_i32_0 = arith.constant 0 : i32
    %c0_i32_1 = arith.constant 0 : i32
    %c0_i32_2 = arith.constant 0 : i32
    return %c0_i32, %c0_i32_0, %c0_i32_1 : i32, i32, i32
  }
  func.func @transform_2(%arg0: i32) -> (i32, i32) {
    %c0_i32 = arith.constant 0 : i32
    %c0_i32_0 = arith.constant 0 : i32
    %c0_i32_1 = arith.constant 0 : i32
    return %c0_i32, %c0_i32_0 : i32, i32
  }
  func.func @transform_3(%arg0: i32) -> (i32, i32) {
    %c0_i32 = arith.constant 0 : i32
    %c0_i32_0 = arith.constant 0 : i32
    %c0_i32_1 = arith.constant 0 : i32
    return %c0_i32, %c0_i32_0 : i32, i32
  }
  func.func @transform_4(%arg0: i32) -> (i32, i32) {
    %c0_i32 = arith.constant 0 : i32
    %c0_i32_0 = arith.constant 0 : i32
    %c0_i32_1 = arith.constant 0 : i32
    return %c0_i32, %c0_i32_0 : i32, i32
  }
  func.func @transform_5(%arg0: i32) -> (i32, i32, i32) {
    %c0_i32 = arith.constant 0 : i32
    %c0_i32_0 = arith.constant 0 : i32
    %c0_i32_1 = arith.constant 0 : i32
    return %arg0, %c0_i32, %c0_i32_0 : i32, i32, i32
  }
  func.func @transform_6(%arg0: i32) -> (i32, i32) {
    %c0_i32 = arith.constant 0 : i32
    %c0_i32_0 = arith.constant 0 : i32
    %c0_i32_1 = arith.constant 0 : i32
    return %c0_i32, %c0_i32_0 : i32, i32
  }
  func.func @transform_7(%arg0: i32) -> (i32, i32) {
    %c0_i32 = arith.constant 0 : i32
    %c0_i32_0 = arith.constant 0 : i32
    %c0_i32_1 = arith.constant 0 : i32
    return %c0_i32, %c0_i32_0 : i32, i32
  }
}

module attributes {stable_mosaic.version = 11 : i64} {
  func.func @epilogue_kernel(%arg0: i32, %arg1: memref<1x8x512xf32, #tpu.memory_space<vmem>>, %arg2: memref<1x8x512xf32, #tpu.memory_space<vmem>>, %arg3: memref<512x512xf32, #tpu.memory_space<vmem>>, %arg4: memref<1x512xf32, #tpu.memory_space<vmem>>, %arg5: memref<1x512xf32, #tpu.memory_space<vmem>>, %arg6: memref<1x512xf32, #tpu.memory_space<vmem>>, %arg7: memref<1x8x512xf32, #tpu.memory_space<vmem>>) attributes {dimension_semantics = [#tpu.dimension_semantics<parallel>], iteration_bounds = array<i64: 2>, scalar_prefetch = 0 : i64, scratch_operands = 0 : i64, tpu.core_type = #tpu.core_type<tc>, window_params = [{transform_indices = @transform_0, window_bounds = array<i64: 1, 8, 512>}, {transform_indices = @transform_1, window_bounds = array<i64: 1, 8, 512>}, {pipeline_mode = #tpu.pipeline_mode<synchronous>, transform_indices = @transform_2, window_bounds = array<i64: 512, 512>}, {pipeline_mode = #tpu.pipeline_mode<synchronous>, transform_indices = @transform_3, window_bounds = array<i64: 1, 512>}, {pipeline_mode = #tpu.pipeline_mode<synchronous>, transform_indices = @transform_4, window_bounds = array<i64: 1, 512>}, {pipeline_mode = #tpu.pipeline_mode<synchronous>, transform_indices = @transform_5, window_bounds = array<i64: 1, 512>}, {transform_indices = @transform_6, window_bounds = array<i64: 1, 8, 512>}]} {
    %c0 = arith.constant 0 : index
    %c0_0 = arith.constant 0 : index
    %c0_1 = arith.constant 0 : index
    %0 = vector.load %arg1[%c0, %c0_0, %c0_1] : memref<1x8x512xf32, #tpu.memory_space<vmem>>, vector<1x8x512xf32>
    %1 = vector.shape_cast %0 : vector<1x8x512xf32> to vector<8x512xf32>
    %c0_2 = arith.constant 0 : index
    %c0_3 = arith.constant 0 : index
    %2 = vector.load %arg5[%c0_2, %c0_3] : memref<1x512xf32, #tpu.memory_space<vmem>>, vector<1x512xf32>
    %3 = vector.broadcast %2 : vector<1x512xf32> to vector<8x512xf32>
    %4 = arith.mulf %1, %3 : vector<8x512xf32>
    %c0_4 = arith.constant 0 : index
    %c0_5 = arith.constant 0 : index
    %5 = vector.load %arg6[%c0_4, %c0_5] : memref<1x512xf32, #tpu.memory_space<vmem>>, vector<1x512xf32>
    %6 = vector.broadcast %5 : vector<1x512xf32> to vector<8x512xf32>
    %7 = arith.addf %4, %6 : vector<8x512xf32>
    %cst = arith.constant 0.000000e+00 : f32
    %8 = vector.broadcast %cst : f32 to vector<8x512xf32>
    %9 = arith.maximumf %7, %8 : vector<8x512xf32>
    %c0_6 = arith.constant 0 : index
    %c0_7 = arith.constant 0 : index
    %c0_8 = arith.constant 0 : index
    %10 = vector.load %arg2[%c0_6, %c0_7, %c0_8] : memref<1x8x512xf32, #tpu.memory_space<vmem>>, vector<1x8x512xf32>
    %11 = vector.shape_cast %10 : vector<1x8x512xf32> to vector<8x512xf32>
    %c0_9 = arith.constant 0 : index
    %c0_10 = arith.constant 0 : index
    %12 = vector.load %arg3[%c0_9, %c0_10] : memref<512x512xf32, #tpu.memory_space<vmem>>, vector<512x512xf32>
    %cst_11 = arith.constant dense<0.000000e+00> : vector<8x512xf32>
    %13 = tpu.matmul %11, %12, %cst_11 {dimension_numbers = #tpu.dot_dimension_numbers<[1], [0], [0], [1], [0, 0, 1, 1], [], []>} : vector<8x512xf32>, vector<512x512xf32>, vector<8x512xf32> -> vector<8x512xf32>
    %c0_12 = arith.constant 0 : index
    %c0_13 = arith.constant 0 : index
    %14 = vector.load %arg4[%c0_12, %c0_13] : memref<1x512xf32, #tpu.memory_space<vmem>>, vector<1x512xf32>
    %15 = vector.broadcast %14 : vector<1x512xf32> to vector<8x512xf32>
    %16 = arith.addf %13, %15 : vector<8x512xf32>
    %17 = arith.addf %9, %16 : vector<8x512xf32>
    %cst_14 = arith.constant 0.000000e+00 : f32
    %18 = vector.broadcast %cst_14 : f32 to vector<8x512xf32>
    %19 = arith.maximumf %17, %18 : vector<8x512xf32>
    %c0_15 = arith.constant 0 : index
    %c0_16 = arith.constant 0 : index
    %c0_17 = arith.constant 0 : index
    %20 = vector.load %arg7[%c0_15, %c0_16, %c0_17] : memref<1x8x512xf32, #tpu.memory_space<vmem>>, vector<1x8x512xf32>
    %21 = vector.shape_cast %20 : vector<1x8x512xf32> to vector<8x512xf32>
    %22 = vector.shape_cast %19 : vector<8x512xf32> to vector<1x8x512xf32>
    tpu.vector_store %arg7[%c0_15, %c0_16, %c0_17], %22 {strides = array<i32>} : memref<1x8x512xf32, #tpu.memory_space<vmem>>, vector<1x8x512xf32>,
    return
  }
  func.func @transform_0(%arg0: i32) -> (i32, i32, i32) {
    %c0_i32 = arith.constant 0 : i32
    %c0_i32_0 = arith.constant 0 : i32
    %c0_i32_1 = arith.constant 0 : i32
    return %arg0, %c0_i32, %c0_i32_0 : i32, i32, i32
  }
  func.func @transform_1(%arg0: i32) -> (i32, i32, i32) {
    %c0_i32 = arith.constant 0 : i32
    %c0_i32_0 = arith.constant 0 : i32
    %c0_i32_1 = arith.constant 0 : i32
    return %arg0, %c0_i32, %c0_i32_0 : i32, i32, i32
  }
  func.func @transform_2(%arg0: i32) -> (i32, i32) {
    %c0_i32 = arith.constant 0 : i32
    %c0_i32_0 = arith.constant 0 : i32
    %c0_i32_1 = arith.constant 0 : i32
    return %c0_i32, %c0_i32_0 : i32, i32
  }
  func.func @transform_3(%arg0: i32) -> (i32, i32) {
    %c0_i32 = arith.constant 0 : i32
    %c0_i32_0 = arith.constant 0 : i32
    %c0_i32_1 = arith.constant 0 : i32
    return %c0_i32, %c0_i32_0 : i32, i32
  }
  func.func @transform_4(%arg0: i32) -> (i32, i32) {
    %c0_i32 = arith.constant 0 : i32
    %c0_i32_0 = arith.constant 0 : i32
    %c0_i32_1 = arith.constant 0 : i32
    return %c0_i32, %c0_i32_0 : i32, i32
  }
  func.func @transform_5(%arg0: i32) -> (i32, i32) {
    %c0_i32 = arith.constant 0 : i32
    %c0_i32_0 = arith.constant 0 : i32
    %c0_i32_1 = arith.constant 0 : i32
    return %c0_i32, %c0_i32_0 : i32, i32
  }
  func.func @transform_6(%arg0: i32) -> (i32, i32, i32) {
    %c0_i32 = arith.constant 0 : i32
    %c0_i32_0 = arith.constant 0 : i32
    %c0_i32_1 = arith.constant 0 : i32
    return %arg0, %c0_i32, %c0_i32_0 : i32, i32, i32
  }
}

</mosaic_0001>

<bundles_post_ra>
// kernel: tile.38
= control target key start
LH: loop header
LB: loop body
LE: loop exit
PB: predicated region body
PF: predicated region fallthrough
CT: control target
= control target key end

     0   :  { %s64_s0 = inlined_call_operand.vmem [shape: f32[8], index: 0, kind: input, shape index: {}]   ;;  %s65_s1 = inlined_call_operand.vmem [shape: f32[64,8], index: 1, kind: output, shape index: {}]  }
   0x1   :  { %v4_v0 = vld [vmem:[%s64_s0] ss:$0 sm:$0xff] }
   0x2   :  { %5 = vst [vmem:[%s65_s1] sm:$0xff] %v4_v0  ;;  %20 = vst [vmem:[%s65_s1 + $0x8] sm:$0xff] %v4_v0 }
   0x3   :  { %21 = vst [vmem:[%s65_s1 + $0x10] sm:$0xff] %v4_v0  ;;  %22 = vst [vmem:[%s65_s1 + $0x18] sm:$0xff] %v4_v0 }
   0x4   :  { %23 = vst [vmem:[%s65_s1 + $0x20] sm:$0xff] %v4_v0  ;;  %24 = vst [vmem:[%s65_s1 + $0x28] sm:$0xff] %v4_v0 }
   0x5   :  { %25 = vst [vmem:[%s65_s1 + $0x30] sm:$0xff] %v4_v0  ;;  %26 = vst [vmem:[%s65_s1 + $0x38] sm:$0xff] %v4_v0 }

// kernel: tile.39
= control target key start
LH: loop header
LB: loop body
LE: loop exit
PB: predicated region body
PF: predicated region fallthrough
CT: control target
= control target key end

     0   :  { %vm6_vm0 = vcmask 1043458   ;;  %s11_s6 = smov 3  ;;  %s14_s7 = smov 12  ;;  %vm8_vm1 = vcmask 64512   ;;  %vm20_vm2 = vcmask 1048512   ;;  %vm32_vm3 = vcmask 982912   ;;  %s417_s0 = inlined_call_operand.vmem [shape: f32[64,8], index: 0, kind: input, shape index: {}]   ;;  %s418_s1 = inlined_call_operand.vmem [shape: f32[1,512], index: 1, kind: output, shape index: {}]  }
   0x1   :  { %v220_v0 = vld [vmem:[%s417_s0 + $0xf] ss:$16 sm:%s11_s6]   ;;  %s35_s12 = smov 3  ;;  %s38_s15 = smov 12  ;;  %vm44_vm4 = vcmask 917312   ;;  %vm56_vm5 = vcmask 851712  }
   0x2   :  { %v221_v1 = vld [vmem:[%s417_s0 + $0xf] ss:$16 sm:%s14_s7]   ;;  %v224_v3 = vld [vmem:[%s417_s0 + $0xd] ss:$16 sm:%s35_s12]   ;;  %s268_s16 = smov 120   ;;  %s23_s19 = smov 3 }
   0x3   :  { %v17_v2 = vsel %vm6_vm0, %v221_v1, %v220_v0  ;;  %v225_v4 = vld [vmem:[%s417_s0 + $0xd] ss:$16 sm:%s38_s15]   ;;  %s26_s20 = smov 12  ;;  %v222_v6 = vld [vmem:[%s417_s0 + $0xe] ss:$16 sm:%s23_s19]   ;;  %s47_s25 = smov 3 }
   0x4   :  { %18 = vrot.lane.b32.xlu0 %v17_v2, %s268_s16  ;;  %v41_v5 = vsel %vm6_vm0, %v225_v4, %v224_v3  ;;  %v223_v7 = vld [vmem:[%s417_s0 + $0xe] ss:$16 sm:%s26_s20]   ;;  %s269_s26 = smov 104   ;;  %s50_s29 = smov 12  ;;  %vm68_vm6 = vcmask 786112   ;;  %vm80_vm7 = vcmask 720512  }
   0x5   :  { %42 = vrot.lane.b32.xlu1 %v41_v5, %s269_s26  ;;  %v29_v8 = vsel %vm6_vm0, %v223_v7, %v222_v6  ;;  %v226_v9 = vld [vmem:[%s417_s0 + $0xc] ss:$16 sm:%s47_s25]   ;;  %s59_s3 = smov 3  ;;  %s62_s4 = smov 12  ;;  %vm92_vm8 = vcmask 654912   ;;  %vm104_vm9 = vcmask 589312  }
   0x6   :  { %v227_v10 = vld [vmem:[%s417_s0 + $0xc] ss:$16 sm:%s50_s29]   ;;  %s270_s5 = smov 112   ;;  %v228_v12 = vld [vmem:[%s417_s0 + $0xb] ss:$16 sm:%s59_s3]   ;;  %s71_s8 = smov 3 }
   0x7   :  { %v53_v11 = vsel %vm6_vm0, %v227_v10, %v226_v9  ;;  %v229_v13 = vld [vmem:[%s417_s0 + $0xb] ss:$16 sm:%s62_s4]   ;;  %v230_v14 = vld [vmem:[%s417_s0 + $0xa] ss:$16 sm:%s71_s8]   ;;  %s74_s13 = smov 12  ;;  %s271_s14 = smov 96  }
   0x8   :  { %30 = vrot.lane.b32.xlu0 %v29_v8, %s270_s5  ;;  %v65_v15 = vsel %vm6_vm0, %v229_v13, %v228_v12  ;;  %v231_v16 = vld [vmem:[%s417_s0 + $0xa] ss:$16 sm:%s74_s13]   ;;  %s83_s17 = smov 3  ;;  %s86_s18 = smov 12  ;;  %vm116_vm10 = vcmask 523712   ;;  %vm128_vm11 = vcmask 458112  }
   0x9   :  { %54 = vrot.lane.b32.xlu1 %v53_v11, %s271_s14  ;;  %v77_v17 = vsel %vm6_vm0, %v231_v16, %v230_v14  ;;  %v232_v18 = vld [vmem:[%s417_s0 + $0x9] ss:$16 sm:%s83_s17]   ;;  %s95_s23 = smov 3  ;;  %s272_s24 = smov 88   ;;  %vm140_vm12 = vcmask 392512   ;;  %vm152_vm13 = vcmask 326912  }
   0xa   :  { %v233_v19 = vld [vmem:[%s417_s0 + $0x9] ss:$16 sm:%s86_s18]   ;;  %v234_v20 = vld [vmem:[%s417_s0 + $0x8] ss:$16 sm:%s95_s23]   ;;  %s98_s27 = smov 12  ;;  %s107_s30 = smov 3 }
   0xb   :  { %v89_v21 = vsel %vm6_vm0, %v233_v19, %v232_v18  ;;  %v235_v22 = vld [vmem:[%s417_s0 + $0x8] ss:$16 sm:%s98_s27]   ;;  %s110_s2 = smov 12  ;;  %s273_s3 = smov 80   ;;  %v236_v23 = vld [vmem:[%s417_s0 + $0x7] ss:$16 sm:%s107_s30]  }
   0xc   :  { %66 = vrot.lane.b32.xlu0 %v65_v15, %s272_s24  ;;  %s119_s6 = smov 3  ;;  %v101_v24 = vsel %vm6_vm0, %v235_v22, %v234_v20  ;;  %v237_v25 = vld [vmem:[%s417_s0 + $0x7] ss:$16 sm:%s110_s2]   ;;  %s122_s11 = smov 12  ;;  %vm164_vm14 = vcmask 261312   ;;  %vm176_vm15 = vcmask 195712  }
   0xd   :  { %78 = vrot.lane.b32.xlu1 %v77_v17, %s273_s3  ;;  %v238_v26 = vld [vmem:[%s417_s0 + $0x6] ss:$16 sm:%s119_s6]   ;;  %s274_s12 = smov 72   ;;  %s131_s15 = smov 3  ;;  %v113_v28 = vsel %vm6_vm0, %v237_v25, %v236_v23 }
   0xe   :  { %v239_v27 = vld [vmem:[%s417_s0 + $0x6] ss:$16 sm:%s122_s11]   ;;  %s134_s16 = smov 12  ;;  %v240_v29 = vld [vmem:[%s417_s0 + $0x5] ss:$16 sm:%s131_s15]   ;;  %s143_s19 = smov 3 }
   0xf   :  { %s275_s20 = smov 64   ;;  %v241_v30 = vld [vmem:[%s417_s0 + $0x5] ss:$16 sm:%s134_s16]   ;;  %s146_s23 = smov 12  ;;  %v125_v31 = vsel %vm6_vm0, %v239_v27, %v238_v26  ;;  %v242_v32 = vld [vmem:[%s417_s0 + $0x4] ss:$16 sm:%s143_s19]  }
  0x10   :  { %90 = vrot.lane.b32.xlu0 %v89_v21, %s274_s12  ;;  %s155_s26 = smov 3  ;;  %s158_s27 = smov 12  ;;  %v243_v33 = vld [vmem:[%s417_s0 + $0x4] ss:$16 sm:%s146_s23]   ;;  %v137_v34 = vsel %vm6_vm0, %v241_v30, %v240_v29 }
  0x11   :  { %102 = vrot.lane.b32.xlu1 %v101_v24, %s275_s20  ;;  %s276_s28 = smov 56   ;;  %s167_s2 = smov 3  ;;  %v244_v35 = vld [vmem:[%s417_s0 + $0x3] ss:$16 sm:%s155_s26]   ;;  %v149_v37 = vsel %vm6_vm0, %v243_v33, %v242_v32 }
  0x12   :  { %s170_s5 = smov 12  ;;  %s277_s6 = smov 48   ;;  %v245_v36 = vld [vmem:[%s417_s0 + $0x3] ss:$16 sm:%s158_s27]   ;;  %v246_v38 = vld [vmem:[%s417_s0 + $0x2] ss:$16 sm:%s167_s2]  }
  0x13   :  { %s179_s9 = smov 3  ;;  %v247_v39 = vld [vmem:[%s417_s0 + $0x2] ss:$16 sm:%s170_s5]   ;;  %s182_s14 = smov 12  ;;  %v161_v41 = vsel %vm6_vm0, %v245_v36, %v244_v35 }
  0x14   :  { %114 = vrot.lane.b32.xlu0 %v113_v28, %s276_s28  ;;  %s2_s15 = smov 3  ;;  %s278_s16 = smov 40   ;;  %v248_v42 = vld [vmem:[%s417_s0 + $0x1] ss:$16 sm:%s179_s9]   ;;  %v173_v46 = vsel %vm6_vm0, %v247_v39, %v246_v38 }
  0x15   :  { %126 = vrot.lane.b32.xlu1 %v125_v31, %s277_s6  ;;  %v3_v40 = vld [vmem:[%s417_s0] ss:$16 sm:%s2_s15]   ;;  %s4_s19 = smov 12  ;;  %s279_s24 = smov 32  }
  0x16   :  { %v5_v43 = vld [vmem:[%s417_s0] ss:$16 sm:%s4_s19]   ;;  %v249_v44 = vld [vmem:[%s417_s0 + $0x1] ss:$16 sm:%s182_s14]   ;;  %s280_s0 = smov 24   ;;  %s281_s27 = smov 16  }
  0x17   :  { %v7_v45 = vsel %vm6_vm0, %v5_v43, %v3_v40  ;;  %v185_v47 = vsel %vm6_vm0, %v249_v44, %v248_v42  ;;  %s282_s28 = smov 8   ;;  %vm188_vm0 = vcmask 130112  }
  0x18   :  { %138 = vrot.lane.b32.xlu0 %v137_v34, %s278_s16  ;;  %9 = vst.msk [vmem:[#allocation0] ss:$8 sm:$0xf] %vm8_vm1, %v7_v45  }
  0x19   :  { %150 = vrot.lane.b32.xlu1 %v149_v37, %s279_s24 }
  0x1c   :  { %162 = vrot.lane.b32.xlu0 %v161_v41, %s280_s0 }
  0x1d   :  { %174 = vrot.lane.b32.xlu1 %v173_v46, %s281_s27 }
  0x20   :  { %186 = vrot.lane.b32.xlu0 %v185_v47, %s282_s28 }
  0x76   :  { %v19_v48 = vpop.permute.xlu0 %18  }
  0x77   :  { %21 = vst.msk [vmem:[#allocation0] ss:$8 sm:$0xf] %vm20_vm2, %v19_v48   ;;  %v43_v49 = vpop.permute.xlu1 %42  }
  0x7a   :  { %v31_v50 = vpop.permute.xlu0 %30  }
  0x7b   :  { %33 = vst.msk [vmem:[#allocation0] ss:$8 sm:$0xf] %vm32_vm3, %v31_v50   ;;  %v55_v51 = vpop.permute.xlu1 %54  }
  0x7c   :  { %45 = vst.msk [vmem:[#allocation0] ss:$8 sm:$0xf] %vm44_vm4, %v43_v49  }
  0x7d   :  { %57 = vst.msk [vmem:[#allocation0] ss:$8 sm:$0xf] %vm56_vm5, %v55_v51  }
  0x7e   :  { %v67_v52 = vpop.permute.xlu0 %66  }
  0x7f   :  { %69 = vst.msk [vmem:[#allocation0] ss:$8 sm:$0xf] %vm68_vm6, %v67_v52   ;;  %v79_v53 = vpop.permute.xlu1 %78  }
  0x80   :  { %81 = vst.msk [vmem:[#allocation0] ss:$8 sm:$0xf] %vm80_vm7, %v79_v53  }
  0x82   :  { %v91_v54 = vpop.permute.xlu0 %90  }
  0x83   :  { %93 = vst.msk [vmem:[#allocation0] ss:$8 sm:$0xf] %vm92_vm8, %v91_v54   ;;  %v103_v55 = vpop.permute.xlu1 %102  }
  0x84   :  { %105 = vst.msk [vmem:[#allocation0] ss:$8 sm:$0xf] %vm104_vm9, %v103_v55  }
  0x86   :  { %v115_v56 = vpop.permute.xlu0 %114  }
  0x87   :  { %117 = vst.msk [vmem:[#allocation0] ss:$8 sm:$0xf] %vm116_vm10, %v115_v56   ;;  %v127_v57 = vpop.permute.xlu1 %126  }
  0x88   :  { %129 = vst.msk [vmem:[#allocation0] ss:$8 sm:$0xf] %vm128_vm11, %v127_v57  }
  0x8a   :  { %v139_v58 = vpop.permute.xlu0 %138  }
  0x8b   :  { %141 = vst.msk [vmem:[#allocation0] ss:$8 sm:$0xf] %vm140_vm12, %v139_v58   ;;  %v151_v59 = vpop.permute.xlu1 %150  }
  0x8c   :  { %153 = vst.msk [vmem:[#allocation0] ss:$8 sm:$0xf] %vm152_vm13, %v151_v59  }
  0x8e   :  { %v163_v60 = vpop.permute.xlu0 %162  }
  0x8f   :  { %165 = vst.msk [vmem:[#allocation0] ss:$8 sm:$0xf] %vm164_vm14, %v163_v60   ;;  %v175_v61 = vpop.permute.xlu1 %174  }
  0x90   :  { %177 = vst.msk [vmem:[#allocation0] ss:$8 sm:$0xf] %vm176_vm15, %v175_v61  }
  0x92   :  { %v187_v62 = vpop.permute.xlu0 %186  }
  0x93   :  { %189 = vst.msk [vmem:[#allocation0] ss:$8 sm:$0xf] %vm188_vm0, %v187_v62  }
  0x9a   :  { %v194_v63 = vld [vmem:[#allocation0] sm:$0x1]  ;;  %v199_v0 = vld [vmem:[#allocation0 + $0x8] sm:$0x1]  ;;  %v205_v1 = vld [vmem:[#allocation0 + $0x10] sm:$0x1] }
  0x9b   :  { %197 = vst [vmem:[%s418_s1] sm:$0x1] %v194_v63  ;;  %250 = vst [vmem:[%s418_s1 + $0x1] sm:$0x1] %v199_v0  ;;  %v212_v2 = vld [vmem:[#allocation0 + $0x18] sm:$0x1] }
  0x9c   :  { %251 = vst [vmem:[%s418_s1 + $0x2] sm:$0x1] %v205_v1  ;;  %252 = vst [vmem:[%s418_s1 + $0x3] sm:$0x1] %v212_v2 }

// kernel: res_decoder_forward.3
= control target key start
LH: loop header
LB: loop body
LE: loop exit
PB: predicated region body
PF: predicated region fallthrough
CT: control target
= control target key end

     0   :  { %s2969_s18 = smov 0   ;;  %s5411_s0 = inlined_call_operand.vmem [shape: f32[2,8,512], index: 0, kind: input, shape index: {}]   ;;  %s5412_s1 = inlined_call_operand.vmem [shape: f32[3,512,512], index: 1, kind: input, shape index: {}]   ;;  %s5413_s2 = inlined_call_operand.vmem [shape: f32[1,512], index: 2, kind: input, shape index: {}]   ;;  %s5414_s3 = inlined_call_operand.vmem [shape: f32[2,8,512], index: 3, kind: output, shape index: {0}]   ;;  %s5415_s4 = inlined_call_operand.vmem [shape: f32[1,512], index: 4, kind: output, shape index: {1}]   ;;  %s5416_s5 = inlined_call_operand.vmem [shape: f32[1,512], index: 5, kind: output, shape index: {2}]  }
   0x1 LB: > { %s2380_s19 = sadd.s32 4294967295, %s2934_s18   ;;  %p2384_p0 = scmp.ge.s32.totalorder %s2934_s18, 1  ;;  %s2934_s18 = sphi %s2969_s18, %s16_s18  }
   0x2   : > { %p182_p1 = scmp.lt.s32.totalorder %s2934_s18, 3 }
   0x4   : > { %p183_p2 = pnand %p2384_p0, %p182_p1 }
   0x5   : > { %p210_p3 = scmp.lt.s32.totalorder (!%p183_p2), %s2380_s19, 1  ;;  %p2389_p4 = scmp.ne.s32.totalorder (!%p183_p2), %s2380_s19, 0 }
   0x6   : > { %186 = sbr.rel (%p183_p2) target bundleno = 654 (0x28e), region = 32 }
   0xb   : > { %s211_s20 = scalar_select %p210_p3, %s2380_s19, 1 }
   0xc   : > { %223 = sbr.rel (%p2389_p4) target bundleno = 21 (0x15), region = 36 }
   0xd   : > { %s2911_s21 = sshll.u32 %s211_s20, 5 }
   0xe   : > { %s2980_s24 = scalar_lea.vmem %s5411_s0, %s2911_s21  ;;  %s2985_s27 = scalar_lea.vmem %s5414_s3, %s2911_s21 }
  0x11   : > { %v224_v0 = vlaneseq  ;;  %v2936_v1 = vmov 0.0  }
  0x13   : > { %vm226_vm0 = vcmp.lt.s32.totalorder %v224_v0, 512 }
  0x14   : > { %228 = vst.msk [vmem:[%s5415_s4] sm:$0xf] %vm226_vm0, %v2936_v1  ;;  %229 = vst.msk [vmem:[%s5416_s5] sm:$0xf] %vm226_vm0, %v2936_v1 }
  0x15 PF: > { %v2994_v2 = vld [vmem:[%s2980_s24 + $0x8] sm:$0xff]  ;;  %v2997_v3 = vld [vmem:[%s2980_s24 + $0x18] sm:$0xff]  ;;  %v3000_v4 = vld [vmem:[%s2980_s24] sm:$0xff]  ;;  %v234_v5 = vlaneseq  ;;  %v2937_v9 = vmov 0.0   ;;  %vm246_vm1 = vcmask 64512  }
  0x16   : > { %280 = vmatprep.subr.mxu0 %v2994_v2  ;;  %351 = vmatprep.subr.mxu1 %v2997_v3  ;;  %v3005_v6 = vld [vmem:[%s2980_s24 + $0x10] sm:$0xff]  ;;  %v2458_v13 = vld [vmem:[%s5412_s1 + $0x9e8] sm:$0xff]  ;;  %v2457_v16 = vld [vmem:[%s5412_s1 + $0x9e0] sm:$0xff] }
  0x17   : > { %281 = vmatpush1.msra.mxu0 %v3000_v4  ;;  %352 = vmatpush1.msra.mxu1 %v3005_v6  ;;  %v3010_v7 = vshrl.u32 %v234_v5, 7  ;;  %v237_v8 = vand.u32 127, %v234_v5  ;;  %v2586_v14 = vld [vmem:[%s5412_s1 + $0xde8] sm:$0xff]  ;;  %v2585_v17 = vld [vmem:[%s5412_s1 + $0xde0] sm:$0xff]  ;;  %vm2246_vm4 = vcmp.lt.s32.totalorder %v234_v5, 512 }
  0x18   : > { %314 = vmatprep.mubr.f32.mxu0 %v2937_v9  ;;  %385 = vmatprep.mubr.f32.mxu1 %v2937_v9  ;;  %v2454_v18 = vld [vmem:[%s5412_s1 + $0x9c8] sm:$0xff]  ;;  %v2453_v20 = vld [vmem:[%s5412_s1 + $0x9c0] sm:$0xff] }
  0x19   : > { %425 = vmatprep.subr.mxu0 %v2994_v2  ;;  %496 = vmatprep.subr.mxu1 %v2997_v3  ;;  %v2390_v10 = vadd.s32 4294967295, %v3010_v7  ;;  %v242_v11 = vadd.s32 1, %v3010_v7  ;;  %v2582_v19 = vld [vmem:[%s5412_s1 + $0xdc8] sm:$0xff]  ;;  %v2581_v21 = vld [vmem:[%s5412_s1 + $0xdc0] sm:$0xff] }
  0x1a   : > { %v2450_v22 = vld [vmem:[%s5412_s1 + $0x9a8] sm:$0xff]  ;;  %v2449_v24 = vld [vmem:[%s5412_s1 + $0x9a0] sm:$0xff] }
  0x1b   : > { %vm239_vm2 = vcmp.eq.s32.totalorder %v237_v8, %v2390_v10  ;;  %vm243_vm3 = vcmp.eq.s32.totalorder %v237_v8, %v242_v11  ;;  %v2578_v23 = vld [vmem:[%s5412_s1 + $0xda8] sm:$0xff]  ;;  %v2577_v25 = vld [vmem:[%s5412_s1 + $0xda0] sm:$0xff] }
  0x1c   : > { %v2391_v12 = vsel %vm239_vm2, 1.0, %v2937_v9  ;;  %v2392_v15 = vsel %vm243_vm3, 1.0, %v2937_v9  ;;  %v2446_v26 = vld [vmem:[%s5412_s1 + $0x988] sm:$0xff]  ;;  %v2445_v28 = vld [vmem:[%s5412_s1 + $0x980] sm:$0xff] }
  0x1d   : > { %2393 = vmatmul.mubr.msk.f32.vlgmr.msra.gmra.mxu0 %vm246_vm1, %v2391_v12  ;;  %2394 = vmatmul.mubr.msk.f32.vlgmr.msra.gmra.mxu1 %vm246_vm1, %v2391_v12  ;;  %v2574_v27 = vld [vmem:[%s5412_s1 + $0xd88] sm:$0xff]  ;;  %v2573_v29 = vld [vmem:[%s5412_s1 + $0xd80] sm:$0xff] }
  0x1e   : > { %426 = vmatpush1.msra.mxu0 %v3000_v4  ;;  %497 = vmatpush1.msra.mxu1 %v3005_v6  ;;  %v2442_v30 = vld [vmem:[%s5412_s1 + $0x968] sm:$0xff]  ;;  %v2441_v32 = vld [vmem:[%s5412_s1 + $0x960] sm:$0xff] }
  0x1f   : > { %459 = vmatprep.mubr.f32.mxu0 %v2937_v9  ;;  %530 = vmatprep.mubr.f32.mxu1 %v2937_v9  ;;  %v2570_v31 = vld [vmem:[%s5412_s1 + $0xd68] sm:$0xff]  ;;  %v2569_v33 = vld [vmem:[%s5412_s1 + $0xd60] sm:$0xff] }
  0x20   : > { %1050 = vmatprep.subr.mxu0 %v2458_v13  ;;  %1121 = vmatprep.subr.mxu1 %v2586_v14  ;;  %v2438_v34 = vld [vmem:[%s5412_s1 + $0x948] sm:$0xff]  ;;  %v2437_v36 = vld [vmem:[%s5412_s1 + $0x940] sm:$0xff] }
  0x21   : > { %2395 = vmatmul.mubr.msk.f32.vlgmr.msra.gmra.mxu0 %vm246_vm1, %v2392_v15  ;;  %2396 = vmatmul.mubr.msk.f32.vlgmr.msra.gmra.mxu1 %vm246_vm1, %v2392_v15  ;;  %v2566_v35 = vld [vmem:[%s5412_s1 + $0xd48] sm:$0xff]  ;;  %v2565_v37 = vld [vmem:[%s5412_s1 + $0xd40] sm:$0xff] }
  0x22   : > { %1051 = vmatpush1.msra.mxu0 %v2457_v16  ;;  %1122 = vmatpush1.msra.mxu1 %v2585_v17  ;;  %v2434_v38 = vld [vmem:[%s5412_s1 + $0x928] sm:$0xff]  ;;  %v2433_v40 = vld [vmem:[%s5412_s1 + $0x920] sm:$0xff] }
  0x23   : > { %1052 = vmatprep.subr.mxu0 %v2454_v18  ;;  %1123 = vmatprep.subr.mxu1 %v2582_v19  ;;  %v2562_v39 = vld [vmem:[%s5412_s1 + $0xd28] sm:$0xff]  ;;  %v2561_v41 = vld [vmem:[%s5412_s1 + $0xd20] sm:$0xff] }
  0x24   : > { %1053 = vmatpush1.msra.mxu0 %v2453_v20  ;;  %1124 = vmatpush1.msra.mxu1 %v2581_v21  ;;  %v2430_v42 = vld [vmem:[%s5412_s1 + $0x908] sm:$0xff]  ;;  %v2429_v44 = vld [vmem:[%s5412_s1 + $0x900] sm:$0xff] }
  0x25   : > { %1054 = vmatprep.subr.mxu0 %v2450_v22  ;;  %1125 = vmatprep.subr.mxu1 %v2578_v23  ;;  %v2558_v43 = vld [vmem:[%s5412_s1 + $0xd08] sm:$0xff]  ;;  %v2557_v45 = vld [vmem:[%s5412_s1 + $0xd00] sm:$0xff] }
  0x26   : > { %1055 = vmatpush1.msra.mxu0 %v2449_v24  ;;  %1126 = vmatpush1.msra.mxu1 %v2577_v25  ;;  %v2426_v46 = vld [vmem:[%s5412_s1 + $0x8e8] sm:$0xff]  ;;  %v2425_v48 = vld [vmem:[%s5412_s1 + $0x8e0] sm:$0xff] }
  0x27   : > { %1056 = vmatprep.subr.mxu0 %v2446_v26  ;;  %1127 = vmatprep.subr.mxu1 %v2574_v27  ;;  %v2554_v47 = vld [vmem:[%s5412_s1 + $0xce8] sm:$0xff]  ;;  %v2553_v49 = vld [vmem:[%s5412_s1 + $0xce0] sm:$0xff] }
  0x28   : > { %1057 = vmatpush1.msra.mxu0 %v2445_v28  ;;  %1128 = vmatpush1.msra.mxu1 %v2573_v29  ;;  %v2422_v50 = vld [vmem:[%s5412_s1 + $0x8c8] sm:$0xff]  ;;  %v2421_v52 = vld [vmem:[%s5412_s1 + $0x8c0] sm:$0xff] }
  0x29   : > { %1058 = vmatprep.subr.mxu0 %v2442_v30  ;;  %1129 = vmatprep.subr.mxu1 %v2570_v31  ;;  %v2550_v51 = vld [vmem:[%s5412_s1 + $0xcc8] sm:$0xff]  ;;  %v2549_v53 = vld [vmem:[%s5412_s1 + $0xcc0] sm:$0xff] }
  0x2a   : > { %1059 = vmatpush1.msra.mxu0 %v2441_v32  ;;  %1130 = vmatpush1.msra.mxu1 %v2569_v33  ;;  %v2418_v54 = vld [vmem:[%s5412_s1 + $0x8a8] sm:$0xff]  ;;  %v2417_v56 = vld [vmem:[%s5412_s1 + $0x8a0] sm:$0xff] }
  0x2b   : > { %1060 = vmatprep.subr.mxu0 %v2438_v34  ;;  %1131 = vmatprep.subr.mxu1 %v2566_v35  ;;  %v2546_v55 = vld [vmem:[%s5412_s1 + $0xca8] sm:$0xff]  ;;  %v2545_v57 = vld [vmem:[%s5412_s1 + $0xca0] sm:$0xff] }
  0x2c   : > { %1061 = vmatpush1.msra.mxu0 %v2437_v36  ;;  %1132 = vmatpush1.msra.mxu1 %v2565_v37  ;;  %v2414_v58 = vld [vmem:[%s5412_s1 + $0x888] sm:$0xff]  ;;  %v2413_v60 = vld [vmem:[%s5412_s1 + $0x880] sm:$0xff] }
  0x2d   : > { %1062 = vmatprep.subr.mxu0 %v2434_v38  ;;  %1133 = vmatprep.subr.mxu1 %v2562_v39  ;;  %v2542_v59 = vld [vmem:[%s5412_s1 + $0xc88] sm:$0xff]  ;;  %v2541_v61 = vld [vmem:[%s5412_s1 + $0xc80] sm:$0xff] }
  0x2e   : > { %1063 = vmatpush1.msra.mxu0 %v2433_v40  ;;  %1134 = vmatpush1.msra.mxu1 %v2561_v41  ;;  %v2410_v62 = vld [vmem:[%s5412_s1 + $0x868] sm:$0xff]  ;;  %v2409_v0 = vld [vmem:[%s5412_s1 + $0x860] sm:$0xff] }
  0x2f   : > { %1064 = vmatprep.subr.mxu0 %v2430_v42  ;;  %1135 = vmatprep.subr.mxu1 %v2558_v43  ;;  %v2538_v63 = vld [vmem:[%s5412_s1 + $0xc68] sm:$0xff]  ;;  %v2537_v1 = vld [vmem:[%s5412_s1 + $0xc60] sm:$0xff] }
  0x30   : > { %1065 = vmatpush1.msra.mxu0 %v2429_v44  ;;  %1136 = vmatpush1.msra.mxu1 %v2557_v45  ;;  %v2406_v8 = vld [vmem:[%s5412_s1 + $0x848] sm:$0xff]  ;;  %v2405_v10 = vld [vmem:[%s5412_s1 + $0x840] sm:$0xff] }
  0x31   : > { %1066 = vmatprep.subr.mxu0 %v2426_v46  ;;  %1137 = vmatprep.subr.mxu1 %v2554_v47  ;;  %v2534_v9 = vld [vmem:[%s5412_s1 + $0xc48] sm:$0xff]  ;;  %v2533_v11 = vld [vmem:[%s5412_s1 + $0xc40] sm:$0xff] }
  0x32   : > { %1067 = vmatpush1.msra.mxu0 %v2425_v48  ;;  %1138 = vmatpush1.msra.mxu1 %v2553_v49  ;;  %v2402_v12 = vld [vmem:[%s5412_s1 + $0x828] sm:$0xff]  ;;  %v2401_v14 = vld [vmem:[%s5412_s1 + $0x820] sm:$0xff] }
  0x33   : > { %1068 = vmatprep.subr.mxu0 %v2422_v50  ;;  %1139 = vmatprep.subr.mxu1 %v2550_v51  ;;  %v2530_v13 = vld [vmem:[%s5412_s1 + $0xc28] sm:$0xff]  ;;  %v2529_v15 = vld [vmem:[%s5412_s1 + $0xc20] sm:$0xff] }
  0x34   : > { %1069 = vmatpush1.msra.mxu0 %v2421_v52  ;;  %1140 = vmatpush1.msra.mxu1 %v2549_v53  ;;  %v2398_v16 = vld [vmem:[%s5412_s1 + $0x808] sm:$0xff]  ;;  %v2397_v18 = vld [vmem:[%s5412_s1 + $0x800] sm:$0xff] }
  0x35   : > { %1070 = vmatprep.subr.mxu0 %v2418_v54  ;;  %1141 = vmatprep.subr.mxu1 %v2546_v55  ;;  %v2526_v17 = vld [vmem:[%s5412_s1 + $0xc08] sm:$0xff]  ;;  %v2525_v19 = vld [vmem:[%s5412_s1 + $0xc00] sm:$0xff] }
  0x36   : > { %1071 = vmatpush1.msra.mxu0 %v2417_v56  ;;  %1142 = vmatpush1.msra.mxu1 %v2545_v57  ;;  %v2522_v20 = vld [vmem:[%s5412_s1 + $0xbe8] sm:$0xff]  ;;  %v2521_v22 = vld [vmem:[%s5412_s1 + $0xbe0] sm:$0xff] }
  0x37   : > { %1072 = vmatprep.subr.mxu0 %v2414_v58  ;;  %1143 = vmatprep.subr.mxu1 %v2542_v59  ;;  %v2650_v21 = vld [vmem:[%s5412_s1 + $0xfe8] sm:$0xff]  ;;  %v2649_v23 = vld [vmem:[%s5412_s1 + $0xfe0] sm:$0xff] }
  0x38   : > { %1073 = vmatpush1.msra.mxu0 %v2413_v60  ;;  %1144 = vmatpush1.msra.mxu1 %v2541_v61  ;;  %v2518_v24 = vld [vmem:[%s5412_s1 + $0xbc8] sm:$0xff]  ;;  %v2517_v26 = vld [vmem:[%s5412_s1 + $0xbc0] sm:$0xff] }
  0x39   : > { %1074 = vmatprep.subr.mxu0 %v2410_v62  ;;  %1145 = vmatprep.subr.mxu1 %v2538_v63  ;;  %v2646_v25 = vld [vmem:[%s5412_s1 + $0xfc8] sm:$0xff]  ;;  %v2645_v27 = vld [vmem:[%s5412_s1 + $0xfc0] sm:$0xff] }
  0x3a   : > { %1075 = vmatpush1.msra.mxu0 %v2409_v0  ;;  %1146 = vmatpush1.msra.mxu1 %v2537_v1  ;;  %v2514_v28 = vld [vmem:[%s5412_s1 + $0xba8] sm:$0xff]  ;;  %v2513_v30 = vld [vmem:[%s5412_s1 + $0xba0] sm:$0xff] }
  0x3b   : > { %1076 = vmatprep.subr.mxu0 %v2406_v8  ;;  %1147 = vmatprep.subr.mxu1 %v2534_v9  ;;  %v2642_v29 = vld [vmem:[%s5412_s1 + $0xfa8] sm:$0xff]  ;;  %v2641_v31 = vld [vmem:[%s5412_s1 + $0xfa0] sm:$0xff] }
  0x3c   : > { %1077 = vmatpush1.msra.mxu0 %v2405_v10  ;;  %1148 = vmatpush1.msra.mxu1 %v2533_v11  ;;  %v2510_v32 = vld [vmem:[%s5412_s1 + $0xb88] sm:$0xff]  ;;  %v2509_v34 = vld [vmem:[%s5412_s1 + $0xb80] sm:$0xff] }
  0x3d   : > { %1078 = vmatprep.subr.mxu0 %v2402_v12  ;;  %1149 = vmatprep.subr.mxu1 %v2530_v13  ;;  %v2638_v33 = vld [vmem:[%s5412_s1 + $0xf88] sm:$0xff]  ;;  %v2637_v35 = vld [vmem:[%s5412_s1 + $0xf80] sm:$0xff] }
  0x3e   : > { %1079 = vmatpush1.msra.mxu0 %v2401_v14  ;;  %1150 = vmatpush1.msra.mxu1 %v2529_v15  ;;  %v2506_v36 = vld [vmem:[%s5412_s1 + $0xb68] sm:$0xff]  ;;  %v2505_v38 = vld [vmem:[%s5412_s1 + $0xb60] sm:$0xff] }
  0x3f   : > { %1080 = vmatprep.subr.mxu0 %v2398_v16  ;;  %1151 = vmatprep.subr.mxu1 %v2526_v17  ;;  %v2634_v37 = vld [vmem:[%s5412_s1 + $0xf68] sm:$0xff]  ;;  %v2633_v39 = vld [vmem:[%s5412_s1 + $0xf60] sm:$0xff] }
  0x40   : > { %1081 = vmatpush1.msra.mxu0 %v2397_v18  ;;  %1152 = vmatpush1.msra.mxu1 %v2525_v19  ;;  %v2502_v40 = vld [vmem:[%s5412_s1 + $0xb48] sm:$0xff]  ;;  %v2501_v42 = vld [vmem:[%s5412_s1 + $0xb40] sm:$0xff] }
  0x41   : > { %1082 = vmatprep.subr.mxu0 %v2522_v20  ;;  %1153 = vmatprep.subr.mxu1 %v2650_v21  ;;  %v2630_v41 = vld [vmem:[%s5412_s1 + $0xf48] sm:$0xff]  ;;  %v2629_v43 = vld [vmem:[%s5412_s1 + $0xf40] sm:$0xff] }
  0x42   : > { %1083 = vmatpush2.msra.mxu0 %v2521_v22  ;;  %1154 = vmatpush2.msra.mxu1 %v2649_v23  ;;  %v2498_v44 = vld [vmem:[%s5412_s1 + $0xb28] sm:$0xff]  ;;  %v2497_v46 = vld [vmem:[%s5412_s1 + $0xb20] sm:$0xff] }
  0x43   : > { %1084 = vmatprep.subr.mxu0 %v2518_v24  ;;  %1155 = vmatprep.subr.mxu1 %v2646_v25  ;;  %v2626_v45 = vld [vmem:[%s5412_s1 + $0xf28] sm:$0xff]  ;;  %v2625_v47 = vld [vmem:[%s5412_s1 + $0xf20] sm:$0xff] }
  0x44   : > { %1085 = vmatpush2.msra.mxu0 %v2517_v26  ;;  %1156 = vmatpush2.msra.mxu1 %v2645_v27  ;;  %v2494_v48 = vld [vmem:[%s5412_s1 + $0xb08] sm:$0xff]  ;;  %v2493_v50 = vld [vmem:[%s5412_s1 + $0xb00] sm:$0xff]  ;;  %v2460_v26 = vld [vmem:[%s5412_s1 + $0x9f8] sm:$0xff] }
  0x45   : > { %1086 = vmatprep.subr.mxu0 %v2514_v28  ;;  %1157 = vmatprep.subr.mxu1 %v2642_v29  ;;  %v2622_v49 = vld [vmem:[%s5412_s1 + $0xf08] sm:$0xff]  ;;  %v2621_v51 = vld [vmem:[%s5412_s1 + $0xf00] sm:$0xff]  ;;  %v2588_v27 = vld [vmem:[%s5412_s1 + $0xdf8] sm:$0xff] }
  0x46   : > { %1087 = vmatpush2.msra.mxu0 %v2513_v30  ;;  %1158 = vmatpush2.msra.mxu1 %v2641_v31  ;;  %v2490_v52 = vld [vmem:[%s5412_s1 + $0xae8] sm:$0xff]  ;;  %v2489_v54 = vld [vmem:[%s5412_s1 + $0xae0] sm:$0xff]  ;;  %v2459_v28 = vld [vmem:[%s5412_s1 + $0x9f0] sm:$0xff] }
  0x47   : > { %1088 = vmatprep.subr.mxu0 %v2510_v32  ;;  %1159 = vmatprep.subr.mxu1 %v2638_v33  ;;  %v2618_v53 = vld [vmem:[%s5412_s1 + $0xee8] sm:$0xff]  ;;  %v2617_v55 = vld [vmem:[%s5412_s1 + $0xee0] sm:$0xff]  ;;  %v2587_v29 = vld [vmem:[%s5412_s1 + $0xdf0] sm:$0xff] }
  0x48   : > { %1089 = vmatpush2.msra.mxu0 %v2509_v34  ;;  %1160 = vmatpush2.msra.mxu1 %v2637_v35  ;;  %v2486_v56 = vld [vmem:[%s5412_s1 + $0xac8] sm:$0xff]  ;;  %v2485_v58 = vld [vmem:[%s5412_s1 + $0xac0] sm:$0xff]  ;;  %v2455_v30 = vld [vmem:[%s5412_s1 + $0x9d0] sm:$0xff] }
  0x49   : > { %1090 = vmatprep.subr.mxu0 %v2506_v36  ;;  %1161 = vmatprep.subr.mxu1 %v2634_v37  ;;  %v2614_v57 = vld [vmem:[%s5412_s1 + $0xec8] sm:$0xff]  ;;  %v2613_v59 = vld [vmem:[%s5412_s1 + $0xec0] sm:$0xff]  ;;  %v2580_v31 = vld [vmem:[%s5412_s1 + $0xdb8] sm:$0xff] }
  0x4a   : > { %1091 = vmatpush2.msra.mxu0 %v2505_v38  ;;  %1162 = vmatpush2.msra.mxu1 %v2633_v39  ;;  %v2482_v60 = vld [vmem:[%s5412_s1 + $0xaa8] sm:$0xff]  ;;  %v2481_v62 = vld [vmem:[%s5412_s1 + $0xaa0] sm:$0xff]  ;;  %v2451_v32 = vld [vmem:[%s5412_s1 + $0x9b0] sm:$0xff] }
  0x4b   : > { %1092 = vmatprep.subr.mxu0 %v2502_v40  ;;  %1163 = vmatprep.subr.mxu1 %v2630_v41  ;;  %v2610_v61 = vld [vmem:[%s5412_s1 + $0xea8] sm:$0xff]  ;;  %v2609_v63 = vld [vmem:[%s5412_s1 + $0xea0] sm:$0xff]  ;;  %v2579_v33 = vld [vmem:[%s5412_s1 + $0xdb0] sm:$0xff] }
  0x4c   : > { %1093 = vmatpush2.msra.mxu0 %v2501_v42  ;;  %1164 = vmatpush2.msra.mxu1 %v2629_v43  ;;  %v2478_v0 = vld [vmem:[%s5412_s1 + $0xa88] sm:$0xff]  ;;  %v2477_v8 = vld [vmem:[%s5412_s1 + $0xa80] sm:$0xff]  ;;  %v2448_v34 = vld [vmem:[%s5412_s1 + $0x998] sm:$0xff] }
  0x4d   : > { %1094 = vmatprep.subr.mxu0 %v2498_v44  ;;  %1165 = vmatprep.subr.mxu1 %v2626_v45  ;;  %v2606_v1 = vld [vmem:[%s5412_s1 + $0xe88] sm:$0xff]  ;;  %v2605_v9 = vld [vmem:[%s5412_s1 + $0xe80] sm:$0xff]  ;;  %v2576_v35 = vld [vmem:[%s5412_s1 + $0xd98] sm:$0xff] }
  0x4e   : > { %1095 = vmatpush2.msra.mxu0 %v2497_v46  ;;  %1166 = vmatpush2.msra.mxu1 %v2625_v47  ;;  %v2474_v10 = vld [vmem:[%s5412_s1 + $0xa68] sm:$0xff]  ;;  %v2473_v12 = vld [vmem:[%s5412_s1 + $0xa60] sm:$0xff]  ;;  %v2447_v36 = vld [vmem:[%s5412_s1 + $0x990] sm:$0xff] }
  0x4f   : > { %1096 = vmatprep.subr.mxu0 %v2494_v48  ;;  %1167 = vmatprep.subr.mxu1 %v2622_v49  ;;  %v2602_v11 = vld [vmem:[%s5412_s1 + $0xe68] sm:$0xff]  ;;  %v2601_v13 = vld [vmem:[%s5412_s1 + $0xe60] sm:$0xff]  ;;  %v2575_v37 = vld [vmem:[%s5412_s1 + $0xd90] sm:$0xff] }
  0x50   : > { %1097 = vmatpush2.msra.mxu0 %v2493_v50  ;;  %1168 = vmatpush2.msra.mxu1 %v2621_v51  ;;  %v2470_v14 = vld [vmem:[%s5412_s1 + $0xa48] sm:$0xff]  ;;  %v2469_v16 = vld [vmem:[%s5412_s1 + $0xa40] sm:$0xff]  ;;  %v2444_v38 = vld [vmem:[%s5412_s1 + $0x978] sm:$0xff] }
  0x51   : > { %1098 = vmatprep.subr.mxu0 %v2490_v52  ;;  %1169 = vmatprep.subr.mxu1 %v2618_v53  ;;  %v2598_v15 = vld [vmem:[%s5412_s1 + $0xe48] sm:$0xff]  ;;  %v2597_v17 = vld [vmem:[%s5412_s1 + $0xe40] sm:$0xff]  ;;  %v2572_v39 = vld [vmem:[%s5412_s1 + $0xd78] sm:$0xff] }
  0x52   : > { %1099 = vmatpush2.msra.mxu0 %v2489_v54  ;;  %1170 = vmatpush2.msra.mxu1 %v2617_v55  ;;  %v2466_v18 = vld [vmem:[%s5412_s1 + $0xa28] sm:$0xff]  ;;  %v2465_v20 = vld [vmem:[%s5412_s1 + $0xa20] sm:$0xff]  ;;  %v2443_v40 = vld [vmem:[%s5412_s1 + $0x970] sm:$0xff] }
  0x53   : > { %1100 = vmatprep.subr.mxu0 %v2486_v56  ;;  %1171 = vmatprep.subr.mxu1 %v2614_v57  ;;  %v2594_v19 = vld [vmem:[%s5412_s1 + $0xe28] sm:$0xff]  ;;  %v2593_v21 = vld [vmem:[%s5412_s1 + $0xe20] sm:$0xff]  ;;  %v2571_v41 = vld [vmem:[%s5412_s1 + $0xd70] sm:$0xff] }
  0x54   : > { %1101 = vmatpush2.msra.mxu0 %v2485_v58  ;;  %1172 = vmatpush2.msra.mxu1 %v2613_v59  ;;  %v2462_v22 = vld [vmem:[%s5412_s1 + $0xa08] sm:$0xff]  ;;  %v2461_v24 = vld [vmem:[%s5412_s1 + $0xa00] sm:$0xff]  ;;  %v2440_v42 = vld [vmem:[%s5412_s1 + $0x958] sm:$0xff] }
  0x55   : > { %1102 = vmatprep.subr.mxu0 %v2482_v60  ;;  %1173 = vmatprep.subr.mxu1 %v2610_v61  ;;  %v2590_v23 = vld [vmem:[%s5412_s1 + $0xe08] sm:$0xff]  ;;  %v2589_v25 = vld [vmem:[%s5412_s1 + $0xe00] sm:$0xff]  ;;  %v2568_v43 = vld [vmem:[%s5412_s1 + $0xd58] sm:$0xff] }
  0x56   : > { %1103 = vmatpush2.msra.mxu0 %v2481_v62  ;;  %1174 = vmatpush2.msra.mxu1 %v2609_v63  ;;  %v2439_v44 = vld [vmem:[%s5412_s1 + $0x950] sm:$0xff]  ;;  %v2436_v46 = vld [vmem:[%s5412_s1 + $0x938] sm:$0xff] }
  0x57   : > { %1104 = vmatprep.subr.mxu0 %v2478_v0  ;;  %1175 = vmatprep.subr.mxu1 %v2606_v1  ;;  %v2567_v45 = vld [vmem:[%s5412_s1 + $0xd50] sm:$0xff]  ;;  %v2564_v47 = vld [vmem:[%s5412_s1 + $0xd38] sm:$0xff] }
  0x58   : > { %1105 = vmatpush2.msra.mxu0 %v2477_v8  ;;  %1176 = vmatpush2.msra.mxu1 %v2605_v9  ;;  %v2435_v48 = vld [vmem:[%s5412_s1 + $0x930] sm:$0xff]  ;;  %v2432_v50 = vld [vmem:[%s5412_s1 + $0x918] sm:$0xff] }
  0x59   : > { %1106 = vmatprep.subr.mxu0 %v2474_v10  ;;  %1177 = vmatprep.subr.mxu1 %v2602_v11  ;;  %v2563_v49 = vld [vmem:[%s5412_s1 + $0xd30] sm:$0xff]  ;;  %v2560_v51 = vld [vmem:[%s5412_s1 + $0xd18] sm:$0xff] }
  0x5a   : > { %1107 = vmatpush2.msra.mxu0 %v2473_v12  ;;  %1178 = vmatpush2.msra.mxu1 %v2601_v13  ;;  %v2431_v52 = vld [vmem:[%s5412_s1 + $0x910] sm:$0xff]  ;;  %v2428_v54 = vld [vmem:[%s5412_s1 + $0x8f8] sm:$0xff] }
  0x5b   : > { %1108 = vmatprep.subr.mxu0 %v2470_v14  ;;  %1179 = vmatprep.subr.mxu1 %v2598_v15  ;;  %v2559_v53 = vld [vmem:[%s5412_s1 + $0xd10] sm:$0xff]  ;;  %v2556_v55 = vld [vmem:[%s5412_s1 + $0xcf8] sm:$0xff] }
  0x5c   : > { %1109 = vmatpush2.msra.mxu0 %v2469_v16  ;;  %1180 = vmatpush2.msra.mxu1 %v2597_v17  ;;  %v2427_v56 = vld [vmem:[%s5412_s1 + $0x8f0] sm:$0xff]  ;;  %v2424_v58 = vld [vmem:[%s5412_s1 + $0x8d8] sm:$0xff] }
  0x5d   : > { %1110 = vmatprep.subr.mxu0 %v2466_v18  ;;  %1181 = vmatprep.subr.mxu1 %v2594_v19  ;;  %v2555_v57 = vld [vmem:[%s5412_s1 + $0xcf0] sm:$0xff]  ;;  %v2552_v59 = vld [vmem:[%s5412_s1 + $0xcd8] sm:$0xff] }
  0x5e   : > { %1111 = vmatpush2.msra.mxu0 %v2465_v20  ;;  %1182 = vmatpush2.msra.mxu1 %v2593_v21  ;;  %v2423_v60 = vld [vmem:[%s5412_s1 + $0x8d0] sm:$0xff]  ;;  %v2420_v62 = vld [vmem:[%s5412_s1 + $0x8b8] sm:$0xff] }
  0x5f   : > { %1112 = vmatprep.subr.mxu0 %v2462_v22  ;;  %1183 = vmatprep.subr.mxu1 %v2590_v23  ;;  %v2551_v61 = vld [vmem:[%s5412_s1 + $0xcd0] sm:$0xff]  ;;  %v2548_v63 = vld [vmem:[%s5412_s1 + $0xcb8] sm:$0xff] }
  0x60   : > { %1113 = vmatpush2.msra.mxu0 %v2461_v24  ;;  %1114 = vmatprep.mubr.f32.mxu0 %v2994_v2  ;;  %v2456_v2 = vld [vmem:[%s5412_s1 + $0x9d8] sm:$0xff]  ;;  %v2419_v0 = vld [vmem:[%s5412_s1 + $0x8b0] sm:$0xff] }
  0x61   : > { %1184 = vmatpush2.msra.mxu1 %v2589_v25  ;;  %1185 = vmatprep.mubr.f32.mxu1 %v2997_v3  ;;  %v2584_v3 = vld [vmem:[%s5412_s1 + $0xdd8] sm:$0xff]  ;;  %v2547_v1 = vld [vmem:[%s5412_s1 + $0xcb0] sm:$0xff] }
  0x62   : > { %1115 = vmatmul.mubr.f32.vlgmr.msra.gmra.mxu0 %v3000_v4  ;;  %1186 = vmatmul.mubr.f32.vlgmr.msra.gmra.mxu1 %v3005_v6  ;;  %v2583_v4 = vld [vmem:[%s5412_s1 + $0xdd0] sm:$0xff]  ;;  %v2452_v6 = vld [vmem:[%s5412_s1 + $0x9b8] sm:$0xff] }
  0x63   : > { %1192 = vmatprep.subr.mxu0 %v2460_v26  ;;  %1263 = vmatprep.subr.mxu1 %v2588_v27  ;;  %v2416_v8 = vld [vmem:[%s5412_s1 + $0x898] sm:$0xff]  ;;  %v2415_v10 = vld [vmem:[%s5412_s1 + $0x890] sm:$0xff] }
  0x64   : > { %1193 = vmatpush1.msra.mxu0 %v2459_v28  ;;  %1264 = vmatpush1.msra.mxu1 %v2587_v29  ;;  %v2544_v9 = vld [vmem:[%s5412_s1 + $0xc98] sm:$0xff]  ;;  %v2543_v11 = vld [vmem:[%s5412_s1 + $0xc90] sm:$0xff] }
  0x65   : > { %1194 = vmatprep.subr.mxu0 %v2456_v2  ;;  %1265 = vmatprep.subr.mxu1 %v2584_v3  ;;  %v2412_v12 = vld [vmem:[%s5412_s1 + $0x878] sm:$0xff]  ;;  %v2411_v14 = vld [vmem:[%s5412_s1 + $0x870] sm:$0xff] }
  0x66   : > { %1195 = vmatpush1.msra.mxu0 %v2455_v30  ;;  %1266 = vmatpush1.msra.mxu1 %v2583_v4  ;;  %v2540_v13 = vld [vmem:[%s5412_s1 + $0xc78] sm:$0xff]  ;;  %v2539_v15 = vld [vmem:[%s5412_s1 + $0xc70] sm:$0xff] }
  0x67   : > { %1196 = vmatprep.subr.mxu0 %v2452_v6  ;;  %1267 = vmatprep.subr.mxu1 %v2580_v31  ;;  %v2408_v16 = vld [vmem:[%s5412_s1 + $0x858] sm:$0xff]  ;;  %v2407_v18 = vld [vmem:[%s5412_s1 + $0x850] sm:$0xff] }
  0x68   : > { %1197 = vmatpush1.msra.mxu0 %v2451_v32  ;;  %1268 = vmatpush1.msra.mxu1 %v2579_v33  ;;  %v2536_v17 = vld [vmem:[%s5412_s1 + $0xc58] sm:$0xff]  ;;  %v2535_v19 = vld [vmem:[%s5412_s1 + $0xc50] sm:$0xff] }
  0x69   : > { %1198 = vmatprep.subr.mxu0 %v2448_v34  ;;  %1269 = vmatprep.subr.mxu1 %v2576_v35  ;;  %v2404_v20 = vld [vmem:[%s5412_s1 + $0x838] sm:$0xff]  ;;  %v2403_v22 = vld [vmem:[%s5412_s1 + $0x830] sm:$0xff] }
  0x6a   : > { %1199 = vmatpush1.msra.mxu0 %v2447_v36  ;;  %1270 = vmatpush1.msra.mxu1 %v2575_v37  ;;  %v2532_v21 = vld [vmem:[%s5412_s1 + $0xc38] sm:$0xff]  ;;  %v2531_v23 = vld [vmem:[%s5412_s1 + $0xc30] sm:$0xff] }
  0x6b   : > { %1200 = vmatprep.subr.mxu0 %v2444_v38  ;;  %1271 = vmatprep.subr.mxu1 %v2572_v39  ;;  %v2400_v24 = vld [vmem:[%s5412_s1 + $0x818] sm:$0xff]  ;;  %v2399_v26 = vld [vmem:[%s5412_s1 + $0x810] sm:$0xff] }
  0x6c   : > { %1201 = vmatpush1.msra.mxu0 %v2443_v40  ;;  %1272 = vmatpush1.msra.mxu1 %v2571_v41  ;;  %v2528_v25 = vld [vmem:[%s5412_s1 + $0xc18] sm:$0xff]  ;;  %v2527_v27 = vld [vmem:[%s5412_s1 + $0xc10] sm:$0xff] }
  0x6d   : > { %1202 = vmatprep.subr.mxu0 %v2440_v42  ;;  %1273 = vmatprep.subr.mxu1 %v2568_v43  ;;  %v2524_v28 = vld [vmem:[%s5412_s1 + $0xbf8] sm:$0xff]  ;;  %v2523_v2 = vld [vmem:[%s5412_s1 + $0xbf0] sm:$0xff] }
  0x6e   : > { %1203 = vmatpush1.msra.mxu0 %v2439_v44  ;;  %1274 = vmatpush1.msra.mxu1 %v2567_v45  ;;  %v2652_v29 = vld [vmem:[%s5412_s1 + $0xff8] sm:$0xff]  ;;  %v2651_v3 = vld [vmem:[%s5412_s1 + $0xff0] sm:$0xff] }
  0x6f   : > { %1204 = vmatprep.subr.mxu0 %v2436_v46  ;;  %1275 = vmatprep.subr.mxu1 %v2564_v47  ;;  %v2520_v30 = vld [vmem:[%s5412_s1 + $0xbd8] sm:$0xff]  ;;  %v2519_v6 = vld [vmem:[%s5412_s1 + $0xbd0] sm:$0xff] }
  0x70   : > { %1205 = vmatpush1.msra.mxu0 %v2435_v48  ;;  %1276 = vmatpush1.msra.mxu1 %v2563_v49  ;;  %v2648_v4 = vld [vmem:[%s5412_s1 + $0xfd8] sm:$0xff]  ;;  %v2647_v31 = vld [vmem:[%s5412_s1 + $0xfd0] sm:$0xff] }
  0x71   : > { %1206 = vmatprep.subr.mxu0 %v2432_v50  ;;  %1277 = vmatprep.subr.mxu1 %v2560_v51  ;;  %v2516_v32 = vld [vmem:[%s5412_s1 + $0xbb8] sm:$0xff]  ;;  %v2515_v34 = vld [vmem:[%s5412_s1 + $0xbb0] sm:$0xff] }
  0x72   : > { %1207 = vmatpush1.msra.mxu0 %v2431_v52  ;;  %1278 = vmatpush1.msra.mxu1 %v2559_v53  ;;  %v2644_v33 = vld [vmem:[%s5412_s1 + $0xfb8] sm:$0xff]  ;;  %v2643_v35 = vld [vmem:[%s5412_s1 + $0xfb0] sm:$0xff] }
  0x73   : > { %1208 = vmatprep.subr.mxu0 %v2428_v54  ;;  %1279 = vmatprep.subr.mxu1 %v2556_v55  ;;  %v2512_v36 = vld [vmem:[%s5412_s1 + $0xb98] sm:$0xff]  ;;  %v2511_v38 = vld [vmem:[%s5412_s1 + $0xb90] sm:$0xff] }
  0x74   : > { %1209 = vmatpush1.msra.mxu0 %v2427_v56  ;;  %1280 = vmatpush1.msra.mxu1 %v2555_v57  ;;  %v2640_v37 = vld [vmem:[%s5412_s1 + $0xf98] sm:$0xff]  ;;  %v2639_v39 = vld [vmem:[%s5412_s1 + $0xf90] sm:$0xff] }
  0x75   : > { %1210 = vmatprep.subr.mxu0 %v2424_v58  ;;  %1281 = vmatprep.subr.mxu1 %v2552_v59  ;;  %v2508_v40 = vld [vmem:[%s5412_s1 + $0xb78] sm:$0xff]  ;;  %v2507_v42 = vld [vmem:[%s5412_s1 + $0xb70] sm:$0xff] }
  0x76   : > { %1211 = vmatpush1.msra.mxu0 %v2423_v60  ;;  %1282 = vmatpush1.msra.mxu1 %v2551_v61  ;;  %v2636_v41 = vld [vmem:[%s5412_s1 + $0xf78] sm:$0xff]  ;;  %v2635_v43 = vld [vmem:[%s5412_s1 + $0xf70] sm:$0xff] }
  0x77   : > { %1212 = vmatprep.subr.mxu0 %v2420_v62  ;;  %1283 = vmatprep.subr.mxu1 %v2548_v63  ;;  %v2504_v44 = vld [vmem:[%s5412_s1 + $0xb58] sm:$0xff]  ;;  %v2503_v46 = vld [vmem:[%s5412_s1 + $0xb50] sm:$0xff] }
  0x78   : > { %1213 = vmatpush1.msra.mxu0 %v2419_v0  ;;  %1284 = vmatpush1.msra.mxu1 %v2547_v1  ;;  %v2632_v45 = vld [vmem:[%s5412_s1 + $0xf58] sm:$0xff]  ;;  %v2631_v47 = vld [vmem:[%s5412_s1 + $0xf50] sm:$0xff] }
  0x79   : > { %1214 = vmatprep.subr.mxu0 %v2416_v8  ;;  %1285 = vmatprep.subr.mxu1 %v2544_v9  ;;  %v2500_v48 = vld [vmem:[%s5412_s1 + $0xb38] sm:$0xff]  ;;  %v2499_v50 = vld [vmem:[%s5412_s1 + $0xb30] sm:$0xff] }
  0x7a   : > { %1215 = vmatpush1.msra.mxu0 %v2415_v10  ;;  %1286 = vmatpush1.msra.mxu1 %v2543_v11  ;;  %v2628_v49 = vld [vmem:[%s5412_s1 + $0xf38] sm:$0xff]  ;;  %v2627_v51 = vld [vmem:[%s5412_s1 + $0xf30] sm:$0xff] }
  0x7b   : > { %1216 = vmatprep.subr.mxu0 %v2412_v12  ;;  %1287 = vmatprep.subr.mxu1 %v2540_v13  ;;  %v2496_v52 = vld [vmem:[%s5412_s1 + $0xb18] sm:$0xff]  ;;  %v2495_v54 = vld [vmem:[%s5412_s1 + $0xb10] sm:$0xff] }
  0x7c   : > { %1217 = vmatpush1.msra.mxu0 %v2411_v14  ;;  %1288 = vmatpush1.msra.mxu1 %v2539_v15  ;;  %v2624_v53 = vld [vmem:[%s5412_s1 + $0xf18] sm:$0xff]  ;;  %v2623_v55 = vld [vmem:[%s5412_s1 + $0xf10] sm:$0xff] }
  0x7d   : > { %1218 = vmatprep.subr.mxu0 %v2408_v16  ;;  %1289 = vmatprep.subr.mxu1 %v2536_v17  ;;  %v2492_v56 = vld [vmem:[%s5412_s1 + $0xaf8] sm:$0xff]  ;;  %v2491_v58 = vld [vmem:[%s5412_s1 + $0xaf0] sm:$0xff] }
  0x7e   : > { %1219 = vmatpush1.msra.mxu0 %v2407_v18  ;;  %1290 = vmatpush1.msra.mxu1 %v2535_v19  ;;  %v2620_v57 = vld [vmem:[%s5412_s1 + $0xef8] sm:$0xff]  ;;  %v2619_v59 = vld [vmem:[%s5412_s1 + $0xef0] sm:$0xff] }
  0x7f   : > { %1220 = vmatprep.subr.mxu0 %v2404_v20  ;;  %1291 = vmatprep.subr.mxu1 %v2532_v21  ;;  %v2488_v60 = vld [vmem:[%s5412_s1 + $0xad8] sm:$0xff]  ;;  %v2487_v62 = vld [vmem:[%s5412_s1 + $0xad0] sm:$0xff] }
  0x80   : > { %1221 = vmatpush1.msra.mxu0 %v2403_v22  ;;  %1292 = vmatpush1.msra.mxu1 %v2531_v23  ;;  %v2616_v61 = vld [vmem:[%s5412_s1 + $0xed8] sm:$0xff]  ;;  %v2615_v63 = vld [vmem:[%s5412_s1 + $0xed0] sm:$0xff] }
  0x81   : > { %1222 = vmatprep.subr.mxu0 %v2400_v24  ;;  %1293 = vmatprep.subr.mxu1 %v2528_v25  ;;  %v2484_v0 = vld [vmem:[%s5412_s1 + $0xab8] sm:$0xff]  ;;  %v2483_v8 = vld [vmem:[%s5412_s1 + $0xab0] sm:$0xff] }
  0x82   : > { %1223 = vmatpush1.msra.mxu0 %v2399_v26  ;;  %1294 = vmatpush1.msra.mxu1 %v2527_v27  ;;  %v2612_v1 = vld [vmem:[%s5412_s1 + $0xeb8] sm:$0xff]  ;;  %v2611_v9 = vld [vmem:[%s5412_s1 + $0xeb0] sm:$0xff] }
  0x83   : > { %1224 = vmatprep.subr.mxu0 %v2524_v28  ;;  %1295 = vmatprep.subr.mxu1 %v2652_v29  ;;  %v2480_v10 = vld [vmem:[%s5412_s1 + $0xa98] sm:$0xff]  ;;  %v2479_v12 = vld [vmem:[%s5412_s1 + $0xa90] sm:$0xff] }
  0x84   : > { %1225 = vmatpush2.msra.mxu0 %v2523_v2  ;;  %1296 = vmatpush2.msra.mxu1 %v2651_v3  ;;  %v2608_v11 = vld [vmem:[%s5412_s1 + $0xe98] sm:$0xff]  ;;  %v2607_v13 = vld [vmem:[%s5412_s1 + $0xe90] sm:$0xff]  ;;  %v2924_v2 = vld [vmem:[%s2980_s24 + $0x8] sm:$0xff] }
  0x85   : > { %1226 = vmatprep.subr.mxu0 %v2520_v30  ;;  %1297 = vmatprep.subr.mxu1 %v2648_v4  ;;  %v2476_v14 = vld [vmem:[%s5412_s1 + $0xa78] sm:$0xff]  ;;  %v2475_v16 = vld [vmem:[%s5412_s1 + $0xa70] sm:$0xff]  ;;  %v598_v3 = vld [vmem:[%s5412_s1 + $0x1e8] sm:$0xff] }
  0x86   : > { %1227 = vmatpush2.msra.mxu0 %v2519_v6  ;;  %1298 = vmatpush2.msra.mxu1 %v2647_v31  ;;  %v2604_v15 = vld [vmem:[%s5412_s1 + $0xe78] sm:$0xff]  ;;  %v2603_v17 = vld [vmem:[%s5412_s1 + $0xe70] sm:$0xff]  ;;  %v726_v30 = vld [vmem:[%s5412_s1 + $0x5e8] sm:$0xff] }
  0x87   : > { %1228 = vmatprep.subr.mxu0 %v2516_v32  ;;  %1299 = vmatprep.subr.mxu1 %v2644_v33  ;;  %v2472_v18 = vld [vmem:[%s5412_s1 + $0xa58] sm:$0xff]  ;;  %v2471_v20 = vld [vmem:[%s5412_s1 + $0xa50] sm:$0xff]  ;;  %v597_v6 = vld [vmem:[%s5412_s1 + $0x1e0] sm:$0xff] }
  0x88   : > { %1229 = vmatpush2.msra.mxu0 %v2515_v34  ;;  %1300 = vmatpush2.msra.mxu1 %v2643_v35  ;;  %v2600_v19 = vld [vmem:[%s5412_s1 + $0xe58] sm:$0xff]  ;;  %v2599_v21 = vld [vmem:[%s5412_s1 + $0xe50] sm:$0xff]  ;;  %v725_v31 = vld [vmem:[%s5412_s1 + $0x5e0] sm:$0xff] }
  0x89   : > { %1230 = vmatprep.subr.mxu0 %v2512_v36  ;;  %1301 = vmatprep.subr.mxu1 %v2640_v37  ;;  %v2468_v22 = vld [vmem:[%s5412_s1 + $0xa38] sm:$0xff]  ;;  %v2467_v24 = vld [vmem:[%s5412_s1 + $0xa30] sm:$0xff]  ;;  %v2926_v32 = vld [vmem:[%s2980_s24] sm:$0xff] }
  0x8a   : > { %1231 = vmatpush2.msra.mxu0 %v2511_v38  ;;  %1302 = vmatpush2.msra.mxu1 %v2639_v39  ;;  %v2596_v23 = vld [vmem:[%s5412_s1 + $0xe38] sm:$0xff]  ;;  %v2595_v25 = vld [vmem:[%s5412_s1 + $0xe30] sm:$0xff]  ;;  %v594_v34 = vld [vmem:[%s5412_s1 + $0x1c8] sm:$0xff] }
  0x8b   : > { %1232 = vmatprep.subr.mxu0 %v2508_v40  ;;  %1303 = vmatprep.subr.mxu1 %v2636_v41  ;;  %v2464_v26 = vld [vmem:[%s5412_s1 + $0xa18] sm:$0xff]  ;;  %v2463_v28 = vld [vmem:[%s5412_s1 + $0xa10] sm:$0xff]  ;;  %v722_v35 = vld [vmem:[%s5412_s1 + $0x5c8] sm:$0xff] }
  0x8c   : > { %1233 = vmatpush2.msra.mxu0 %v2507_v42  ;;  %1304 = vmatpush2.msra.mxu1 %v2635_v43  ;;  %v2592_v27 = vld [vmem:[%s5412_s1 + $0xe18] sm:$0xff]  ;;  %v2591_v29 = vld [vmem:[%s5412_s1 + $0xe10] sm:$0xff]  ;;  %v593_v36 = vld [vmem:[%s5412_s1 + $0x1c0] sm:$0xff] }
  0x8d   : > { %1234 = vmatprep.subr.mxu0 %v2504_v44  ;;  %1305 = vmatprep.subr.mxu1 %v2632_v45  ;;  %v2925_v4 = vld [vmem:[%s2980_s24 + $0x18] sm:$0xff]  ;;  %v2927_v33 = vld [vmem:[%s2980_s24 + $0x10] sm:$0xff]  ;;  %v721_v37 = vld [vmem:[%s5412_s1 + $0x5c0] sm:$0xff] }
  0x8e   : > { %1235 = vmatpush2.msra.mxu0 %v2503_v46  ;;  %1306 = vmatpush2.msra.mxu1 %v2631_v47  ;;  %v590_v38 = vld [vmem:[%s5412_s1 + $0x1a8] sm:$0xff]  ;;  %v589_v40 = vld [vmem:[%s5412_s1 + $0x1a0] sm:$0xff] }
  0x8f   : > { %1236 = vmatprep.subr.mxu0 %v2500_v48  ;;  %1307 = vmatprep.subr.mxu1 %v2628_v49  ;;  %v718_v39 = vld [vmem:[%s5412_s1 + $0x5a8] sm:$0xff]  ;;  %v717_v41 = vld [vmem:[%s5412_s1 + $0x5a0] sm:$0xff] }
  0x90   : > { %1237 = vmatpush2.msra.mxu0 %v2499_v50  ;;  %1308 = vmatpush2.msra.mxu1 %v2627_v51  ;;  %v586_v42 = vld [vmem:[%s5412_s1 + $0x188] sm:$0xff]  ;;  %v585_v44 = vld [vmem:[%s5412_s1 + $0x180] sm:$0xff] }
  0x91   : > { %1238 = vmatprep.subr.mxu0 %v2496_v52  ;;  %1309 = vmatprep.subr.mxu1 %v2624_v53  ;;  %v714_v43 = vld [vmem:[%s5412_s1 + $0x588] sm:$0xff]  ;;  %v713_v45 = vld [vmem:[%s5412_s1 + $0x580] sm:$0xff] }
  0x92   : > { %1239 = vmatpush2.msra.mxu0 %v2495_v54  ;;  %1310 = vmatpush2.msra.mxu1 %v2623_v55  ;;  %v582_v46 = vld [vmem:[%s5412_s1 + $0x168] sm:$0xff]  ;;  %v581_v48 = vld [vmem:[%s5412_s1 + $0x160] sm:$0xff] }
  0x93   : > { %1240 = vmatprep.subr.mxu0 %v2492_v56  ;;  %1311 = vmatprep.subr.mxu1 %v2620_v57  ;;  %v710_v47 = vld [vmem:[%s5412_s1 + $0x568] sm:$0xff]  ;;  %v709_v49 = vld [vmem:[%s5412_s1 + $0x560] sm:$0xff] }
  0x94   : > { %1241 = vmatpush2.msra.mxu0 %v2491_v58  ;;  %1312 = vmatpush2.msra.mxu1 %v2619_v59  ;;  %v578_v50 = vld [vmem:[%s5412_s1 + $0x148] sm:$0xff]  ;;  %v577_v52 = vld [vmem:[%s5412_s1 + $0x140] sm:$0xff] }
  0x95   : > { %1242 = vmatprep.subr.mxu0 %v2488_v60  ;;  %1313 = vmatprep.subr.mxu1 %v2616_v61  ;;  %v706_v51 = vld [vmem:[%s5412_s1 + $0x548] sm:$0xff]  ;;  %v705_v53 = vld [vmem:[%s5412_s1 + $0x540] sm:$0xff] }
  0x96   : > { %1243 = vmatpush2.msra.mxu0 %v2487_v62  ;;  %1314 = vmatpush2.msra.mxu1 %v2615_v63  ;;  %v574_v54 = vld [vmem:[%s5412_s1 + $0x128] sm:$0xff]  ;;  %v573_v56 = vld [vmem:[%s5412_s1 + $0x120] sm:$0xff] }
  0x97   : > { %1244 = vmatprep.subr.mxu0 %v2484_v0  ;;  %1315 = vmatprep.subr.mxu1 %v2612_v1  ;;  %v702_v55 = vld [vmem:[%s5412_s1 + $0x528] sm:$0xff]  ;;  %v701_v57 = vld [vmem:[%s5412_s1 + $0x520] sm:$0xff] }
  0x98   : > { %1245 = vmatpush2.msra.mxu0 %v2483_v8  ;;  %1316 = vmatpush2.msra.mxu1 %v2611_v9  ;;  %v570_v58 = vld [vmem:[%s5412_s1 + $0x108] sm:$0xff]  ;;  %v569_v60 = vld [vmem:[%s5412_s1 + $0x100] sm:$0xff] }
  0x99   : > { %1246 = vmatprep.subr.mxu0 %v2480_v10  ;;  %1317 = vmatprep.subr.mxu1 %v2608_v11  ;;  %v698_v59 = vld [vmem:[%s5412_s1 + $0x508] sm:$0xff]  ;;  %v697_v61 = vld [vmem:[%s5412_s1 + $0x500] sm:$0xff] }
  0x9a   : > { %1247 = vmatpush2.msra.mxu0 %v2479_v12  ;;  %1318 = vmatpush2.msra.mxu1 %v2607_v13  ;;  %v566_v62 = vld [vmem:[%s5412_s1 + $0xe8] sm:$0xff]  ;;  %v565_v0 = vld [vmem:[%s5412_s1 + $0xe0] sm:$0xff] }
  0x9b   : > { %1248 = vmatprep.subr.mxu0 %v2476_v14  ;;  %1319 = vmatprep.subr.mxu1 %v2604_v15  ;;  %v694_v63 = vld [vmem:[%s5412_s1 + $0x4e8] sm:$0xff]  ;;  %v693_v1 = vld [vmem:[%s5412_s1 + $0x4e0] sm:$0xff] }
  0x9c   : > { %1249 = vmatpush2.msra.mxu0 %v2475_v16  ;;  %1320 = vmatpush2.msra.mxu1 %v2603_v17  ;;  %v562_v8 = vld [vmem:[%s5412_s1 + $0xc8] sm:$0xff]  ;;  %v561_v10 = vld [vmem:[%s5412_s1 + $0xc0] sm:$0xff] }
  0x9d   : > { %1250 = vmatprep.subr.mxu0 %v2472_v18  ;;  %1321 = vmatprep.subr.mxu1 %v2600_v19  ;;  %v690_v9 = vld [vmem:[%s5412_s1 + $0x4c8] sm:$0xff]  ;;  %v689_v11 = vld [vmem:[%s5412_s1 + $0x4c0] sm:$0xff] }
  0x9e   : > { %1251 = vmatpush2.msra.mxu0 %v2471_v20  ;;  %1322 = vmatpush2.msra.mxu1 %v2599_v21  ;;  %v558_v12 = vld [vmem:[%s5412_s1 + $0xa8] sm:$0xff]  ;;  %v557_v14 = vld [vmem:[%s5412_s1 + $0xa0] sm:$0xff] }
  0x9f   : > { %1252 = vmatprep.subr.mxu0 %v2468_v22  ;;  %1323 = vmatprep.subr.mxu1 %v2596_v23  ;;  %v686_v13 = vld [vmem:[%s5412_s1 + $0x4a8] sm:$0xff]  ;;  %v685_v15 = vld [vmem:[%s5412_s1 + $0x4a0] sm:$0xff] }
  0xa0   : > { %1253 = vmatpush2.msra.mxu0 %v2467_v24  ;;  %1324 = vmatpush2.msra.mxu1 %v2595_v25  ;;  %v554_v16 = vld [vmem:[%s5412_s1 + $0x88] sm:$0xff]  ;;  %v553_v18 = vld [vmem:[%s5412_s1 + $0x80] sm:$0xff] }
  0xa1   : > { %1254 = vmatprep.subr.mxu0 %v2464_v26  ;;  %1325 = vmatprep.subr.mxu1 %v2592_v27  ;;  %v682_v17 = vld [vmem:[%s5412_s1 + $0x488] sm:$0xff]  ;;  %v681_v19 = vld [vmem:[%s5412_s1 + $0x480] sm:$0xff] }
  0xa2   : > { %1255 = vmatpush2.msra.mxu0 %v2463_v28  ;;  %1256 = vmatprep.mubr.f32.mxu0 %v2924_v2  ;;  %v550_v20 = vld [vmem:[%s5412_s1 + $0x68] sm:$0xff]  ;;  %v549_v22 = vld [vmem:[%s5412_s1 + $0x60] sm:$0xff] }
  0xa3   : > { %1326 = vmatpush2.msra.mxu1 %v2591_v29  ;;  %1327 = vmatprep.mubr.f32.mxu1 %v2925_v4  ;;  %v678_v21 = vld [vmem:[%s5412_s1 + $0x468] sm:$0xff]  ;;  %v677_v23 = vld [vmem:[%s5412_s1 + $0x460] sm:$0xff] }
  0xa4   : > { %1257 = vmatmul.mubr.f32.vlgmr.msra.gmra.mxu0 %v2926_v32  ;;  %1328 = vmatmul.mubr.f32.vlgmr.msra.gmra.mxu1 %v2927_v33  ;;  %v546_v24 = vld [vmem:[%s5412_s1 + $0x48] sm:$0xff]  ;;  %v545_v26 = vld [vmem:[%s5412_s1 + $0x40] sm:$0xff] }
  0xa5   : > { %1334 = vmatprep.subr.mxu0 %v598_v3  ;;  %1405 = vmatprep.subr.mxu1 %v726_v30  ;;  %v674_v25 = vld [vmem:[%s5412_s1 + $0x448] sm:$0xff]  ;;  %v673_v27 = vld [vmem:[%s5412_s1 + $0x440] sm:$0xff] }
  0xa6   : > { %1335 = vmatpush1.msra.mxu0 %v597_v6  ;;  %1406 = vmatpush1.msra.mxu1 %v725_v31  ;;  %v542_v28 = vld [vmem:[%s5412_s1 + $0x28] sm:$0xff]  ;;  %v541_v2 = vld [vmem:[%s5412_s1 + $0x20] sm:$0xff] }
  0xa7   : > { %1336 = vmatprep.subr.mxu0 %v594_v34  ;;  %1407 = vmatprep.subr.mxu1 %v722_v35  ;;  %v670_v29 = vld [vmem:[%s5412_s1 + $0x428] sm:$0xff]  ;;  %v669_v3 = vld [vmem:[%s5412_s1 + $0x420] sm:$0xff] }
  0xa8   : > { %1337 = vmatpush1.msra.mxu0 %v593_v36  ;;  %1408 = vmatpush1.msra.mxu1 %v721_v37  ;;  %v538_v30 = vld [vmem:[%s5412_s1 + $0x8] sm:$0xff]  ;;  %v537_v6 = vld [vmem:[%s5412_s1] sm:$0xff] }
  0xa9   : > { %1338 = vmatprep.subr.mxu0 %v590_v38  ;;  %1409 = vmatprep.subr.mxu1 %v718_v39  ;;  %v666_v4 = vld [vmem:[%s5412_s1 + $0x408] sm:$0xff]  ;;  %v665_v31 = vld [vmem:[%s5412_s1 + $0x400] sm:$0xff] }
  0xaa   : > { %1339 = vmatpush1.msra.mxu0 %v589_v40  ;;  %1410 = vmatpush1.msra.mxu1 %v717_v41  ;;  %v662_v32 = vld [vmem:[%s5412_s1 + $0x3e8] sm:$0xff]  ;;  %v661_v34 = vld [vmem:[%s5412_s1 + $0x3e0] sm:$0xff] }
  0xab   : > { %1340 = vmatprep.subr.mxu0 %v586_v42  ;;  %1411 = vmatprep.subr.mxu1 %v714_v43  ;;  %v790_v33 = vld [vmem:[%s5412_s1 + $0x7e8] sm:$0xff]  ;;  %v789_v35 = vld [vmem:[%s5412_s1 + $0x7e0] sm:$0xff] }
  0xac   : > { %1341 = vmatpush1.msra.mxu0 %v585_v44  ;;  %1412 = vmatpush1.msra.mxu1 %v713_v45  ;;  %v658_v36 = vld [vmem:[%s5412_s1 + $0x3c8] sm:$0xff]  ;;  %v657_v38 = vld [vmem:[%s5412_s1 + $0x3c0] sm:$0xff] }
  0xad   : > { %1342 = vmatprep.subr.mxu0 %v582_v46  ;;  %1413 = vmatprep.subr.mxu1 %v710_v47  ;;  %v786_v37 = vld [vmem:[%s5412_s1 + $0x7c8] sm:$0xff]  ;;  %v785_v39 = vld [vmem:[%s5412_s1 + $0x7c0] sm:$0xff] }
  0xae   : > { %1343 = vmatpush1.msra.mxu0 %v581_v48  ;;  %1414 = vmatpush1.msra.mxu1 %v709_v49  ;;  %v654_v40 = vld [vmem:[%s5412_s1 + $0x3a8] sm:$0xff]  ;;  %v653_v42 = vld [vmem:[%s5412_s1 + $0x3a0] sm:$0xff] }
  0xaf   : > { %1344 = vmatprep.subr.mxu0 %v578_v50  ;;  %1415 = vmatprep.subr.mxu1 %v706_v51  ;;  %v782_v41 = vld [vmem:[%s5412_s1 + $0x7a8] sm:$0xff]  ;;  %v781_v43 = vld [vmem:[%s5412_s1 + $0x7a0] sm:$0xff] }
  0xb0   : > { %1345 = vmatpush1.msra.mxu0 %v577_v52  ;;  %1416 = vmatpush1.msra.mxu1 %v705_v53  ;;  %v650_v44 = vld [vmem:[%s5412_s1 + $0x388] sm:$0xff]  ;;  %v649_v46 = vld [vmem:[%s5412_s1 + $0x380] sm:$0xff] }
  0xb1   : > { %1346 = vmatprep.subr.mxu0 %v574_v54  ;;  %1417 = vmatprep.subr.mxu1 %v702_v55  ;;  %v778_v45 = vld [vmem:[%s5412_s1 + $0x788] sm:$0xff]  ;;  %v777_v47 = vld [vmem:[%s5412_s1 + $0x780] sm:$0xff] }
  0xb2   : > { %1347 = vmatpush1.msra.mxu0 %v573_v56  ;;  %1418 = vmatpush1.msra.mxu1 %v701_v57  ;;  %v646_v48 = vld [vmem:[%s5412_s1 + $0x368] sm:$0xff]  ;;  %v645_v50 = vld [vmem:[%s5412_s1 + $0x360] sm:$0xff] }
  0xb3   : > { %1348 = vmatprep.subr.mxu0 %v570_v58  ;;  %1419 = vmatprep.subr.mxu1 %v698_v59  ;;  %v774_v49 = vld [vmem:[%s5412_s1 + $0x768] sm:$0xff]  ;;  %v773_v51 = vld [vmem:[%s5412_s1 + $0x760] sm:$0xff] }
  0xb4   : > { %1349 = vmatpush1.msra.mxu0 %v569_v60  ;;  %1420 = vmatpush1.msra.mxu1 %v697_v61  ;;  %v642_v52 = vld [vmem:[%s5412_s1 + $0x348] sm:$0xff]  ;;  %v641_v54 = vld [vmem:[%s5412_s1 + $0x340] sm:$0xff] }
  0xb5   : > { %1350 = vmatprep.subr.mxu0 %v566_v62  ;;  %1421 = vmatprep.subr.mxu1 %v694_v63  ;;  %v770_v53 = vld [vmem:[%s5412_s1 + $0x748] sm:$0xff]  ;;  %v769_v55 = vld [vmem:[%s5412_s1 + $0x740] sm:$0xff] }
  0xb6   : > { %1351 = vmatpush1.msra.mxu0 %v565_v0  ;;  %1422 = vmatpush1.msra.mxu1 %v693_v1  ;;  %v638_v56 = vld [vmem:[%s5412_s1 + $0x328] sm:$0xff]  ;;  %v637_v58 = vld [vmem:[%s5412_s1 + $0x320] sm:$0xff] }
  0xb7   : > { %1352 = vmatprep.subr.mxu0 %v562_v8  ;;  %1423 = vmatprep.subr.mxu1 %v690_v9  ;;  %v766_v57 = vld [vmem:[%s5412_s1 + $0x728] sm:$0xff]  ;;  %v765_v59 = vld [vmem:[%s5412_s1 + $0x720] sm:$0xff] }
  0xb8   : > { %1353 = vmatpush1.msra.mxu0 %v561_v10  ;;  %1424 = vmatpush1.msra.mxu1 %v689_v11  ;;  %v634_v60 = vld [vmem:[%s5412_s1 + $0x308] sm:$0xff]  ;;  %v633_v62 = vld [vmem:[%s5412_s1 + $0x300] sm:$0xff] }
  0xb9   : > { %1354 = vmatprep.subr.mxu0 %v558_v12  ;;  %1425 = vmatprep.subr.mxu1 %v686_v13  ;;  %v762_v61 = vld [vmem:[%s5412_s1 + $0x708] sm:$0xff]  ;;  %v761_v63 = vld [vmem:[%s5412_s1 + $0x700] sm:$0xff] }
  0xba   : > { %1355 = vmatpush1.msra.mxu0 %v557_v14  ;;  %1426 = vmatpush1.msra.mxu1 %v685_v15  ;;  %v630_v0 = vld [vmem:[%s5412_s1 + $0x2e8] sm:$0xff]  ;;  %v629_v8 = vld [vmem:[%s5412_s1 + $0x2e0] sm:$0xff] }
  0xbb   : > { %1356 = vmatprep.subr.mxu0 %v554_v16  ;;  %1427 = vmatprep.subr.mxu1 %v682_v17  ;;  %v758_v1 = vld [vmem:[%s5412_s1 + $0x6e8] sm:$0xff]  ;;  %v757_v9 = vld [vmem:[%s5412_s1 + $0x6e0] sm:$0xff] }
  0xbc   : > { %1357 = vmatpush1.msra.mxu0 %v553_v18  ;;  %1428 = vmatpush1.msra.mxu1 %v681_v19  ;;  %v626_v10 = vld [vmem:[%s5412_s1 + $0x2c8] sm:$0xff]  ;;  %v625_v12 = vld [vmem:[%s5412_s1 + $0x2c0] sm:$0xff] }
  0xbd   : > { %1358 = vmatprep.subr.mxu0 %v550_v20  ;;  %1429 = vmatprep.subr.mxu1 %v678_v21  ;;  %v754_v11 = vld [vmem:[%s5412_s1 + $0x6c8] sm:$0xff]  ;;  %v753_v13 = vld [vmem:[%s5412_s1 + $0x6c0] sm:$0xff] }
  0xbe   : > { %1359 = vmatpush1.msra.mxu0 %v549_v22  ;;  %1430 = vmatpush1.msra.mxu1 %v677_v23  ;;  %v622_v14 = vld [vmem:[%s5412_s1 + $0x2a8] sm:$0xff]  ;;  %v621_v16 = vld [vmem:[%s5412_s1 + $0x2a0] sm:$0xff] }
  0xbf   : > { %1360 = vmatprep.subr.mxu0 %v546_v24  ;;  %1431 = vmatprep.subr.mxu1 %v674_v25  ;;  %v750_v15 = vld [vmem:[%s5412_s1 + $0x6a8] sm:$0xff]  ;;  %v749_v17 = vld [vmem:[%s5412_s1 + $0x6a0] sm:$0xff] }
  0xc0   : > { %1361 = vmatpush1.msra.mxu0 %v545_v26  ;;  %1432 = vmatpush1.msra.mxu1 %v673_v27  ;;  %v618_v18 = vld [vmem:[%s5412_s1 + $0x288] sm:$0xff]  ;;  %v617_v20 = vld [vmem:[%s5412_s1 + $0x280] sm:$0xff] }
  0xc1   : > { %1362 = vmatprep.subr.mxu0 %v542_v28  ;;  %1433 = vmatprep.subr.mxu1 %v670_v29  ;;  %v746_v19 = vld [vmem:[%s5412_s1 + $0x688] sm:$0xff]  ;;  %v745_v21 = vld [vmem:[%s5412_s1 + $0x680] sm:$0xff] }
  0xc2   : > { %1363 = vmatpush1.msra.mxu0 %v541_v2  ;;  %1434 = vmatpush1.msra.mxu1 %v669_v3  ;;  %v614_v22 = vld [vmem:[%s5412_s1 + $0x268] sm:$0xff]  ;;  %v613_v24 = vld [vmem:[%s5412_s1 + $0x260] sm:$0xff] }
  0xc3   : > { %1364 = vmatprep.subr.mxu0 %v538_v30  ;;  %1435 = vmatprep.subr.mxu1 %v666_v4  ;;  %v742_v23 = vld [vmem:[%s5412_s1 + $0x668] sm:$0xff]  ;;  %v741_v25 = vld [vmem:[%s5412_s1 + $0x660] sm:$0xff] }
  0xc4   : > { %1365 = vmatpush1.msra.mxu0 %v537_v6  ;;  %1436 = vmatpush1.msra.mxu1 %v665_v31  ;;  %v610_v26 = vld [vmem:[%s5412_s1 + $0x248] sm:$0xff]  ;;  %v609_v28 = vld [vmem:[%s5412_s1 + $0x240] sm:$0xff] }
  0xc5   : > { %1366 = vmatprep.subr.mxu0 %v662_v32  ;;  %1437 = vmatprep.subr.mxu1 %v790_v33  ;;  %v738_v27 = vld [vmem:[%s5412_s1 + $0x648] sm:$0xff]  ;;  %v737_v29 = vld [vmem:[%s5412_s1 + $0x640] sm:$0xff] }
  0xc6   : > { %1367 = vmatpush2.msra.mxu0 %v661_v34  ;;  %1438 = vmatpush2.msra.mxu1 %v789_v35  ;;  %v606_v2 = vld [vmem:[%s5412_s1 + $0x228] sm:$0xff]  ;;  %v605_v6 = vld [vmem:[%s5412_s1 + $0x220] sm:$0xff] }
  0xc7   : > { %1368 = vmatprep.subr.mxu0 %v658_v36  ;;  %1439 = vmatprep.subr.mxu1 %v786_v37  ;;  %v734_v3 = vld [vmem:[%s5412_s1 + $0x628] sm:$0xff]  ;;  %v733_v31 = vld [vmem:[%s5412_s1 + $0x620] sm:$0xff] }
  0xc8   : > { %1369 = vmatpush2.msra.mxu0 %v657_v38  ;;  %1440 = vmatpush2.msra.mxu1 %v785_v39  ;;  %v602_v32 = vld [vmem:[%s5412_s1 + $0x208] sm:$0xff]  ;;  %v601_v34 = vld [vmem:[%s5412_s1 + $0x200] sm:$0xff]  ;;  %v600_v38 = vld [vmem:[%s5412_s1 + $0x1f8] sm:$0xff] }
  0xc9   : > { %1370 = vmatprep.subr.mxu0 %v654_v40  ;;  %1441 = vmatprep.subr.mxu1 %v782_v41  ;;  %v730_v33 = vld [vmem:[%s5412_s1 + $0x608] sm:$0xff]  ;;  %v729_v35 = vld [vmem:[%s5412_s1 + $0x600] sm:$0xff]  ;;  %v728_v39 = vld [vmem:[%s5412_s1 + $0x5f8] sm:$0xff] }
  0xca   : > { %1371 = vmatpush2.msra.mxu0 %v653_v42  ;;  %1442 = vmatpush2.msra.mxu1 %v781_v43  ;;  %v599_v40 = vld [vmem:[%s5412_s1 + $0x1f0] sm:$0xff]  ;;  %v596_v42 = vld [vmem:[%s5412_s1 + $0x1d8] sm:$0xff] }
  0xcb   : > { %1372 = vmatprep.subr.mxu0 %v650_v44  ;;  %1443 = vmatprep.subr.mxu1 %v778_v45  ;;  %v727_v41 = vld [vmem:[%s5412_s1 + $0x5f0] sm:$0xff]  ;;  %v724_v43 = vld [vmem:[%s5412_s1 + $0x5d8] sm:$0xff] }
  0xcc   : > { %1373 = vmatpush2.msra.mxu0 %v649_v46  ;;  %1444 = vmatpush2.msra.mxu1 %v777_v47  ;;  %v595_v44 = vld [vmem:[%s5412_s1 + $0x1d0] sm:$0xff]  ;;  %v592_v46 = vld [vmem:[%s5412_s1 + $0x1b8] sm:$0xff] }
  0xcd   : > { %1374 = vmatprep.subr.mxu0 %v646_v48  ;;  %1445 = vmatprep.subr.mxu1 %v774_v49  ;;  %v723_v45 = vld [vmem:[%s5412_s1 + $0x5d0] sm:$0xff]  ;;  %v720_v47 = vld [vmem:[%s5412_s1 + $0x5b8] sm:$0xff] }
  0xce   : > { %1375 = vmatpush2.msra.mxu0 %v645_v50  ;;  %1446 = vmatpush2.msra.mxu1 %v773_v51  ;;  %v591_v48 = vld [vmem:[%s5412_s1 + $0x1b0] sm:$0xff]  ;;  %v588_v50 = vld [vmem:[%s5412_s1 + $0x198] sm:$0xff] }
  0xcf   : > { %1376 = vmatprep.subr.mxu0 %v642_v52  ;;  %1447 = vmatprep.subr.mxu1 %v770_v53  ;;  %v719_v49 = vld [vmem:[%s5412_s1 + $0x5b0] sm:$0xff]  ;;  %v716_v51 = vld [vmem:[%s5412_s1 + $0x598] sm:$0xff] }
  0xd0   : > { %1377 = vmatpush2.msra.mxu0 %v641_v54  ;;  %1448 = vmatpush2.msra.mxu1 %v769_v55  ;;  %v587_v52 = vld [vmem:[%s5412_s1 + $0x190] sm:$0xff]  ;;  %v584_v54 = vld [vmem:[%s5412_s1 + $0x178] sm:$0xff] }
  0xd1   : > { %1378 = vmatprep.subr.mxu0 %v638_v56  ;;  %1449 = vmatprep.subr.mxu1 %v766_v57  ;;  %v715_v53 = vld [vmem:[%s5412_s1 + $0x590] sm:$0xff]  ;;  %v712_v55 = vld [vmem:[%s5412_s1 + $0x578] sm:$0xff] }
  0xd2   : > { %1379 = vmatpush2.msra.mxu0 %v637_v58  ;;  %1450 = vmatpush2.msra.mxu1 %v765_v59  ;;  %v583_v56 = vld [vmem:[%s5412_s1 + $0x170] sm:$0xff]  ;;  %v580_v58 = vld [vmem:[%s5412_s1 + $0x158] sm:$0xff] }
  0xd3   : > { %1380 = vmatprep.subr.mxu0 %v634_v60  ;;  %1451 = vmatprep.subr.mxu1 %v762_v61  ;;  %v711_v57 = vld [vmem:[%s5412_s1 + $0x570] sm:$0xff]  ;;  %v708_v59 = vld [vmem:[%s5412_s1 + $0x558] sm:$0xff] }
  0xd4   : > { %1381 = vmatpush2.msra.mxu0 %v633_v62  ;;  %1452 = vmatpush2.msra.mxu1 %v761_v63  ;;  %v579_v60 = vld [vmem:[%s5412_s1 + $0x150] sm:$0xff]  ;;  %v576_v62 = vld [vmem:[%s5412_s1 + $0x138] sm:$0xff] }
  0xd5   : > { %1382 = vmatprep.subr.mxu0 %v630_v0  ;;  %1453 = vmatprep.subr.mxu1 %v758_v1  ;;  %v707_v61 = vld [vmem:[%s5412_s1 + $0x550] sm:$0xff]  ;;  %v704_v63 = vld [vmem:[%s5412_s1 + $0x538] sm:$0xff] }
  0xd6   : > { %1383 = vmatpush2.msra.mxu0 %v629_v8  ;;  %1454 = vmatpush2.msra.mxu1 %v757_v9  ;;  %v575_v0 = vld [vmem:[%s5412_s1 + $0x130] sm:$0xff]  ;;  %v572_v8 = vld [vmem:[%s5412_s1 + $0x118] sm:$0xff] }
  0xd7   : > { %1384 = vmatprep.subr.mxu0 %v626_v10  ;;  %1455 = vmatprep.subr.mxu1 %v754_v11  ;;  %v703_v1 = vld [vmem:[%s5412_s1 + $0x530] sm:$0xff]  ;;  %v700_v9 = vld [vmem:[%s5412_s1 + $0x518] sm:$0xff] }
  0xd8   : > { %1385 = vmatpush2.msra.mxu0 %v625_v12  ;;  %1456 = vmatpush2.msra.mxu1 %v753_v13  ;;  %v571_v10 = vld [vmem:[%s5412_s1 + $0x110] sm:$0xff]  ;;  %v568_v12 = vld [vmem:[%s5412_s1 + $0xf8] sm:$0xff] }
  0xd9   : > { %1386 = vmatprep.subr.mxu0 %v622_v14  ;;  %1457 = vmatprep.subr.mxu1 %v750_v15  ;;  %v699_v11 = vld [vmem:[%s5412_s1 + $0x510] sm:$0xff]  ;;  %v696_v13 = vld [vmem:[%s5412_s1 + $0x4f8] sm:$0xff] }
  0xda   : > { %1387 = vmatpush2.msra.mxu0 %v621_v16  ;;  %1458 = vmatpush2.msra.mxu1 %v749_v17  ;;  %v567_v14 = vld [vmem:[%s5412_s1 + $0xf0] sm:$0xff]  ;;  %v564_v16 = vld [vmem:[%s5412_s1 + $0xd8] sm:$0xff] }
  0xdb   : > { %1388 = vmatprep.subr.mxu0 %v618_v18  ;;  %1459 = vmatprep.subr.mxu1 %v746_v19  ;;  %v695_v15 = vld [vmem:[%s5412_s1 + $0x4f0] sm:$0xff]  ;;  %v692_v17 = vld [vmem:[%s5412_s1 + $0x4d8] sm:$0xff] }
  0xdc   : > { %1389 = vmatpush2.msra.mxu0 %v617_v20  ;;  %1460 = vmatpush2.msra.mxu1 %v745_v21  ;;  %v563_v18 = vld [vmem:[%s5412_s1 + $0xd0] sm:$0xff]  ;;  %v560_v20 = vld [vmem:[%s5412_s1 + $0xb8] sm:$0xff] }
  0xdd   : > { %1390 = vmatprep.subr.mxu0 %v614_v22  ;;  %1461 = vmatprep.subr.mxu1 %v742_v23  ;;  %v4165_v30 = vpop.f32.mrf.mxu0  ;;  %v4167_v4 = vpop.f32.mrf.mxu1  ;;  %v691_v19 = vld [vmem:[%s5412_s1 + $0x4d0] sm:$0xff]  ;;  %v688_v21 = vld [vmem:[%s5412_s1 + $0x4b8] sm:$0xff] }
  0xde   : > { %1391 = vmatpush2.msra.mxu0 %v613_v24  ;;  %1462 = vmatpush2.msra.mxu1 %v741_v25  ;;  %v559_v22 = vld [vmem:[%s5412_s1 + $0xb0] sm:$0xff]  ;;  %v556_v24 = vld [vmem:[%s5412_s1 + $0x98] sm:$0xff] }
  0xdf   : > { %1392 = vmatprep.subr.mxu0 %v610_v26  ;;  %1463 = vmatprep.subr.mxu1 %v738_v27  ;;  %v318_v36 = vpop.f32.mrf.mxu0  ;;  %v389_v37 = vpop.f32.mrf.mxu1  ;;  %v687_v23 = vld [vmem:[%s5412_s1 + $0x4b0] sm:$0xff]  ;;  %v684_v25 = vld [vmem:[%s5412_s1 + $0x498] sm:$0xff] }
  0xe0   : > { %1393 = vmatpush2.msra.mxu0 %v609_v28  ;;  %1464 = vmatpush2.msra.mxu1 %v737_v29  ;;  %v555_v26 = vld [vmem:[%s5412_s1 + $0x90] sm:$0xff]  ;;  %v552_v28 = vld [vmem:[%s5412_s1 + $0x78] sm:$0xff] }
  0xe1   : > { %1394 = vmatprep.subr.mxu0 %v606_v2  ;;  %1465 = vmatprep.subr.mxu1 %v734_v3  ;;  %v683_v27 = vld [vmem:[%s5412_s1 + $0x490] sm:$0xff]  ;;  %v680_v29 = vld [vmem:[%s5412_s1 + $0x478] sm:$0xff] }
  0xe2   : > { %1395 = vmatpush2.msra.mxu0 %v605_v6  ;;  %1466 = vmatpush2.msra.mxu1 %v733_v31  ;;  %v551_v2 = vld [vmem:[%s5412_s1 + $0x70] sm:$0xff]  ;;  %v548_v6 = vld [vmem:[%s5412_s1 + $0x58] sm:$0xff] }
  0xe3   : > { %1396 = vmatprep.subr.mxu0 %v602_v32  ;;  %1467 = vmatprep.subr.mxu1 %v730_v33  ;;  %v679_v3 = vld [vmem:[%s5412_s1 + $0x470] sm:$0xff]  ;;  %v676_v31 = vld [vmem:[%s5412_s1 + $0x458] sm:$0xff] }
  0xe4   : > { %1397 = vmatpush2.msra.mxu0 %v601_v34  ;;  %1468 = vmatpush2.msra.mxu1 %v729_v35  ;;  %v547_v32 = vld [vmem:[%s5412_s1 + $0x50] sm:$0xff]  ;;  %v544_v34 = vld [vmem:[%s5412_s1 + $0x38] sm:$0xff] }
  0xe5   : > { %1398 = vmatprep.mubr.f32.mxu0 %v318_v36  ;;  %1469 = vmatprep.mubr.f32.mxu1 %v389_v37  ;;  %v675_v33 = vld [vmem:[%s5412_s1 + $0x450] sm:$0xff]  ;;  %v672_v35 = vld [vmem:[%s5412_s1 + $0x438] sm:$0xff] }
  0xe6   : > { %1476 = vmatprep.subr.mxu0 %v600_v38  ;;  %1547 = vmatprep.subr.mxu1 %v728_v39  ;;  %v540_v38 = vld [vmem:[%s5412_s1 + $0x18] sm:$0xff] }
  0xe7   : > { %1399 = vmatmul.mubr.f32.vlgmr.msra.gmra.mxu0 %v4165_v30  ;;  %1470 = vmatmul.mubr.f32.vlgmr.msra.gmra.mxu1 %v4167_v4  ;;  %v668_v39 = vld [vmem:[%s5412_s1 + $0x418] sm:$0xff] }
  0xe8   : > { %1477 = vmatpush1.msra.mxu0 %v599_v40  ;;  %1548 = vmatpush1.msra.mxu1 %v727_v41  ;;  %v539_v40 = vld [vmem:[%s5412_s1 + $0x10] sm:$0xff] }
  0xe9   : > { %1478 = vmatprep.subr.mxu0 %v596_v42  ;;  %1540 = vmatprep.mubr.f32.mxu0 %v318_v36  ;;  %v543_v36 = vld [vmem:[%s5412_s1 + $0x30] sm:$0xff]  ;;  %v664_v42 = vld [vmem:[%s5412_s1 + $0x3f8] sm:$0xff] }
  0xea   : > { %1549 = vmatprep.subr.mxu1 %v724_v43  ;;  %1611 = vmatprep.mubr.f32.mxu1 %v389_v37  ;;  %v671_v37 = vld [vmem:[%s5412_s1 + $0x430] sm:$0xff]  ;;  %v792_v43 = vld [vmem:[%s5412_s1 + $0x7f8] sm:$0xff] }
  0xeb   : > { %1479 = vmatpush1.msra.mxu0 %v595_v44  ;;  %1550 = vmatpush1.msra.mxu1 %v723_v45  ;;  %v667_v41 = vld [vmem:[%s5412_s1 + $0x410] sm:$0xff] }
  0xec   : > { %1480 = vmatprep.subr.mxu0 %v592_v46  ;;  %1551 = vmatprep.subr.mxu1 %v720_v47  ;;  %v663_v44 = vld [vmem:[%s5412_s1 + $0x3f0] sm:$0xff]  ;;  %v660_v46 = vld [vmem:[%s5412_s1 + $0x3d8] sm:$0xff] }
  0xed   : > { %1481 = vmatpush1.msra.mxu0 %v591_v48  ;;  %1552 = vmatpush1.msra.mxu1 %v719_v49  ;;  %v791_v45 = vld [vmem:[%s5412_s1 + $0x7f0] sm:$0xff]  ;;  %v788_v47 = vld [vmem:[%s5412_s1 + $0x7d8] sm:$0xff] }
  0xee   : > { %1482 = vmatprep.subr.mxu0 %v588_v50  ;;  %1553 = vmatprep.subr.mxu1 %v716_v51  ;;  %v659_v48 = vld [vmem:[%s5412_s1 + $0x3d0] sm:$0xff]  ;;  %v656_v50 = vld [vmem:[%s5412_s1 + $0x3b8] sm:$0xff] }
  0xef   : > { %1483 = vmatpush1.msra.mxu0 %v587_v52  ;;  %1554 = vmatpush1.msra.mxu1 %v715_v53  ;;  %v787_v49 = vld [vmem:[%s5412_s1 + $0x7d0] sm:$0xff]  ;;  %v784_v51 = vld [vmem:[%s5412_s1 + $0x7b8] sm:$0xff] }
  0xf0   : > { %1484 = vmatprep.subr.mxu0 %v584_v54  ;;  %1555 = vmatprep.subr.mxu1 %v712_v55  ;;  %v655_v52 = vld [vmem:[%s5412_s1 + $0x3b0] sm:$0xff]  ;;  %v652_v54 = vld [vmem:[%s5412_s1 + $0x398] sm:$0xff] }
  0xf1   : > { %1485 = vmatpush1.msra.mxu0 %v583_v56  ;;  %1556 = vmatpush1.msra.mxu1 %v711_v57  ;;  %v783_v53 = vld [vmem:[%s5412_s1 + $0x7b0] sm:$0xff]  ;;  %v780_v55 = vld [vmem:[%s5412_s1 + $0x798] sm:$0xff] }
  0xf2   : > { %1486 = vmatprep.subr.mxu0 %v580_v58  ;;  %1557 = vmatprep.subr.mxu1 %v708_v59  ;;  %v651_v56 = vld [vmem:[%s5412_s1 + $0x390] sm:$0xff]  ;;  %v648_v58 = vld [vmem:[%s5412_s1 + $0x378] sm:$0xff] }
  0xf3   : > { %1487 = vmatpush1.msra.mxu0 %v579_v60  ;;  %1558 = vmatpush1.msra.mxu1 %v707_v61  ;;  %v779_v57 = vld [vmem:[%s5412_s1 + $0x790] sm:$0xff]  ;;  %v776_v59 = vld [vmem:[%s5412_s1 + $0x778] sm:$0xff] }
  0xf4   : > { %1488 = vmatprep.subr.mxu0 %v576_v62  ;;  %1559 = vmatprep.subr.mxu1 %v704_v63  ;;  %v647_v60 = vld [vmem:[%s5412_s1 + $0x370] sm:$0xff]  ;;  %v644_v62 = vld [vmem:[%s5412_s1 + $0x358] sm:$0xff] }
  0xf5   : > { %1489 = vmatpush1.msra.mxu0 %v575_v0  ;;  %1560 = vmatpush1.msra.mxu1 %v703_v1  ;;  %v775_v61 = vld [vmem:[%s5412_s1 + $0x770] sm:$0xff]  ;;  %v772_v63 = vld [vmem:[%s5412_s1 + $0x758] sm:$0xff] }
  0xf6   : > { %1490 = vmatprep.subr.mxu0 %v572_v8  ;;  %1561 = vmatprep.subr.mxu1 %v700_v9  ;;  %v643_v0 = vld [vmem:[%s5412_s1 + $0x350] sm:$0xff]  ;;  %v640_v8 = vld [vmem:[%s5412_s1 + $0x338] sm:$0xff] }
  0xf7   : > { %1491 = vmatpush1.msra.mxu0 %v571_v10  ;;  %1562 = vmatpush1.msra.mxu1 %v699_v11  ;;  %v771_v1 = vld [vmem:[%s5412_s1 + $0x750] sm:$0xff]  ;;  %v768_v9 = vld [vmem:[%s5412_s1 + $0x738] sm:$0xff] }
  0xf8   : > { %1492 = vmatprep.subr.mxu0 %v568_v12  ;;  %1563 = vmatprep.subr.mxu1 %v696_v13  ;;  %v639_v10 = vld [vmem:[%s5412_s1 + $0x330] sm:$0xff]  ;;  %v636_v12 = vld [vmem:[%s5412_s1 + $0x318] sm:$0xff] }
  0xf9   : > { %1493 = vmatpush1.msra.mxu0 %v567_v14  ;;  %1564 = vmatpush1.msra.mxu1 %v695_v15  ;;  %v767_v11 = vld [vmem:[%s5412_s1 + $0x730] sm:$0xff]  ;;  %v764_v13 = vld [vmem:[%s5412_s1 + $0x718] sm:$0xff] }
  0xfa   : > { %1494 = vmatprep.subr.mxu0 %v564_v16  ;;  %1565 = vmatprep.subr.mxu1 %v692_v17  ;;  %v635_v14 = vld [vmem:[%s5412_s1 + $0x310] sm:$0xff]  ;;  %v632_v16 = vld [vmem:[%s5412_s1 + $0x2f8] sm:$0xff] }
  0xfb   : > { %1495 = vmatpush1.msra.mxu0 %v563_v18  ;;  %1566 = vmatpush1.msra.mxu1 %v691_v19  ;;  %v763_v15 = vld [vmem:[%s5412_s1 + $0x710] sm:$0xff]  ;;  %v760_v17 = vld [vmem:[%s5412_s1 + $0x6f8] sm:$0xff] }
  0xfc   : > { %1496 = vmatprep.subr.mxu0 %v560_v20  ;;  %1567 = vmatprep.subr.mxu1 %v688_v21  ;;  %v631_v18 = vld [vmem:[%s5412_s1 + $0x2f0] sm:$0xff]  ;;  %v628_v20 = vld [vmem:[%s5412_s1 + $0x2d8] sm:$0xff] }
  0xfd   : > { %1497 = vmatpush1.msra.mxu0 %v559_v22  ;;  %1568 = vmatpush1.msra.mxu1 %v687_v23  ;;  %v759_v19 = vld [vmem:[%s5412_s1 + $0x6f0] sm:$0xff]  ;;  %v756_v21 = vld [vmem:[%s5412_s1 + $0x6d8] sm:$0xff] }
  0xfe   : > { %1498 = vmatprep.subr.mxu0 %v556_v24  ;;  %1569 = vmatprep.subr.mxu1 %v684_v25  ;;  %v627_v22 = vld [vmem:[%s5412_s1 + $0x2d0] sm:$0xff]  ;;  %v624_v24 = vld [vmem:[%s5412_s1 + $0x2b8] sm:$0xff] }
  0xff   : > { %1499 = vmatpush1.msra.mxu0 %v555_v26  ;;  %1570 = vmatpush1.msra.mxu1 %v683_v27  ;;  %v755_v23 = vld [vmem:[%s5412_s1 + $0x6d0] sm:$0xff]  ;;  %v752_v25 = vld [vmem:[%s5412_s1 + $0x6b8] sm:$0xff] }
 0x100   : > { %1500 = vmatprep.subr.mxu0 %v552_v28  ;;  %1571 = vmatprep.subr.mxu1 %v680_v29  ;;  %v623_v26 = vld [vmem:[%s5412_s1 + $0x2b0] sm:$0xff]  ;;  %v620_v28 = vld [vmem:[%s5412_s1 + $0x298] sm:$0xff] }
 0x101   : > { %1501 = vmatpush1.msra.mxu0 %v551_v2  ;;  %1572 = vmatpush1.msra.mxu1 %v679_v3  ;;  %v751_v27 = vld [vmem:[%s5412_s1 + $0x6b0] sm:$0xff]  ;;  %v748_v29 = vld [vmem:[%s5412_s1 + $0x698] sm:$0xff] }
 0x102   : > { %1502 = vmatprep.subr.mxu0 %v548_v6  ;;  %1573 = vmatprep.subr.mxu1 %v676_v31  ;;  %v619_v2 = vld [vmem:[%s5412_s1 + $0x290] sm:$0xff]  ;;  %v616_v6 = vld [vmem:[%s5412_s1 + $0x278] sm:$0xff] }
 0x103   : > { %1503 = vmatpush1.msra.mxu0 %v547_v32  ;;  %1574 = vmatpush1.msra.mxu1 %v675_v33  ;;  %v747_v3 = vld [vmem:[%s5412_s1 + $0x690] sm:$0xff]  ;;  %v744_v31 = vld [vmem:[%s5412_s1 + $0x678] sm:$0xff] }
 0x104   : > { %1504 = vmatprep.subr.mxu0 %v544_v34  ;;  %1575 = vmatprep.subr.mxu1 %v672_v35  ;;  %v615_v32 = vld [vmem:[%s5412_s1 + $0x270] sm:$0xff]  ;;  %v612_v34 = vld [vmem:[%s5412_s1 + $0x258] sm:$0xff] }
 0x105   : > { %1505 = vmatpush1.msra.mxu0 %v543_v36  ;;  %1576 = vmatpush1.msra.mxu1 %v671_v37  ;;  %v743_v33 = vld [vmem:[%s5412_s1 + $0x670] sm:$0xff]  ;;  %v740_v35 = vld [vmem:[%s5412_s1 + $0x658] sm:$0xff] }
 0x106   : > { %1506 = vmatprep.subr.mxu0 %v540_v38  ;;  %1577 = vmatprep.subr.mxu1 %v668_v39  ;;  %v611_v36 = vld [vmem:[%s5412_s1 + $0x250] sm:$0xff]  ;;  %v608_v38 = vld [vmem:[%s5412_s1 + $0x238] sm:$0xff] }
 0x107   : > { %1507 = vmatpush1.msra.mxu0 %v539_v40  ;;  %1578 = vmatpush1.msra.mxu1 %v667_v41  ;;  %v739_v37 = vld [vmem:[%s5412_s1 + $0x650] sm:$0xff]  ;;  %v736_v39 = vld [vmem:[%s5412_s1 + $0x638] sm:$0xff] }
 0x108   : > { %1508 = vmatprep.subr.mxu0 %v664_v42  ;;  %1579 = vmatprep.subr.mxu1 %v792_v43  ;;  %v607_v40 = vld [vmem:[%s5412_s1 + $0x230] sm:$0xff]  ;;  %v604_v42 = vld [vmem:[%s5412_s1 + $0x218] sm:$0xff] }
 0x109   : > { %1509 = vmatpush2.msra.mxu0 %v663_v44  ;;  %1580 = vmatpush2.msra.mxu1 %v791_v45  ;;  %v735_v41 = vld [vmem:[%s5412_s1 + $0x630] sm:$0xff]  ;;  %v732_v43 = vld [vmem:[%s5412_s1 + $0x618] sm:$0xff] }
 0x10a   : > { %1510 = vmatprep.subr.mxu0 %v660_v46  ;;  %1581 = vmatprep.subr.mxu1 %v788_v47  ;;  %v603_v44 = vld [vmem:[%s5412_s1 + $0x210] sm:$0xff]  ;;  %v4573_v46 = vpop.f32.mrf.mxu0  ;;  %v4575_v47 = vpop.f32.mrf.mxu1 }
 0x10b   : > { %1511 = vmatpush2.msra.mxu0 %v659_v48  ;;  %1582 = vmatpush2.msra.mxu1 %v787_v49  ;;  %v731_v45 = vld [vmem:[%s5412_s1 + $0x610] sm:$0xff]  ;;  %v2714_v48 = vld [vmem:[%s5412_s1 + $0x11e8] sm:$0xff] }
 0x10c   : > { %1512 = vmatprep.subr.mxu0 %v656_v50  ;;  %1583 = vmatprep.subr.mxu1 %v784_v51  ;;  %v2842_v49 = vld [vmem:[%s5412_s1 + $0x15e8] sm:$0xff]  ;;  %v2713_v50 = vld [vmem:[%s5412_s1 + $0x11e0] sm:$0xff] }
 0x10d   : > { %1513 = vmatpush2.msra.mxu0 %v655_v52  ;;  %1584 = vmatpush2.msra.mxu1 %v783_v53  ;;  %v2841_v51 = vld [vmem:[%s5412_s1 + $0x15e0] sm:$0xff]  ;;  %v4591_v52 = vpop.f32.mrf.mxu0  ;;  %v2710_v53 = vld [vmem:[%s5412_s1 + $0x11c8] sm:$0xff] }
 0x10e   : > { %1514 = vmatprep.subr.mxu0 %v652_v54  ;;  %1585 = vmatprep.subr.mxu1 %v780_v55  ;;  %v2838_v54 = vld [vmem:[%s5412_s1 + $0x15c8] sm:$0xff]  ;;  %v4599_v55 = vpop.f32.mrf.mxu1 }
 0x10f   : > { %1515 = vmatpush2.msra.mxu0 %v651_v56  ;;  %1586 = vmatpush2.msra.mxu1 %v779_v57  ;;  %v2706_v56 = vld [vmem:[%s5412_s1 + $0x11a8] sm:$0xff] }
 0x110   : > { %1516 = vmatprep.subr.mxu0 %v648_v58  ;;  %1587 = vmatprep.subr.mxu1 %v776_v59  ;;  %v2834_v57 = vld [vmem:[%s5412_s1 + $0x15a8] sm:$0xff]  ;;  %v2705_v58 = vld [vmem:[%s5412_s1 + $0x11a0] sm:$0xff] }
 0x111   : > { %1517 = vmatpush2.msra.mxu0 %v647_v60  ;;  %1588 = vmatpush2.msra.mxu1 %v775_v61  ;;  %v2833_v59 = vld [vmem:[%s5412_s1 + $0x15a0] sm:$0xff]  ;;  %v2702_v60 = vld [vmem:[%s5412_s1 + $0x1188] sm:$0xff] }
 0x112   : > { %1518 = vmatprep.subr.mxu0 %v644_v62  ;;  %1589 = vmatprep.subr.mxu1 %v772_v63  ;;  %v2830_v61 = vld [vmem:[%s5412_s1 + $0x1588] sm:$0xff]  ;;  %v2701_v62 = vld [vmem:[%s5412_s1 + $0x1180] sm:$0xff] }
 0x113   : > { %1519 = vmatpush2.msra.mxu0 %v643_v0  ;;  %1590 = vmatpush2.msra.mxu1 %v771_v1  ;;  %v2829_v63 = vld [vmem:[%s5412_s1 + $0x1580] sm:$0xff]  ;;  %v2698_v0 = vld [vmem:[%s5412_s1 + $0x1168] sm:$0xff] }
 0x114   : > { %1520 = vmatprep.subr.mxu0 %v640_v8  ;;  %1591 = vmatprep.subr.mxu1 %v768_v9  ;;  %v2826_v1 = vld [vmem:[%s5412_s1 + $0x1568] sm:$0xff]  ;;  %v2697_v8 = vld [vmem:[%s5412_s1 + $0x1160] sm:$0xff] }
 0x115   : > { %1521 = vmatpush2.msra.mxu0 %v639_v10  ;;  %1592 = vmatpush2.msra.mxu1 %v767_v11  ;;  %v2825_v9 = vld [vmem:[%s5412_s1 + $0x1560] sm:$0xff]  ;;  %v2694_v10 = vld [vmem:[%s5412_s1 + $0x1148] sm:$0xff] }
 0x116   : > { %1522 = vmatprep.subr.mxu0 %v636_v12  ;;  %1593 = vmatprep.subr.mxu1 %v764_v13  ;;  %v2822_v11 = vld [vmem:[%s5412_s1 + $0x1548] sm:$0xff]  ;;  %v2693_v12 = vld [vmem:[%s5412_s1 + $0x1140] sm:$0xff] }
 0x117   : > { %1523 = vmatpush2.msra.mxu0 %v635_v14  ;;  %1594 = vmatpush2.msra.mxu1 %v763_v15  ;;  %v2821_v13 = vld [vmem:[%s5412_s1 + $0x1540] sm:$0xff]  ;;  %v2690_v14 = vld [vmem:[%s5412_s1 + $0x1128] sm:$0xff] }
 0x118   : > { %1524 = vmatprep.subr.mxu0 %v632_v16  ;;  %1595 = vmatprep.subr.mxu1 %v760_v17  ;;  %v2818_v15 = vld [vmem:[%s5412_s1 + $0x1528] sm:$0xff]  ;;  %v2689_v16 = vld [vmem:[%s5412_s1 + $0x1120] sm:$0xff] }
 0x119   : > { %1525 = vmatpush2.msra.mxu0 %v631_v18  ;;  %1596 = vmatpush2.msra.mxu1 %v759_v19  ;;  %v2817_v17 = vld [vmem:[%s5412_s1 + $0x1520] sm:$0xff]  ;;  %v2686_v18 = vld [vmem:[%s5412_s1 + $0x1108] sm:$0xff] }
 0x11a   : > { %1526 = vmatprep.subr.mxu0 %v628_v20  ;;  %1597 = vmatprep.subr.mxu1 %v756_v21  ;;  %v2814_v19 = vld [vmem:[%s5412_s1 + $0x1508] sm:$0xff]  ;;  %v2685_v20 = vld [vmem:[%s5412_s1 + $0x1100] sm:$0xff] }
 0x11b   : > { %1527 = vmatpush2.msra.mxu0 %v627_v22  ;;  %1598 = vmatpush2.msra.mxu1 %v755_v23  ;;  %v2813_v21 = vld [vmem:[%s5412_s1 + $0x1500] sm:$0xff]  ;;  %v2682_v22 = vld [vmem:[%s5412_s1 + $0x10e8] sm:$0xff] }
 0x11c   : > { %1528 = vmatprep.subr.mxu0 %v624_v24  ;;  %1599 = vmatprep.subr.mxu1 %v752_v25  ;;  %v2810_v23 = vld [vmem:[%s5412_s1 + $0x14e8] sm:$0xff]  ;;  %v2681_v24 = vld [vmem:[%s5412_s1 + $0x10e0] sm:$0xff] }
 0x11d   : > { %1529 = vmatpush2.msra.mxu0 %v623_v26  ;;  %1600 = vmatpush2.msra.mxu1 %v751_v27  ;;  %v2809_v25 = vld [vmem:[%s5412_s1 + $0x14e0] sm:$0xff]  ;;  %v2678_v26 = vld [vmem:[%s5412_s1 + $0x10c8] sm:$0xff] }
 0x11e   : > { %1530 = vmatprep.subr.mxu0 %v620_v28  ;;  %1601 = vmatprep.subr.mxu1 %v748_v29  ;;  %v2806_v27 = vld [vmem:[%s5412_s1 + $0x14c8] sm:$0xff]  ;;  %v2677_v28 = vld [vmem:[%s5412_s1 + $0x10c0] sm:$0xff] }
 0x11f   : > { %1531 = vmatpush2.msra.mxu0 %v619_v2  ;;  %1602 = vmatpush2.msra.mxu1 %v747_v3  ;;  %v2805_v29 = vld [vmem:[%s5412_s1 + $0x14c0] sm:$0xff]  ;;  %v2674_v2 = vld [vmem:[%s5412_s1 + $0x10a8] sm:$0xff] }
 0x120   : > { %1532 = vmatprep.subr.mxu0 %v616_v6  ;;  %1603 = vmatprep.subr.mxu1 %v744_v31  ;;  %v2802_v3 = vld [vmem:[%s5412_s1 + $0x14a8] sm:$0xff]  ;;  %v2673_v6 = vld [vmem:[%s5412_s1 + $0x10a0] sm:$0xff] }
 0x121   : > { %1533 = vmatpush2.msra.mxu0 %v615_v32  ;;  %1604 = vmatpush2.msra.mxu1 %v743_v33  ;;  %v2801_v31 = vld [vmem:[%s5412_s1 + $0x14a0] sm:$0xff]  ;;  %v2670_v32 = vld [vmem:[%s5412_s1 + $0x1088] sm:$0xff] }
 0x122   : > { %1534 = vmatprep.subr.mxu0 %v612_v34  ;;  %1605 = vmatprep.subr.mxu1 %v740_v35  ;;  %v2798_v33 = vld [vmem:[%s5412_s1 + $0x1488] sm:$0xff]  ;;  %v2669_v34 = vld [vmem:[%s5412_s1 + $0x1080] sm:$0xff] }
 0x123   : > { %1535 = vmatpush2.msra.mxu0 %v611_v36  ;;  %1606 = vmatpush2.msra.mxu1 %v739_v37  ;;  %v2797_v35 = vld [vmem:[%s5412_s1 + $0x1480] sm:$0xff]  ;;  %v2666_v36 = vld [vmem:[%s5412_s1 + $0x1068] sm:$0xff] }
 0x124   : > { %1536 = vmatprep.subr.mxu0 %v608_v38  ;;  %1607 = vmatprep.subr.mxu1 %v736_v39  ;;  %v2794_v37 = vld [vmem:[%s5412_s1 + $0x1468] sm:$0xff]  ;;  %v2665_v38 = vld [vmem:[%s5412_s1 + $0x1060] sm:$0xff] }
 0x125   : > { %1537 = vmatpush2.msra.mxu0 %v607_v40  ;;  %1608 = vmatpush2.msra.mxu1 %v735_v41  ;;  %v2793_v39 = vld [vmem:[%s5412_s1 + $0x1460] sm:$0xff]  ;;  %v2662_v40 = vld [vmem:[%s5412_s1 + $0x1048] sm:$0xff] }
 0x126   : > { %1538 = vmatprep.subr.mxu0 %v604_v42  ;;  %1609 = vmatprep.subr.mxu1 %v732_v43  ;;  %v2790_v41 = vld [vmem:[%s5412_s1 + $0x1448] sm:$0xff]  ;;  %v2661_v42 = vld [vmem:[%s5412_s1 + $0x1040] sm:$0xff] }
 0x127   : > { %1539 = vmatpush2.msra.mxu0 %v603_v44  ;;  %1610 = vmatpush2.msra.mxu1 %v731_v45  ;;  %v2789_v43 = vld [vmem:[%s5412_s1 + $0x1440] sm:$0xff]  ;;  %v2658_v44 = vld [vmem:[%s5412_s1 + $0x1028] sm:$0xff] }
 0x128   : > { %1541 = vmatmul.mubr.f32.vlgmr.msra.gmra.mxu0 %v4165_v30  ;;  %1612 = vmatmul.mubr.f32.vlgmr.msra.gmra.mxu1 %v4167_v4  ;;  %v2709_v30 = vld [vmem:[%s5412_s1 + $0x11c0] sm:$0xff]  ;;  %v2786_v45 = vld [vmem:[%s5412_s1 + $0x1428] sm:$0xff] }
 0x129   : > { %1875 = vmatprep.subr.mxu0 %v2714_v48  ;;  %1946 = vmatprep.subr.mxu1 %v2842_v49  ;;  %v2837_v4 = vld [vmem:[%s5412_s1 + $0x15c0] sm:$0xff] }
 0x12a   : > { %1876 = vmatpush1.msra.mxu0 %v2713_v50  ;;  %1939 = vmatprep.mubr.f32.mxu0 %v4591_v52  ;;  %v2657_v48 = vld [vmem:[%s5412_s1 + $0x1020] sm:$0xff]  ;;  %v2654_v50 = vld [vmem:[%s5412_s1 + $0x1008] sm:$0xff] }
 0x12b   : > { %1947 = vmatpush1.msra.mxu1 %v2841_v51  ;;  %2010 = vmatprep.mubr.f32.mxu1 %v4599_v55  ;;  %v2785_v49 = vld [vmem:[%s5412_s1 + $0x1420] sm:$0xff]  ;;  %v2782_v51 = vld [vmem:[%s5412_s1 + $0x1408] sm:$0xff] }
 0x12c   : > { %1877 = vmatprep.subr.mxu0 %v2710_v53  ;;  %1948 = vmatprep.subr.mxu1 %v2838_v54  ;;  %v2653_v53 = vld [vmem:[%s5412_s1 + $0x1000] sm:$0xff] }
 0x12d   : > { %1878 = vmatpush1.msra.mxu0 %v2709_v30  ;;  %1949 = vmatpush1.msra.mxu1 %v2837_v4  ;;  %v2781_v54 = vld [vmem:[%s5412_s1 + $0x1400] sm:$0xff]  ;;  %v2778_v30 = vld [vmem:[%s5412_s1 + $0x13e8] sm:$0xff] }
 0x12e   : > { %1879 = vmatprep.subr.mxu0 %v2706_v56  ;;  %1950 = vmatprep.subr.mxu1 %v2834_v57  ;;  %v2906_v4 = vld [vmem:[%s5412_s1 + $0x17e8] sm:$0xff]  ;;  %v2777_v56 = vld [vmem:[%s5412_s1 + $0x13e0] sm:$0xff] }
 0x12f   : > { %1880 = vmatpush1.msra.mxu0 %v2705_v58  ;;  %1951 = vmatpush1.msra.mxu1 %v2833_v59  ;;  %v2905_v57 = vld [vmem:[%s5412_s1 + $0x17e0] sm:$0xff]  ;;  %v2774_v58 = vld [vmem:[%s5412_s1 + $0x13c8] sm:$0xff] }
 0x130   : > { %1881 = vmatprep.subr.mxu0 %v2702_v60  ;;  %1952 = vmatprep.subr.mxu1 %v2830_v61  ;;  %v2902_v59 = vld [vmem:[%s5412_s1 + $0x17c8] sm:$0xff]  ;;  %v2773_v60 = vld [vmem:[%s5412_s1 + $0x13c0] sm:$0xff] }
 0x131   : > { %1882 = vmatpush1.msra.mxu0 %v2701_v62  ;;  %1953 = vmatpush1.msra.mxu1 %v2829_v63  ;;  %v2901_v61 = vld [vmem:[%s5412_s1 + $0x17c0] sm:$0xff]  ;;  %v2770_v62 = vld [vmem:[%s5412_s1 + $0x13a8] sm:$0xff] }
 0x132   : > { %1883 = vmatprep.subr.mxu0 %v2698_v0  ;;  %1954 = vmatprep.subr.mxu1 %v2826_v1  ;;  %v2898_v63 = vld [vmem:[%s5412_s1 + $0x17a8] sm:$0xff]  ;;  %v2769_v0 = vld [vmem:[%s5412_s1 + $0x13a0] sm:$0xff] }
 0x133   : > { %1884 = vmatpush1.msra.mxu0 %v2697_v8  ;;  %1955 = vmatpush1.msra.mxu1 %v2825_v9  ;;  %v2897_v1 = vld [vmem:[%s5412_s1 + $0x17a0] sm:$0xff]  ;;  %v2766_v8 = vld [vmem:[%s5412_s1 + $0x1388] sm:$0xff] }
 0x134   : > { %1885 = vmatprep.subr.mxu0 %v2694_v10  ;;  %1956 = vmatprep.subr.mxu1 %v2822_v11  ;;  %v2894_v9 = vld [vmem:[%s5412_s1 + $0x1788] sm:$0xff]  ;;  %v2765_v10 = vld [vmem:[%s5412_s1 + $0x1380] sm:$0xff] }
 0x135   : > { %1886 = vmatpush1.msra.mxu0 %v2693_v12  ;;  %1957 = vmatpush1.msra.mxu1 %v2821_v13  ;;  %v2893_v11 = vld [vmem:[%s5412_s1 + $0x1780] sm:$0xff]  ;;  %v2762_v12 = vld [vmem:[%s5412_s1 + $0x1368] sm:$0xff] }
 0x136   : > { %1887 = vmatprep.subr.mxu0 %v2690_v14  ;;  %1958 = vmatprep.subr.mxu1 %v2818_v15  ;;  %v2890_v13 = vld [vmem:[%s5412_s1 + $0x1768] sm:$0xff]  ;;  %v2761_v14 = vld [vmem:[%s5412_s1 + $0x1360] sm:$0xff] }
 0x137   : > { %1888 = vmatpush1.msra.mxu0 %v2689_v16  ;;  %1959 = vmatpush1.msra.mxu1 %v2817_v17  ;;  %v2889_v15 = vld [vmem:[%s5412_s1 + $0x1760] sm:$0xff]  ;;  %v2758_v16 = vld [vmem:[%s5412_s1 + $0x1348] sm:$0xff] }
 0x138   : > { %1889 = vmatprep.subr.mxu0 %v2686_v18  ;;  %1960 = vmatprep.subr.mxu1 %v2814_v19  ;;  %v2886_v17 = vld [vmem:[%s5412_s1 + $0x1748] sm:$0xff]  ;;  %v2757_v18 = vld [vmem:[%s5412_s1 + $0x1340] sm:$0xff] }
 0x139   : > { %1890 = vmatpush1.msra.mxu0 %v2685_v20  ;;  %1961 = vmatpush1.msra.mxu1 %v2813_v21  ;;  %v2885_v19 = vld [vmem:[%s5412_s1 + $0x1740] sm:$0xff]  ;;  %v2754_v20 = vld [vmem:[%s5412_s1 + $0x1328] sm:$0xff] }
 0x13a   : > { %1891 = vmatprep.subr.mxu0 %v2682_v22  ;;  %1962 = vmatprep.subr.mxu1 %v2810_v23  ;;  %v2882_v21 = vld [vmem:[%s5412_s1 + $0x1728] sm:$0xff]  ;;  %v2753_v22 = vld [vmem:[%s5412_s1 + $0x1320] sm:$0xff] }
 0x13b   : > { %1892 = vmatpush1.msra.mxu0 %v2681_v24  ;;  %1963 = vmatpush1.msra.mxu1 %v2809_v25  ;;  %v2881_v23 = vld [vmem:[%s5412_s1 + $0x1720] sm:$0xff]  ;;  %v2750_v24 = vld [vmem:[%s5412_s1 + $0x1308] sm:$0xff] }
 0x13c   : > { %1893 = vmatprep.subr.mxu0 %v2678_v26  ;;  %1964 = vmatprep.subr.mxu1 %v2806_v27  ;;  %v2878_v25 = vld [vmem:[%s5412_s1 + $0x1708] sm:$0xff]  ;;  %v2749_v26 = vld [vmem:[%s5412_s1 + $0x1300] sm:$0xff] }
 0x13d   : > { %1894 = vmatpush1.msra.mxu0 %v2677_v28  ;;  %1965 = vmatpush1.msra.mxu1 %v2805_v29  ;;  %v2877_v27 = vld [vmem:[%s5412_s1 + $0x1700] sm:$0xff]  ;;  %v2746_v28 = vld [vmem:[%s5412_s1 + $0x12e8] sm:$0xff] }
 0x13e   : > { %1895 = vmatprep.subr.mxu0 %v2674_v2  ;;  %1966 = vmatprep.subr.mxu1 %v2802_v3  ;;  %v2874_v29 = vld [vmem:[%s5412_s1 + $0x16e8] sm:$0xff]  ;;  %v2745_v2 = vld [vmem:[%s5412_s1 + $0x12e0] sm:$0xff] }
 0x13f   : > { %1896 = vmatpush1.msra.mxu0 %v2673_v6  ;;  %1967 = vmatpush1.msra.mxu1 %v2801_v31  ;;  %v2873_v3 = vld [vmem:[%s5412_s1 + $0x16e0] sm:$0xff]  ;;  %v2742_v6 = vld [vmem:[%s5412_s1 + $0x12c8] sm:$0xff] }
 0x140   : > { %1897 = vmatprep.subr.mxu0 %v2670_v32  ;;  %1968 = vmatprep.subr.mxu1 %v2798_v33  ;;  %v2870_v31 = vld [vmem:[%s5412_s1 + $0x16c8] sm:$0xff]  ;;  %v2741_v32 = vld [vmem:[%s5412_s1 + $0x12c0] sm:$0xff] }
 0x141   : > { %1898 = vmatpush1.msra.mxu0 %v2669_v34  ;;  %1969 = vmatpush1.msra.mxu1 %v2797_v35  ;;  %v2869_v33 = vld [vmem:[%s5412_s1 + $0x16c0] sm:$0xff]  ;;  %v2738_v34 = vld [vmem:[%s5412_s1 + $0x12a8] sm:$0xff] }
 0x142   : > { %1899 = vmatprep.subr.mxu0 %v2666_v36  ;;  %1970 = vmatprep.subr.mxu1 %v2794_v37  ;;  %v2866_v35 = vld [vmem:[%s5412_s1 + $0x16a8] sm:$0xff]  ;;  %v2737_v36 = vld [vmem:[%s5412_s1 + $0x12a0] sm:$0xff] }
 0x143   : > { %1900 = vmatpush1.msra.mxu0 %v2665_v38  ;;  %1971 = vmatpush1.msra.mxu1 %v2793_v39  ;;  %v2865_v37 = vld [vmem:[%s5412_s1 + $0x16a0] sm:$0xff]  ;;  %v2734_v38 = vld [vmem:[%s5412_s1 + $0x1288] sm:$0xff] }
 0x144   : > { %1901 = vmatprep.subr.mxu0 %v2662_v40  ;;  %1972 = vmatprep.subr.mxu1 %v2790_v41  ;;  %v2862_v39 = vld [vmem:[%s5412_s1 + $0x1688] sm:$0xff]  ;;  %v4915_v40 = vpop.f32.mrf.mxu0  ;;  %v4917_v41 = vpop.f32.mrf.mxu1 }
 0x145   : > { %1902 = vmatpush1.msra.mxu0 %v2661_v42  ;;  %1973 = vmatpush1.msra.mxu1 %v2789_v43  ;;  %v2733_v42 = vld [vmem:[%s5412_s1 + $0x1280] sm:$0xff] }
 0x146   : > { %1903 = vmatprep.subr.mxu0 %v2658_v44  ;;  %1974 = vmatprep.subr.mxu1 %v2786_v45  ;;  %v2861_v43 = vld [vmem:[%s5412_s1 + $0x1680] sm:$0xff]  ;;  %v2730_v44 = vld [vmem:[%s5412_s1 + $0x1268] sm:$0xff] }
 0x147   : > { %1904 = vmatpush1.msra.mxu0 %v2657_v48  ;;  %1975 = vmatpush1.msra.mxu1 %v2785_v49  ;;  %v2858_v45 = vld [vmem:[%s5412_s1 + $0x1668] sm:$0xff]  ;;  %v2729_v48 = vld [vmem:[%s5412_s1 + $0x1260] sm:$0xff] }
 0x148   : > { %1905 = vmatprep.subr.mxu0 %v2654_v50  ;;  %1976 = vmatprep.subr.mxu1 %v2782_v51  ;;  %v2857_v49 = vld [vmem:[%s5412_s1 + $0x1660] sm:$0xff]  ;;  %v2726_v50 = vld [vmem:[%s5412_s1 + $0x1248] sm:$0xff] }
 0x149   : > { %1906 = vmatpush1.msra.mxu0 %v2653_v53  ;;  %1977 = vmatpush1.msra.mxu1 %v2781_v54  ;;  %v2854_v51 = vld [vmem:[%s5412_s1 + $0x1648] sm:$0xff]  ;;  %v4943_v53 = vpop.f32.mrf.mxu0  ;;  %v4945_v54 = vpop.f32.mrf.mxu1 }
 0x14a   : > { %1907 = vmatprep.subr.mxu0 %v2778_v30  ;;  %1978 = vmatprep.subr.mxu1 %v2906_v4  ;;  %v2725_v30 = vld [vmem:[%s5412_s1 + $0x1240] sm:$0xff] }
 0x14b   : > { %1908 = vmatpush2.msra.mxu0 %v2777_v56  ;;  %1979 = vmatpush2.msra.mxu1 %v2905_v57  ;;  %v2853_v4 = vld [vmem:[%s5412_s1 + $0x1640] sm:$0xff]  ;;  %v2722_v56 = vld [vmem:[%s5412_s1 + $0x1228] sm:$0xff] }
 0x14c   : > { %1909 = vmatprep.subr.mxu0 %v2774_v58  ;;  %1980 = vmatprep.subr.mxu1 %v2902_v59  ;;  %v2850_v57 = vld [vmem:[%s5412_s1 + $0x1628] sm:$0xff]  ;;  %v2721_v58 = vld [vmem:[%s5412_s1 + $0x1220] sm:$0xff] }
 0x14d   : > { %1910 = vmatpush2.msra.mxu0 %v2773_v60  ;;  %1981 = vmatpush2.msra.mxu1 %v2901_v61  ;;  %v2849_v59 = vld [vmem:[%s5412_s1 + $0x1620] sm:$0xff] }
 0x14e   : > { %1911 = vmatprep.subr.mxu0 %v2770_v62  ;;  %1982 = vmatprep.subr.mxu1 %v2898_v63  ;;  %v2718_v62 = vld [vmem:[%s5412_s1 + $0x1208] sm:$0xff] }
 0x14f   : > { %1912 = vmatpush2.msra.mxu0 %v2769_v0  ;;  %1983 = vmatpush2.msra.mxu1 %v2897_v1  ;;  %v2846_v63 = vld [vmem:[%s5412_s1 + $0x1608] sm:$0xff]  ;;  %v2717_v1 = vld [vmem:[%s5412_s1 + $0x1200] sm:$0xff] }
 0x150   : > { %1913 = vmatprep.subr.mxu0 %v2766_v8  ;;  %1984 = vmatprep.subr.mxu1 %v2894_v9  ;;  %v2845_v8 = vld [vmem:[%s5412_s1 + $0x1600] sm:$0xff] }
 0x151   : > { %1914 = vmatpush2.msra.mxu0 %v2765_v10  ;;  %1985 = vmatpush2.msra.mxu1 %v2893_v11 }
 0x152   : > { %1915 = vmatprep.subr.mxu0 %v2762_v12  ;;  %1986 = vmatprep.subr.mxu1 %v2890_v13  ;;  %v2716_v12 = vld [vmem:[%s5412_s1 + $0x11f8] sm:$0xff] }
 0x153   : > { %1916 = vmatpush2.msra.mxu0 %v2761_v14  ;;  %1987 = vmatpush2.msra.mxu1 %v2889_v15  ;;  %v2844_v13 = vld [vmem:[%s5412_s1 + $0x15f8] sm:$0xff]  ;;  %v2715_v14 = vld [vmem:[%s5412_s1 + $0x11f0] sm:$0xff] }
 0x154   : > { %1917 = vmatprep.subr.mxu0 %v2758_v16  ;;  %1988 = vmatprep.subr.mxu1 %v2886_v17  ;;  %v2843_v15 = vld [vmem:[%s5412_s1 + $0x15f0] sm:$0xff]  ;;  %v2712_v16 = vld [vmem:[%s5412_s1 + $0x11d8] sm:$0xff] }
 0x155   : > { %1918 = vmatpush2.msra.mxu0 %v2757_v18  ;;  %1989 = vmatpush2.msra.mxu1 %v2885_v19  ;;  %v2840_v17 = vld [vmem:[%s5412_s1 + $0x15d8] sm:$0xff]  ;;  %v2711_v18 = vld [vmem:[%s5412_s1 + $0x11d0] sm:$0xff] }
 0x156   : > { %1919 = vmatprep.subr.mxu0 %v2754_v20  ;;  %1990 = vmatprep.subr.mxu1 %v2882_v21  ;;  %v2839_v19 = vld [vmem:[%s5412_s1 + $0x15d0] sm:$0xff]  ;;  %v2708_v20 = vld [vmem:[%s5412_s1 + $0x11b8] sm:$0xff] }
 0x157   : > { %1920 = vmatpush2.msra.mxu0 %v2753_v22  ;;  %1991 = vmatpush2.msra.mxu1 %v2881_v23  ;;  %v2836_v21 = vld [vmem:[%s5412_s1 + $0x15b8] sm:$0xff]  ;;  %v2835_v22 = vld [vmem:[%s5412_s1 + $0x15b0] sm:$0xff] }
 0x158   : > { %1921 = vmatprep.subr.mxu0 %v2750_v24  ;;  %1992 = vmatprep.subr.mxu1 %v2878_v25  ;;  %v2832_v23 = vld [vmem:[%s5412_s1 + $0x1598] sm:$0xff]  ;;  %v2703_v24 = vld [vmem:[%s5412_s1 + $0x1190] sm:$0xff] }
 0x159   : > { %1922 = vmatpush2.msra.mxu0 %v2749_v26  ;;  %1993 = vmatpush2.msra.mxu1 %v2877_v27  ;;  %v2831_v25 = vld [vmem:[%s5412_s1 + $0x1590] sm:$0xff]  ;;  %v2700_v26 = vld [vmem:[%s5412_s1 + $0x1178] sm:$0xff] }
 0x15a   : > { %1923 = vmatprep.subr.mxu0 %v2746_v28  ;;  %1994 = vmatprep.subr.mxu1 %v2874_v29  ;;  %v2828_v27 = vld [vmem:[%s5412_s1 + $0x1578] sm:$0xff]  ;;  %v2699_v28 = vld [vmem:[%s5412_s1 + $0x1170] sm:$0xff] }
 0x15b   : > { %1924 = vmatpush2.msra.mxu0 %v2745_v2  ;;  %1995 = vmatpush2.msra.mxu1 %v2873_v3  ;;  %v2827_v29 = vld [vmem:[%s5412_s1 + $0x1570] sm:$0xff]  ;;  %v2696_v2 = vld [vmem:[%s5412_s1 + $0x1158] sm:$0xff] }
 0x15c   : > { %1925 = vmatprep.subr.mxu0 %v2742_v6  ;;  %1996 = vmatprep.subr.mxu1 %v2870_v31  ;;  %v2824_v3 = vld [vmem:[%s5412_s1 + $0x1558] sm:$0xff]  ;;  %v2695_v6 = vld [vmem:[%s5412_s1 + $0x1150] sm:$0xff] }
 0x15d   : > { %1926 = vmatpush2.msra.mxu0 %v2741_v32  ;;  %1997 = vmatpush2.msra.mxu1 %v2869_v33  ;;  %v2823_v31 = vld [vmem:[%s5412_s1 + $0x1550] sm:$0xff]  ;;  %v2692_v32 = vld [vmem:[%s5412_s1 + $0x1138] sm:$0xff] }
 0x15e   : > { %1927 = vmatprep.subr.mxu0 %v2738_v34  ;;  %1998 = vmatprep.subr.mxu1 %v2866_v35  ;;  %v2820_v33 = vld [vmem:[%s5412_s1 + $0x1538] sm:$0xff]  ;;  %v2691_v34 = vld [vmem:[%s5412_s1 + $0x1130] sm:$0xff] }
 0x15f   : > { %1928 = vmatpush2.msra.mxu0 %v2737_v36  ;;  %1999 = vmatpush2.msra.mxu1 %v2865_v37  ;;  %v2819_v35 = vld [vmem:[%s5412_s1 + $0x1530] sm:$0xff]  ;;  %v2688_v36 = vld [vmem:[%s5412_s1 + $0x1118] sm:$0xff] }
 0x160   : > { %1929 = vmatprep.subr.mxu0 %v2734_v38  ;;  %2000 = vmatprep.subr.mxu1 %v2862_v39  ;;  %v2816_v37 = vld [vmem:[%s5412_s1 + $0x1518] sm:$0xff]  ;;  %v2687_v38 = vld [vmem:[%s5412_s1 + $0x1110] sm:$0xff] }
 0x161   : > { %1930 = vmatpush2.msra.mxu0 %v2733_v42  ;;  %2001 = vmatpush2.msra.mxu1 %v2861_v43  ;;  %v2815_v39 = vld [vmem:[%s5412_s1 + $0x1510] sm:$0xff]  ;;  %v2684_v42 = vld [vmem:[%s5412_s1 + $0x10f8] sm:$0xff] }
 0x162   : > { %1931 = vmatprep.subr.mxu0 %v2730_v44  ;;  %2002 = vmatprep.subr.mxu1 %v2858_v45  ;;  %v2812_v43 = vld [vmem:[%s5412_s1 + $0x14f8] sm:$0xff]  ;;  %v2683_v44 = vld [vmem:[%s5412_s1 + $0x10f0] sm:$0xff] }
 0x163   : > { %1932 = vmatpush2.msra.mxu0 %v2729_v48  ;;  %2003 = vmatpush2.msra.mxu1 %v2857_v49  ;;  %v2811_v45 = vld [vmem:[%s5412_s1 + $0x14f0] sm:$0xff]  ;;  %v2680_v48 = vld [vmem:[%s5412_s1 + $0x10d8] sm:$0xff] }
 0x164   : > { %1933 = vmatprep.subr.mxu0 %v2726_v50  ;;  %2004 = vmatprep.subr.mxu1 %v2854_v51  ;;  %v1258_v60 = vpop.f32.mrf.mxu0  ;;  %v1329_v61 = vpop.f32.mrf.mxu1  ;;  %v2808_v49 = vld [vmem:[%s5412_s1 + $0x14d8] sm:$0xff]  ;;  %v2679_v50 = vld [vmem:[%s5412_s1 + $0x10d0] sm:$0xff] }
 0x165   : > { %1934 = vmatpush2.msra.mxu0 %v2725_v30  ;;  %2005 = vmatpush2.msra.mxu1 %v2853_v4  ;;  %v4971_v0 = vadd.f32 %v1329_v61, %v1258_v60  ;;  %v2807_v51 = vld [vmem:[%s5412_s1 + $0x14d0] sm:$0xff]  ;;  %v2676_v30 = vld [vmem:[%s5412_s1 + $0x10b8] sm:$0xff] }
 0x166   : > { %1935 = vmatprep.subr.mxu0 %v2722_v56  ;;  %2006 = vmatprep.subr.mxu1 %v2850_v57  ;;  %v1260_v9 = vpop.f32.mrf.mxu0  ;;  %v1331_v10 = vpop.f32.mrf.mxu1  ;;  %v2804_v4 = vld [vmem:[%s5412_s1 + $0x14b8] sm:$0xff]  ;;  %v2675_v56 = vld [vmem:[%s5412_s1 + $0x10b0] sm:$0xff] }
 0x167   : > { %1936 = vmatpush2.msra.mxu0 %v2721_v58  ;;  %2007 = vmatpush2.msra.mxu1 %v2849_v59  ;;  %v4979_v11 = vadd.f32 %v1331_v10, %v1260_v9  ;;  %v2803_v57 = vld [vmem:[%s5412_s1 + $0x14b0] sm:$0xff]  ;;  %v2672_v58 = vld [vmem:[%s5412_s1 + $0x1098] sm:$0xff] }
 0x168   : > { %1937 = vmatprep.subr.mxu0 %v2718_v62  ;;  %2008 = vmatprep.subr.mxu1 %v2846_v63  ;;  %v2800_v59 = vld [vmem:[%s5412_s1 + $0x1498] sm:$0xff]  ;;  %v2671_v60 = vld [vmem:[%s5412_s1 + $0x1090] sm:$0xff] }
 0x169   : > { %1938 = vmatpush2.msra.mxu0 %v2717_v1  ;;  %2009 = vmatpush2.msra.mxu1 %v2845_v8  ;;  %v2799_v61 = vld [vmem:[%s5412_s1 + $0x1490] sm:$0xff]  ;;  %v2668_v62 = vld [vmem:[%s5412_s1 + $0x1078] sm:$0xff] }
 0x16a   : > { %1940 = vmatmul.mubr.f32.vlgmr.msra.gmra.mxu0 %v4573_v46  ;;  %2011 = vmatmul.mubr.f32.vlgmr.msra.gmra.mxu1 %v4575_v47  ;;  %v2796_v63 = vld [vmem:[%s5412_s1 + $0x1478] sm:$0xff]  ;;  %v2667_v1 = vld [vmem:[%s5412_s1 + $0x1070] sm:$0xff] }
 0x16b   : > { %2017 = vmatprep.subr.mxu0 %v2716_v12  ;;  %2088 = vmatprep.subr.mxu1 %v2844_v13  ;;  %v2795_v8 = vld [vmem:[%s5412_s1 + $0x1470] sm:$0xff]  ;;  %v2664_v9 = vld [vmem:[%s5412_s1 + $0x1058] sm:$0xff] }
 0x16c   : > { %2018 = vmatpush1.msra.mxu0 %v2715_v14  ;;  %2081 = vmatprep.mubr.f32.mxu0 %v4591_v52  ;;  %v2707_v52 = vld [vmem:[%s5412_s1 + $0x11b0] sm:$0xff]  ;;  %v2792_v10 = vld [vmem:[%s5412_s1 + $0x1458] sm:$0xff] }
 0x16d   : > { %2089 = vmatpush1.msra.mxu1 %v2843_v15  ;;  %2152 = vmatprep.mubr.f32.mxu1 %v4599_v55  ;;  %v2704_v55 = vld [vmem:[%s5412_s1 + $0x1198] sm:$0xff]  ;;  %v2663_v12 = vld [vmem:[%s5412_s1 + $0x1050] sm:$0xff] }
 0x16e   : > { %2019 = vmatprep.subr.mxu0 %v2712_v16  ;;  %2090 = vmatprep.subr.mxu1 %v2840_v17  ;;  %v2791_v13 = vld [vmem:[%s5412_s1 + $0x1450] sm:$0xff]  ;;  %v2660_v14 = vld [vmem:[%s5412_s1 + $0x1038] sm:$0xff] }
 0x16f   : > { %2020 = vmatpush1.msra.mxu0 %v2711_v18  ;;  %2091 = vmatpush1.msra.mxu1 %v2839_v19  ;;  %v2788_v15 = vld [vmem:[%s5412_s1 + $0x1438] sm:$0xff]  ;;  %v2659_v16 = vld [vmem:[%s5412_s1 + $0x1030] sm:$0xff] }
 0x170   : > { %2021 = vmatprep.subr.mxu0 %v2708_v20  ;;  %2092 = vmatprep.subr.mxu1 %v2836_v21  ;;  %v2787_v17 = vld [vmem:[%s5412_s1 + $0x1430] sm:$0xff]  ;;  %v2656_v18 = vld [vmem:[%s5412_s1 + $0x1018] sm:$0xff] }
 0x171   : > { %2022 = vmatpush1.msra.mxu0 %v2707_v52  ;;  %2093 = vmatpush1.msra.mxu1 %v2835_v22  ;;  %v2784_v19 = vld [vmem:[%s5412_s1 + $0x1418] sm:$0xff]  ;;  %v2655_v20 = vld [vmem:[%s5412_s1 + $0x1010] sm:$0xff] }
 0x172   : > { %2023 = vmatprep.subr.mxu0 %v2704_v55  ;;  %2094 = vmatprep.subr.mxu1 %v2832_v23  ;;  %v2783_v21 = vld [vmem:[%s5412_s1 + $0x1410] sm:$0xff]  ;;  %v2780_v52 = vld [vmem:[%s5412_s1 + $0x13f8] sm:$0xff] }
 0x173   : > { %2024 = vmatpush1.msra.mxu0 %v2703_v24  ;;  %2095 = vmatpush1.msra.mxu1 %v2831_v25  ;;  %v2908_v22 = vld [vmem:[%s5412_s1 + $0x17f8] sm:$0xff]  ;;  %v2779_v55 = vld [vmem:[%s5412_s1 + $0x13f0] sm:$0xff] }
 0x174   : > { %2025 = vmatprep.subr.mxu0 %v2700_v26  ;;  %2096 = vmatprep.subr.mxu1 %v2828_v27  ;;  %v2907_v23 = vld [vmem:[%s5412_s1 + $0x17f0] sm:$0xff]  ;;  %v2776_v24 = vld [vmem:[%s5412_s1 + $0x13d8] sm:$0xff] }
 0x175   : > { %2026 = vmatpush1.msra.mxu0 %v2699_v28  ;;  %2097 = vmatpush1.msra.mxu1 %v2827_v29  ;;  %v2904_v25 = vld [vmem:[%s5412_s1 + $0x17d8] sm:$0xff]  ;;  %v2775_v26 = vld [vmem:[%s5412_s1 + $0x13d0] sm:$0xff] }
 0x176   : > { %2027 = vmatprep.subr.mxu0 %v2696_v2  ;;  %2098 = vmatprep.subr.mxu1 %v2824_v3  ;;  %v2903_v27 = vld [vmem:[%s5412_s1 + $0x17d0] sm:$0xff]  ;;  %v2772_v28 = vld [vmem:[%s5412_s1 + $0x13b8] sm:$0xff] }
 0x177   : > { %2028 = vmatpush1.msra.mxu0 %v2695_v6  ;;  %2099 = vmatpush1.msra.mxu1 %v2823_v31  ;;  %v2900_v29 = vld [vmem:[%s5412_s1 + $0x17b8] sm:$0xff]  ;;  %v2771_v2 = vld [vmem:[%s5412_s1 + $0x13b0] sm:$0xff] }
 0x178   : > { %2029 = vmatprep.subr.mxu0 %v2692_v32  ;;  %2100 = vmatprep.subr.mxu1 %v2820_v33  ;;  %v2899_v3 = vld [vmem:[%s5412_s1 + $0x17b0] sm:$0xff]  ;;  %v2768_v6 = vld [vmem:[%s5412_s1 + $0x1398] sm:$0xff] }
 0x179   : > { %2030 = vmatpush1.msra.mxu0 %v2691_v34  ;;  %2101 = vmatpush1.msra.mxu1 %v2819_v35  ;;  %v2896_v31 = vld [vmem:[%s5412_s1 + $0x1798] sm:$0xff]  ;;  %v2767_v32 = vld [vmem:[%s5412_s1 + $0x1390] sm:$0xff] }
 0x17a   : > { %2031 = vmatprep.subr.mxu0 %v2688_v36  ;;  %2102 = vmatprep.subr.mxu1 %v2816_v37  ;;  %v2895_v33 = vld [vmem:[%s5412_s1 + $0x1790] sm:$0xff]  ;;  %v2764_v34 = vld [vmem:[%s5412_s1 + $0x1378] sm:$0xff] }
 0x17b   : > { %2032 = vmatpush1.msra.mxu0 %v2687_v38  ;;  %2103 = vmatpush1.msra.mxu1 %v2815_v39  ;;  %v2892_v35 = vld [vmem:[%s5412_s1 + $0x1778] sm:$0xff]  ;;  %v2763_v36 = vld [vmem:[%s5412_s1 + $0x1370] sm:$0xff] }
 0x17c   : > { %2033 = vmatprep.subr.mxu0 %v2684_v42  ;;  %2104 = vmatprep.subr.mxu1 %v2812_v43  ;;  %v2891_v37 = vld [vmem:[%s5412_s1 + $0x1770] sm:$0xff]  ;;  %v2760_v38 = vld [vmem:[%s5412_s1 + $0x1358] sm:$0xff] }
 0x17d   : > { %2034 = vmatpush1.msra.mxu0 %v2683_v44  ;;  %2105 = vmatpush1.msra.mxu1 %v2811_v45  ;;  %v2888_v39 = vld [vmem:[%s5412_s1 + $0x1758] sm:$0xff]  ;;  %v2759_v42 = vld [vmem:[%s5412_s1 + $0x1350] sm:$0xff] }
 0x17e   : > { %2035 = vmatprep.subr.mxu0 %v2680_v48  ;;  %2106 = vmatprep.subr.mxu1 %v2808_v49  ;;  %v2887_v43 = vld [vmem:[%s5412_s1 + $0x1750] sm:$0xff]  ;;  %v2756_v44 = vld [vmem:[%s5412_s1 + $0x1338] sm:$0xff] }
 0x17f   : > { %2036 = vmatpush1.msra.mxu0 %v2679_v50  ;;  %2107 = vmatpush1.msra.mxu1 %v2807_v51  ;;  %v2884_v45 = vld [vmem:[%s5412_s1 + $0x1738] sm:$0xff]  ;;  %v2755_v48 = vld [vmem:[%s5412_s1 + $0x1330] sm:$0xff] }
 0x180   : > { %2037 = vmatprep.subr.mxu0 %v2676_v30  ;;  %2108 = vmatprep.subr.mxu1 %v2804_v4  ;;  %v2883_v49 = vld [vmem:[%s5412_s1 + $0x1730] sm:$0xff]  ;;  %v2752_v50 = vld [vmem:[%s5412_s1 + $0x1318] sm:$0xff] }
 0x181   : > { %2038 = vmatpush1.msra.mxu0 %v2675_v56  ;;  %2109 = vmatpush1.msra.mxu1 %v2803_v57  ;;  %v2880_v51 = vld [vmem:[%s5412_s1 + $0x1718] sm:$0xff]  ;;  %v2751_v30 = vld [vmem:[%s5412_s1 + $0x1310] sm:$0xff] }
 0x182   : > { %2039 = vmatprep.subr.mxu0 %v2672_v58  ;;  %2110 = vmatprep.subr.mxu1 %v2800_v59  ;;  %v2879_v4 = vld [vmem:[%s5412_s1 + $0x1710] sm:$0xff]  ;;  %v2748_v56 = vld [vmem:[%s5412_s1 + $0x12f8] sm:$0xff] }
 0x183   : > { %2040 = vmatpush1.msra.mxu0 %v2671_v60  ;;  %2111 = vmatpush1.msra.mxu1 %v2799_v61  ;;  %v2876_v57 = vld [vmem:[%s5412_s1 + $0x16f8] sm:$0xff]  ;;  %v2747_v58 = vld [vmem:[%s5412_s1 + $0x12f0] sm:$0xff] }
 0x184   : > { %2041 = vmatprep.subr.mxu0 %v2668_v62  ;;  %2112 = vmatprep.subr.mxu1 %v2796_v63  ;;  %v2875_v59 = vld [vmem:[%s5412_s1 + $0x16f0] sm:$0xff]  ;;  %v2744_v60 = vld [vmem:[%s5412_s1 + $0x12d8] sm:$0xff] }
 0x185   : > { %2042 = vmatpush1.msra.mxu0 %v2667_v1  ;;  %2113 = vmatpush1.msra.mxu1 %v2795_v8  ;;  %v2872_v61 = vld [vmem:[%s5412_s1 + $0x16d8] sm:$0xff]  ;;  %v2743_v62 = vld [vmem:[%s5412_s1 + $0x12d0] sm:$0xff] }
 0x186   : > { %2043 = vmatprep.subr.mxu0 %v2664_v9  ;;  %2114 = vmatprep.subr.mxu1 %v2792_v10  ;;  %v2871_v63 = vld [vmem:[%s5412_s1 + $0x16d0] sm:$0xff]  ;;  %v2740_v1 = vld [vmem:[%s5412_s1 + $0x12b8] sm:$0xff] }
 0x187   : > { %2044 = vmatpush1.msra.mxu0 %v2663_v12  ;;  %2115 = vmatpush1.msra.mxu1 %v2791_v13  ;;  %v2868_v8 = vld [vmem:[%s5412_s1 + $0x16b8] sm:$0xff]  ;;  %v2739_v9 = vld [vmem:[%s5412_s1 + $0x12b0] sm:$0xff] }
 0x188   : > { %2045 = vmatprep.subr.mxu0 %v2660_v14  ;;  %2116 = vmatprep.subr.mxu1 %v2788_v15  ;;  %v2867_v10 = vld [vmem:[%s5412_s1 + $0x16b0] sm:$0xff]  ;;  %v2736_v12 = vld [vmem:[%s5412_s1 + $0x1298] sm:$0xff] }
 0x189   : > { %2046 = vmatpush1.msra.mxu0 %v2659_v16  ;;  %2117 = vmatpush1.msra.mxu1 %v2787_v17  ;;  %v2864_v13 = vld [vmem:[%s5412_s1 + $0x1698] sm:$0xff]  ;;  %v2735_v14 = vld [vmem:[%s5412_s1 + $0x1290] sm:$0xff] }
 0x18a   : > { %2047 = vmatprep.subr.mxu0 %v2656_v18  ;;  %2118 = vmatprep.subr.mxu1 %v2784_v19  ;;  %v2863_v15 = vld [vmem:[%s5412_s1 + $0x1690] sm:$0xff]  ;;  %v2732_v16 = vld [vmem:[%s5412_s1 + $0x1278] sm:$0xff] }
 0x18b   : > { %2048 = vmatpush1.msra.mxu0 %v2655_v20  ;;  %2119 = vmatpush1.msra.mxu1 %v2783_v21  ;;  %v2860_v17 = vld [vmem:[%s5412_s1 + $0x1678] sm:$0xff]  ;;  %v2731_v18 = vld [vmem:[%s5412_s1 + $0x1270] sm:$0xff] }
 0x18c   : > { %2049 = vmatprep.subr.mxu0 %v2780_v52  ;;  %2120 = vmatprep.subr.mxu1 %v2908_v22  ;;  %v2859_v19 = vld [vmem:[%s5412_s1 + $0x1670] sm:$0xff]  ;;  %v2728_v20 = vld [vmem:[%s5412_s1 + $0x1258] sm:$0xff] }
 0x18d   : > { %2050 = vmatpush2.msra.mxu0 %v2779_v55  ;;  %2121 = vmatpush2.msra.mxu1 %v2907_v23  ;;  %v2856_v21 = vld [vmem:[%s5412_s1 + $0x1658] sm:$0xff]  ;;  %v2727_v52 = vld [vmem:[%s5412_s1 + $0x1250] sm:$0xff] }
 0x18e   : > { %2051 = vmatprep.subr.mxu0 %v2776_v24  ;;  %2122 = vmatprep.subr.mxu1 %v2904_v25  ;;  %v2855_v22 = vld [vmem:[%s5412_s1 + $0x1650] sm:$0xff]  ;;  %v2724_v55 = vld [vmem:[%s5412_s1 + $0x1238] sm:$0xff] }
 0x18f   : > { %2052 = vmatpush2.msra.mxu0 %v2775_v26  ;;  %2123 = vmatpush2.msra.mxu1 %v2903_v27  ;;  %v2852_v23 = vld [vmem:[%s5412_s1 + $0x1638] sm:$0xff]  ;;  %v2723_v24 = vld [vmem:[%s5412_s1 + $0x1230] sm:$0xff] }
 0x190   : > { %2053 = vmatprep.subr.mxu0 %v2772_v28  ;;  %2124 = vmatprep.subr.mxu1 %v2900_v29  ;;  %v2851_v25 = vld [vmem:[%s5412_s1 + $0x1630] sm:$0xff]  ;;  %v2720_v26 = vld [vmem:[%s5412_s1 + $0x1218] sm:$0xff] }
 0x191   : > { %2054 = vmatpush2.msra.mxu0 %v2771_v2  ;;  %2125 = vmatpush2.msra.mxu1 %v2899_v3  ;;  %v2848_v27 = vld [vmem:[%s5412_s1 + $0x1618] sm:$0xff]  ;;  %v2719_v28 = vld [vmem:[%s5412_s1 + $0x1210] sm:$0xff] }
 0x192   : > { %2055 = vmatprep.subr.mxu0 %v2768_v6  ;;  %2126 = vmatprep.subr.mxu1 %v2896_v31  ;;  %v2847_v29 = vld [vmem:[%s5412_s1 + $0x1610] sm:$0xff] }
 0x193   : > { %2056 = vmatpush2.msra.mxu0 %v2767_v32  ;;  %2127 = vmatpush2.msra.mxu1 %v2895_v33 }
 0x194   : > { %2057 = vmatprep.subr.mxu0 %v2764_v34  ;;  %2128 = vmatprep.subr.mxu1 %v2892_v35 }
 0x195   : > { %2058 = vmatpush2.msra.mxu0 %v2763_v36  ;;  %2129 = vmatpush2.msra.mxu1 %v2891_v37 }
 0x196   : > { %2059 = vmatprep.subr.mxu0 %v2760_v38  ;;  %2130 = vmatprep.subr.mxu1 %v2888_v39 }
 0x197   : > { %2060 = vmatpush2.msra.mxu0 %v2759_v42  ;;  %2131 = vmatpush2.msra.mxu1 %v2887_v43  ;;  %v2167_v43 = vsub.s32 0, %v3010_v7 }
 0x198   : > { %2061 = vmatprep.subr.mxu0 %v2756_v44  ;;  %2132 = vmatprep.subr.mxu1 %v2884_v45  ;;  %v2171_v45 = vsub.s32 1, %v3010_v7 }
 0x199   : > { %2062 = vmatpush2.msra.mxu0 %v2755_v48  ;;  %2133 = vmatpush2.msra.mxu1 %v2883_v49 }
 0x19a   : > { %2063 = vmatprep.subr.mxu0 %v2752_v50  ;;  %2134 = vmatprep.subr.mxu1 %v2880_v51 }
 0x19b   : > { %2064 = vmatpush2.msra.mxu0 %v2751_v30  ;;  %2135 = vmatpush2.msra.mxu1 %v2879_v4 }
 0x19c   : > { %2065 = vmatprep.subr.mxu0 %v2748_v56  ;;  %2136 = vmatprep.subr.mxu1 %v2876_v57 }
 0x19d   : > { %2066 = vmatpush2.msra.mxu0 %v2747_v58  ;;  %2137 = vmatpush2.msra.mxu1 %v2875_v59 }
 0x19e   : > { %2067 = vmatprep.subr.mxu0 %v2744_v60  ;;  %2138 = vmatprep.subr.mxu1 %v2872_v61 }
 0x19f   : > { %2068 = vmatpush2.msra.mxu0 %v2743_v62  ;;  %2139 = vmatpush2.msra.mxu1 %v2871_v63 }
 0x1a0   : > { %2069 = vmatprep.subr.mxu0 %v2740_v1  ;;  %2140 = vmatprep.subr.mxu1 %v2868_v8 }
 0x1a1   : > { %2070 = vmatpush2.msra.mxu0 %v2739_v9  ;;  %2141 = vmatpush2.msra.mxu1 %v2867_v10 }
 0x1a2   : > { %2071 = vmatprep.subr.mxu0 %v2736_v12  ;;  %2142 = vmatprep.subr.mxu1 %v2864_v13 }
 0x1a3   : > { %2072 = vmatpush2.msra.mxu0 %v2735_v14  ;;  %2143 = vmatpush2.msra.mxu1 %v2863_v15 }
 0x1a4   : > { %2073 = vmatprep.subr.mxu0 %v2732_v16  ;;  %2144 = vmatprep.subr.mxu1 %v2860_v17 }
 0x1a5   : > { %2074 = vmatpush2.msra.mxu0 %v2731_v18  ;;  %2145 = vmatpush2.msra.mxu1 %v2859_v19 }
 0x1a6   : > { %2075 = vmatprep.subr.mxu0 %v2728_v20  ;;  %2146 = vmatprep.subr.mxu1 %v2856_v21 }
 0x1a7   : > { %2076 = vmatpush2.msra.mxu0 %v2727_v52  ;;  %2147 = vmatpush2.msra.mxu1 %v2855_v22  ;;  %v1400_v2 = vpop.f32.mrf.mxu0  ;;  %v1471_v3 = vpop.f32.mrf.mxu1 }
 0x1a8   : > { %2077 = vmatprep.subr.mxu0 %v2724_v55  ;;  %2148 = vmatprep.subr.mxu1 %v2852_v23 }
 0x1a9   : > { %2078 = vmatpush2.msra.mxu0 %v2723_v24  ;;  %2149 = vmatpush2.msra.mxu1 %v2851_v25  ;;  %v1402_v6 = vpop.f32.mrf.mxu0  ;;  %v1473_v31 = vpop.f32.mrf.mxu1 }
 0x1aa   : > { %2079 = vmatprep.subr.mxu0 %v2720_v26  ;;  %2150 = vmatprep.subr.mxu1 %v2848_v27 }
 0x1ab   : > { %2080 = vmatpush2.msra.mxu0 %v2719_v28  ;;  %2151 = vmatpush2.msra.mxu1 %v2847_v29  ;;  %v2175_v29 = vsub.s32 2, %v3010_v7 }
 0x1ac   : > { %2082 = vmatmul.mubr.f32.vlgmr.msra.gmra.mxu0 %v4573_v46  ;;  %2153 = vmatmul.mubr.f32.vlgmr.msra.gmra.mxu1 %v4575_v47  ;;  %v1188_v46 = vadd.f32 %v4917_v41, %v4915_v40  ;;  %v1190_v47 = vadd.f32 %v4945_v54, %v4943_v53 }
 0x1ae   : > { %v1401_v42 = vadd.f32 %v1400_v2, %v1188_v46  ;;  %v1403_v44 = vadd.f32 %v1402_v6, %v1190_v47  ;;  %v2179_v2 = vsub.s32 3, %v3010_v7 }
 0x1b0   : > { %v1472_v49 = vadd.f32 %v1471_v3, %v1401_v42  ;;  %v1474_v53 = vadd.f32 %v1473_v31, %v1403_v44 }
 0x1e8   : > { %v1542_v32 = vpop.f32.mrf.mxu0  ;;  %v1613_v33 = vpop.f32.mrf.mxu1 }
 0x1e9   : > { %v1543_v34 = vadd.f32 %v1542_v32, %v4971_v0  ;;  %v2163_v0 = vld [vmem:[%s5413_s2] sm:$0xf] }
 0x1ea   : > { %v1544_v35 = vpop.f32.mrf.mxu0  ;;  %v1615_v38 = vpop.f32.mrf.mxu1  ;;  %v2168_v51 = vrot.slane %v2163_v0, %v2167_v43  ;;  %v2172_v4 = vrot.slane %v2163_v0, %v2171_v45  ;;  %v2176_v32 = vrot.slane %v2163_v0, %v2175_v29 }
 0x1eb   : > { %v5372_v36 = vadd.f32 %v1613_v33, %v1543_v34  ;;  %v1545_v37 = vadd.f32 %v1544_v35, %v4979_v11 }
 0x1ed   : > { %v5375_v39 = vadd.f32 %v1615_v38, %v1545_v37  ;;  %v2180_v38 = vrot.slane %v2163_v0, %v2179_v2 }
 0x22a   : > { %v1941_v11 = vpop.f32.mrf.mxu0  ;;  %v2012_v48 = vpop.f32.mrf.mxu1 }
 0x22b   : > { %v2013_v50 = vadd.f32 %v2012_v48, %v1941_v11 }
 0x22c   : > { %v1943_v40 = vpop.f32.mrf.mxu0  ;;  %v2014_v41 = vpop.f32.mrf.mxu1 }
 0x22d   : > { %v2159_v54 = vadd.f32 %v2013_v50, %v1472_v49  ;;  %v2015_v30 = vadd.f32 %v2014_v41, %v1943_v40  ;;  %v2938_v50 = vmov 1966171168  }
 0x22f   : > { %v2185_v56 = vadd.f32 %v2168_v51, %v2159_v54  ;;  %v2160_v57 = vadd.f32 %v2015_v30, %v1474_v53  ;;  %v2221_v51 = vunpack.c.l.s4 %v2938_v50 }
 0x231   : > { %v2190_v58 = vrot.slane %v2185_v56, 4  ;;  %v2250_v59 = vmul.f32 %v2185_v56, %v2185_v56  ;;  %2309 = vst [vmem:[%s2985_s27] sm:$0xff] %v2185_v56  ;;  %v2186_v60 = vadd.f32 %v2172_v4, %v2160_v57 }
 0x233   : > { %v2191_v61 = vadd.f32 %v2190_v58, %v2185_v56  ;;  %v2254_v62 = vrot.slane %v2250_v59, 4  ;;  %v2196_v63 = vrot.slane %v2186_v60, 4  ;;  %v2251_v1 = vmul.f32 %v2186_v60, %v2186_v60  ;;  %2310 = vst [vmem:[%s2985_s27 + $0x8] sm:$0xff] %v2186_v60 }
 0x235   : > { %v2192_v8 = vrot.slane %v2191_v61, 2  ;;  %v2255_v9 = vadd.f32 %v2254_v62, %v2250_v59  ;;  %v2197_v10 = vadd.f32 %v2196_v63, %v2186_v60  ;;  %v2260_v12 = vrot.slane %v2251_v1, 4 }
 0x237   : > { %v2193_v13 = vadd.f32 %v2192_v8, %v2191_v61  ;;  %v2256_v14 = vrot.slane %v2255_v9, 2  ;;  %v2198_v15 = vrot.slane %v2197_v10, 2  ;;  %v2261_v16 = vadd.f32 %v2260_v12, %v2251_v1 }
 0x239   : > { %v2194_v17 = vrot.slane %v2193_v13, 1  ;;  %v2257_v18 = vadd.f32 %v2256_v14, %v2255_v9  ;;  %v2199_v19 = vadd.f32 %v2198_v15, %v2197_v10  ;;  %v2262_v20 = vrot.slane %v2261_v16, 2 }
 0x23b   : > { %v2258_v21 = vrot.slane %v2257_v18, 1  ;;  %v2200_v52 = vrot.slane %v2199_v19, 1  ;;  %v2263_v22 = vadd.f32 %v2262_v20, %v2261_v16  ;;  %v2195_v55 = vadd.f32 %v2194_v17, %v2193_v13  ;;  %v2189_v20 = vld [vmem:[%s5415_s4] sm:$0xf] }
 0x23d   : > { %v2201_v23 = vadd.f32 %v2200_v52, %v2199_v19  ;;  %v2264_v24 = vrot.slane %v2263_v22, 1  ;;  %v2259_v25 = vadd.f32 %v2258_v21, %v2257_v18 }
 0x23f   : > { %v2218_v26 = vcombine.low %v2195_v55, %v2201_v23  ;;  %v2265_v27 = vadd.f32 %v2264_v24, %v2263_v22 }
 0x241   : > { %v2282_v28 = vcombine.low %v2259_v25, %v2265_v27 }
 0x26c   : > { %v2083_v3 = vpop.f32.mrf.mxu0  ;;  %v2154_v6 = vpop.f32.mrf.mxu1 }
 0x26d   : > { %v2155_v31 = vadd.f32 %v2154_v6, %v2083_v3 }
 0x26e   : > { %v2085_v33 = vpop.f32.mrf.mxu0  ;;  %v2156_v34 = vpop.f32.mrf.mxu1 }
 0x26f   : > { %v2161_v35 = vadd.f32 %v2155_v31, %v5372_v36  ;;  %v2157_v37 = vadd.f32 %v2156_v34, %v2085_v33 }
 0x271   : > { %v2187_v46 = vadd.f32 %v2176_v32, %v2161_v35  ;;  %v2162_v47 = vadd.f32 %v2157_v37, %v5375_v39  ;;  %v2222_v39 = vunpack.c.0.s8 %v2221_v51 }
 0x273   : > { %v2202_v42 = vrot.slane %v2187_v46, 4  ;;  %v2252_v43 = vmul.f32 %v2187_v46, %v2187_v46  ;;  %2311 = vst [vmem:[%s2985_s27 + $0x10] sm:$0xff] %v2187_v46  ;;  %v2188_v44 = vadd.f32 %v2180_v38, %v2162_v47  ;;  %v2225_v63 = vsub.s32 %v2222_v39, %v3010_v7  ;;  %v2249_v7 = vld [vmem:[%s5416_s5] sm:$0xf] }
 0x275   : > { %v2203_v45 = vadd.f32 %v2202_v42, %v2187_v46  ;;  %v2266_v11 = vrot.slane %v2252_v43, 4  ;;  %v2208_v48 = vrot.slane %v2188_v44, 4  ;;  %v2253_v49 = vmul.f32 %v2188_v44, %v2188_v44  ;;  %2312 = vst [vmem:[%s2985_s27 + $0x18] sm:$0xff] %v2188_v44 }
 0x276   : > { %v2226_v14 = vrot.slane %v2218_v26, %v2225_v63  ;;  %v2290_v17 = vrot.slane %v2282_v28, %v2225_v63 }
 0x277   : > { %v2204_v40 = vrot.slane %v2203_v45, 2  ;;  %v2267_v41 = vadd.f32 %v2266_v11, %v2252_v43  ;;  %v2209_v53 = vadd.f32 %v2208_v48, %v2188_v44  ;;  %v2272_v36 = vrot.slane %v2253_v49, 4 }
 0x279   : > { %v2205_v54 = vadd.f32 %v2204_v40, %v2203_v45  ;;  %v2268_v0 = vrot.slane %v2267_v41, 2  ;;  %v2210_v30 = vrot.slane %v2209_v53, 2  ;;  %v2273_v4 = vadd.f32 %v2272_v36, %v2253_v49 }
 0x27b   : > { %v2206_v56 = vrot.slane %v2205_v54, 1  ;;  %v2269_v57 = vadd.f32 %v2268_v0, %v2267_v41  ;;  %v2211_v58 = vadd.f32 %v2210_v30, %v2209_v53  ;;  %v2274_v59 = vrot.slane %v2273_v4, 2 }
 0x27d   : > { %v2270_v60 = vrot.slane %v2269_v57, 1  ;;  %v2212_v61 = vrot.slane %v2211_v58, 1  ;;  %v2275_v62 = vadd.f32 %v2274_v59, %v2273_v4  ;;  %v2207_v1 = vadd.f32 %v2206_v56, %v2205_v54 }
 0x27f   : > { %v2213_v8 = vadd.f32 %v2212_v61, %v2211_v58  ;;  %v2276_v9 = vrot.slane %v2275_v62, 1  ;;  %v2271_v10 = vadd.f32 %v2270_v60, %v2269_v57 }
 0x281   : > { %v2219_v12 = vcombine.low %v2207_v1, %v2213_v8  ;;  %v2277_v13 = vadd.f32 %v2276_v9, %v2275_v62 }
 0x283   : > { %v2233_v15 = vrot.slane %v2219_v12, %v2225_v63  ;;  %v2283_v16 = vcombine.low %v2271_v10, %v2277_v13 }
 0x285   : > { %v2234_v18 = vcombine.low %v2226_v14, %v2233_v15  ;;  %v2297_v19 = vrot.slane %v2283_v16, %v2225_v63 }
 0x287   : > { %v2241_v21 = vrot.slane %v2234_v18, %v2225_v63  ;;  %v2298_v52 = vcombine.low %v2290_v17, %v2297_v19 }
 0x289   : > { %v2243_v22 = vadd.f32 %v2241_v21, %v2189_v20  ;;  %v2305_v55 = vrot.slane %v2298_v52, %v2225_v63 }
 0x28b   : > { %2248 = vst.msk [vmem:[%s5415_s4] sm:$0xf] %vm2246_vm4, %v2243_v22  ;;  %v2307_v23 = vadd.f32 %v2305_v55, %v2249_v7 }
 0x28d   : > { %2308 = vst.msk [vmem:[%s5416_s5] sm:$0xf] %vm2246_vm4, %v2307_v23 }
 0x28e PF: > { %s16_s18 = sadd.s32 1, %s2934_s18  }
 0x28f   : > { %p13_p5 = scmp.ge.s32.totalorder %s16_s18, 4  }
 0x291   :  { %15 = sbr.rel (!%p13_p5) target bundleno = 1 (0x1), region = 84 }

// kernel: res_decoder_forward.4
= control target key start
LH: loop header
LB: loop body
LE: loop exit
PB: predicated region body
PF: predicated region fallthrough
CT: control target
= control target key end

     0   :  { %s3085_s24 = smov 0   ;;  %s5541_s0 = inlined_call_operand.vmem [shape: f32[2,8,512], index: 0, kind: input, shape index: {}]   ;;  %s5542_s1 = inlined_call_operand.vmem [shape: f32[3,512,512], index: 1, kind: input, shape index: {}]   ;;  %s5543_s2 = inlined_call_operand.vmem [shape: f32[1,512], index: 2, kind: input, shape index: {}]   ;;  %s5544_s3 = inlined_call_operand.vmem [shape: f32[1,512], index: 3, kind: input, shape index: {}]   ;;  %s5545_s4 = inlined_call_operand.vmem [shape: f32[1,512], index: 4, kind: input, shape index: {}]   ;;  %s5546_s5 = inlined_call_operand.vmem [shape: f32[2,8,512], index: 5, kind: output, shape index: {0}]   ;;  %s5547_s6 = inlined_call_operand.vmem [shape: f32[1,512], index: 6, kind: output, shape index: {1}]   ;;  %s5548_s7 = inlined_call_operand.vmem [shape: f32[1,512], index: 7, kind: output, shape index: {2}]  }
   0x1 LB: > { %s2490_s25 = sadd.s32 4294967295, %s3040_s24   ;;  %p2494_p0 = scmp.ge.s32.totalorder %s3040_s24, 1  ;;  %s3040_s24 = sphi %s3085_s24, %s18_s24  }
   0x2   : > { %p232_p1 = scmp.lt.s32.totalorder %s3040_s24, 3 }
   0x4   : > { %p233_p2 = pnand %p2494_p0, %p232_p1 }
   0x5   : > { %p264_p3 = scmp.lt.s32.totalorder (!%p233_p2), %s2490_s25, 1  ;;  %p2499_p4 = scmp.ne.s32.totalorder (!%p233_p2), %s2490_s25, 0 }
   0x6   : > { %236 = sbr.rel (%p233_p2) target bundleno = 663 (0x297), region = 40 }
   0xb   : > { %s265_s26 = scalar_select %p264_p3, %s2490_s25, 1 }
   0xc   : > { %277 = sbr.rel (%p2499_p4) target bundleno = 21 (0x15), region = 44 }
   0xd   : > { %s3021_s27 = sshll.u32 %s265_s26, 5 }
   0xe   : > { %s268_s30 = scalar_lea.vmem %s5541_s0, %s3021_s27  ;;  %s3099_s10 = scalar_lea.vmem %s5546_s5, %s3021_s27 }
  0x11   : > { %v278_v0 = vlaneseq  ;;  %v3042_v1 = vmov 0.0  }
  0x13   : > { %vm280_vm0 = vcmp.lt.s32.totalorder %v278_v0, 512 }
  0x14   : > { %282 = vst.msk [vmem:[%s5547_s6] sm:$0xf] %vm280_vm0, %v3042_v1  ;;  %283 = vst.msk [vmem:[%s5548_s7] sm:$0xf] %vm280_vm0, %v3042_v1 }
  0x15 PF: > { %v290_v2 = vlaneseq  ;;  %v3043_v3 = vmov 0.0   ;;  %v288_v5 = vld [vmem:[%s5544_s3] sm:$0xf]  ;;  %v285_v11 = vld [vmem:[%s268_s30 + $0x8] sm:$0xff]  ;;  %v287_v12 = vld [vmem:[%s268_s30 + $0x18] sm:$0xff]  ;;  %vm356_vm2 = vcmask 64512  }
  0x16   : > { %424 = vmatprep.mubr.f32.mxu0 %v3043_v3  ;;  %495 = vmatprep.mubr.f32.mxu1 %v3043_v3  ;;  %v314_v6 = vld [vmem:[%s5545_s4] sm:$0xf]  ;;  %v286_v20 = vld [vmem:[%s268_s30 + $0x10] sm:$0xff]  ;;  %v2568_v39 = vld [vmem:[%s5542_s1 + $0x9e8] sm:$0xff] }
  0x17   : > { %v3108_v4 = vshrl.u32 %v290_v2, 7  ;;  %v347_v13 = vand.u32 127, %v290_v2  ;;  %v284_v19 = vld [vmem:[%s268_s30] sm:$0xff]  ;;  %v2696_v40 = vld [vmem:[%s5542_s1 + $0xde8] sm:$0xff]  ;;  %vm2356_vm4 = vcmp.lt.s32.totalorder %v290_v2, 512 }
  0x18   : > { %v2567_v42 = vld [vmem:[%s5542_s1 + $0x9e0] sm:$0xff]  ;;  %v2564_v44 = vld [vmem:[%s5542_s1 + $0x9c8] sm:$0xff] }
  0x19   : > { %v3117_v7 = vsub.s32 1, %v3108_v4  ;;  %v3120_v8 = vsub.s32 3, %v3108_v4  ;;  %v3123_v9 = vsub.s32 0, %v3108_v4  ;;  %v3126_v10 = vsub.s32 2, %v3108_v4  ;;  %v2695_v43 = vld [vmem:[%s5542_s1 + $0xde0] sm:$0xff]  ;;  %v2692_v45 = vld [vmem:[%s5542_s1 + $0xdc8] sm:$0xff] }
  0x1a   : > { %v2500_v14 = vadd.s32 4294967295, %v3108_v4  ;;  %v352_v33 = vadd.s32 1, %v3108_v4  ;;  %v2563_v46 = vld [vmem:[%s5542_s1 + $0x9c0] sm:$0xff]  ;;  %v2560_v48 = vld [vmem:[%s5542_s1 + $0x9a8] sm:$0xff] }
  0x1b   : > { %v297_v15 = vrot.slane %v288_v5, %v3117_v7  ;;  %v323_v16 = vrot.slane %v314_v6, %v3117_v7  ;;  %v305_v17 = vrot.slane %v288_v5, %v3120_v8  ;;  %v331_v18 = vrot.slane %v314_v6, %v3120_v8  ;;  %v2691_v47 = vld [vmem:[%s5542_s1 + $0xdc0] sm:$0xff]  ;;  %v2688_v49 = vld [vmem:[%s5542_s1 + $0xda8] sm:$0xff] }
  0x1c   : > { %v293_v21 = vrot.slane %v288_v5, %v3123_v9  ;;  %v319_v22 = vrot.slane %v314_v6, %v3123_v9  ;;  %v301_v23 = vrot.slane %v288_v5, %v3126_v10  ;;  %v327_v24 = vrot.slane %v314_v6, %v3126_v10  ;;  %v2559_v50 = vld [vmem:[%s5542_s1 + $0x9a0] sm:$0xff]  ;;  %v2556_v52 = vld [vmem:[%s5542_s1 + $0x988] sm:$0xff] }
  0x1d   : > { %v311_v25 = vmul.f32 %v297_v15, %v285_v11  ;;  %v313_v26 = vmul.f32 %v305_v17, %v287_v12  ;;  %vm349_vm1 = vcmp.eq.s32.totalorder %v347_v13, %v2500_v14  ;;  %vm353_vm3 = vcmp.eq.s32.totalorder %v347_v13, %v352_v33  ;;  %v2687_v51 = vld [vmem:[%s5542_s1 + $0xda0] sm:$0xff]  ;;  %v2684_v53 = vld [vmem:[%s5542_s1 + $0xd88] sm:$0xff] }
  0x1e   : > { %v310_v27 = vmul.f32 %v293_v21, %v284_v19  ;;  %v312_v28 = vmul.f32 %v301_v23, %v286_v20  ;;  %v2501_v38 = vsel %vm349_vm1, 1.0, %v3043_v3  ;;  %v2502_v41 = vsel %vm353_vm3, 1.0, %v3043_v3  ;;  %v2555_v54 = vld [vmem:[%s5542_s1 + $0x980] sm:$0xff]  ;;  %v2552_v56 = vld [vmem:[%s5542_s1 + $0x968] sm:$0xff] }
  0x1f   : > { %v337_v29 = vadd.f32 %v323_v16, %v311_v25  ;;  %v339_v30 = vadd.f32 %v331_v18, %v313_v26  ;;  %v2683_v55 = vld [vmem:[%s5542_s1 + $0xd80] sm:$0xff]  ;;  %v2680_v57 = vld [vmem:[%s5542_s1 + $0xd68] sm:$0xff] }
  0x20   : > { %v336_v31 = vadd.f32 %v319_v22, %v310_v27  ;;  %v338_v32 = vadd.f32 %v327_v24, %v312_v28  ;;  %v2551_v58 = vld [vmem:[%s5542_s1 + $0x960] sm:$0xff]  ;;  %v2548_v60 = vld [vmem:[%s5542_s1 + $0x948] sm:$0xff] }
  0x21   : > { %v3139_v34 = vmax.f32 %v337_v29, 0.0  ;;  %v3141_v35 = vmax.f32 %v339_v30, 0.0  ;;  %v2679_v59 = vld [vmem:[%s5542_s1 + $0xd60] sm:$0xff]  ;;  %v2676_v61 = vld [vmem:[%s5542_s1 + $0xd48] sm:$0xff] }
  0x22   : > { %v3143_v36 = vmax.f32 %v336_v31, 0.0  ;;  %v3145_v37 = vmax.f32 %v338_v32, 0.0  ;;  %v2547_v62 = vld [vmem:[%s5542_s1 + $0x940] sm:$0xff]  ;;  %v2544_v0 = vld [vmem:[%s5542_s1 + $0x928] sm:$0xff] }
  0x23   : > { %390 = vmatprep.subr.mxu0 %v3139_v34  ;;  %461 = vmatprep.subr.mxu1 %v3141_v35  ;;  %v2675_v63 = vld [vmem:[%s5542_s1 + $0xd40] sm:$0xff]  ;;  %v2672_v1 = vld [vmem:[%s5542_s1 + $0xd28] sm:$0xff] }
  0x24   : > { %391 = vmatpush1.msra.mxu0 %v3143_v36  ;;  %462 = vmatpush1.msra.mxu1 %v3145_v37  ;;  %v2671_v5 = vld [vmem:[%s5542_s1 + $0xd20] sm:$0xff]  ;;  %v2540_v6 = vld [vmem:[%s5542_s1 + $0x908] sm:$0xff] }
  0x25   : > { %2503 = vmatmul.mubr.msk.f32.vlgmr.msra.gmra.mxu0 %vm356_vm2, %v2501_v38  ;;  %2504 = vmatmul.mubr.msk.f32.vlgmr.msra.gmra.mxu1 %vm356_vm2, %v2501_v38  ;;  %v2668_v11 = vld [vmem:[%s5542_s1 + $0xd08] sm:$0xff]  ;;  %v2539_v12 = vld [vmem:[%s5542_s1 + $0x900] sm:$0xff] }
  0x26   : > { %535 = vmatprep.subr.mxu0 %v3139_v34  ;;  %606 = vmatprep.subr.mxu1 %v3141_v35  ;;  %v2667_v13 = vld [vmem:[%s5542_s1 + $0xd00] sm:$0xff]  ;;  %v2536_v14 = vld [vmem:[%s5542_s1 + $0x8e8] sm:$0xff] }
  0x27   : > { %536 = vmatpush1.msra.mxu0 %v3143_v36  ;;  %607 = vmatpush1.msra.mxu1 %v3145_v37  ;;  %v2664_v15 = vld [vmem:[%s5542_s1 + $0xce8] sm:$0xff]  ;;  %v2535_v16 = vld [vmem:[%s5542_s1 + $0x8e0] sm:$0xff] }
  0x28   : > { %569 = vmatprep.mubr.f32.mxu0 %v3043_v3  ;;  %640 = vmatprep.mubr.f32.mxu1 %v3043_v3  ;;  %v2543_v3 = vld [vmem:[%s5542_s1 + $0x920] sm:$0xff]  ;;  %v2532_v18 = vld [vmem:[%s5542_s1 + $0x8c8] sm:$0xff] }
  0x29   : > { %1160 = vmatprep.subr.mxu0 %v2568_v39  ;;  %1231 = vmatprep.subr.mxu1 %v2696_v40  ;;  %v2663_v17 = vld [vmem:[%s5542_s1 + $0xce0] sm:$0xff]  ;;  %v2660_v19 = vld [vmem:[%s5542_s1 + $0xcc8] sm:$0xff] }
  0x2a   : > { %2505 = vmatmul.mubr.msk.f32.vlgmr.msra.gmra.mxu0 %vm356_vm2, %v2502_v41  ;;  %2506 = vmatmul.mubr.msk.f32.vlgmr.msra.gmra.mxu1 %vm356_vm2, %v2502_v41  ;;  %v2531_v20 = vld [vmem:[%s5542_s1 + $0x8c0] sm:$0xff]  ;;  %v2528_v22 = vld [vmem:[%s5542_s1 + $0x8a8] sm:$0xff] }
  0x2b   : > { %1161 = vmatpush1.msra.mxu0 %v2567_v42  ;;  %1232 = vmatpush1.msra.mxu1 %v2695_v43  ;;  %v2659_v21 = vld [vmem:[%s5542_s1 + $0xcc0] sm:$0xff]  ;;  %v2656_v23 = vld [vmem:[%s5542_s1 + $0xca8] sm:$0xff] }
  0x2c   : > { %1162 = vmatprep.subr.mxu0 %v2564_v44  ;;  %1233 = vmatprep.subr.mxu1 %v2692_v45  ;;  %v2527_v24 = vld [vmem:[%s5542_s1 + $0x8a0] sm:$0xff]  ;;  %v2524_v26 = vld [vmem:[%s5542_s1 + $0x888] sm:$0xff] }
  0x2d   : > { %1163 = vmatpush1.msra.mxu0 %v2563_v46  ;;  %1234 = vmatpush1.msra.mxu1 %v2691_v47  ;;  %v2655_v25 = vld [vmem:[%s5542_s1 + $0xca0] sm:$0xff]  ;;  %v2652_v27 = vld [vmem:[%s5542_s1 + $0xc88] sm:$0xff] }
  0x2e   : > { %1164 = vmatprep.subr.mxu0 %v2560_v48  ;;  %1235 = vmatprep.subr.mxu1 %v2688_v49  ;;  %v2523_v28 = vld [vmem:[%s5542_s1 + $0x880] sm:$0xff]  ;;  %v2520_v30 = vld [vmem:[%s5542_s1 + $0x868] sm:$0xff] }
  0x2f   : > { %1165 = vmatpush1.msra.mxu0 %v2559_v50  ;;  %1236 = vmatpush1.msra.mxu1 %v2687_v51  ;;  %v2651_v29 = vld [vmem:[%s5542_s1 + $0xc80] sm:$0xff]  ;;  %v2648_v31 = vld [vmem:[%s5542_s1 + $0xc68] sm:$0xff] }
  0x30   : > { %1166 = vmatprep.subr.mxu0 %v2556_v52  ;;  %1237 = vmatprep.subr.mxu1 %v2684_v53  ;;  %v2519_v32 = vld [vmem:[%s5542_s1 + $0x860] sm:$0xff]  ;;  %v2516_v38 = vld [vmem:[%s5542_s1 + $0x848] sm:$0xff] }
  0x31   : > { %1167 = vmatpush1.msra.mxu0 %v2555_v54  ;;  %1238 = vmatpush1.msra.mxu1 %v2683_v55  ;;  %v2647_v33 = vld [vmem:[%s5542_s1 + $0xc60] sm:$0xff]  ;;  %v2644_v39 = vld [vmem:[%s5542_s1 + $0xc48] sm:$0xff] }
  0x32   : > { %1168 = vmatprep.subr.mxu0 %v2552_v56  ;;  %1239 = vmatprep.subr.mxu1 %v2680_v57  ;;  %v2515_v40 = vld [vmem:[%s5542_s1 + $0x840] sm:$0xff]  ;;  %v2512_v42 = vld [vmem:[%s5542_s1 + $0x828] sm:$0xff] }
  0x33   : > { %1169 = vmatpush1.msra.mxu0 %v2551_v58  ;;  %1240 = vmatpush1.msra.mxu1 %v2679_v59  ;;  %v2643_v41 = vld [vmem:[%s5542_s1 + $0xc40] sm:$0xff]  ;;  %v2640_v43 = vld [vmem:[%s5542_s1 + $0xc28] sm:$0xff] }
  0x34   : > { %1170 = vmatprep.subr.mxu0 %v2548_v60  ;;  %1241 = vmatprep.subr.mxu1 %v2676_v61  ;;  %v2511_v44 = vld [vmem:[%s5542_s1 + $0x820] sm:$0xff]  ;;  %v2508_v46 = vld [vmem:[%s5542_s1 + $0x808] sm:$0xff] }
  0x35   : > { %1171 = vmatpush1.msra.mxu0 %v2547_v62  ;;  %1242 = vmatpush1.msra.mxu1 %v2675_v63  ;;  %v2639_v45 = vld [vmem:[%s5542_s1 + $0xc20] sm:$0xff]  ;;  %v2636_v47 = vld [vmem:[%s5542_s1 + $0xc08] sm:$0xff] }
  0x36   : > { %1172 = vmatprep.subr.mxu0 %v2544_v0  ;;  %1243 = vmatprep.subr.mxu1 %v2672_v1  ;;  %v2507_v48 = vld [vmem:[%s5542_s1 + $0x800] sm:$0xff]  ;;  %v2632_v50 = vld [vmem:[%s5542_s1 + $0xbe8] sm:$0xff] }
  0x37   : > { %1173 = vmatpush1.msra.mxu0 %v2543_v3  ;;  %1244 = vmatpush1.msra.mxu1 %v2671_v5  ;;  %v2635_v49 = vld [vmem:[%s5542_s1 + $0xc00] sm:$0xff]  ;;  %v2760_v51 = vld [vmem:[%s5542_s1 + $0xfe8] sm:$0xff] }
  0x38   : > { %1174 = vmatprep.subr.mxu0 %v2540_v6  ;;  %1245 = vmatprep.subr.mxu1 %v2668_v11  ;;  %v2631_v52 = vld [vmem:[%s5542_s1 + $0xbe0] sm:$0xff]  ;;  %v2628_v54 = vld [vmem:[%s5542_s1 + $0xbc8] sm:$0xff] }
  0x39   : > { %1175 = vmatpush1.msra.mxu0 %v2539_v12  ;;  %1246 = vmatpush1.msra.mxu1 %v2667_v13  ;;  %v2759_v53 = vld [vmem:[%s5542_s1 + $0xfe0] sm:$0xff]  ;;  %v2756_v55 = vld [vmem:[%s5542_s1 + $0xfc8] sm:$0xff] }
  0x3a   : > { %1176 = vmatprep.subr.mxu0 %v2536_v14  ;;  %1247 = vmatprep.subr.mxu1 %v2664_v15  ;;  %v2627_v56 = vld [vmem:[%s5542_s1 + $0xbc0] sm:$0xff]  ;;  %v2624_v58 = vld [vmem:[%s5542_s1 + $0xba8] sm:$0xff] }
  0x3b   : > { %1177 = vmatpush1.msra.mxu0 %v2535_v16  ;;  %1248 = vmatpush1.msra.mxu1 %v2663_v17  ;;  %v2755_v57 = vld [vmem:[%s5542_s1 + $0xfc0] sm:$0xff]  ;;  %v2752_v59 = vld [vmem:[%s5542_s1 + $0xfa8] sm:$0xff] }
  0x3c   : > { %1178 = vmatprep.subr.mxu0 %v2532_v18  ;;  %1249 = vmatprep.subr.mxu1 %v2660_v19  ;;  %v2623_v60 = vld [vmem:[%s5542_s1 + $0xba0] sm:$0xff]  ;;  %v2620_v62 = vld [vmem:[%s5542_s1 + $0xb88] sm:$0xff] }
  0x3d   : > { %1179 = vmatpush1.msra.mxu0 %v2531_v20  ;;  %1250 = vmatpush1.msra.mxu1 %v2659_v21  ;;  %v2751_v61 = vld [vmem:[%s5542_s1 + $0xfa0] sm:$0xff]  ;;  %v2748_v63 = vld [vmem:[%s5542_s1 + $0xf88] sm:$0xff] }
  0x3e   : > { %1180 = vmatprep.subr.mxu0 %v2528_v22  ;;  %1251 = vmatprep.subr.mxu1 %v2656_v23  ;;  %v2619_v0 = vld [vmem:[%s5542_s1 + $0xb80] sm:$0xff]  ;;  %v2616_v3 = vld [vmem:[%s5542_s1 + $0xb68] sm:$0xff] }
  0x3f   : > { %1181 = vmatpush1.msra.mxu0 %v2527_v24  ;;  %1252 = vmatpush1.msra.mxu1 %v2655_v25  ;;  %v2747_v1 = vld [vmem:[%s5542_s1 + $0xf80] sm:$0xff]  ;;  %v2744_v5 = vld [vmem:[%s5542_s1 + $0xf68] sm:$0xff] }
  0x40   : > { %1182 = vmatprep.subr.mxu0 %v2524_v26  ;;  %1253 = vmatprep.subr.mxu1 %v2652_v27  ;;  %v2615_v6 = vld [vmem:[%s5542_s1 + $0xb60] sm:$0xff]  ;;  %v2612_v12 = vld [vmem:[%s5542_s1 + $0xb48] sm:$0xff] }
  0x41   : > { %1183 = vmatpush1.msra.mxu0 %v2523_v28  ;;  %1254 = vmatpush1.msra.mxu1 %v2651_v29  ;;  %v2743_v11 = vld [vmem:[%s5542_s1 + $0xf60] sm:$0xff]  ;;  %v2740_v13 = vld [vmem:[%s5542_s1 + $0xf48] sm:$0xff] }
  0x42   : > { %1184 = vmatprep.subr.mxu0 %v2520_v30  ;;  %1255 = vmatprep.subr.mxu1 %v2648_v31  ;;  %v2611_v14 = vld [vmem:[%s5542_s1 + $0xb40] sm:$0xff]  ;;  %v2608_v16 = vld [vmem:[%s5542_s1 + $0xb28] sm:$0xff] }
  0x43   : > { %1185 = vmatpush1.msra.mxu0 %v2519_v32  ;;  %1256 = vmatpush1.msra.mxu1 %v2647_v33  ;;  %v2739_v15 = vld [vmem:[%s5542_s1 + $0xf40] sm:$0xff]  ;;  %v2736_v17 = vld [vmem:[%s5542_s1 + $0xf28] sm:$0xff] }
  0x44   : > { %1186 = vmatprep.subr.mxu0 %v2516_v38  ;;  %1257 = vmatprep.subr.mxu1 %v2644_v39  ;;  %v2607_v18 = vld [vmem:[%s5542_s1 + $0xb20] sm:$0xff]  ;;  %v2604_v20 = vld [vmem:[%s5542_s1 + $0xb08] sm:$0xff] }
  0x45   : > { %1187 = vmatpush1.msra.mxu0 %v2515_v40  ;;  %1258 = vmatpush1.msra.mxu1 %v2643_v41  ;;  %v2735_v19 = vld [vmem:[%s5542_s1 + $0xf20] sm:$0xff]  ;;  %v2732_v21 = vld [vmem:[%s5542_s1 + $0xf08] sm:$0xff] }
  0x46   : > { %1188 = vmatprep.subr.mxu0 %v2512_v42  ;;  %1259 = vmatprep.subr.mxu1 %v2640_v43  ;;  %v2603_v22 = vld [vmem:[%s5542_s1 + $0xb00] sm:$0xff]  ;;  %v2600_v24 = vld [vmem:[%s5542_s1 + $0xae8] sm:$0xff] }
  0x47   : > { %1189 = vmatpush1.msra.mxu0 %v2511_v44  ;;  %1260 = vmatpush1.msra.mxu1 %v2639_v45  ;;  %v2731_v23 = vld [vmem:[%s5542_s1 + $0xf00] sm:$0xff]  ;;  %v2728_v25 = vld [vmem:[%s5542_s1 + $0xee8] sm:$0xff] }
  0x48   : > { %1190 = vmatprep.subr.mxu0 %v2508_v46  ;;  %1261 = vmatprep.subr.mxu1 %v2636_v47  ;;  %v2599_v26 = vld [vmem:[%s5542_s1 + $0xae0] sm:$0xff]  ;;  %v2596_v28 = vld [vmem:[%s5542_s1 + $0xac8] sm:$0xff] }
  0x49   : > { %1191 = vmatpush1.msra.mxu0 %v2507_v48  ;;  %1262 = vmatpush1.msra.mxu1 %v2635_v49  ;;  %v2727_v27 = vld [vmem:[%s5542_s1 + $0xee0] sm:$0xff]  ;;  %v2724_v29 = vld [vmem:[%s5542_s1 + $0xec8] sm:$0xff] }
  0x4a   : > { %1192 = vmatprep.subr.mxu0 %v2632_v50  ;;  %1263 = vmatprep.subr.mxu1 %v2760_v51  ;;  %v2595_v30 = vld [vmem:[%s5542_s1 + $0xac0] sm:$0xff]  ;;  %v2592_v32 = vld [vmem:[%s5542_s1 + $0xaa8] sm:$0xff] }
  0x4b   : > { %1193 = vmatpush2.msra.mxu0 %v2631_v52  ;;  %1264 = vmatpush2.msra.mxu1 %v2759_v53  ;;  %v2723_v31 = vld [vmem:[%s5542_s1 + $0xec0] sm:$0xff]  ;;  %v2720_v33 = vld [vmem:[%s5542_s1 + $0xea8] sm:$0xff] }
  0x4c   : > { %1194 = vmatprep.subr.mxu0 %v2628_v54  ;;  %1265 = vmatprep.subr.mxu1 %v2756_v55  ;;  %v2591_v38 = vld [vmem:[%s5542_s1 + $0xaa0] sm:$0xff]  ;;  %v2588_v40 = vld [vmem:[%s5542_s1 + $0xa88] sm:$0xff] }
  0x4d   : > { %1195 = vmatpush2.msra.mxu0 %v2627_v56  ;;  %1266 = vmatpush2.msra.mxu1 %v2755_v57  ;;  %v2719_v39 = vld [vmem:[%s5542_s1 + $0xea0] sm:$0xff]  ;;  %v2716_v41 = vld [vmem:[%s5542_s1 + $0xe88] sm:$0xff] }
  0x4e   : > { %1196 = vmatprep.subr.mxu0 %v2624_v58  ;;  %1267 = vmatprep.subr.mxu1 %v2752_v59  ;;  %v2587_v42 = vld [vmem:[%s5542_s1 + $0xa80] sm:$0xff]  ;;  %v2584_v44 = vld [vmem:[%s5542_s1 + $0xa68] sm:$0xff] }
  0x4f   : > { %1197 = vmatpush2.msra.mxu0 %v2623_v60  ;;  %1268 = vmatpush2.msra.mxu1 %v2751_v61  ;;  %v2715_v43 = vld [vmem:[%s5542_s1 + $0xe80] sm:$0xff]  ;;  %v2712_v45 = vld [vmem:[%s5542_s1 + $0xe68] sm:$0xff]  ;;  %v2570_v60 = vld [vmem:[%s5542_s1 + $0x9f8] sm:$0xff] }
  0x50   : > { %1198 = vmatprep.subr.mxu0 %v2620_v62  ;;  %1269 = vmatprep.subr.mxu1 %v2748_v63  ;;  %v2583_v46 = vld [vmem:[%s5542_s1 + $0xa60] sm:$0xff]  ;;  %v2580_v48 = vld [vmem:[%s5542_s1 + $0xa48] sm:$0xff]  ;;  %v2698_v61 = vld [vmem:[%s5542_s1 + $0xdf8] sm:$0xff] }
  0x51   : > { %1199 = vmatpush2.msra.mxu0 %v2619_v0  ;;  %1270 = vmatpush2.msra.mxu1 %v2747_v1  ;;  %v2711_v47 = vld [vmem:[%s5542_s1 + $0xe60] sm:$0xff]  ;;  %v2708_v49 = vld [vmem:[%s5542_s1 + $0xe48] sm:$0xff]  ;;  %v2569_v62 = vld [vmem:[%s5542_s1 + $0x9f0] sm:$0xff] }
  0x52   : > { %1200 = vmatprep.subr.mxu0 %v2616_v3  ;;  %1271 = vmatprep.subr.mxu1 %v2744_v5  ;;  %v2579_v50 = vld [vmem:[%s5542_s1 + $0xa40] sm:$0xff]  ;;  %v2576_v52 = vld [vmem:[%s5542_s1 + $0xa28] sm:$0xff]  ;;  %v2697_v63 = vld [vmem:[%s5542_s1 + $0xdf0] sm:$0xff] }
  0x53   : > { %1201 = vmatpush2.msra.mxu0 %v2615_v6  ;;  %1272 = vmatpush2.msra.mxu1 %v2743_v11  ;;  %v2707_v51 = vld [vmem:[%s5542_s1 + $0xe40] sm:$0xff]  ;;  %v2704_v53 = vld [vmem:[%s5542_s1 + $0xe28] sm:$0xff]  ;;  %v2566_v0 = vld [vmem:[%s5542_s1 + $0x9d8] sm:$0xff] }
  0x54   : > { %1202 = vmatprep.subr.mxu0 %v2612_v12  ;;  %1273 = vmatprep.subr.mxu1 %v2740_v13  ;;  %v2575_v54 = vld [vmem:[%s5542_s1 + $0xa20] sm:$0xff]  ;;  %v2572_v56 = vld [vmem:[%s5542_s1 + $0xa08] sm:$0xff]  ;;  %v2694_v1 = vld [vmem:[%s5542_s1 + $0xdd8] sm:$0xff] }
  0x55   : > { %1203 = vmatpush2.msra.mxu0 %v2611_v14  ;;  %1274 = vmatpush2.msra.mxu1 %v2739_v15  ;;  %v2703_v55 = vld [vmem:[%s5542_s1 + $0xe20] sm:$0xff]  ;;  %v2700_v57 = vld [vmem:[%s5542_s1 + $0xe08] sm:$0xff]  ;;  %v2565_v3 = vld [vmem:[%s5542_s1 + $0x9d0] sm:$0xff] }
  0x56   : > { %1204 = vmatprep.subr.mxu0 %v2608_v16  ;;  %1275 = vmatprep.subr.mxu1 %v2736_v17  ;;  %v2571_v58 = vld [vmem:[%s5542_s1 + $0xa00] sm:$0xff]  ;;  %v2693_v5 = vld [vmem:[%s5542_s1 + $0xdd0] sm:$0xff]  ;;  %v2562_v6 = vld [vmem:[%s5542_s1 + $0x9b8] sm:$0xff] }
  0x57   : > { %1205 = vmatpush2.msra.mxu0 %v2607_v18  ;;  %1276 = vmatpush2.msra.mxu1 %v2735_v19  ;;  %v2699_v59 = vld [vmem:[%s5542_s1 + $0xe00] sm:$0xff]  ;;  %v2690_v11 = vld [vmem:[%s5542_s1 + $0xdb8] sm:$0xff]  ;;  %v2561_v12 = vld [vmem:[%s5542_s1 + $0x9b0] sm:$0xff] }
  0x58   : > { %1206 = vmatprep.subr.mxu0 %v2604_v20  ;;  %1277 = vmatprep.subr.mxu1 %v2732_v21  ;;  %v2689_v13 = vld [vmem:[%s5542_s1 + $0xdb0] sm:$0xff]  ;;  %v2558_v14 = vld [vmem:[%s5542_s1 + $0x998] sm:$0xff] }
  0x59   : > { %1207 = vmatpush2.msra.mxu0 %v2603_v22  ;;  %1278 = vmatpush2.msra.mxu1 %v2731_v23  ;;  %v2686_v15 = vld [vmem:[%s5542_s1 + $0xd98] sm:$0xff]  ;;  %v2557_v16 = vld [vmem:[%s5542_s1 + $0x990] sm:$0xff] }
  0x5a   : > { %1208 = vmatprep.subr.mxu0 %v2600_v24  ;;  %1279 = vmatprep.subr.mxu1 %v2728_v25  ;;  %v2685_v17 = vld [vmem:[%s5542_s1 + $0xd90] sm:$0xff]  ;;  %v2554_v18 = vld [vmem:[%s5542_s1 + $0x978] sm:$0xff] }
  0x5b   : > { %1209 = vmatpush2.msra.mxu0 %v2599_v26  ;;  %1280 = vmatpush2.msra.mxu1 %v2727_v27  ;;  %v2682_v19 = vld [vmem:[%s5542_s1 + $0xd78] sm:$0xff]  ;;  %v2553_v20 = vld [vmem:[%s5542_s1 + $0x970] sm:$0xff] }
  0x5c   : > { %1210 = vmatprep.subr.mxu0 %v2596_v28  ;;  %1281 = vmatprep.subr.mxu1 %v2724_v29  ;;  %v2681_v21 = vld [vmem:[%s5542_s1 + $0xd70] sm:$0xff]  ;;  %v2550_v22 = vld [vmem:[%s5542_s1 + $0x958] sm:$0xff] }
  0x5d   : > { %1211 = vmatpush2.msra.mxu0 %v2595_v30  ;;  %1282 = vmatpush2.msra.mxu1 %v2723_v31  ;;  %v2678_v23 = vld [vmem:[%s5542_s1 + $0xd58] sm:$0xff]  ;;  %v2549_v24 = vld [vmem:[%s5542_s1 + $0x950] sm:$0xff] }
  0x5e   : > { %1212 = vmatprep.subr.mxu0 %v2592_v32  ;;  %1283 = vmatprep.subr.mxu1 %v2720_v33  ;;  %v2677_v25 = vld [vmem:[%s5542_s1 + $0xd50] sm:$0xff]  ;;  %v2546_v26 = vld [vmem:[%s5542_s1 + $0x938] sm:$0xff] }
  0x5f   : > { %1213 = vmatpush2.msra.mxu0 %v2591_v38  ;;  %1284 = vmatpush2.msra.mxu1 %v2719_v39  ;;  %v2674_v27 = vld [vmem:[%s5542_s1 + $0xd38] sm:$0xff]  ;;  %v2545_v28 = vld [vmem:[%s5542_s1 + $0x930] sm:$0xff] }
  0x60   : > { %1214 = vmatprep.subr.mxu0 %v2588_v40  ;;  %1285 = vmatprep.subr.mxu1 %v2716_v41  ;;  %v2673_v29 = vld [vmem:[%s5542_s1 + $0xd30] sm:$0xff]  ;;  %v2542_v30 = vld [vmem:[%s5542_s1 + $0x918] sm:$0xff] }
  0x61   : > { %1215 = vmatpush2.msra.mxu0 %v2587_v42  ;;  %1286 = vmatpush2.msra.mxu1 %v2715_v43  ;;  %v2670_v31 = vld [vmem:[%s5542_s1 + $0xd18] sm:$0xff]  ;;  %v2541_v32 = vld [vmem:[%s5542_s1 + $0x910] sm:$0xff] }
  0x62   : > { %1216 = vmatprep.subr.mxu0 %v2584_v44  ;;  %1287 = vmatprep.subr.mxu1 %v2712_v45  ;;  %v2669_v33 = vld [vmem:[%s5542_s1 + $0xd10] sm:$0xff]  ;;  %v2538_v38 = vld [vmem:[%s5542_s1 + $0x8f8] sm:$0xff] }
  0x63   : > { %1217 = vmatpush2.msra.mxu0 %v2583_v46  ;;  %1288 = vmatpush2.msra.mxu1 %v2711_v47  ;;  %v2666_v39 = vld [vmem:[%s5542_s1 + $0xcf8] sm:$0xff]  ;;  %v2537_v40 = vld [vmem:[%s5542_s1 + $0x8f0] sm:$0xff] }
  0x64   : > { %1218 = vmatprep.subr.mxu0 %v2580_v48  ;;  %1289 = vmatprep.subr.mxu1 %v2708_v49  ;;  %v2665_v41 = vld [vmem:[%s5542_s1 + $0xcf0] sm:$0xff]  ;;  %v2534_v42 = vld [vmem:[%s5542_s1 + $0x8d8] sm:$0xff] }
  0x65   : > { %1219 = vmatpush2.msra.mxu0 %v2579_v50  ;;  %1290 = vmatpush2.msra.mxu1 %v2707_v51  ;;  %v2662_v43 = vld [vmem:[%s5542_s1 + $0xcd8] sm:$0xff]  ;;  %v2533_v44 = vld [vmem:[%s5542_s1 + $0x8d0] sm:$0xff] }
  0x66   : > { %1220 = vmatprep.subr.mxu0 %v2576_v52  ;;  %1291 = vmatprep.subr.mxu1 %v2704_v53  ;;  %v2661_v45 = vld [vmem:[%s5542_s1 + $0xcd0] sm:$0xff]  ;;  %v2530_v46 = vld [vmem:[%s5542_s1 + $0x8b8] sm:$0xff] }
  0x67   : > { %1221 = vmatpush2.msra.mxu0 %v2575_v54  ;;  %1292 = vmatpush2.msra.mxu1 %v2703_v55  ;;  %v2658_v47 = vld [vmem:[%s5542_s1 + $0xcb8] sm:$0xff]  ;;  %v2529_v48 = vld [vmem:[%s5542_s1 + $0x8b0] sm:$0xff] }
  0x68   : > { %1222 = vmatprep.subr.mxu0 %v2572_v56  ;;  %1293 = vmatprep.subr.mxu1 %v2700_v57  ;;  %v2657_v49 = vld [vmem:[%s5542_s1 + $0xcb0] sm:$0xff]  ;;  %v2526_v50 = vld [vmem:[%s5542_s1 + $0x898] sm:$0xff] }
  0x69   : > { %1223 = vmatpush2.msra.mxu0 %v2571_v58  ;;  %1224 = vmatprep.mubr.f32.mxu0 %v3139_v34  ;;  %v2654_v51 = vld [vmem:[%s5542_s1 + $0xc98] sm:$0xff]  ;;  %v2525_v52 = vld [vmem:[%s5542_s1 + $0x890] sm:$0xff] }
  0x6a   : > { %1294 = vmatpush2.msra.mxu1 %v2699_v59  ;;  %1295 = vmatprep.mubr.f32.mxu1 %v3141_v35  ;;  %v2653_v53 = vld [vmem:[%s5542_s1 + $0xc90] sm:$0xff]  ;;  %v2522_v54 = vld [vmem:[%s5542_s1 + $0x878] sm:$0xff] }
  0x6b   : > { %1225 = vmatmul.mubr.f32.vlgmr.msra.gmra.mxu0 %v3143_v36  ;;  %1296 = vmatmul.mubr.f32.vlgmr.msra.gmra.mxu1 %v3145_v37  ;;  %v2650_v55 = vld [vmem:[%s5542_s1 + $0xc78] sm:$0xff]  ;;  %v2521_v56 = vld [vmem:[%s5542_s1 + $0x870] sm:$0xff] }
  0x6c   : > { %1302 = vmatprep.subr.mxu0 %v2570_v60  ;;  %1373 = vmatprep.subr.mxu1 %v2698_v61  ;;  %v2649_v57 = vld [vmem:[%s5542_s1 + $0xc70] sm:$0xff]  ;;  %v2518_v58 = vld [vmem:[%s5542_s1 + $0x858] sm:$0xff] }
  0x6d   : > { %1303 = vmatpush1.msra.mxu0 %v2569_v62  ;;  %1374 = vmatpush1.msra.mxu1 %v2697_v63  ;;  %v2646_v59 = vld [vmem:[%s5542_s1 + $0xc58] sm:$0xff]  ;;  %v2517_v60 = vld [vmem:[%s5542_s1 + $0x850] sm:$0xff] }
  0x6e   : > { %1304 = vmatprep.subr.mxu0 %v2566_v0  ;;  %1375 = vmatprep.subr.mxu1 %v2694_v1  ;;  %v2645_v61 = vld [vmem:[%s5542_s1 + $0xc50] sm:$0xff]  ;;  %v2514_v62 = vld [vmem:[%s5542_s1 + $0x838] sm:$0xff] }
  0x6f   : > { %1305 = vmatpush1.msra.mxu0 %v2565_v3  ;;  %1376 = vmatpush1.msra.mxu1 %v2693_v5  ;;  %v2642_v63 = vld [vmem:[%s5542_s1 + $0xc38] sm:$0xff]  ;;  %v2513_v0 = vld [vmem:[%s5542_s1 + $0x830] sm:$0xff] }
  0x70   : > { %1306 = vmatprep.subr.mxu0 %v2562_v6  ;;  %1377 = vmatprep.subr.mxu1 %v2690_v11  ;;  %v2641_v1 = vld [vmem:[%s5542_s1 + $0xc30] sm:$0xff]  ;;  %v2510_v3 = vld [vmem:[%s5542_s1 + $0x818] sm:$0xff] }
  0x71   : > { %1307 = vmatpush1.msra.mxu0 %v2561_v12  ;;  %1378 = vmatpush1.msra.mxu1 %v2689_v13  ;;  %v2638_v5 = vld [vmem:[%s5542_s1 + $0xc18] sm:$0xff]  ;;  %v2509_v6 = vld [vmem:[%s5542_s1 + $0x810] sm:$0xff] }
  0x72   : > { %1308 = vmatprep.subr.mxu0 %v2558_v14  ;;  %1379 = vmatprep.subr.mxu1 %v2686_v15  ;;  %v2637_v11 = vld [vmem:[%s5542_s1 + $0xc10] sm:$0xff]  ;;  %v2634_v12 = vld [vmem:[%s5542_s1 + $0xbf8] sm:$0xff] }
  0x73   : > { %1309 = vmatpush1.msra.mxu0 %v2557_v16  ;;  %1380 = vmatpush1.msra.mxu1 %v2685_v17  ;;  %v2762_v13 = vld [vmem:[%s5542_s1 + $0xff8] sm:$0xff]  ;;  %v2633_v14 = vld [vmem:[%s5542_s1 + $0xbf0] sm:$0xff] }
  0x74   : > { %1310 = vmatprep.subr.mxu0 %v2554_v18  ;;  %1381 = vmatprep.subr.mxu1 %v2682_v19  ;;  %v2761_v15 = vld [vmem:[%s5542_s1 + $0xff0] sm:$0xff]  ;;  %v2630_v16 = vld [vmem:[%s5542_s1 + $0xbd8] sm:$0xff] }
  0x75   : > { %1311 = vmatpush1.msra.mxu0 %v2553_v20  ;;  %1382 = vmatpush1.msra.mxu1 %v2681_v21  ;;  %v2758_v17 = vld [vmem:[%s5542_s1 + $0xfd8] sm:$0xff]  ;;  %v2629_v18 = vld [vmem:[%s5542_s1 + $0xbd0] sm:$0xff] }
  0x76   : > { %1312 = vmatprep.subr.mxu0 %v2550_v22  ;;  %1383 = vmatprep.subr.mxu1 %v2678_v23  ;;  %v2757_v19 = vld [vmem:[%s5542_s1 + $0xfd0] sm:$0xff]  ;;  %v2626_v20 = vld [vmem:[%s5542_s1 + $0xbb8] sm:$0xff] }
  0x77   : > { %1313 = vmatpush1.msra.mxu0 %v2549_v24  ;;  %1384 = vmatpush1.msra.mxu1 %v2677_v25  ;;  %v2754_v21 = vld [vmem:[%s5542_s1 + $0xfb8] sm:$0xff]  ;;  %v2625_v22 = vld [vmem:[%s5542_s1 + $0xbb0] sm:$0xff] }
  0x78   : > { %1314 = vmatprep.subr.mxu0 %v2546_v26  ;;  %1385 = vmatprep.subr.mxu1 %v2674_v27  ;;  %v2753_v23 = vld [vmem:[%s5542_s1 + $0xfb0] sm:$0xff]  ;;  %v2622_v24 = vld [vmem:[%s5542_s1 + $0xb98] sm:$0xff] }
  0x79   : > { %1315 = vmatpush1.msra.mxu0 %v2545_v28  ;;  %1386 = vmatpush1.msra.mxu1 %v2673_v29  ;;  %v2750_v25 = vld [vmem:[%s5542_s1 + $0xf98] sm:$0xff]  ;;  %v2621_v26 = vld [vmem:[%s5542_s1 + $0xb90] sm:$0xff] }
  0x7a   : > { %1316 = vmatprep.subr.mxu0 %v2542_v30  ;;  %1387 = vmatprep.subr.mxu1 %v2670_v31  ;;  %v2749_v27 = vld [vmem:[%s5542_s1 + $0xf90] sm:$0xff]  ;;  %v2618_v28 = vld [vmem:[%s5542_s1 + $0xb78] sm:$0xff] }
  0x7b   : > { %1317 = vmatpush1.msra.mxu0 %v2541_v32  ;;  %1388 = vmatpush1.msra.mxu1 %v2669_v33  ;;  %v2746_v29 = vld [vmem:[%s5542_s1 + $0xf78] sm:$0xff]  ;;  %v2617_v30 = vld [vmem:[%s5542_s1 + $0xb70] sm:$0xff] }
  0x7c   : > { %1318 = vmatprep.subr.mxu0 %v2538_v38  ;;  %1389 = vmatprep.subr.mxu1 %v2666_v39  ;;  %v2745_v31 = vld [vmem:[%s5542_s1 + $0xf70] sm:$0xff]  ;;  %v2614_v32 = vld [vmem:[%s5542_s1 + $0xb58] sm:$0xff] }
  0x7d   : > { %1319 = vmatpush1.msra.mxu0 %v2537_v40  ;;  %1390 = vmatpush1.msra.mxu1 %v2665_v41  ;;  %v2742_v33 = vld [vmem:[%s5542_s1 + $0xf58] sm:$0xff]  ;;  %v2613_v38 = vld [vmem:[%s5542_s1 + $0xb50] sm:$0xff] }
  0x7e   : > { %1320 = vmatprep.subr.mxu0 %v2534_v42  ;;  %1391 = vmatprep.subr.mxu1 %v2662_v43  ;;  %v2741_v39 = vld [vmem:[%s5542_s1 + $0xf50] sm:$0xff]  ;;  %v2610_v40 = vld [vmem:[%s5542_s1 + $0xb38] sm:$0xff] }
  0x7f   : > { %1321 = vmatpush1.msra.mxu0 %v2533_v44  ;;  %1392 = vmatpush1.msra.mxu1 %v2661_v45  ;;  %v2738_v41 = vld [vmem:[%s5542_s1 + $0xf38] sm:$0xff]  ;;  %v2609_v42 = vld [vmem:[%s5542_s1 + $0xb30] sm:$0xff] }
  0x80   : > { %1322 = vmatprep.subr.mxu0 %v2530_v46  ;;  %1393 = vmatprep.subr.mxu1 %v2658_v47  ;;  %v2737_v43 = vld [vmem:[%s5542_s1 + $0xf30] sm:$0xff]  ;;  %v2606_v44 = vld [vmem:[%s5542_s1 + $0xb18] sm:$0xff] }
  0x81   : > { %1323 = vmatpush1.msra.mxu0 %v2529_v48  ;;  %1394 = vmatpush1.msra.mxu1 %v2657_v49  ;;  %v2734_v45 = vld [vmem:[%s5542_s1 + $0xf18] sm:$0xff]  ;;  %v2605_v46 = vld [vmem:[%s5542_s1 + $0xb10] sm:$0xff] }
  0x82   : > { %1324 = vmatprep.subr.mxu0 %v2526_v50  ;;  %1395 = vmatprep.subr.mxu1 %v2654_v51  ;;  %v2733_v47 = vld [vmem:[%s5542_s1 + $0xf10] sm:$0xff]  ;;  %v2602_v48 = vld [vmem:[%s5542_s1 + $0xaf8] sm:$0xff] }
  0x83   : > { %1325 = vmatpush1.msra.mxu0 %v2525_v52  ;;  %1396 = vmatpush1.msra.mxu1 %v2653_v53  ;;  %v2730_v49 = vld [vmem:[%s5542_s1 + $0xef8] sm:$0xff]  ;;  %v2601_v50 = vld [vmem:[%s5542_s1 + $0xaf0] sm:$0xff] }
  0x84   : > { %1326 = vmatprep.subr.mxu0 %v2522_v54  ;;  %1397 = vmatprep.subr.mxu1 %v2650_v55  ;;  %v2729_v51 = vld [vmem:[%s5542_s1 + $0xef0] sm:$0xff]  ;;  %v2598_v52 = vld [vmem:[%s5542_s1 + $0xad8] sm:$0xff] }
  0x85   : > { %1327 = vmatpush1.msra.mxu0 %v2521_v56  ;;  %1398 = vmatpush1.msra.mxu1 %v2649_v57  ;;  %v2726_v53 = vld [vmem:[%s5542_s1 + $0xed8] sm:$0xff]  ;;  %v2597_v54 = vld [vmem:[%s5542_s1 + $0xad0] sm:$0xff] }
  0x86   : > { %1328 = vmatprep.subr.mxu0 %v2518_v58  ;;  %1399 = vmatprep.subr.mxu1 %v2646_v59  ;;  %v2725_v55 = vld [vmem:[%s5542_s1 + $0xed0] sm:$0xff]  ;;  %v2594_v56 = vld [vmem:[%s5542_s1 + $0xab8] sm:$0xff] }
  0x87   : > { %1329 = vmatpush1.msra.mxu0 %v2517_v60  ;;  %1400 = vmatpush1.msra.mxu1 %v2645_v61  ;;  %v2722_v57 = vld [vmem:[%s5542_s1 + $0xeb8] sm:$0xff]  ;;  %v2593_v58 = vld [vmem:[%s5542_s1 + $0xab0] sm:$0xff] }
  0x88   : > { %1330 = vmatprep.subr.mxu0 %v2514_v62  ;;  %1401 = vmatprep.subr.mxu1 %v2642_v63  ;;  %v2721_v59 = vld [vmem:[%s5542_s1 + $0xeb0] sm:$0xff]  ;;  %v2590_v60 = vld [vmem:[%s5542_s1 + $0xa98] sm:$0xff] }
  0x89   : > { %1331 = vmatpush1.msra.mxu0 %v2513_v0  ;;  %1402 = vmatpush1.msra.mxu1 %v2641_v1  ;;  %v2718_v61 = vld [vmem:[%s5542_s1 + $0xe98] sm:$0xff]  ;;  %v2589_v62 = vld [vmem:[%s5542_s1 + $0xa90] sm:$0xff] }
  0x8a   : > { %1332 = vmatprep.subr.mxu0 %v2510_v3  ;;  %1403 = vmatprep.subr.mxu1 %v2638_v5  ;;  %v2717_v63 = vld [vmem:[%s5542_s1 + $0xe90] sm:$0xff]  ;;  %v2586_v0 = vld [vmem:[%s5542_s1 + $0xa78] sm:$0xff] }
  0x8b   : > { %1333 = vmatpush1.msra.mxu0 %v2509_v6  ;;  %1404 = vmatpush1.msra.mxu1 %v2637_v11  ;;  %v2714_v1 = vld [vmem:[%s5542_s1 + $0xe78] sm:$0xff]  ;;  %v2585_v3 = vld [vmem:[%s5542_s1 + $0xa70] sm:$0xff] }
  0x8c   : > { %1334 = vmatprep.subr.mxu0 %v2634_v12  ;;  %1405 = vmatprep.subr.mxu1 %v2762_v13  ;;  %v2713_v5 = vld [vmem:[%s5542_s1 + $0xe70] sm:$0xff]  ;;  %v2582_v6 = vld [vmem:[%s5542_s1 + $0xa58] sm:$0xff] }
  0x8d   : > { %1335 = vmatpush2.msra.mxu0 %v2633_v14  ;;  %1406 = vmatpush2.msra.mxu1 %v2761_v15  ;;  %v2710_v11 = vld [vmem:[%s5542_s1 + $0xe58] sm:$0xff]  ;;  %v2581_v12 = vld [vmem:[%s5542_s1 + $0xa50] sm:$0xff] }
  0x8e   : > { %1336 = vmatprep.subr.mxu0 %v2630_v16  ;;  %1407 = vmatprep.subr.mxu1 %v2758_v17  ;;  %v2709_v13 = vld [vmem:[%s5542_s1 + $0xe50] sm:$0xff]  ;;  %v2578_v14 = vld [vmem:[%s5542_s1 + $0xa38] sm:$0xff] }
  0x8f   : > { %1337 = vmatpush2.msra.mxu0 %v2629_v18  ;;  %1408 = vmatpush2.msra.mxu1 %v2757_v19  ;;  %v2706_v15 = vld [vmem:[%s5542_s1 + $0xe38] sm:$0xff]  ;;  %v2577_v16 = vld [vmem:[%s5542_s1 + $0xa30] sm:$0xff] }
  0x90   : > { %1338 = vmatprep.subr.mxu0 %v2626_v20  ;;  %1409 = vmatprep.subr.mxu1 %v2754_v21  ;;  %v2705_v17 = vld [vmem:[%s5542_s1 + $0xe30] sm:$0xff]  ;;  %v2574_v18 = vld [vmem:[%s5542_s1 + $0xa18] sm:$0xff] }
  0x91   : > { %1339 = vmatpush2.msra.mxu0 %v2625_v22  ;;  %1410 = vmatpush2.msra.mxu1 %v2753_v23  ;;  %v2702_v19 = vld [vmem:[%s5542_s1 + $0xe18] sm:$0xff]  ;;  %v2573_v20 = vld [vmem:[%s5542_s1 + $0xa10] sm:$0xff]  ;;  %v708_v22 = vld [vmem:[%s5542_s1 + $0x1e8] sm:$0xff] }
  0x92   : > { %1340 = vmatprep.subr.mxu0 %v2622_v24  ;;  %1411 = vmatprep.subr.mxu1 %v2750_v25  ;;  %v2701_v21 = vld [vmem:[%s5542_s1 + $0xe10] sm:$0xff]  ;;  %v836_v23 = vld [vmem:[%s5542_s1 + $0x5e8] sm:$0xff]  ;;  %v707_v24 = vld [vmem:[%s5542_s1 + $0x1e0] sm:$0xff] }
  0x93   : > { %1341 = vmatpush2.msra.mxu0 %v2621_v26  ;;  %1412 = vmatpush2.msra.mxu1 %v2749_v27  ;;  %v835_v25 = vld [vmem:[%s5542_s1 + $0x5e0] sm:$0xff]  ;;  %v828_v27 = vld [vmem:[%s5542_s1 + $0x5a8] sm:$0xff] }
  0x94   : > { %1342 = vmatprep.subr.mxu0 %v2618_v28  ;;  %1413 = vmatprep.subr.mxu1 %v2746_v29  ;;  %v703_v26 = vld [vmem:[%s5542_s1 + $0x1c0] sm:$0xff] }
  0x95   : > { %1343 = vmatpush2.msra.mxu0 %v2617_v30  ;;  %1414 = vmatpush2.msra.mxu1 %v2745_v31  ;;  %v699_v28 = vld [vmem:[%s5542_s1 + $0x1a0] sm:$0xff]  ;;  %v696_v30 = vld [vmem:[%s5542_s1 + $0x188] sm:$0xff] }
  0x96   : > { %1344 = vmatprep.subr.mxu0 %v2614_v32  ;;  %1415 = vmatprep.subr.mxu1 %v2742_v33  ;;  %v827_v29 = vld [vmem:[%s5542_s1 + $0x5a0] sm:$0xff]  ;;  %v824_v31 = vld [vmem:[%s5542_s1 + $0x588] sm:$0xff] }
  0x97   : > { %1345 = vmatpush2.msra.mxu0 %v2613_v38  ;;  %1416 = vmatpush2.msra.mxu1 %v2741_v39  ;;  %v695_v32 = vld [vmem:[%s5542_s1 + $0x180] sm:$0xff]  ;;  %v692_v38 = vld [vmem:[%s5542_s1 + $0x168] sm:$0xff] }
  0x98   : > { %1346 = vmatprep.subr.mxu0 %v2610_v40  ;;  %1417 = vmatprep.subr.mxu1 %v2738_v41  ;;  %v823_v33 = vld [vmem:[%s5542_s1 + $0x580] sm:$0xff]  ;;  %v820_v39 = vld [vmem:[%s5542_s1 + $0x568] sm:$0xff] }
  0x99   : > { %1347 = vmatpush2.msra.mxu0 %v2609_v42  ;;  %1418 = vmatpush2.msra.mxu1 %v2737_v43  ;;  %v691_v40 = vld [vmem:[%s5542_s1 + $0x160] sm:$0xff]  ;;  %v688_v42 = vld [vmem:[%s5542_s1 + $0x148] sm:$0xff] }
  0x9a   : > { %1348 = vmatprep.subr.mxu0 %v2606_v44  ;;  %1419 = vmatprep.subr.mxu1 %v2734_v45  ;;  %v819_v41 = vld [vmem:[%s5542_s1 + $0x560] sm:$0xff]  ;;  %v816_v43 = vld [vmem:[%s5542_s1 + $0x548] sm:$0xff] }
  0x9b   : > { %1349 = vmatpush2.msra.mxu0 %v2605_v46  ;;  %1420 = vmatpush2.msra.mxu1 %v2733_v47  ;;  %v687_v44 = vld [vmem:[%s5542_s1 + $0x140] sm:$0xff]  ;;  %v684_v46 = vld [vmem:[%s5542_s1 + $0x128] sm:$0xff] }
  0x9c   : > { %1350 = vmatprep.subr.mxu0 %v2602_v48  ;;  %1421 = vmatprep.subr.mxu1 %v2730_v49  ;;  %v815_v45 = vld [vmem:[%s5542_s1 + $0x540] sm:$0xff]  ;;  %v812_v47 = vld [vmem:[%s5542_s1 + $0x528] sm:$0xff] }
  0x9d   : > { %1351 = vmatpush2.msra.mxu0 %v2601_v50  ;;  %1422 = vmatpush2.msra.mxu1 %v2729_v51  ;;  %v683_v48 = vld [vmem:[%s5542_s1 + $0x120] sm:$0xff]  ;;  %v680_v50 = vld [vmem:[%s5542_s1 + $0x108] sm:$0xff] }
  0x9e   : > { %1352 = vmatprep.subr.mxu0 %v2598_v52  ;;  %1423 = vmatprep.subr.mxu1 %v2726_v53  ;;  %v811_v49 = vld [vmem:[%s5542_s1 + $0x520] sm:$0xff]  ;;  %v808_v51 = vld [vmem:[%s5542_s1 + $0x508] sm:$0xff] }
  0x9f   : > { %1353 = vmatpush2.msra.mxu0 %v2597_v54  ;;  %1424 = vmatpush2.msra.mxu1 %v2725_v55  ;;  %v679_v52 = vld [vmem:[%s5542_s1 + $0x100] sm:$0xff]  ;;  %v676_v54 = vld [vmem:[%s5542_s1 + $0xe8] sm:$0xff] }
  0xa0   : > { %1354 = vmatprep.subr.mxu0 %v2594_v56  ;;  %1425 = vmatprep.subr.mxu1 %v2722_v57  ;;  %v807_v53 = vld [vmem:[%s5542_s1 + $0x500] sm:$0xff]  ;;  %v804_v55 = vld [vmem:[%s5542_s1 + $0x4e8] sm:$0xff] }
  0xa1   : > { %1355 = vmatpush2.msra.mxu0 %v2593_v58  ;;  %1426 = vmatpush2.msra.mxu1 %v2721_v59  ;;  %v675_v56 = vld [vmem:[%s5542_s1 + $0xe0] sm:$0xff]  ;;  %v672_v58 = vld [vmem:[%s5542_s1 + $0xc8] sm:$0xff] }
  0xa2   : > { %1356 = vmatprep.subr.mxu0 %v2590_v60  ;;  %1427 = vmatprep.subr.mxu1 %v2718_v61  ;;  %v803_v57 = vld [vmem:[%s5542_s1 + $0x4e0] sm:$0xff]  ;;  %v800_v59 = vld [vmem:[%s5542_s1 + $0x4c8] sm:$0xff] }
  0xa3   : > { %1357 = vmatpush2.msra.mxu0 %v2589_v62  ;;  %1428 = vmatpush2.msra.mxu1 %v2717_v63  ;;  %v671_v60 = vld [vmem:[%s5542_s1 + $0xc0] sm:$0xff]  ;;  %v668_v62 = vld [vmem:[%s5542_s1 + $0xa8] sm:$0xff] }
  0xa4   : > { %1358 = vmatprep.subr.mxu0 %v2586_v0  ;;  %1429 = vmatprep.subr.mxu1 %v2714_v1  ;;  %v799_v61 = vld [vmem:[%s5542_s1 + $0x4c0] sm:$0xff]  ;;  %v796_v63 = vld [vmem:[%s5542_s1 + $0x4a8] sm:$0xff] }
  0xa5   : > { %1359 = vmatpush2.msra.mxu0 %v2585_v3  ;;  %1430 = vmatpush2.msra.mxu1 %v2713_v5  ;;  %v667_v0 = vld [vmem:[%s5542_s1 + $0xa0] sm:$0xff]  ;;  %v664_v3 = vld [vmem:[%s5542_s1 + $0x88] sm:$0xff] }
  0xa6   : > { %1360 = vmatprep.subr.mxu0 %v2582_v6  ;;  %1431 = vmatprep.subr.mxu1 %v2710_v11  ;;  %v795_v1 = vld [vmem:[%s5542_s1 + $0x4a0] sm:$0xff]  ;;  %v792_v5 = vld [vmem:[%s5542_s1 + $0x488] sm:$0xff] }
  0xa7   : > { %1361 = vmatpush2.msra.mxu0 %v2581_v12  ;;  %1432 = vmatpush2.msra.mxu1 %v2709_v13  ;;  %v663_v6 = vld [vmem:[%s5542_s1 + $0x80] sm:$0xff]  ;;  %v660_v12 = vld [vmem:[%s5542_s1 + $0x68] sm:$0xff] }
  0xa8   : > { %1362 = vmatprep.subr.mxu0 %v2578_v14  ;;  %1433 = vmatprep.subr.mxu1 %v2706_v15  ;;  %v791_v11 = vld [vmem:[%s5542_s1 + $0x480] sm:$0xff]  ;;  %v788_v13 = vld [vmem:[%s5542_s1 + $0x468] sm:$0xff] }
  0xa9   : > { %1363 = vmatpush2.msra.mxu0 %v2577_v16  ;;  %1434 = vmatpush2.msra.mxu1 %v2705_v17  ;;  %v659_v14 = vld [vmem:[%s5542_s1 + $0x60] sm:$0xff]  ;;  %v656_v16 = vld [vmem:[%s5542_s1 + $0x48] sm:$0xff] }
  0xaa   : > { %1364 = vmatprep.subr.mxu0 %v2574_v18  ;;  %1435 = vmatprep.subr.mxu1 %v2702_v19  ;;  %v787_v15 = vld [vmem:[%s5542_s1 + $0x460] sm:$0xff]  ;;  %v784_v17 = vld [vmem:[%s5542_s1 + $0x448] sm:$0xff] }
  0xab   : > { %1365 = vmatpush2.msra.mxu0 %v2573_v20  ;;  %1366 = vmatprep.mubr.f32.mxu0 %v3139_v34  ;;  %v704_v34 = vld [vmem:[%s5542_s1 + $0x1c8] sm:$0xff]  ;;  %v655_v18 = vld [vmem:[%s5542_s1 + $0x40] sm:$0xff] }
  0xac   : > { %1436 = vmatpush2.msra.mxu1 %v2701_v21  ;;  %1437 = vmatprep.mubr.f32.mxu1 %v3141_v35  ;;  %v832_v35 = vld [vmem:[%s5542_s1 + $0x5c8] sm:$0xff]  ;;  %v783_v19 = vld [vmem:[%s5542_s1 + $0x440] sm:$0xff] }
  0xad   : > { %1367 = vmatmul.mubr.f32.vlgmr.msra.gmra.mxu0 %v3143_v36  ;;  %1438 = vmatmul.mubr.f32.vlgmr.msra.gmra.mxu1 %v3145_v37  ;;  %v831_v36 = vld [vmem:[%s5542_s1 + $0x5c0] sm:$0xff]  ;;  %v700_v37 = vld [vmem:[%s5542_s1 + $0x1a8] sm:$0xff] }
  0xae   : > { %1444 = vmatprep.subr.mxu0 %v708_v22  ;;  %1515 = vmatprep.subr.mxu1 %v836_v23  ;;  %v652_v20 = vld [vmem:[%s5542_s1 + $0x28] sm:$0xff]  ;;  %v651_v22 = vld [vmem:[%s5542_s1 + $0x20] sm:$0xff] }
  0xaf   : > { %1445 = vmatpush1.msra.mxu0 %v707_v24  ;;  %1516 = vmatpush1.msra.mxu1 %v835_v25  ;;  %v780_v21 = vld [vmem:[%s5542_s1 + $0x428] sm:$0xff]  ;;  %v779_v23 = vld [vmem:[%s5542_s1 + $0x420] sm:$0xff] }
  0xb0   : > { %1446 = vmatprep.subr.mxu0 %v704_v34  ;;  %1517 = vmatprep.subr.mxu1 %v832_v35  ;;  %v648_v24 = vld [vmem:[%s5542_s1 + $0x8] sm:$0xff]  ;;  %v647_v34 = vld [vmem:[%s5542_s1] sm:$0xff] }
  0xb1   : > { %1447 = vmatpush1.msra.mxu0 %v703_v26  ;;  %1518 = vmatpush1.msra.mxu1 %v831_v36  ;;  %v776_v25 = vld [vmem:[%s5542_s1 + $0x408] sm:$0xff]  ;;  %v775_v35 = vld [vmem:[%s5542_s1 + $0x400] sm:$0xff] }
  0xb2   : > { %1448 = vmatprep.subr.mxu0 %v700_v37  ;;  %1519 = vmatprep.subr.mxu1 %v828_v27  ;;  %v772_v26 = vld [vmem:[%s5542_s1 + $0x3e8] sm:$0xff]  ;;  %v771_v37 = vld [vmem:[%s5542_s1 + $0x3e0] sm:$0xff] }
  0xb3   : > { %1449 = vmatpush1.msra.mxu0 %v699_v28  ;;  %1520 = vmatpush1.msra.mxu1 %v827_v29  ;;  %v900_v36 = vld [vmem:[%s5542_s1 + $0x7e8] sm:$0xff]  ;;  %v899_v27 = vld [vmem:[%s5542_s1 + $0x7e0] sm:$0xff] }
  0xb4   : > { %1450 = vmatprep.subr.mxu0 %v696_v30  ;;  %1521 = vmatprep.subr.mxu1 %v824_v31  ;;  %v768_v28 = vld [vmem:[%s5542_s1 + $0x3c8] sm:$0xff]  ;;  %v767_v30 = vld [vmem:[%s5542_s1 + $0x3c0] sm:$0xff] }
  0xb5   : > { %1451 = vmatpush1.msra.mxu0 %v695_v32  ;;  %1522 = vmatpush1.msra.mxu1 %v823_v33  ;;  %v896_v29 = vld [vmem:[%s5542_s1 + $0x7c8] sm:$0xff]  ;;  %v895_v31 = vld [vmem:[%s5542_s1 + $0x7c0] sm:$0xff] }
  0xb6   : > { %1452 = vmatprep.subr.mxu0 %v692_v38  ;;  %1523 = vmatprep.subr.mxu1 %v820_v39  ;;  %v764_v32 = vld [vmem:[%s5542_s1 + $0x3a8] sm:$0xff]  ;;  %v763_v38 = vld [vmem:[%s5542_s1 + $0x3a0] sm:$0xff] }
  0xb7   : > { %1453 = vmatpush1.msra.mxu0 %v691_v40  ;;  %1524 = vmatpush1.msra.mxu1 %v819_v41  ;;  %v892_v33 = vld [vmem:[%s5542_s1 + $0x7a8] sm:$0xff]  ;;  %v891_v39 = vld [vmem:[%s5542_s1 + $0x7a0] sm:$0xff] }
  0xb8   : > { %1454 = vmatprep.subr.mxu0 %v688_v42  ;;  %1525 = vmatprep.subr.mxu1 %v816_v43  ;;  %v760_v40 = vld [vmem:[%s5542_s1 + $0x388] sm:$0xff]  ;;  %v759_v42 = vld [vmem:[%s5542_s1 + $0x380] sm:$0xff] }
  0xb9   : > { %1455 = vmatpush1.msra.mxu0 %v687_v44  ;;  %1526 = vmatpush1.msra.mxu1 %v815_v45  ;;  %v888_v41 = vld [vmem:[%s5542_s1 + $0x788] sm:$0xff]  ;;  %v887_v43 = vld [vmem:[%s5542_s1 + $0x780] sm:$0xff] }
  0xba   : > { %1456 = vmatprep.subr.mxu0 %v684_v46  ;;  %1527 = vmatprep.subr.mxu1 %v812_v47  ;;  %v756_v44 = vld [vmem:[%s5542_s1 + $0x368] sm:$0xff]  ;;  %v755_v46 = vld [vmem:[%s5542_s1 + $0x360] sm:$0xff] }
  0xbb   : > { %1457 = vmatpush1.msra.mxu0 %v683_v48  ;;  %1528 = vmatpush1.msra.mxu1 %v811_v49  ;;  %v884_v45 = vld [vmem:[%s5542_s1 + $0x768] sm:$0xff]  ;;  %v883_v47 = vld [vmem:[%s5542_s1 + $0x760] sm:$0xff] }
  0xbc   : > { %1458 = vmatprep.subr.mxu0 %v680_v50  ;;  %1529 = vmatprep.subr.mxu1 %v808_v51  ;;  %v752_v48 = vld [vmem:[%s5542_s1 + $0x348] sm:$0xff]  ;;  %v751_v50 = vld [vmem:[%s5542_s1 + $0x340] sm:$0xff] }
  0xbd   : > { %1459 = vmatpush1.msra.mxu0 %v679_v52  ;;  %1530 = vmatpush1.msra.mxu1 %v807_v53  ;;  %v880_v49 = vld [vmem:[%s5542_s1 + $0x748] sm:$0xff]  ;;  %v879_v51 = vld [vmem:[%s5542_s1 + $0x740] sm:$0xff] }
  0xbe   : > { %1460 = vmatprep.subr.mxu0 %v676_v54  ;;  %1531 = vmatprep.subr.mxu1 %v804_v55  ;;  %v748_v52 = vld [vmem:[%s5542_s1 + $0x328] sm:$0xff]  ;;  %v747_v54 = vld [vmem:[%s5542_s1 + $0x320] sm:$0xff] }
  0xbf   : > { %1461 = vmatpush1.msra.mxu0 %v675_v56  ;;  %1532 = vmatpush1.msra.mxu1 %v803_v57  ;;  %v876_v53 = vld [vmem:[%s5542_s1 + $0x728] sm:$0xff]  ;;  %v875_v55 = vld [vmem:[%s5542_s1 + $0x720] sm:$0xff] }
  0xc0   : > { %1462 = vmatprep.subr.mxu0 %v672_v58  ;;  %1533 = vmatprep.subr.mxu1 %v800_v59  ;;  %v744_v56 = vld [vmem:[%s5542_s1 + $0x308] sm:$0xff]  ;;  %v743_v58 = vld [vmem:[%s5542_s1 + $0x300] sm:$0xff] }
  0xc1   : > { %1463 = vmatpush1.msra.mxu0 %v671_v60  ;;  %1534 = vmatpush1.msra.mxu1 %v799_v61  ;;  %v872_v57 = vld [vmem:[%s5542_s1 + $0x708] sm:$0xff]  ;;  %v871_v59 = vld [vmem:[%s5542_s1 + $0x700] sm:$0xff] }
  0xc2   : > { %1464 = vmatprep.subr.mxu0 %v668_v62  ;;  %1535 = vmatprep.subr.mxu1 %v796_v63  ;;  %v740_v60 = vld [vmem:[%s5542_s1 + $0x2e8] sm:$0xff]  ;;  %v739_v62 = vld [vmem:[%s5542_s1 + $0x2e0] sm:$0xff] }
  0xc3   : > { %1465 = vmatpush1.msra.mxu0 %v667_v0  ;;  %1536 = vmatpush1.msra.mxu1 %v795_v1  ;;  %v868_v61 = vld [vmem:[%s5542_s1 + $0x6e8] sm:$0xff]  ;;  %v867_v63 = vld [vmem:[%s5542_s1 + $0x6e0] sm:$0xff] }
  0xc4   : > { %1466 = vmatprep.subr.mxu0 %v664_v3  ;;  %1537 = vmatprep.subr.mxu1 %v792_v5  ;;  %v736_v0 = vld [vmem:[%s5542_s1 + $0x2c8] sm:$0xff]  ;;  %v735_v3 = vld [vmem:[%s5542_s1 + $0x2c0] sm:$0xff] }
  0xc5   : > { %1467 = vmatpush1.msra.mxu0 %v663_v6  ;;  %1538 = vmatpush1.msra.mxu1 %v791_v11  ;;  %v864_v1 = vld [vmem:[%s5542_s1 + $0x6c8] sm:$0xff]  ;;  %v863_v5 = vld [vmem:[%s5542_s1 + $0x6c0] sm:$0xff] }
  0xc6   : > { %1468 = vmatprep.subr.mxu0 %v660_v12  ;;  %1539 = vmatprep.subr.mxu1 %v788_v13  ;;  %v732_v6 = vld [vmem:[%s5542_s1 + $0x2a8] sm:$0xff]  ;;  %v731_v12 = vld [vmem:[%s5542_s1 + $0x2a0] sm:$0xff] }
  0xc7   : > { %1469 = vmatpush1.msra.mxu0 %v659_v14  ;;  %1540 = vmatpush1.msra.mxu1 %v787_v15  ;;  %v860_v11 = vld [vmem:[%s5542_s1 + $0x6a8] sm:$0xff]  ;;  %v859_v13 = vld [vmem:[%s5542_s1 + $0x6a0] sm:$0xff] }
  0xc8   : > { %1470 = vmatprep.subr.mxu0 %v656_v16  ;;  %1541 = vmatprep.subr.mxu1 %v784_v17  ;;  %v728_v14 = vld [vmem:[%s5542_s1 + $0x288] sm:$0xff]  ;;  %v727_v16 = vld [vmem:[%s5542_s1 + $0x280] sm:$0xff] }
  0xc9   : > { %1471 = vmatpush1.msra.mxu0 %v655_v18  ;;  %1542 = vmatpush1.msra.mxu1 %v783_v19  ;;  %v856_v15 = vld [vmem:[%s5542_s1 + $0x688] sm:$0xff]  ;;  %v855_v17 = vld [vmem:[%s5542_s1 + $0x680] sm:$0xff] }
  0xca   : > { %1472 = vmatprep.subr.mxu0 %v652_v20  ;;  %1543 = vmatprep.subr.mxu1 %v780_v21  ;;  %v724_v18 = vld [vmem:[%s5542_s1 + $0x268] sm:$0xff]  ;;  %v723_v20 = vld [vmem:[%s5542_s1 + $0x260] sm:$0xff] }
  0xcb   : > { %1473 = vmatpush1.msra.mxu0 %v651_v22  ;;  %1544 = vmatpush1.msra.mxu1 %v779_v23  ;;  %v852_v19 = vld [vmem:[%s5542_s1 + $0x668] sm:$0xff]  ;;  %v851_v21 = vld [vmem:[%s5542_s1 + $0x660] sm:$0xff] }
  0xcc   : > { %1474 = vmatprep.subr.mxu0 %v648_v24  ;;  %1545 = vmatprep.subr.mxu1 %v776_v25  ;;  %v720_v22 = vld [vmem:[%s5542_s1 + $0x248] sm:$0xff]  ;;  %v719_v24 = vld [vmem:[%s5542_s1 + $0x240] sm:$0xff] }
  0xcd   : > { %1475 = vmatpush1.msra.mxu0 %v647_v34  ;;  %1546 = vmatpush1.msra.mxu1 %v775_v35  ;;  %v848_v23 = vld [vmem:[%s5542_s1 + $0x648] sm:$0xff]  ;;  %v847_v25 = vld [vmem:[%s5542_s1 + $0x640] sm:$0xff] }
  0xce   : > { %1476 = vmatprep.subr.mxu0 %v772_v26  ;;  %1547 = vmatprep.subr.mxu1 %v900_v36  ;;  %v716_v34 = vld [vmem:[%s5542_s1 + $0x228] sm:$0xff] }
  0xcf   : > { %1477 = vmatpush2.msra.mxu0 %v771_v37  ;;  %1548 = vmatpush2.msra.mxu1 %v899_v27  ;;  %v844_v35 = vld [vmem:[%s5542_s1 + $0x628] sm:$0xff]  ;;  %v715_v37 = vld [vmem:[%s5542_s1 + $0x220] sm:$0xff] }
  0xd0   : > { %1478 = vmatprep.subr.mxu0 %v768_v28  ;;  %1549 = vmatprep.subr.mxu1 %v896_v29  ;;  %v843_v27 = vld [vmem:[%s5542_s1 + $0x620] sm:$0xff]  ;;  %v712_v28 = vld [vmem:[%s5542_s1 + $0x208] sm:$0xff] }
  0xd1   : > { %1479 = vmatpush2.msra.mxu0 %v767_v30  ;;  %1550 = vmatpush2.msra.mxu1 %v895_v31  ;;  %v840_v29 = vld [vmem:[%s5542_s1 + $0x608] sm:$0xff]  ;;  %v711_v30 = vld [vmem:[%s5542_s1 + $0x200] sm:$0xff] }
  0xd2   : > { %1480 = vmatprep.subr.mxu0 %v764_v32  ;;  %1551 = vmatprep.subr.mxu1 %v892_v33  ;;  %v839_v31 = vld [vmem:[%s5542_s1 + $0x600] sm:$0xff] }
  0xd3   : > { %1481 = vmatpush2.msra.mxu0 %v763_v38  ;;  %1552 = vmatpush2.msra.mxu1 %v891_v39  ;;  %v710_v38 = vld [vmem:[%s5542_s1 + $0x1f8] sm:$0xff] }
  0xd4   : > { %1482 = vmatprep.subr.mxu0 %v760_v40  ;;  %1553 = vmatprep.subr.mxu1 %v888_v41  ;;  %v838_v39 = vld [vmem:[%s5542_s1 + $0x5f8] sm:$0xff]  ;;  %v709_v40 = vld [vmem:[%s5542_s1 + $0x1f0] sm:$0xff] }
  0xd5   : > { %1483 = vmatpush2.msra.mxu0 %v759_v42  ;;  %1554 = vmatpush2.msra.mxu1 %v887_v43  ;;  %v837_v41 = vld [vmem:[%s5542_s1 + $0x5f0] sm:$0xff]  ;;  %v706_v42 = vld [vmem:[%s5542_s1 + $0x1d8] sm:$0xff] }
  0xd6   : > { %1484 = vmatprep.subr.mxu0 %v756_v44  ;;  %1555 = vmatprep.subr.mxu1 %v884_v45  ;;  %v834_v43 = vld [vmem:[%s5542_s1 + $0x5d8] sm:$0xff]  ;;  %v705_v44 = vld [vmem:[%s5542_s1 + $0x1d0] sm:$0xff] }
  0xd7   : > { %1485 = vmatpush2.msra.mxu0 %v755_v46  ;;  %1556 = vmatpush2.msra.mxu1 %v883_v47  ;;  %v833_v45 = vld [vmem:[%s5542_s1 + $0x5d0] sm:$0xff]  ;;  %v702_v46 = vld [vmem:[%s5542_s1 + $0x1b8] sm:$0xff] }
  0xd8   : > { %1486 = vmatprep.subr.mxu0 %v752_v48  ;;  %1557 = vmatprep.subr.mxu1 %v880_v49  ;;  %v830_v47 = vld [vmem:[%s5542_s1 + $0x5b8] sm:$0xff]  ;;  %v701_v48 = vld [vmem:[%s5542_s1 + $0x1b0] sm:$0xff] }
  0xd9   : > { %1487 = vmatpush2.msra.mxu0 %v751_v50  ;;  %1558 = vmatpush2.msra.mxu1 %v879_v51  ;;  %v829_v49 = vld [vmem:[%s5542_s1 + $0x5b0] sm:$0xff]  ;;  %v698_v50 = vld [vmem:[%s5542_s1 + $0x198] sm:$0xff] }
  0xda   : > { %1488 = vmatprep.subr.mxu0 %v748_v52  ;;  %1559 = vmatprep.subr.mxu1 %v876_v53  ;;  %v826_v51 = vld [vmem:[%s5542_s1 + $0x598] sm:$0xff]  ;;  %v697_v52 = vld [vmem:[%s5542_s1 + $0x190] sm:$0xff] }
  0xdb   : > { %1489 = vmatpush2.msra.mxu0 %v747_v54  ;;  %1560 = vmatpush2.msra.mxu1 %v875_v55  ;;  %v825_v53 = vld [vmem:[%s5542_s1 + $0x590] sm:$0xff]  ;;  %v694_v54 = vld [vmem:[%s5542_s1 + $0x178] sm:$0xff] }
  0xdc   : > { %1490 = vmatprep.subr.mxu0 %v744_v56  ;;  %1561 = vmatprep.subr.mxu1 %v872_v57  ;;  %v822_v55 = vld [vmem:[%s5542_s1 + $0x578] sm:$0xff]  ;;  %v693_v56 = vld [vmem:[%s5542_s1 + $0x170] sm:$0xff] }
  0xdd   : > { %1491 = vmatpush2.msra.mxu0 %v743_v58  ;;  %1562 = vmatpush2.msra.mxu1 %v871_v59  ;;  %v821_v57 = vld [vmem:[%s5542_s1 + $0x570] sm:$0xff]  ;;  %v690_v58 = vld [vmem:[%s5542_s1 + $0x158] sm:$0xff] }
  0xde   : > { %1492 = vmatprep.subr.mxu0 %v740_v60  ;;  %1563 = vmatprep.subr.mxu1 %v868_v61  ;;  %v818_v59 = vld [vmem:[%s5542_s1 + $0x558] sm:$0xff]  ;;  %v689_v60 = vld [vmem:[%s5542_s1 + $0x150] sm:$0xff] }
  0xdf   : > { %1493 = vmatpush2.msra.mxu0 %v739_v62  ;;  %1564 = vmatpush2.msra.mxu1 %v867_v63  ;;  %v817_v61 = vld [vmem:[%s5542_s1 + $0x550] sm:$0xff]  ;;  %v686_v62 = vld [vmem:[%s5542_s1 + $0x138] sm:$0xff] }
  0xe0   : > { %1494 = vmatprep.subr.mxu0 %v736_v0  ;;  %1565 = vmatprep.subr.mxu1 %v864_v1  ;;  %v814_v63 = vld [vmem:[%s5542_s1 + $0x538] sm:$0xff]  ;;  %v685_v0 = vld [vmem:[%s5542_s1 + $0x130] sm:$0xff] }
  0xe1   : > { %1495 = vmatpush2.msra.mxu0 %v735_v3  ;;  %1566 = vmatpush2.msra.mxu1 %v863_v5  ;;  %v813_v1 = vld [vmem:[%s5542_s1 + $0x530] sm:$0xff]  ;;  %v682_v3 = vld [vmem:[%s5542_s1 + $0x118] sm:$0xff] }
  0xe2   : > { %1496 = vmatprep.subr.mxu0 %v732_v6  ;;  %1567 = vmatprep.subr.mxu1 %v860_v11  ;;  %v810_v5 = vld [vmem:[%s5542_s1 + $0x518] sm:$0xff]  ;;  %v681_v6 = vld [vmem:[%s5542_s1 + $0x110] sm:$0xff] }
  0xe3   : > { %1497 = vmatpush2.msra.mxu0 %v731_v12  ;;  %1568 = vmatpush2.msra.mxu1 %v859_v13  ;;  %v809_v11 = vld [vmem:[%s5542_s1 + $0x510] sm:$0xff]  ;;  %v678_v12 = vld [vmem:[%s5542_s1 + $0xf8] sm:$0xff] }
  0xe4   : > { %1498 = vmatprep.subr.mxu0 %v728_v14  ;;  %1569 = vmatprep.subr.mxu1 %v856_v15  ;;  %v806_v13 = vld [vmem:[%s5542_s1 + $0x4f8] sm:$0xff]  ;;  %v677_v14 = vld [vmem:[%s5542_s1 + $0xf0] sm:$0xff] }
  0xe5   : > { %1499 = vmatpush2.msra.mxu0 %v727_v16  ;;  %1570 = vmatpush2.msra.mxu1 %v855_v17  ;;  %v4301_v26 = vpop.f32.mrf.mxu0  ;;  %v4303_v36 = vpop.f32.mrf.mxu1  ;;  %v805_v15 = vld [vmem:[%s5542_s1 + $0x4f0] sm:$0xff]  ;;  %v674_v16 = vld [vmem:[%s5542_s1 + $0xd8] sm:$0xff] }
  0xe6   : > { %1500 = vmatprep.subr.mxu0 %v724_v18  ;;  %1571 = vmatprep.subr.mxu1 %v852_v19  ;;  %v802_v17 = vld [vmem:[%s5542_s1 + $0x4d8] sm:$0xff]  ;;  %v673_v18 = vld [vmem:[%s5542_s1 + $0xd0] sm:$0xff] }
  0xe7   : > { %1501 = vmatpush2.msra.mxu0 %v723_v20  ;;  %1572 = vmatpush2.msra.mxu1 %v851_v21  ;;  %v428_v32 = vpop.f32.mrf.mxu0  ;;  %v499_v33 = vpop.f32.mrf.mxu1  ;;  %v801_v19 = vld [vmem:[%s5542_s1 + $0x4d0] sm:$0xff]  ;;  %v670_v20 = vld [vmem:[%s5542_s1 + $0xb8] sm:$0xff] }
  0xe8   : > { %1502 = vmatprep.subr.mxu0 %v720_v22  ;;  %1573 = vmatprep.subr.mxu1 %v848_v23  ;;  %v798_v21 = vld [vmem:[%s5542_s1 + $0x4b8] sm:$0xff]  ;;  %v669_v22 = vld [vmem:[%s5542_s1 + $0xb0] sm:$0xff] }
  0xe9   : > { %1503 = vmatpush2.msra.mxu0 %v719_v24  ;;  %1574 = vmatpush2.msra.mxu1 %v847_v25  ;;  %v797_v23 = vld [vmem:[%s5542_s1 + $0x4b0] sm:$0xff]  ;;  %v666_v24 = vld [vmem:[%s5542_s1 + $0x98] sm:$0xff] }
  0xea   : > { %1504 = vmatprep.subr.mxu0 %v716_v34  ;;  %1575 = vmatprep.subr.mxu1 %v844_v35  ;;  %v794_v25 = vld [vmem:[%s5542_s1 + $0x498] sm:$0xff]  ;;  %v665_v34 = vld [vmem:[%s5542_s1 + $0x90] sm:$0xff] }
  0xeb   : > { %1505 = vmatpush2.msra.mxu0 %v715_v37  ;;  %1576 = vmatpush2.msra.mxu1 %v843_v27  ;;  %v793_v35 = vld [vmem:[%s5542_s1 + $0x490] sm:$0xff]  ;;  %v662_v37 = vld [vmem:[%s5542_s1 + $0x78] sm:$0xff] }
  0xec   : > { %1506 = vmatprep.subr.mxu0 %v712_v28  ;;  %1577 = vmatprep.subr.mxu1 %v840_v29  ;;  %v790_v27 = vld [vmem:[%s5542_s1 + $0x478] sm:$0xff]  ;;  %v661_v28 = vld [vmem:[%s5542_s1 + $0x70] sm:$0xff] }
  0xed   : > { %1507 = vmatpush2.msra.mxu0 %v711_v30  ;;  %1578 = vmatpush2.msra.mxu1 %v839_v31  ;;  %v789_v29 = vld [vmem:[%s5542_s1 + $0x470] sm:$0xff]  ;;  %v658_v30 = vld [vmem:[%s5542_s1 + $0x58] sm:$0xff] }
  0xee   : > { %1508 = vmatprep.mubr.f32.mxu0 %v428_v32  ;;  %1579 = vmatprep.mubr.f32.mxu1 %v499_v33  ;;  %v786_v31 = vld [vmem:[%s5542_s1 + $0x458] sm:$0xff] }
  0xef   : > { %1586 = vmatprep.subr.mxu0 %v710_v38  ;;  %1657 = vmatprep.subr.mxu1 %v838_v39  ;;  %v654_v38 = vld [vmem:[%s5542_s1 + $0x38] sm:$0xff] }
  0xf0   : > { %1509 = vmatmul.mubr.f32.vlgmr.msra.gmra.mxu0 %v4301_v26  ;;  %1580 = vmatmul.mubr.f32.vlgmr.msra.gmra.mxu1 %v4303_v36  ;;  %v782_v39 = vld [vmem:[%s5542_s1 + $0x438] sm:$0xff] }
  0xf1   : > { %1587 = vmatpush1.msra.mxu0 %v709_v40  ;;  %1658 = vmatpush1.msra.mxu1 %v837_v41  ;;  %v653_v40 = vld [vmem:[%s5542_s1 + $0x30] sm:$0xff] }
  0xf2   : > { %1588 = vmatprep.subr.mxu0 %v706_v42  ;;  %1650 = vmatprep.mubr.f32.mxu0 %v428_v32  ;;  %v657_v32 = vld [vmem:[%s5542_s1 + $0x50] sm:$0xff]  ;;  %v650_v42 = vld [vmem:[%s5542_s1 + $0x18] sm:$0xff] }
  0xf3   : > { %1659 = vmatprep.subr.mxu1 %v834_v43  ;;  %1721 = vmatprep.mubr.f32.mxu1 %v499_v33  ;;  %v785_v33 = vld [vmem:[%s5542_s1 + $0x450] sm:$0xff]  ;;  %v778_v43 = vld [vmem:[%s5542_s1 + $0x418] sm:$0xff] }
  0xf4   : > { %1589 = vmatpush1.msra.mxu0 %v705_v44  ;;  %1660 = vmatpush1.msra.mxu1 %v833_v45  ;;  %v781_v41 = vld [vmem:[%s5542_s1 + $0x430] sm:$0xff] }
  0xf5   : > { %1590 = vmatprep.subr.mxu0 %v702_v46  ;;  %1661 = vmatprep.subr.mxu1 %v830_v47  ;;  %v649_v44 = vld [vmem:[%s5542_s1 + $0x10] sm:$0xff]  ;;  %v774_v46 = vld [vmem:[%s5542_s1 + $0x3f8] sm:$0xff] }
  0xf6   : > { %1591 = vmatpush1.msra.mxu0 %v701_v48  ;;  %1662 = vmatpush1.msra.mxu1 %v829_v49  ;;  %v777_v45 = vld [vmem:[%s5542_s1 + $0x410] sm:$0xff]  ;;  %v902_v47 = vld [vmem:[%s5542_s1 + $0x7f8] sm:$0xff] }
  0xf7   : > { %1592 = vmatprep.subr.mxu0 %v698_v50  ;;  %1663 = vmatprep.subr.mxu1 %v826_v51  ;;  %v773_v48 = vld [vmem:[%s5542_s1 + $0x3f0] sm:$0xff]  ;;  %v770_v50 = vld [vmem:[%s5542_s1 + $0x3d8] sm:$0xff] }
  0xf8   : > { %1593 = vmatpush1.msra.mxu0 %v697_v52  ;;  %1664 = vmatpush1.msra.mxu1 %v825_v53  ;;  %v901_v49 = vld [vmem:[%s5542_s1 + $0x7f0] sm:$0xff]  ;;  %v898_v51 = vld [vmem:[%s5542_s1 + $0x7d8] sm:$0xff] }
  0xf9   : > { %1594 = vmatprep.subr.mxu0 %v694_v54  ;;  %1665 = vmatprep.subr.mxu1 %v822_v55  ;;  %v769_v52 = vld [vmem:[%s5542_s1 + $0x3d0] sm:$0xff]  ;;  %v766_v54 = vld [vmem:[%s5542_s1 + $0x3b8] sm:$0xff] }
  0xfa   : > { %1595 = vmatpush1.msra.mxu0 %v693_v56  ;;  %1666 = vmatpush1.msra.mxu1 %v821_v57  ;;  %v897_v53 = vld [vmem:[%s5542_s1 + $0x7d0] sm:$0xff]  ;;  %v894_v55 = vld [vmem:[%s5542_s1 + $0x7b8] sm:$0xff] }
  0xfb   : > { %1596 = vmatprep.subr.mxu0 %v690_v58  ;;  %1667 = vmatprep.subr.mxu1 %v818_v59  ;;  %v765_v56 = vld [vmem:[%s5542_s1 + $0x3b0] sm:$0xff]  ;;  %v762_v58 = vld [vmem:[%s5542_s1 + $0x398] sm:$0xff] }
  0xfc   : > { %1597 = vmatpush1.msra.mxu0 %v689_v60  ;;  %1668 = vmatpush1.msra.mxu1 %v817_v61  ;;  %v893_v57 = vld [vmem:[%s5542_s1 + $0x7b0] sm:$0xff]  ;;  %v890_v59 = vld [vmem:[%s5542_s1 + $0x798] sm:$0xff] }
  0xfd   : > { %1598 = vmatprep.subr.mxu0 %v686_v62  ;;  %1669 = vmatprep.subr.mxu1 %v814_v63  ;;  %v761_v60 = vld [vmem:[%s5542_s1 + $0x390] sm:$0xff]  ;;  %v758_v62 = vld [vmem:[%s5542_s1 + $0x378] sm:$0xff] }
  0xfe   : > { %1599 = vmatpush1.msra.mxu0 %v685_v0  ;;  %1670 = vmatpush1.msra.mxu1 %v813_v1  ;;  %v889_v61 = vld [vmem:[%s5542_s1 + $0x790] sm:$0xff]  ;;  %v886_v63 = vld [vmem:[%s5542_s1 + $0x778] sm:$0xff] }
  0xff   : > { %1600 = vmatprep.subr.mxu0 %v682_v3  ;;  %1671 = vmatprep.subr.mxu1 %v810_v5  ;;  %v757_v0 = vld [vmem:[%s5542_s1 + $0x370] sm:$0xff]  ;;  %v754_v3 = vld [vmem:[%s5542_s1 + $0x358] sm:$0xff] }
 0x100   : > { %1601 = vmatpush1.msra.mxu0 %v681_v6  ;;  %1672 = vmatpush1.msra.mxu1 %v809_v11  ;;  %v885_v1 = vld [vmem:[%s5542_s1 + $0x770] sm:$0xff]  ;;  %v882_v5 = vld [vmem:[%s5542_s1 + $0x758] sm:$0xff] }
 0x101   : > { %1602 = vmatprep.subr.mxu0 %v678_v12  ;;  %1673 = vmatprep.subr.mxu1 %v806_v13  ;;  %v753_v6 = vld [vmem:[%s5542_s1 + $0x350] sm:$0xff]  ;;  %v750_v12 = vld [vmem:[%s5542_s1 + $0x338] sm:$0xff] }
 0x102   : > { %1603 = vmatpush1.msra.mxu0 %v677_v14  ;;  %1674 = vmatpush1.msra.mxu1 %v805_v15  ;;  %v881_v11 = vld [vmem:[%s5542_s1 + $0x750] sm:$0xff]  ;;  %v878_v13 = vld [vmem:[%s5542_s1 + $0x738] sm:$0xff] }
 0x103   : > { %1604 = vmatprep.subr.mxu0 %v674_v16  ;;  %1675 = vmatprep.subr.mxu1 %v802_v17  ;;  %v749_v14 = vld [vmem:[%s5542_s1 + $0x330] sm:$0xff]  ;;  %v746_v16 = vld [vmem:[%s5542_s1 + $0x318] sm:$0xff] }
 0x104   : > { %1605 = vmatpush1.msra.mxu0 %v673_v18  ;;  %1676 = vmatpush1.msra.mxu1 %v801_v19  ;;  %v877_v15 = vld [vmem:[%s5542_s1 + $0x730] sm:$0xff]  ;;  %v874_v17 = vld [vmem:[%s5542_s1 + $0x718] sm:$0xff] }
 0x105   : > { %1606 = vmatprep.subr.mxu0 %v670_v20  ;;  %1677 = vmatprep.subr.mxu1 %v798_v21  ;;  %v745_v18 = vld [vmem:[%s5542_s1 + $0x310] sm:$0xff]  ;;  %v742_v20 = vld [vmem:[%s5542_s1 + $0x2f8] sm:$0xff] }
 0x106   : > { %1607 = vmatpush1.msra.mxu0 %v669_v22  ;;  %1678 = vmatpush1.msra.mxu1 %v797_v23  ;;  %v873_v19 = vld [vmem:[%s5542_s1 + $0x710] sm:$0xff]  ;;  %v870_v21 = vld [vmem:[%s5542_s1 + $0x6f8] sm:$0xff] }
 0x107   : > { %1608 = vmatprep.subr.mxu0 %v666_v24  ;;  %1679 = vmatprep.subr.mxu1 %v794_v25  ;;  %v741_v22 = vld [vmem:[%s5542_s1 + $0x2f0] sm:$0xff]  ;;  %v738_v24 = vld [vmem:[%s5542_s1 + $0x2d8] sm:$0xff] }
 0x108   : > { %1609 = vmatpush1.msra.mxu0 %v665_v34  ;;  %1680 = vmatpush1.msra.mxu1 %v793_v35  ;;  %v869_v23 = vld [vmem:[%s5542_s1 + $0x6f0] sm:$0xff]  ;;  %v866_v25 = vld [vmem:[%s5542_s1 + $0x6d8] sm:$0xff] }
 0x109   : > { %1610 = vmatprep.subr.mxu0 %v662_v37  ;;  %1681 = vmatprep.subr.mxu1 %v790_v27  ;;  %v737_v34 = vld [vmem:[%s5542_s1 + $0x2d0] sm:$0xff]  ;;  %v734_v37 = vld [vmem:[%s5542_s1 + $0x2b8] sm:$0xff] }
 0x10a   : > { %1611 = vmatpush1.msra.mxu0 %v661_v28  ;;  %1682 = vmatpush1.msra.mxu1 %v789_v29  ;;  %v865_v35 = vld [vmem:[%s5542_s1 + $0x6d0] sm:$0xff]  ;;  %v862_v27 = vld [vmem:[%s5542_s1 + $0x6b8] sm:$0xff] }
 0x10b   : > { %1612 = vmatprep.subr.mxu0 %v658_v30  ;;  %1683 = vmatprep.subr.mxu1 %v786_v31  ;;  %v733_v28 = vld [vmem:[%s5542_s1 + $0x2b0] sm:$0xff]  ;;  %v730_v30 = vld [vmem:[%s5542_s1 + $0x298] sm:$0xff] }
 0x10c   : > { %1613 = vmatpush1.msra.mxu0 %v657_v32  ;;  %1684 = vmatpush1.msra.mxu1 %v785_v33  ;;  %v861_v29 = vld [vmem:[%s5542_s1 + $0x6b0] sm:$0xff]  ;;  %v858_v31 = vld [vmem:[%s5542_s1 + $0x698] sm:$0xff] }
 0x10d   : > { %1614 = vmatprep.subr.mxu0 %v654_v38  ;;  %1685 = vmatprep.subr.mxu1 %v782_v39  ;;  %v729_v32 = vld [vmem:[%s5542_s1 + $0x290] sm:$0xff]  ;;  %v726_v38 = vld [vmem:[%s5542_s1 + $0x278] sm:$0xff] }
 0x10e   : > { %1615 = vmatpush1.msra.mxu0 %v653_v40  ;;  %1686 = vmatpush1.msra.mxu1 %v781_v41  ;;  %v857_v33 = vld [vmem:[%s5542_s1 + $0x690] sm:$0xff]  ;;  %v854_v39 = vld [vmem:[%s5542_s1 + $0x678] sm:$0xff] }
 0x10f   : > { %1616 = vmatprep.subr.mxu0 %v650_v42  ;;  %1687 = vmatprep.subr.mxu1 %v778_v43  ;;  %v725_v40 = vld [vmem:[%s5542_s1 + $0x270] sm:$0xff]  ;;  %v722_v42 = vld [vmem:[%s5542_s1 + $0x258] sm:$0xff] }
 0x110   : > { %1617 = vmatpush1.msra.mxu0 %v649_v44  ;;  %1688 = vmatpush1.msra.mxu1 %v777_v45  ;;  %v853_v41 = vld [vmem:[%s5542_s1 + $0x670] sm:$0xff]  ;;  %v850_v43 = vld [vmem:[%s5542_s1 + $0x658] sm:$0xff] }
 0x111   : > { %1618 = vmatprep.subr.mxu0 %v774_v46  ;;  %1689 = vmatprep.subr.mxu1 %v902_v47  ;;  %v721_v44 = vld [vmem:[%s5542_s1 + $0x250] sm:$0xff]  ;;  %v718_v46 = vld [vmem:[%s5542_s1 + $0x238] sm:$0xff] }
 0x112   : > { %1619 = vmatpush2.msra.mxu0 %v773_v48  ;;  %1690 = vmatpush2.msra.mxu1 %v901_v49  ;;  %v849_v45 = vld [vmem:[%s5542_s1 + $0x650] sm:$0xff]  ;;  %v846_v47 = vld [vmem:[%s5542_s1 + $0x638] sm:$0xff] }
 0x113   : > { %1620 = vmatprep.subr.mxu0 %v770_v50  ;;  %1691 = vmatprep.subr.mxu1 %v898_v51  ;;  %v717_v48 = vld [vmem:[%s5542_s1 + $0x230] sm:$0xff]  ;;  %v714_v50 = vld [vmem:[%s5542_s1 + $0x218] sm:$0xff] }
 0x114   : > { %1621 = vmatpush2.msra.mxu0 %v769_v52  ;;  %1692 = vmatpush2.msra.mxu1 %v897_v53  ;;  %v845_v49 = vld [vmem:[%s5542_s1 + $0x630] sm:$0xff]  ;;  %v842_v51 = vld [vmem:[%s5542_s1 + $0x618] sm:$0xff] }
 0x115   : > { %1622 = vmatprep.subr.mxu0 %v766_v54  ;;  %1693 = vmatprep.subr.mxu1 %v894_v55  ;;  %v713_v52 = vld [vmem:[%s5542_s1 + $0x210] sm:$0xff]  ;;  %v4709_v54 = vpop.f32.mrf.mxu0  ;;  %v4711_v55 = vpop.f32.mrf.mxu1 }
 0x116   : > { %1623 = vmatpush2.msra.mxu0 %v765_v56  ;;  %1694 = vmatpush2.msra.mxu1 %v893_v57  ;;  %v841_v53 = vld [vmem:[%s5542_s1 + $0x610] sm:$0xff]  ;;  %v2824_v56 = vld [vmem:[%s5542_s1 + $0x11e8] sm:$0xff] }
 0x117   : > { %1624 = vmatprep.subr.mxu0 %v762_v58  ;;  %1695 = vmatprep.subr.mxu1 %v890_v59  ;;  %v2952_v57 = vld [vmem:[%s5542_s1 + $0x15e8] sm:$0xff]  ;;  %v2823_v58 = vld [vmem:[%s5542_s1 + $0x11e0] sm:$0xff] }
 0x118   : > { %1625 = vmatpush2.msra.mxu0 %v761_v60  ;;  %1696 = vmatpush2.msra.mxu1 %v889_v61  ;;  %v2951_v59 = vld [vmem:[%s5542_s1 + $0x15e0] sm:$0xff]  ;;  %v4727_v60 = vpop.f32.mrf.mxu0  ;;  %v2820_v61 = vld [vmem:[%s5542_s1 + $0x11c8] sm:$0xff] }
 0x119   : > { %1626 = vmatprep.subr.mxu0 %v758_v62  ;;  %1697 = vmatprep.subr.mxu1 %v886_v63  ;;  %v2948_v62 = vld [vmem:[%s5542_s1 + $0x15c8] sm:$0xff]  ;;  %v4735_v63 = vpop.f32.mrf.mxu1 }
 0x11a   : > { %1627 = vmatpush2.msra.mxu0 %v757_v0  ;;  %1698 = vmatpush2.msra.mxu1 %v885_v1  ;;  %v2816_v0 = vld [vmem:[%s5542_s1 + $0x11a8] sm:$0xff] }
 0x11b   : > { %1628 = vmatprep.subr.mxu0 %v754_v3  ;;  %1699 = vmatprep.subr.mxu1 %v882_v5  ;;  %v2944_v1 = vld [vmem:[%s5542_s1 + $0x15a8] sm:$0xff]  ;;  %v2815_v3 = vld [vmem:[%s5542_s1 + $0x11a0] sm:$0xff] }
 0x11c   : > { %1629 = vmatpush2.msra.mxu0 %v753_v6  ;;  %1700 = vmatpush2.msra.mxu1 %v881_v11  ;;  %v2943_v5 = vld [vmem:[%s5542_s1 + $0x15a0] sm:$0xff]  ;;  %v2812_v6 = vld [vmem:[%s5542_s1 + $0x1188] sm:$0xff] }
 0x11d   : > { %1630 = vmatprep.subr.mxu0 %v750_v12  ;;  %1701 = vmatprep.subr.mxu1 %v878_v13  ;;  %v2940_v11 = vld [vmem:[%s5542_s1 + $0x1588] sm:$0xff]  ;;  %v2811_v12 = vld [vmem:[%s5542_s1 + $0x1180] sm:$0xff] }
 0x11e   : > { %1631 = vmatpush2.msra.mxu0 %v749_v14  ;;  %1702 = vmatpush2.msra.mxu1 %v877_v15  ;;  %v2939_v13 = vld [vmem:[%s5542_s1 + $0x1580] sm:$0xff]  ;;  %v2808_v14 = vld [vmem:[%s5542_s1 + $0x1168] sm:$0xff] }
 0x11f   : > { %1632 = vmatprep.subr.mxu0 %v746_v16  ;;  %1703 = vmatprep.subr.mxu1 %v874_v17  ;;  %v2936_v15 = vld [vmem:[%s5542_s1 + $0x1568] sm:$0xff]  ;;  %v2807_v16 = vld [vmem:[%s5542_s1 + $0x1160] sm:$0xff] }
 0x120   : > { %1633 = vmatpush2.msra.mxu0 %v745_v18  ;;  %1704 = vmatpush2.msra.mxu1 %v873_v19  ;;  %v2935_v17 = vld [vmem:[%s5542_s1 + $0x1560] sm:$0xff]  ;;  %v2804_v18 = vld [vmem:[%s5542_s1 + $0x1148] sm:$0xff] }
 0x121   : > { %1634 = vmatprep.subr.mxu0 %v742_v20  ;;  %1705 = vmatprep.subr.mxu1 %v870_v21  ;;  %v2932_v19 = vld [vmem:[%s5542_s1 + $0x1548] sm:$0xff]  ;;  %v2803_v20 = vld [vmem:[%s5542_s1 + $0x1140] sm:$0xff] }
 0x122   : > { %1635 = vmatpush2.msra.mxu0 %v741_v22  ;;  %1706 = vmatpush2.msra.mxu1 %v869_v23  ;;  %v2931_v21 = vld [vmem:[%s5542_s1 + $0x1540] sm:$0xff]  ;;  %v2800_v22 = vld [vmem:[%s5542_s1 + $0x1128] sm:$0xff] }
 0x123   : > { %1636 = vmatprep.subr.mxu0 %v738_v24  ;;  %1707 = vmatprep.subr.mxu1 %v866_v25  ;;  %v2928_v23 = vld [vmem:[%s5542_s1 + $0x1528] sm:$0xff]  ;;  %v2799_v24 = vld [vmem:[%s5542_s1 + $0x1120] sm:$0xff] }
 0x124   : > { %1637 = vmatpush2.msra.mxu0 %v737_v34  ;;  %1708 = vmatpush2.msra.mxu1 %v865_v35  ;;  %v2927_v25 = vld [vmem:[%s5542_s1 + $0x1520] sm:$0xff]  ;;  %v2796_v34 = vld [vmem:[%s5542_s1 + $0x1108] sm:$0xff] }
 0x125   : > { %1638 = vmatprep.subr.mxu0 %v734_v37  ;;  %1709 = vmatprep.subr.mxu1 %v862_v27  ;;  %v2924_v35 = vld [vmem:[%s5542_s1 + $0x1508] sm:$0xff]  ;;  %v2795_v37 = vld [vmem:[%s5542_s1 + $0x1100] sm:$0xff] }
 0x126   : > { %1639 = vmatpush2.msra.mxu0 %v733_v28  ;;  %1710 = vmatpush2.msra.mxu1 %v861_v29  ;;  %v2923_v27 = vld [vmem:[%s5542_s1 + $0x1500] sm:$0xff]  ;;  %v2792_v28 = vld [vmem:[%s5542_s1 + $0x10e8] sm:$0xff] }
 0x127   : > { %1640 = vmatprep.subr.mxu0 %v730_v30  ;;  %1711 = vmatprep.subr.mxu1 %v858_v31  ;;  %v2920_v29 = vld [vmem:[%s5542_s1 + $0x14e8] sm:$0xff]  ;;  %v2791_v30 = vld [vmem:[%s5542_s1 + $0x10e0] sm:$0xff] }
 0x128   : > { %1641 = vmatpush2.msra.mxu0 %v729_v32  ;;  %1712 = vmatpush2.msra.mxu1 %v857_v33  ;;  %v2919_v31 = vld [vmem:[%s5542_s1 + $0x14e0] sm:$0xff]  ;;  %v2788_v32 = vld [vmem:[%s5542_s1 + $0x10c8] sm:$0xff] }
 0x129   : > { %1642 = vmatprep.subr.mxu0 %v726_v38  ;;  %1713 = vmatprep.subr.mxu1 %v854_v39  ;;  %v2916_v33 = vld [vmem:[%s5542_s1 + $0x14c8] sm:$0xff]  ;;  %v2787_v38 = vld [vmem:[%s5542_s1 + $0x10c0] sm:$0xff] }
 0x12a   : > { %1643 = vmatpush2.msra.mxu0 %v725_v40  ;;  %1714 = vmatpush2.msra.mxu1 %v853_v41  ;;  %v2915_v39 = vld [vmem:[%s5542_s1 + $0x14c0] sm:$0xff]  ;;  %v2784_v40 = vld [vmem:[%s5542_s1 + $0x10a8] sm:$0xff] }
 0x12b   : > { %1644 = vmatprep.subr.mxu0 %v722_v42  ;;  %1715 = vmatprep.subr.mxu1 %v850_v43  ;;  %v2912_v41 = vld [vmem:[%s5542_s1 + $0x14a8] sm:$0xff]  ;;  %v2783_v42 = vld [vmem:[%s5542_s1 + $0x10a0] sm:$0xff] }
 0x12c   : > { %1645 = vmatpush2.msra.mxu0 %v721_v44  ;;  %1716 = vmatpush2.msra.mxu1 %v849_v45  ;;  %v2911_v43 = vld [vmem:[%s5542_s1 + $0x14a0] sm:$0xff]  ;;  %v2780_v44 = vld [vmem:[%s5542_s1 + $0x1088] sm:$0xff] }
 0x12d   : > { %1646 = vmatprep.subr.mxu0 %v718_v46  ;;  %1717 = vmatprep.subr.mxu1 %v846_v47  ;;  %v2908_v45 = vld [vmem:[%s5542_s1 + $0x1488] sm:$0xff]  ;;  %v2779_v46 = vld [vmem:[%s5542_s1 + $0x1080] sm:$0xff] }
 0x12e   : > { %1647 = vmatpush2.msra.mxu0 %v717_v48  ;;  %1718 = vmatpush2.msra.mxu1 %v845_v49  ;;  %v2907_v47 = vld [vmem:[%s5542_s1 + $0x1480] sm:$0xff]  ;;  %v2776_v48 = vld [vmem:[%s5542_s1 + $0x1068] sm:$0xff] }
 0x12f   : > { %1648 = vmatprep.subr.mxu0 %v714_v50  ;;  %1719 = vmatprep.subr.mxu1 %v842_v51  ;;  %v2904_v49 = vld [vmem:[%s5542_s1 + $0x1468] sm:$0xff]  ;;  %v2775_v50 = vld [vmem:[%s5542_s1 + $0x1060] sm:$0xff] }
 0x130   : > { %1649 = vmatpush2.msra.mxu0 %v713_v52  ;;  %1720 = vmatpush2.msra.mxu1 %v841_v53  ;;  %v2903_v51 = vld [vmem:[%s5542_s1 + $0x1460] sm:$0xff]  ;;  %v2772_v52 = vld [vmem:[%s5542_s1 + $0x1048] sm:$0xff] }
 0x131   : > { %1651 = vmatmul.mubr.f32.vlgmr.msra.gmra.mxu0 %v4301_v26  ;;  %1722 = vmatmul.mubr.f32.vlgmr.msra.gmra.mxu1 %v4303_v36  ;;  %v2819_v26 = vld [vmem:[%s5542_s1 + $0x11c0] sm:$0xff]  ;;  %v2900_v53 = vld [vmem:[%s5542_s1 + $0x1448] sm:$0xff] }
 0x132   : > { %1985 = vmatprep.subr.mxu0 %v2824_v56  ;;  %2056 = vmatprep.subr.mxu1 %v2952_v57  ;;  %v2947_v36 = vld [vmem:[%s5542_s1 + $0x15c0] sm:$0xff] }
 0x133   : > { %1986 = vmatpush1.msra.mxu0 %v2823_v58  ;;  %2049 = vmatprep.mubr.f32.mxu0 %v4727_v60  ;;  %v2771_v56 = vld [vmem:[%s5542_s1 + $0x1040] sm:$0xff]  ;;  %v2768_v58 = vld [vmem:[%s5542_s1 + $0x1028] sm:$0xff] }
 0x134   : > { %2057 = vmatpush1.msra.mxu1 %v2951_v59  ;;  %2120 = vmatprep.mubr.f32.mxu1 %v4735_v63  ;;  %v2899_v57 = vld [vmem:[%s5542_s1 + $0x1440] sm:$0xff]  ;;  %v2896_v59 = vld [vmem:[%s5542_s1 + $0x1428] sm:$0xff] }
 0x135   : > { %1987 = vmatprep.subr.mxu0 %v2820_v61  ;;  %2058 = vmatprep.subr.mxu1 %v2948_v62  ;;  %v2767_v61 = vld [vmem:[%s5542_s1 + $0x1020] sm:$0xff] }
 0x136   : > { %1988 = vmatpush1.msra.mxu0 %v2819_v26  ;;  %2059 = vmatpush1.msra.mxu1 %v2947_v36  ;;  %v2895_v62 = vld [vmem:[%s5542_s1 + $0x1420] sm:$0xff]  ;;  %v2764_v26 = vld [vmem:[%s5542_s1 + $0x1008] sm:$0xff] }
 0x137   : > { %1989 = vmatprep.subr.mxu0 %v2816_v0  ;;  %2060 = vmatprep.subr.mxu1 %v2944_v1  ;;  %v2892_v36 = vld [vmem:[%s5542_s1 + $0x1408] sm:$0xff]  ;;  %v2763_v0 = vld [vmem:[%s5542_s1 + $0x1000] sm:$0xff] }
 0x138   : > { %1990 = vmatpush1.msra.mxu0 %v2815_v3  ;;  %2061 = vmatpush1.msra.mxu1 %v2943_v5  ;;  %v2891_v1 = vld [vmem:[%s5542_s1 + $0x1400] sm:$0xff]  ;;  %v2888_v3 = vld [vmem:[%s5542_s1 + $0x13e8] sm:$0xff] }
 0x139   : > { %1991 = vmatprep.subr.mxu0 %v2812_v6  ;;  %2062 = vmatprep.subr.mxu1 %v2940_v11  ;;  %v3016_v5 = vld [vmem:[%s5542_s1 + $0x17e8] sm:$0xff]  ;;  %v2887_v6 = vld [vmem:[%s5542_s1 + $0x13e0] sm:$0xff] }
 0x13a   : > { %1992 = vmatpush1.msra.mxu0 %v2811_v12  ;;  %2063 = vmatpush1.msra.mxu1 %v2939_v13  ;;  %v3015_v11 = vld [vmem:[%s5542_s1 + $0x17e0] sm:$0xff]  ;;  %v2884_v12 = vld [vmem:[%s5542_s1 + $0x13c8] sm:$0xff] }
 0x13b   : > { %1993 = vmatprep.subr.mxu0 %v2808_v14  ;;  %2064 = vmatprep.subr.mxu1 %v2936_v15  ;;  %v3012_v13 = vld [vmem:[%s5542_s1 + $0x17c8] sm:$0xff]  ;;  %v2883_v14 = vld [vmem:[%s5542_s1 + $0x13c0] sm:$0xff] }
 0x13c   : > { %1994 = vmatpush1.msra.mxu0 %v2807_v16  ;;  %2065 = vmatpush1.msra.mxu1 %v2935_v17  ;;  %v3011_v15 = vld [vmem:[%s5542_s1 + $0x17c0] sm:$0xff]  ;;  %v2880_v16 = vld [vmem:[%s5542_s1 + $0x13a8] sm:$0xff] }
 0x13d   : > { %1995 = vmatprep.subr.mxu0 %v2804_v18  ;;  %2066 = vmatprep.subr.mxu1 %v2932_v19  ;;  %v3008_v17 = vld [vmem:[%s5542_s1 + $0x17a8] sm:$0xff]  ;;  %v2879_v18 = vld [vmem:[%s5542_s1 + $0x13a0] sm:$0xff] }
 0x13e   : > { %1996 = vmatpush1.msra.mxu0 %v2803_v20  ;;  %2067 = vmatpush1.msra.mxu1 %v2931_v21  ;;  %v3007_v19 = vld [vmem:[%s5542_s1 + $0x17a0] sm:$0xff]  ;;  %v2876_v20 = vld [vmem:[%s5542_s1 + $0x1388] sm:$0xff] }
 0x13f   : > { %1997 = vmatprep.subr.mxu0 %v2800_v22  ;;  %2068 = vmatprep.subr.mxu1 %v2928_v23  ;;  %v3004_v21 = vld [vmem:[%s5542_s1 + $0x1788] sm:$0xff]  ;;  %v2875_v22 = vld [vmem:[%s5542_s1 + $0x1380] sm:$0xff] }
 0x140   : > { %1998 = vmatpush1.msra.mxu0 %v2799_v24  ;;  %2069 = vmatpush1.msra.mxu1 %v2927_v25  ;;  %v3003_v23 = vld [vmem:[%s5542_s1 + $0x1780] sm:$0xff]  ;;  %v2872_v24 = vld [vmem:[%s5542_s1 + $0x1368] sm:$0xff] }
 0x141   : > { %1999 = vmatprep.subr.mxu0 %v2796_v34  ;;  %2070 = vmatprep.subr.mxu1 %v2924_v35  ;;  %v3000_v25 = vld [vmem:[%s5542_s1 + $0x1768] sm:$0xff]  ;;  %v2871_v34 = vld [vmem:[%s5542_s1 + $0x1360] sm:$0xff] }
 0x142   : > { %2000 = vmatpush1.msra.mxu0 %v2795_v37  ;;  %2071 = vmatpush1.msra.mxu1 %v2923_v27  ;;  %v2999_v35 = vld [vmem:[%s5542_s1 + $0x1760] sm:$0xff]  ;;  %v2868_v37 = vld [vmem:[%s5542_s1 + $0x1348] sm:$0xff] }
 0x143   : > { %2001 = vmatprep.subr.mxu0 %v2792_v28  ;;  %2072 = vmatprep.subr.mxu1 %v2920_v29  ;;  %v2996_v27 = vld [vmem:[%s5542_s1 + $0x1748] sm:$0xff]  ;;  %v2867_v28 = vld [vmem:[%s5542_s1 + $0x1340] sm:$0xff] }
 0x144   : > { %2002 = vmatpush1.msra.mxu0 %v2791_v30  ;;  %2073 = vmatpush1.msra.mxu1 %v2919_v31  ;;  %v2995_v29 = vld [vmem:[%s5542_s1 + $0x1740] sm:$0xff]  ;;  %v2864_v30 = vld [vmem:[%s5542_s1 + $0x1328] sm:$0xff] }
 0x145   : > { %2003 = vmatprep.subr.mxu0 %v2788_v32  ;;  %2074 = vmatprep.subr.mxu1 %v2916_v33  ;;  %v2992_v31 = vld [vmem:[%s5542_s1 + $0x1728] sm:$0xff]  ;;  %v2863_v32 = vld [vmem:[%s5542_s1 + $0x1320] sm:$0xff] }
 0x146   : > { %2004 = vmatpush1.msra.mxu0 %v2787_v38  ;;  %2075 = vmatpush1.msra.mxu1 %v2915_v39  ;;  %v2991_v33 = vld [vmem:[%s5542_s1 + $0x1720] sm:$0xff]  ;;  %v2860_v38 = vld [vmem:[%s5542_s1 + $0x1308] sm:$0xff] }
 0x147   : > { %2005 = vmatprep.subr.mxu0 %v2784_v40  ;;  %2076 = vmatprep.subr.mxu1 %v2912_v41  ;;  %v2988_v39 = vld [vmem:[%s5542_s1 + $0x1708] sm:$0xff]  ;;  %v2859_v40 = vld [vmem:[%s5542_s1 + $0x1300] sm:$0xff] }
 0x148   : > { %2006 = vmatpush1.msra.mxu0 %v2783_v42  ;;  %2077 = vmatpush1.msra.mxu1 %v2911_v43  ;;  %v2987_v41 = vld [vmem:[%s5542_s1 + $0x1700] sm:$0xff]  ;;  %v2856_v42 = vld [vmem:[%s5542_s1 + $0x12e8] sm:$0xff] }
 0x149   : > { %2007 = vmatprep.subr.mxu0 %v2780_v44  ;;  %2078 = vmatprep.subr.mxu1 %v2908_v45  ;;  %v2984_v43 = vld [vmem:[%s5542_s1 + $0x16e8] sm:$0xff]  ;;  %v2855_v44 = vld [vmem:[%s5542_s1 + $0x12e0] sm:$0xff] }
 0x14a   : > { %2008 = vmatpush1.msra.mxu0 %v2779_v46  ;;  %2079 = vmatpush1.msra.mxu1 %v2907_v47  ;;  %v2983_v45 = vld [vmem:[%s5542_s1 + $0x16e0] sm:$0xff]  ;;  %v2852_v46 = vld [vmem:[%s5542_s1 + $0x12c8] sm:$0xff] }
 0x14b   : > { %2009 = vmatprep.subr.mxu0 %v2776_v48  ;;  %2080 = vmatprep.subr.mxu1 %v2904_v49  ;;  %v2980_v47 = vld [vmem:[%s5542_s1 + $0x16c8] sm:$0xff]  ;;  %v2851_v48 = vld [vmem:[%s5542_s1 + $0x12c0] sm:$0xff] }
 0x14c   : > { %2010 = vmatpush1.msra.mxu0 %v2775_v50  ;;  %2081 = vmatpush1.msra.mxu1 %v2903_v51  ;;  %v2979_v49 = vld [vmem:[%s5542_s1 + $0x16c0] sm:$0xff]  ;;  %v2848_v50 = vld [vmem:[%s5542_s1 + $0x12a8] sm:$0xff] }
 0x14d   : > { %2011 = vmatprep.subr.mxu0 %v2772_v52  ;;  %2082 = vmatprep.subr.mxu1 %v2900_v53  ;;  %v2976_v51 = vld [vmem:[%s5542_s1 + $0x16a8] sm:$0xff]  ;;  %v2847_v52 = vld [vmem:[%s5542_s1 + $0x12a0] sm:$0xff] }
 0x14e   : > { %2012 = vmatpush1.msra.mxu0 %v2771_v56  ;;  %2083 = vmatpush1.msra.mxu1 %v2899_v57  ;;  %v2975_v53 = vld [vmem:[%s5542_s1 + $0x16a0] sm:$0xff]  ;;  %v2844_v56 = vld [vmem:[%s5542_s1 + $0x1288] sm:$0xff] }
 0x14f   : > { %2013 = vmatprep.subr.mxu0 %v2768_v58  ;;  %2084 = vmatprep.subr.mxu1 %v2896_v59  ;;  %v2972_v57 = vld [vmem:[%s5542_s1 + $0x1688] sm:$0xff]  ;;  %v5051_v58 = vpop.f32.mrf.mxu0  ;;  %v5053_v59 = vpop.f32.mrf.mxu1 }
 0x150   : > { %2014 = vmatpush1.msra.mxu0 %v2767_v61  ;;  %2085 = vmatpush1.msra.mxu1 %v2895_v62  ;;  %v2843_v61 = vld [vmem:[%s5542_s1 + $0x1280] sm:$0xff] }
 0x151   : > { %2015 = vmatprep.subr.mxu0 %v2764_v26  ;;  %2086 = vmatprep.subr.mxu1 %v2892_v36  ;;  %v2971_v62 = vld [vmem:[%s5542_s1 + $0x1680] sm:$0xff]  ;;  %v2840_v26 = vld [vmem:[%s5542_s1 + $0x1268] sm:$0xff] }
 0x152   : > { %2016 = vmatpush1.msra.mxu0 %v2763_v0  ;;  %2087 = vmatpush1.msra.mxu1 %v2891_v1  ;;  %v2968_v36 = vld [vmem:[%s5542_s1 + $0x1668] sm:$0xff]  ;;  %v2839_v0 = vld [vmem:[%s5542_s1 + $0x1260] sm:$0xff] }
 0x153   : > { %2017 = vmatprep.subr.mxu0 %v2888_v3  ;;  %2088 = vmatprep.subr.mxu1 %v3016_v5  ;;  %v2967_v1 = vld [vmem:[%s5542_s1 + $0x1660] sm:$0xff]  ;;  %v2836_v3 = vld [vmem:[%s5542_s1 + $0x1248] sm:$0xff] }
 0x154   : > { %2018 = vmatpush2.msra.mxu0 %v2887_v6  ;;  %2089 = vmatpush2.msra.mxu1 %v3015_v11  ;;  %v2964_v5 = vld [vmem:[%s5542_s1 + $0x1648] sm:$0xff]  ;;  %v5079_v6 = vpop.f32.mrf.mxu0  ;;  %v5081_v11 = vpop.f32.mrf.mxu1 }
 0x155   : > { %2019 = vmatprep.subr.mxu0 %v2884_v12  ;;  %2090 = vmatprep.subr.mxu1 %v3012_v13  ;;  %v2835_v12 = vld [vmem:[%s5542_s1 + $0x1240] sm:$0xff] }
 0x156   : > { %2020 = vmatpush2.msra.mxu0 %v2883_v14  ;;  %2091 = vmatpush2.msra.mxu1 %v3011_v15  ;;  %v2963_v13 = vld [vmem:[%s5542_s1 + $0x1640] sm:$0xff]  ;;  %v2832_v14 = vld [vmem:[%s5542_s1 + $0x1228] sm:$0xff] }
 0x157   : > { %2021 = vmatprep.subr.mxu0 %v2880_v16  ;;  %2092 = vmatprep.subr.mxu1 %v3008_v17  ;;  %v2960_v15 = vld [vmem:[%s5542_s1 + $0x1628] sm:$0xff]  ;;  %v2831_v16 = vld [vmem:[%s5542_s1 + $0x1220] sm:$0xff] }
 0x158   : > { %2022 = vmatpush2.msra.mxu0 %v2879_v18  ;;  %2093 = vmatpush2.msra.mxu1 %v3007_v19  ;;  %v2959_v17 = vld [vmem:[%s5542_s1 + $0x1620] sm:$0xff] }
 0x159   : > { %2023 = vmatprep.subr.mxu0 %v2876_v20  ;;  %2094 = vmatprep.subr.mxu1 %v3004_v21  ;;  %v2828_v20 = vld [vmem:[%s5542_s1 + $0x1208] sm:$0xff] }
 0x15a   : > { %2024 = vmatpush2.msra.mxu0 %v2875_v22  ;;  %2095 = vmatpush2.msra.mxu1 %v3003_v23  ;;  %v2956_v21 = vld [vmem:[%s5542_s1 + $0x1608] sm:$0xff]  ;;  %v2827_v23 = vld [vmem:[%s5542_s1 + $0x1200] sm:$0xff] }
 0x15b   : > { %2025 = vmatprep.subr.mxu0 %v2872_v24  ;;  %2096 = vmatprep.subr.mxu1 %v3000_v25  ;;  %v2955_v24 = vld [vmem:[%s5542_s1 + $0x1600] sm:$0xff] }
 0x15c   : > { %2026 = vmatpush2.msra.mxu0 %v2871_v34  ;;  %2097 = vmatpush2.msra.mxu1 %v2999_v35 }
 0x15d   : > { %2027 = vmatprep.subr.mxu0 %v2868_v37  ;;  %2098 = vmatprep.subr.mxu1 %v2996_v27  ;;  %v2826_v37 = vld [vmem:[%s5542_s1 + $0x11f8] sm:$0xff] }
 0x15e   : > { %2028 = vmatpush2.msra.mxu0 %v2867_v28  ;;  %2099 = vmatpush2.msra.mxu1 %v2995_v29  ;;  %v2954_v27 = vld [vmem:[%s5542_s1 + $0x15f8] sm:$0xff]  ;;  %v2825_v28 = vld [vmem:[%s5542_s1 + $0x11f0] sm:$0xff] }
 0x15f   : > { %2029 = vmatprep.subr.mxu0 %v2864_v30  ;;  %2100 = vmatprep.subr.mxu1 %v2992_v31  ;;  %v2953_v29 = vld [vmem:[%s5542_s1 + $0x15f0] sm:$0xff]  ;;  %v2822_v30 = vld [vmem:[%s5542_s1 + $0x11d8] sm:$0xff] }
 0x160   : > { %2030 = vmatpush2.msra.mxu0 %v2863_v32  ;;  %2101 = vmatpush2.msra.mxu1 %v2991_v33  ;;  %v2950_v31 = vld [vmem:[%s5542_s1 + $0x15d8] sm:$0xff]  ;;  %v2821_v32 = vld [vmem:[%s5542_s1 + $0x11d0] sm:$0xff] }
 0x161   : > { %2031 = vmatprep.subr.mxu0 %v2860_v38  ;;  %2102 = vmatprep.subr.mxu1 %v2988_v39  ;;  %v2949_v33 = vld [vmem:[%s5542_s1 + $0x15d0] sm:$0xff]  ;;  %v2818_v38 = vld [vmem:[%s5542_s1 + $0x11b8] sm:$0xff] }
 0x162   : > { %2032 = vmatpush2.msra.mxu0 %v2859_v40  ;;  %2103 = vmatpush2.msra.mxu1 %v2987_v41  ;;  %v2946_v39 = vld [vmem:[%s5542_s1 + $0x15b8] sm:$0xff]  ;;  %v2945_v40 = vld [vmem:[%s5542_s1 + $0x15b0] sm:$0xff] }
 0x163   : > { %2033 = vmatprep.subr.mxu0 %v2856_v42  ;;  %2104 = vmatprep.subr.mxu1 %v2984_v43  ;;  %v2942_v41 = vld [vmem:[%s5542_s1 + $0x1598] sm:$0xff]  ;;  %v2813_v42 = vld [vmem:[%s5542_s1 + $0x1190] sm:$0xff] }
 0x164   : > { %2034 = vmatpush2.msra.mxu0 %v2855_v44  ;;  %2105 = vmatpush2.msra.mxu1 %v2983_v45  ;;  %v2941_v43 = vld [vmem:[%s5542_s1 + $0x1590] sm:$0xff]  ;;  %v2810_v44 = vld [vmem:[%s5542_s1 + $0x1178] sm:$0xff] }
 0x165   : > { %2035 = vmatprep.subr.mxu0 %v2852_v46  ;;  %2106 = vmatprep.subr.mxu1 %v2980_v47  ;;  %v2938_v45 = vld [vmem:[%s5542_s1 + $0x1578] sm:$0xff]  ;;  %v2809_v46 = vld [vmem:[%s5542_s1 + $0x1170] sm:$0xff] }
 0x166   : > { %2036 = vmatpush2.msra.mxu0 %v2851_v48  ;;  %2107 = vmatpush2.msra.mxu1 %v2979_v49  ;;  %v2937_v47 = vld [vmem:[%s5542_s1 + $0x1570] sm:$0xff]  ;;  %v2806_v48 = vld [vmem:[%s5542_s1 + $0x1158] sm:$0xff] }
 0x167   : > { %2037 = vmatprep.subr.mxu0 %v2848_v50  ;;  %2108 = vmatprep.subr.mxu1 %v2976_v51  ;;  %v2934_v49 = vld [vmem:[%s5542_s1 + $0x1558] sm:$0xff]  ;;  %v2805_v50 = vld [vmem:[%s5542_s1 + $0x1150] sm:$0xff] }
 0x168   : > { %2038 = vmatpush2.msra.mxu0 %v2847_v52  ;;  %2109 = vmatpush2.msra.mxu1 %v2975_v53  ;;  %v2933_v51 = vld [vmem:[%s5542_s1 + $0x1550] sm:$0xff]  ;;  %v2802_v52 = vld [vmem:[%s5542_s1 + $0x1138] sm:$0xff] }
 0x169   : > { %2039 = vmatprep.subr.mxu0 %v2844_v56  ;;  %2110 = vmatprep.subr.mxu1 %v2972_v57  ;;  %v2930_v53 = vld [vmem:[%s5542_s1 + $0x1538] sm:$0xff]  ;;  %v2801_v56 = vld [vmem:[%s5542_s1 + $0x1130] sm:$0xff] }
 0x16a   : > { %2040 = vmatpush2.msra.mxu0 %v2843_v61  ;;  %2111 = vmatpush2.msra.mxu1 %v2971_v62  ;;  %v2929_v57 = vld [vmem:[%s5542_s1 + $0x1530] sm:$0xff]  ;;  %v2798_v61 = vld [vmem:[%s5542_s1 + $0x1118] sm:$0xff] }
 0x16b   : > { %2041 = vmatprep.subr.mxu0 %v2840_v26  ;;  %2112 = vmatprep.subr.mxu1 %v2968_v36  ;;  %v2926_v62 = vld [vmem:[%s5542_s1 + $0x1518] sm:$0xff]  ;;  %v2797_v26 = vld [vmem:[%s5542_s1 + $0x1110] sm:$0xff] }
 0x16c   : > { %2042 = vmatpush2.msra.mxu0 %v2839_v0  ;;  %2113 = vmatpush2.msra.mxu1 %v2967_v1  ;;  %v2925_v36 = vld [vmem:[%s5542_s1 + $0x1510] sm:$0xff]  ;;  %v2794_v0 = vld [vmem:[%s5542_s1 + $0x10f8] sm:$0xff] }
 0x16d   : > { %2043 = vmatprep.subr.mxu0 %v2836_v3  ;;  %2114 = vmatprep.subr.mxu1 %v2964_v5  ;;  %v1368_v18 = vpop.f32.mrf.mxu0  ;;  %v1439_v19 = vpop.f32.mrf.mxu1  ;;  %v2922_v1 = vld [vmem:[%s5542_s1 + $0x14f8] sm:$0xff]  ;;  %v2793_v3 = vld [vmem:[%s5542_s1 + $0x10f0] sm:$0xff] }
 0x16e   : > { %2044 = vmatpush2.msra.mxu0 %v2835_v12  ;;  %2115 = vmatpush2.msra.mxu1 %v2963_v13  ;;  %v5107_v22 = vadd.f32 %v1439_v19, %v1368_v18  ;;  %v2921_v5 = vld [vmem:[%s5542_s1 + $0x14f0] sm:$0xff]  ;;  %v2790_v12 = vld [vmem:[%s5542_s1 + $0x10d8] sm:$0xff] }
 0x16f   : > { %2045 = vmatprep.subr.mxu0 %v2832_v14  ;;  %2116 = vmatprep.subr.mxu1 %v2960_v15  ;;  %v1370_v25 = vpop.f32.mrf.mxu0  ;;  %v1441_v34 = vpop.f32.mrf.mxu1  ;;  %v2918_v13 = vld [vmem:[%s5542_s1 + $0x14d8] sm:$0xff]  ;;  %v2789_v14 = vld [vmem:[%s5542_s1 + $0x10d0] sm:$0xff] }
 0x170   : > { %2046 = vmatpush2.msra.mxu0 %v2831_v16  ;;  %2117 = vmatpush2.msra.mxu1 %v2959_v17  ;;  %v5115_v35 = vadd.f32 %v1441_v34, %v1370_v25  ;;  %v2917_v15 = vld [vmem:[%s5542_s1 + $0x14d0] sm:$0xff]  ;;  %v2786_v16 = vld [vmem:[%s5542_s1 + $0x10b8] sm:$0xff] }
 0x171   : > { %2047 = vmatprep.subr.mxu0 %v2828_v20  ;;  %2118 = vmatprep.subr.mxu1 %v2956_v21  ;;  %v2914_v17 = vld [vmem:[%s5542_s1 + $0x14b8] sm:$0xff]  ;;  %v2785_v18 = vld [vmem:[%s5542_s1 + $0x10b0] sm:$0xff] }
 0x172   : > { %2048 = vmatpush2.msra.mxu0 %v2827_v23  ;;  %2119 = vmatpush2.msra.mxu1 %v2955_v24  ;;  %v2913_v19 = vld [vmem:[%s5542_s1 + $0x14b0] sm:$0xff]  ;;  %v2782_v20 = vld [vmem:[%s5542_s1 + $0x1098] sm:$0xff] }
 0x173   : > { %2050 = vmatmul.mubr.f32.vlgmr.msra.gmra.mxu0 %v4709_v54  ;;  %2121 = vmatmul.mubr.f32.vlgmr.msra.gmra.mxu1 %v4711_v55  ;;  %v2910_v21 = vld [vmem:[%s5542_s1 + $0x1498] sm:$0xff]  ;;  %v2781_v23 = vld [vmem:[%s5542_s1 + $0x1090] sm:$0xff] }
 0x174   : > { %2127 = vmatprep.subr.mxu0 %v2826_v37  ;;  %2198 = vmatprep.subr.mxu1 %v2954_v27  ;;  %v2909_v24 = vld [vmem:[%s5542_s1 + $0x1490] sm:$0xff]  ;;  %v2778_v25 = vld [vmem:[%s5542_s1 + $0x1078] sm:$0xff] }
 0x175   : > { %2128 = vmatpush1.msra.mxu0 %v2825_v28  ;;  %2191 = vmatprep.mubr.f32.mxu0 %v4727_v60  ;;  %v2817_v60 = vld [vmem:[%s5542_s1 + $0x11b0] sm:$0xff]  ;;  %v2906_v34 = vld [vmem:[%s5542_s1 + $0x1478] sm:$0xff] }
 0x176   : > { %2199 = vmatpush1.msra.mxu1 %v2953_v29  ;;  %2262 = vmatprep.mubr.f32.mxu1 %v4735_v63  ;;  %v2814_v63 = vld [vmem:[%s5542_s1 + $0x1198] sm:$0xff]  ;;  %v2777_v37 = vld [vmem:[%s5542_s1 + $0x1070] sm:$0xff] }
 0x177   : > { %2129 = vmatprep.subr.mxu0 %v2822_v30  ;;  %2200 = vmatprep.subr.mxu1 %v2950_v31  ;;  %v2905_v27 = vld [vmem:[%s5542_s1 + $0x1470] sm:$0xff]  ;;  %v2774_v28 = vld [vmem:[%s5542_s1 + $0x1058] sm:$0xff] }
 0x178   : > { %2130 = vmatpush1.msra.mxu0 %v2821_v32  ;;  %2201 = vmatpush1.msra.mxu1 %v2949_v33  ;;  %v2902_v29 = vld [vmem:[%s5542_s1 + $0x1458] sm:$0xff]  ;;  %v2773_v30 = vld [vmem:[%s5542_s1 + $0x1050] sm:$0xff] }
 0x179   : > { %2131 = vmatprep.subr.mxu0 %v2818_v38  ;;  %2202 = vmatprep.subr.mxu1 %v2946_v39  ;;  %v2901_v31 = vld [vmem:[%s5542_s1 + $0x1450] sm:$0xff]  ;;  %v2770_v32 = vld [vmem:[%s5542_s1 + $0x1038] sm:$0xff] }
 0x17a   : > { %2132 = vmatpush1.msra.mxu0 %v2817_v60  ;;  %2203 = vmatpush1.msra.mxu1 %v2945_v40  ;;  %v2898_v33 = vld [vmem:[%s5542_s1 + $0x1438] sm:$0xff]  ;;  %v2769_v38 = vld [vmem:[%s5542_s1 + $0x1030] sm:$0xff] }
 0x17b   : > { %2133 = vmatprep.subr.mxu0 %v2814_v63  ;;  %2204 = vmatprep.subr.mxu1 %v2942_v41  ;;  %v2897_v39 = vld [vmem:[%s5542_s1 + $0x1430] sm:$0xff]  ;;  %v2766_v60 = vld [vmem:[%s5542_s1 + $0x1018] sm:$0xff] }
 0x17c   : > { %2134 = vmatpush1.msra.mxu0 %v2813_v42  ;;  %2205 = vmatpush1.msra.mxu1 %v2941_v43  ;;  %v2894_v40 = vld [vmem:[%s5542_s1 + $0x1418] sm:$0xff]  ;;  %v2765_v63 = vld [vmem:[%s5542_s1 + $0x1010] sm:$0xff] }
 0x17d   : > { %2135 = vmatprep.subr.mxu0 %v2810_v44  ;;  %2206 = vmatprep.subr.mxu1 %v2938_v45  ;;  %v2893_v41 = vld [vmem:[%s5542_s1 + $0x1410] sm:$0xff]  ;;  %v2890_v42 = vld [vmem:[%s5542_s1 + $0x13f8] sm:$0xff] }
 0x17e   : > { %2136 = vmatpush1.msra.mxu0 %v2809_v46  ;;  %2207 = vmatpush1.msra.mxu1 %v2937_v47  ;;  %v3018_v43 = vld [vmem:[%s5542_s1 + $0x17f8] sm:$0xff]  ;;  %v2889_v44 = vld [vmem:[%s5542_s1 + $0x13f0] sm:$0xff] }
 0x17f   : > { %2137 = vmatprep.subr.mxu0 %v2806_v48  ;;  %2208 = vmatprep.subr.mxu1 %v2934_v49  ;;  %v3017_v45 = vld [vmem:[%s5542_s1 + $0x17f0] sm:$0xff]  ;;  %v2886_v46 = vld [vmem:[%s5542_s1 + $0x13d8] sm:$0xff] }
 0x180   : > { %2138 = vmatpush1.msra.mxu0 %v2805_v50  ;;  %2209 = vmatpush1.msra.mxu1 %v2933_v51  ;;  %v3014_v47 = vld [vmem:[%s5542_s1 + $0x17d8] sm:$0xff]  ;;  %v2885_v48 = vld [vmem:[%s5542_s1 + $0x13d0] sm:$0xff] }
 0x181   : > { %2139 = vmatprep.subr.mxu0 %v2802_v52  ;;  %2210 = vmatprep.subr.mxu1 %v2930_v53  ;;  %v3013_v49 = vld [vmem:[%s5542_s1 + $0x17d0] sm:$0xff]  ;;  %v2882_v50 = vld [vmem:[%s5542_s1 + $0x13b8] sm:$0xff] }
 0x182   : > { %2140 = vmatpush1.msra.mxu0 %v2801_v56  ;;  %2211 = vmatpush1.msra.mxu1 %v2929_v57  ;;  %v3010_v51 = vld [vmem:[%s5542_s1 + $0x17b8] sm:$0xff]  ;;  %v2881_v52 = vld [vmem:[%s5542_s1 + $0x13b0] sm:$0xff] }
 0x183   : > { %2141 = vmatprep.subr.mxu0 %v2798_v61  ;;  %2212 = vmatprep.subr.mxu1 %v2926_v62  ;;  %v3009_v53 = vld [vmem:[%s5542_s1 + $0x17b0] sm:$0xff]  ;;  %v2878_v56 = vld [vmem:[%s5542_s1 + $0x1398] sm:$0xff] }
 0x184   : > { %2142 = vmatpush1.msra.mxu0 %v2797_v26  ;;  %2213 = vmatpush1.msra.mxu1 %v2925_v36  ;;  %v3006_v57 = vld [vmem:[%s5542_s1 + $0x1798] sm:$0xff]  ;;  %v2877_v61 = vld [vmem:[%s5542_s1 + $0x1390] sm:$0xff] }
 0x185   : > { %2143 = vmatprep.subr.mxu0 %v2794_v0  ;;  %2214 = vmatprep.subr.mxu1 %v2922_v1  ;;  %v3005_v62 = vld [vmem:[%s5542_s1 + $0x1790] sm:$0xff]  ;;  %v2874_v26 = vld [vmem:[%s5542_s1 + $0x1378] sm:$0xff] }
 0x186   : > { %2144 = vmatpush1.msra.mxu0 %v2793_v3  ;;  %2215 = vmatpush1.msra.mxu1 %v2921_v5  ;;  %v3002_v36 = vld [vmem:[%s5542_s1 + $0x1778] sm:$0xff]  ;;  %v2873_v0 = vld [vmem:[%s5542_s1 + $0x1370] sm:$0xff] }
 0x187   : > { %2145 = vmatprep.subr.mxu0 %v2790_v12  ;;  %2216 = vmatprep.subr.mxu1 %v2918_v13  ;;  %v3001_v1 = vld [vmem:[%s5542_s1 + $0x1770] sm:$0xff]  ;;  %v2870_v3 = vld [vmem:[%s5542_s1 + $0x1358] sm:$0xff] }
 0x188   : > { %2146 = vmatpush1.msra.mxu0 %v2789_v14  ;;  %2217 = vmatpush1.msra.mxu1 %v2917_v15  ;;  %v2998_v5 = vld [vmem:[%s5542_s1 + $0x1758] sm:$0xff]  ;;  %v2869_v12 = vld [vmem:[%s5542_s1 + $0x1350] sm:$0xff] }
 0x189   : > { %2147 = vmatprep.subr.mxu0 %v2786_v16  ;;  %2218 = vmatprep.subr.mxu1 %v2914_v17  ;;  %v2997_v13 = vld [vmem:[%s5542_s1 + $0x1750] sm:$0xff]  ;;  %v2866_v14 = vld [vmem:[%s5542_s1 + $0x1338] sm:$0xff] }
 0x18a   : > { %2148 = vmatpush1.msra.mxu0 %v2785_v18  ;;  %2219 = vmatpush1.msra.mxu1 %v2913_v19  ;;  %v2994_v15 = vld [vmem:[%s5542_s1 + $0x1738] sm:$0xff]  ;;  %v2865_v16 = vld [vmem:[%s5542_s1 + $0x1330] sm:$0xff] }
 0x18b   : > { %2149 = vmatprep.subr.mxu0 %v2782_v20  ;;  %2220 = vmatprep.subr.mxu1 %v2910_v21  ;;  %v2993_v17 = vld [vmem:[%s5542_s1 + $0x1730] sm:$0xff]  ;;  %v2862_v18 = vld [vmem:[%s5542_s1 + $0x1318] sm:$0xff] }
 0x18c   : > { %2150 = vmatpush1.msra.mxu0 %v2781_v23  ;;  %2221 = vmatpush1.msra.mxu1 %v2909_v24  ;;  %v2990_v19 = vld [vmem:[%s5542_s1 + $0x1718] sm:$0xff]  ;;  %v2861_v20 = vld [vmem:[%s5542_s1 + $0x1310] sm:$0xff] }
 0x18d   : > { %2151 = vmatprep.subr.mxu0 %v2778_v25  ;;  %2222 = vmatprep.subr.mxu1 %v2906_v34  ;;  %v2989_v21 = vld [vmem:[%s5542_s1 + $0x1710] sm:$0xff]  ;;  %v2858_v23 = vld [vmem:[%s5542_s1 + $0x12f8] sm:$0xff] }
 0x18e   : > { %2152 = vmatpush1.msra.mxu0 %v2777_v37  ;;  %2223 = vmatpush1.msra.mxu1 %v2905_v27  ;;  %v2986_v24 = vld [vmem:[%s5542_s1 + $0x16f8] sm:$0xff]  ;;  %v2857_v25 = vld [vmem:[%s5542_s1 + $0x12f0] sm:$0xff] }
 0x18f   : > { %2153 = vmatprep.subr.mxu0 %v2774_v28  ;;  %2224 = vmatprep.subr.mxu1 %v2902_v29  ;;  %v2985_v34 = vld [vmem:[%s5542_s1 + $0x16f0] sm:$0xff]  ;;  %v2854_v37 = vld [vmem:[%s5542_s1 + $0x12d8] sm:$0xff] }
 0x190   : > { %2154 = vmatpush1.msra.mxu0 %v2773_v30  ;;  %2225 = vmatpush1.msra.mxu1 %v2901_v31  ;;  %v2982_v27 = vld [vmem:[%s5542_s1 + $0x16d8] sm:$0xff]  ;;  %v2853_v28 = vld [vmem:[%s5542_s1 + $0x12d0] sm:$0xff] }
 0x191   : > { %2155 = vmatprep.subr.mxu0 %v2770_v32  ;;  %2226 = vmatprep.subr.mxu1 %v2898_v33  ;;  %v2981_v29 = vld [vmem:[%s5542_s1 + $0x16d0] sm:$0xff]  ;;  %v2850_v30 = vld [vmem:[%s5542_s1 + $0x12b8] sm:$0xff] }
 0x192   : > { %2156 = vmatpush1.msra.mxu0 %v2769_v38  ;;  %2227 = vmatpush1.msra.mxu1 %v2897_v39  ;;  %v2978_v31 = vld [vmem:[%s5542_s1 + $0x16b8] sm:$0xff]  ;;  %v2849_v32 = vld [vmem:[%s5542_s1 + $0x12b0] sm:$0xff] }
 0x193   : > { %2157 = vmatprep.subr.mxu0 %v2766_v60  ;;  %2228 = vmatprep.subr.mxu1 %v2894_v40  ;;  %v2977_v33 = vld [vmem:[%s5542_s1 + $0x16b0] sm:$0xff]  ;;  %v2846_v38 = vld [vmem:[%s5542_s1 + $0x1298] sm:$0xff] }
 0x194   : > { %2158 = vmatpush1.msra.mxu0 %v2765_v63  ;;  %2229 = vmatpush1.msra.mxu1 %v2893_v41  ;;  %v2974_v39 = vld [vmem:[%s5542_s1 + $0x1698] sm:$0xff]  ;;  %v2845_v60 = vld [vmem:[%s5542_s1 + $0x1290] sm:$0xff] }
 0x195   : > { %2159 = vmatprep.subr.mxu0 %v2890_v42  ;;  %2230 = vmatprep.subr.mxu1 %v3018_v43  ;;  %v2973_v40 = vld [vmem:[%s5542_s1 + $0x1690] sm:$0xff]  ;;  %v2842_v63 = vld [vmem:[%s5542_s1 + $0x1278] sm:$0xff] }
 0x196   : > { %2160 = vmatpush2.msra.mxu0 %v2889_v44  ;;  %2231 = vmatpush2.msra.mxu1 %v3017_v45  ;;  %v2970_v41 = vld [vmem:[%s5542_s1 + $0x1678] sm:$0xff]  ;;  %v2841_v42 = vld [vmem:[%s5542_s1 + $0x1270] sm:$0xff] }
 0x197   : > { %2161 = vmatprep.subr.mxu0 %v2886_v46  ;;  %2232 = vmatprep.subr.mxu1 %v3014_v47  ;;  %v2969_v43 = vld [vmem:[%s5542_s1 + $0x1670] sm:$0xff]  ;;  %v2838_v44 = vld [vmem:[%s5542_s1 + $0x1258] sm:$0xff] }
 0x198   : > { %2162 = vmatpush2.msra.mxu0 %v2885_v48  ;;  %2233 = vmatpush2.msra.mxu1 %v3013_v49  ;;  %v2966_v45 = vld [vmem:[%s5542_s1 + $0x1658] sm:$0xff]  ;;  %v2837_v46 = vld [vmem:[%s5542_s1 + $0x1250] sm:$0xff] }
 0x199   : > { %2163 = vmatprep.subr.mxu0 %v2882_v50  ;;  %2234 = vmatprep.subr.mxu1 %v3010_v51  ;;  %v2965_v47 = vld [vmem:[%s5542_s1 + $0x1650] sm:$0xff]  ;;  %v2834_v48 = vld [vmem:[%s5542_s1 + $0x1238] sm:$0xff] }
 0x19a   : > { %2164 = vmatpush2.msra.mxu0 %v2881_v52  ;;  %2235 = vmatpush2.msra.mxu1 %v3009_v53  ;;  %v2962_v49 = vld [vmem:[%s5542_s1 + $0x1638] sm:$0xff]  ;;  %v2833_v50 = vld [vmem:[%s5542_s1 + $0x1230] sm:$0xff] }
 0x19b   : > { %2165 = vmatprep.subr.mxu0 %v2878_v56  ;;  %2236 = vmatprep.subr.mxu1 %v3006_v57  ;;  %v2961_v51 = vld [vmem:[%s5542_s1 + $0x1630] sm:$0xff]  ;;  %v2830_v52 = vld [vmem:[%s5542_s1 + $0x1218] sm:$0xff] }
 0x19c   : > { %2166 = vmatpush2.msra.mxu0 %v2877_v61  ;;  %2237 = vmatpush2.msra.mxu1 %v3005_v62  ;;  %v2958_v53 = vld [vmem:[%s5542_s1 + $0x1618] sm:$0xff]  ;;  %v2829_v56 = vld [vmem:[%s5542_s1 + $0x1210] sm:$0xff] }
 0x19d   : > { %2167 = vmatprep.subr.mxu0 %v2874_v26  ;;  %2238 = vmatprep.subr.mxu1 %v3002_v36  ;;  %v2957_v57 = vld [vmem:[%s5542_s1 + $0x1610] sm:$0xff] }
 0x19e   : > { %2168 = vmatpush2.msra.mxu0 %v2873_v0  ;;  %2239 = vmatpush2.msra.mxu1 %v3001_v1 }
 0x19f   : > { %2169 = vmatprep.subr.mxu0 %v2870_v3  ;;  %2240 = vmatprep.subr.mxu1 %v2998_v5 }
 0x1a0   : > { %2170 = vmatpush2.msra.mxu0 %v2869_v12  ;;  %2241 = vmatpush2.msra.mxu1 %v2997_v13 }
 0x1a1   : > { %2171 = vmatprep.subr.mxu0 %v2866_v14  ;;  %2242 = vmatprep.subr.mxu1 %v2994_v15 }
 0x1a2   : > { %2172 = vmatpush2.msra.mxu0 %v2865_v16  ;;  %2243 = vmatpush2.msra.mxu1 %v2993_v17  ;;  %v1298_v16 = vadd.f32 %v5053_v59, %v5051_v58  ;;  %v2273_v17 = vld [vmem:[%s5543_s2] sm:$0xf] }
 0x1a3   : > { %2173 = vmatprep.subr.mxu0 %v2862_v18  ;;  %2244 = vmatprep.subr.mxu1 %v2990_v19 }
 0x1a4   : > { %2174 = vmatpush2.msra.mxu0 %v2861_v20  ;;  %2245 = vmatpush2.msra.mxu1 %v2989_v21 }
 0x1a5   : > { %2175 = vmatprep.subr.mxu0 %v2858_v23  ;;  %2246 = vmatprep.subr.mxu1 %v2986_v24 }
 0x1a6   : > { %2176 = vmatpush2.msra.mxu0 %v2857_v25  ;;  %2247 = vmatpush2.msra.mxu1 %v2985_v34 }
 0x1a7   : > { %2177 = vmatprep.subr.mxu0 %v2854_v37  ;;  %2248 = vmatprep.subr.mxu1 %v2982_v27 }
 0x1a8   : > { %2178 = vmatpush2.msra.mxu0 %v2853_v28  ;;  %2249 = vmatpush2.msra.mxu1 %v2981_v29 }
 0x1a9   : > { %2179 = vmatprep.subr.mxu0 %v2850_v30  ;;  %2250 = vmatprep.subr.mxu1 %v2978_v31 }
 0x1aa   : > { %2180 = vmatpush2.msra.mxu0 %v2849_v32  ;;  %2251 = vmatpush2.msra.mxu1 %v2977_v33 }
 0x1ab   : > { %2181 = vmatprep.subr.mxu0 %v2846_v38  ;;  %2252 = vmatprep.subr.mxu1 %v2974_v39 }
 0x1ac   : > { %2182 = vmatpush2.msra.mxu0 %v2845_v60  ;;  %2253 = vmatpush2.msra.mxu1 %v2973_v40 }
 0x1ad   : > { %2183 = vmatprep.subr.mxu0 %v2842_v63  ;;  %2254 = vmatprep.subr.mxu1 %v2970_v41 }
 0x1ae   : > { %2184 = vmatpush2.msra.mxu0 %v2841_v42  ;;  %2255 = vmatpush2.msra.mxu1 %v2969_v43 }
 0x1af   : > { %2185 = vmatprep.subr.mxu0 %v2838_v44  ;;  %2256 = vmatprep.subr.mxu1 %v2966_v45 }
 0x1b0   : > { %2186 = vmatpush2.msra.mxu0 %v2837_v46  ;;  %2257 = vmatpush2.msra.mxu1 %v2965_v47  ;;  %v1510_v61 = vpop.f32.mrf.mxu0  ;;  %v1581_v62 = vpop.f32.mrf.mxu1 }
 0x1b1   : > { %2187 = vmatprep.subr.mxu0 %v2834_v48  ;;  %2258 = vmatprep.subr.mxu1 %v2962_v49 }
 0x1b2   : > { %2188 = vmatpush2.msra.mxu0 %v2833_v50  ;;  %2259 = vmatpush2.msra.mxu1 %v2961_v51  ;;  %v1512_v26 = vpop.f32.mrf.mxu0  ;;  %v1583_v36 = vpop.f32.mrf.mxu1 }
 0x1b3   : > { %2189 = vmatprep.subr.mxu0 %v2830_v52  ;;  %2260 = vmatprep.subr.mxu1 %v2958_v53 }
 0x1b4   : > { %2190 = vmatpush2.msra.mxu0 %v2829_v56  ;;  %2261 = vmatpush2.msra.mxu1 %v2957_v57 }
 0x1b5   : > { %2192 = vmatmul.mubr.f32.vlgmr.msra.gmra.mxu0 %v4709_v54  ;;  %2263 = vmatmul.mubr.f32.vlgmr.msra.gmra.mxu1 %v4711_v55  ;;  %v1300_v54 = vadd.f32 %v5081_v11, %v5079_v6  ;;  %v1511_v55 = vadd.f32 %v1510_v61, %v1298_v16  ;;  %v2282_v6 = vrot.slane %v2273_v17, %v3117_v7 }
 0x1b7   : > { %v1513_v18 = vadd.f32 %v1512_v26, %v1300_v54  ;;  %v1582_v20 = vadd.f32 %v1581_v62, %v1511_v55  ;;  %v2286_v26 = vrot.slane %v2273_v17, %v3126_v10 }
 0x1b9   : > { %v1584_v58 = vadd.f32 %v1583_v36, %v1513_v18 }
 0x1f1   : > { %v1652_v0 = vpop.f32.mrf.mxu0  ;;  %v1723_v1 = vpop.f32.mrf.mxu1 }
 0x1f2   : > { %v1653_v3 = vadd.f32 %v1652_v0, %v5107_v22 }
 0x1f3   : > { %v1654_v5 = vpop.f32.mrf.mxu0  ;;  %v1725_v14 = vpop.f32.mrf.mxu1 }
 0x1f4   : > { %v1724_v12 = vadd.f32 %v1723_v1, %v1653_v3  ;;  %v1655_v13 = vadd.f32 %v1654_v5, %v5115_v35  ;;  %v2278_v35 = vrot.slane %v2273_v17, %v3123_v9  ;;  %v2290_v5 = vrot.slane %v2273_v17, %v3120_v8 }
 0x1f6   : > { %v1726_v15 = vadd.f32 %v1725_v14, %v1655_v13 }
 0x233   : > { %v2051_v22 = vpop.f32.mrf.mxu0  ;;  %v2122_v19 = vpop.f32.mrf.mxu1 }
 0x234   : > { %v2123_v21 = vadd.f32 %v2122_v19, %v2051_v22 }
 0x235   : > { %v2053_v23 = vpop.f32.mrf.mxu0  ;;  %v2124_v24 = vpop.f32.mrf.mxu1 }
 0x236   : > { %v2269_v59 = vadd.f32 %v2123_v21, %v1582_v20  ;;  %v2125_v25 = vadd.f32 %v2124_v24, %v2053_v23  ;;  %v3044_v21 = vmov 1966171168  }
 0x237   : > { %v2331_v10 = vunpack.c.l.s4 %v3044_v21 }
 0x238   : > { %v2295_v11 = vadd.f32 %v2278_v35, %v2269_v59  ;;  %v2270_v34 = vadd.f32 %v2125_v25, %v1584_v58 }
 0x23a   : > { %v2300_v37 = vrot.slane %v2295_v11, 4  ;;  %v2360_v27 = vmul.f32 %v2295_v11, %v2295_v11  ;;  %2419 = vst [vmem:[%s3099_s10] sm:$0xff] %v2295_v11  ;;  %v2296_v28 = vadd.f32 %v2282_v6, %v2270_v34 }
 0x23c   : > { %v2301_v29 = vadd.f32 %v2300_v37, %v2295_v11  ;;  %v2364_v30 = vrot.slane %v2360_v27, 4  ;;  %v2306_v31 = vrot.slane %v2296_v28, 4  ;;  %v2361_v32 = vmul.f32 %v2296_v28, %v2296_v28  ;;  %2420 = vst [vmem:[%s3099_s10 + $0x8] sm:$0xff] %v2296_v28 }
 0x23e   : > { %v2302_v9 = vrot.slane %v2301_v29, 2  ;;  %v2365_v33 = vadd.f32 %v2364_v30, %v2360_v27  ;;  %v2307_v38 = vadd.f32 %v2306_v31, %v2296_v28  ;;  %v2370_v39 = vrot.slane %v2361_v32, 4 }
 0x240   : > { %v2303_v60 = vadd.f32 %v2302_v9, %v2301_v29  ;;  %v2366_v40 = vrot.slane %v2365_v33, 2  ;;  %v2308_v63 = vrot.slane %v2307_v38, 2  ;;  %v2371_v41 = vadd.f32 %v2370_v39, %v2361_v32 }
 0x242   : > { %v2304_v7 = vrot.slane %v2303_v60, 1  ;;  %v2367_v42 = vadd.f32 %v2366_v40, %v2365_v33  ;;  %v2309_v43 = vadd.f32 %v2308_v63, %v2307_v38  ;;  %v2372_v44 = vrot.slane %v2371_v41, 2 }
 0x244   : > { %v2368_v45 = vrot.slane %v2367_v42, 1  ;;  %v2310_v46 = vrot.slane %v2309_v43, 1  ;;  %v2373_v47 = vadd.f32 %v2372_v44, %v2371_v41  ;;  %v2305_v48 = vadd.f32 %v2304_v7, %v2303_v60 }
 0x246   : > { %v2311_v49 = vadd.f32 %v2310_v46, %v2309_v43  ;;  %v2374_v50 = vrot.slane %v2373_v47, 1  ;;  %v2369_v51 = vadd.f32 %v2368_v45, %v2367_v42  ;;  %v2299_v42 = vld [vmem:[%s5547_s6] sm:$0xf] }
 0x248   : > { %v2328_v52 = vcombine.low %v2305_v48, %v2311_v49  ;;  %v2375_v53 = vadd.f32 %v2374_v50, %v2373_v47 }
 0x24a   : > { %v2392_v56 = vcombine.low %v2369_v51, %v2375_v53 }
 0x275   : > { %v2193_v57 = vpop.f32.mrf.mxu0  ;;  %v2264_v61 = vpop.f32.mrf.mxu1 }
 0x276   : > { %v2265_v62 = vadd.f32 %v2264_v61, %v2193_v57 }
 0x277   : > { %v2195_v36 = vpop.f32.mrf.mxu0  ;;  %v2266_v0 = vpop.f32.mrf.mxu1 }
 0x278   : > { %v2271_v1 = vadd.f32 %v2265_v62, %v1724_v12  ;;  %v2267_v3 = vadd.f32 %v2266_v0, %v2195_v36 }
 0x27a   : > { %v2297_v13 = vadd.f32 %v2286_v26, %v2271_v1  ;;  %v2272_v14 = vadd.f32 %v2267_v3, %v1726_v15  ;;  %v2332_v15 = vunpack.c.0.s8 %v2331_v10 }
 0x27c   : > { %v2312_v16 = vrot.slane %v2297_v13, 4  ;;  %v2362_v54 = vmul.f32 %v2297_v13, %v2297_v13  ;;  %2421 = vst [vmem:[%s3099_s10 + $0x10] sm:$0xff] %v2297_v13  ;;  %v2298_v55 = vadd.f32 %v2290_v5, %v2272_v14  ;;  %v2335_v29 = vsub.s32 %v2332_v15, %v3108_v4  ;;  %v2359_v4 = vld [vmem:[%s5548_s7] sm:$0xf] }
 0x27e   : > { %v2313_v18 = vadd.f32 %v2312_v16, %v2297_v13  ;;  %v2376_v22 = vrot.slane %v2362_v54, 4  ;;  %v2318_v19 = vrot.slane %v2298_v55, 4  ;;  %v2363_v20 = vmul.f32 %v2298_v55, %v2298_v55  ;;  %2422 = vst [vmem:[%s3099_s10 + $0x18] sm:$0xff] %v2298_v55 }
 0x27f   : > { %v2336_v39 = vrot.slane %v2328_v52, %v2335_v29  ;;  %v2400_v63 = vrot.slane %v2392_v56, %v2335_v29 }
 0x280   : > { %v2314_v35 = vrot.slane %v2313_v18, 2  ;;  %v2377_v23 = vadd.f32 %v2376_v22, %v2362_v54  ;;  %v2319_v24 = vadd.f32 %v2318_v19, %v2298_v55  ;;  %v2382_v12 = vrot.slane %v2363_v20, 4 }
 0x282   : > { %v2315_v58 = vadd.f32 %v2314_v35, %v2313_v18  ;;  %v2378_v59 = vrot.slane %v2377_v23, 2  ;;  %v2320_v8 = vrot.slane %v2319_v24, 2  ;;  %v2383_v17 = vadd.f32 %v2382_v12, %v2363_v20 }
 0x284   : > { %v2316_v25 = vrot.slane %v2315_v58, 1  ;;  %v2379_v6 = vadd.f32 %v2378_v59, %v2377_v23  ;;  %v2321_v11 = vadd.f32 %v2320_v8, %v2319_v24  ;;  %v2384_v34 = vrot.slane %v2383_v17, 2 }
 0x286   : > { %v2380_v37 = vrot.slane %v2379_v6, 1  ;;  %v2322_v27 = vrot.slane %v2321_v11, 1  ;;  %v2385_v28 = vadd.f32 %v2384_v34, %v2383_v17  ;;  %v2317_v30 = vadd.f32 %v2316_v25, %v2315_v58 }
 0x288   : > { %v2323_v31 = vadd.f32 %v2322_v27, %v2321_v11  ;;  %v2386_v32 = vrot.slane %v2385_v28, 1  ;;  %v2381_v9 = vadd.f32 %v2380_v37, %v2379_v6 }
 0x28a   : > { %v2329_v33 = vcombine.low %v2317_v30, %v2323_v31  ;;  %v2387_v38 = vadd.f32 %v2386_v32, %v2385_v28 }
 0x28c   : > { %v2343_v60 = vrot.slane %v2329_v33, %v2335_v29  ;;  %v2393_v40 = vcombine.low %v2381_v9, %v2387_v38 }
 0x28e   : > { %v2344_v41 = vcombine.low %v2336_v39, %v2343_v60  ;;  %v2407_v7 = vrot.slane %v2393_v40, %v2335_v29 }
 0x290   : > { %v2351_v43 = vrot.slane %v2344_v41, %v2335_v29  ;;  %v2408_v44 = vcombine.low %v2400_v63, %v2407_v7 }
 0x292   : > { %v2353_v45 = vadd.f32 %v2351_v43, %v2299_v42  ;;  %v2415_v46 = vrot.slane %v2408_v44, %v2335_v29 }
 0x294   : > { %2358 = vst.msk [vmem:[%s5547_s6] sm:$0xf] %vm2356_vm4, %v2353_v45  ;;  %v2417_v47 = vadd.f32 %v2415_v46, %v2359_v4 }
 0x296   : > { %2418 = vst.msk [vmem:[%s5548_s7] sm:$0xf] %vm2356_vm4, %v2417_v47 }
 0x297 PF: > { %s18_s24 = sadd.s32 1, %s3040_s24  }
 0x298   : > { %p15_p5 = scmp.ge.s32.totalorder %s18_s24, 4  }
 0x29a   :  { %17 = sbr.rel (!%p15_p5) target bundleno = 1 (0x1), region = 92 }

// kernel: res_decoder_forward.5
= control target key start
LH: loop header
LB: loop body
LE: loop exit
PB: predicated region body
PF: predicated region fallthrough
CT: control target
= control target key end

     0   :  { %s1044_s21 = smov 0   ;;  %s1884_s0 = inlined_call_operand.vmem [shape: f32[2,8,512], index: 0, kind: input, shape index: {}]   ;;  %s1885_s1 = inlined_call_operand.vmem [shape: f32[2,8,512], index: 1, kind: input, shape index: {}]   ;;  %s1886_s2 = inlined_call_operand.vmem [shape: f32[512,512], index: 2, kind: input, shape index: {}]   ;;  %s1887_s3 = inlined_call_operand.vmem [shape: f32[1,512], index: 3, kind: input, shape index: {}]   ;;  %s1888_s4 = inlined_call_operand.vmem [shape: f32[1,512], index: 4, kind: input, shape index: {}]   ;;  %s1889_s5 = inlined_call_operand.vmem [shape: f32[1,512], index: 5, kind: input, shape index: {}]   ;;  %s1890_s6 = inlined_call_operand.vmem [shape: f32[2,8,512], index: 6, kind: output, shape index: {}]  }
   0x1 LB: > { %s977_s22 = sadd.s32 4294967295, %s1007_s21   ;;  %p981_p0 = scmp.ge.s32.totalorder %s1007_s21, 1  ;;  %s1007_s21 = sphi %s1044_s21, %s16_s21  }
   0x2   : > { %p222_p1 = scmp.lt.s32.totalorder %s1007_s21, 3 }
   0x4   : > { %p223_p2 = pnand %p981_p0, %p222_p1 }
   0x5   : > { %p1354_p3 = scmp.lt.s32.totalorder (!%p223_p2), %s977_s22, 1 }
   0x6   : > { %226 = sbr.rel (%p223_p2) target bundleno = 347 (0x15b), region = 44 }
   0xb   : > { %v397_v0 = vld [vmem:[%s1886_s2 + $0x1e8] sm:$0xff]  ;;  %v396_v2 = vld [vmem:[%s1886_s2 + $0x1e0] sm:$0xff]  ;;  %s1893_s22 = smov (!%p1354_p3, %s977_s22), 1 }
   0xc   : > { %v525_v1 = vld [vmem:[%s1886_s2 + $0x5e8] sm:$0xff]  ;;  %614 = vmatprep.subr.mxu0 %v397_v0  ;;  %v524_v3 = vld [vmem:[%s1886_s2 + $0x5e0] sm:$0xff]  ;;  %s1410_s12 = sshll.u32 %s1893_s22, 5 }
   0xd   : > { %685 = vmatprep.subr.mxu1 %v525_v1  ;;  %v393_v4 = vld [vmem:[%s1886_s2 + $0x1c8] sm:$0xff]  ;;  %615 = vmatpush1.msra.mxu0 %v396_v2  ;;  %v392_v6 = vld [vmem:[%s1886_s2 + $0x1c0] sm:$0xff]  ;;  %s266_s25 = scalar_lea.vmem %s1885_s1, %s1410_s12  ;;  %s1859_s14 = scalar_lea.vmem %s1884_s0, %s1410_s12 }
   0xe   : > { %v521_v5 = vld [vmem:[%s1886_s2 + $0x5c8] sm:$0xff]  ;;  %686 = vmatpush1.msra.mxu1 %v524_v3  ;;  %v520_v7 = vld [vmem:[%s1886_s2 + $0x5c0] sm:$0xff]  ;;  %616 = vmatprep.subr.mxu0 %v393_v4  ;;  %s1873_s20 = scalar_lea.vmem %s1890_s6, %s1410_s12 }
   0xf   : > { %v389_v8 = vld [vmem:[%s1886_s2 + $0x1a8] sm:$0xff]  ;;  %687 = vmatprep.subr.mxu1 %v521_v5  ;;  %v388_v10 = vld [vmem:[%s1886_s2 + $0x1a0] sm:$0xff]  ;;  %617 = vmatpush1.msra.mxu0 %v392_v6 }
  0x10   : > { %v517_v9 = vld [vmem:[%s1886_s2 + $0x5a8] sm:$0xff]  ;;  %v516_v11 = vld [vmem:[%s1886_s2 + $0x5a0] sm:$0xff]  ;;  %688 = vmatpush1.msra.mxu1 %v520_v7  ;;  %618 = vmatprep.subr.mxu0 %v389_v8 }
  0x11   : > { %v385_v12 = vld [vmem:[%s1886_s2 + $0x188] sm:$0xff]  ;;  %689 = vmatprep.subr.mxu1 %v517_v9  ;;  %v384_v14 = vld [vmem:[%s1886_s2 + $0x180] sm:$0xff]  ;;  %619 = vmatpush1.msra.mxu0 %v388_v10 }
  0x12   : > { %v513_v13 = vld [vmem:[%s1886_s2 + $0x588] sm:$0xff]  ;;  %v512_v15 = vld [vmem:[%s1886_s2 + $0x580] sm:$0xff]  ;;  %690 = vmatpush1.msra.mxu1 %v516_v11  ;;  %620 = vmatprep.subr.mxu0 %v385_v12 }
  0x13   : > { %v381_v16 = vld [vmem:[%s1886_s2 + $0x168] sm:$0xff]  ;;  %691 = vmatprep.subr.mxu1 %v513_v13  ;;  %v380_v18 = vld [vmem:[%s1886_s2 + $0x160] sm:$0xff]  ;;  %621 = vmatpush1.msra.mxu0 %v384_v14 }
  0x14   : > { %v509_v17 = vld [vmem:[%s1886_s2 + $0x568] sm:$0xff]  ;;  %v508_v19 = vld [vmem:[%s1886_s2 + $0x560] sm:$0xff]  ;;  %692 = vmatpush1.msra.mxu1 %v512_v15  ;;  %622 = vmatprep.subr.mxu0 %v381_v16 }
  0x15   : > { %v377_v20 = vld [vmem:[%s1886_s2 + $0x148] sm:$0xff]  ;;  %693 = vmatprep.subr.mxu1 %v509_v17  ;;  %v376_v22 = vld [vmem:[%s1886_s2 + $0x140] sm:$0xff]  ;;  %623 = vmatpush1.msra.mxu0 %v380_v18 }
  0x16   : > { %v505_v21 = vld [vmem:[%s1886_s2 + $0x548] sm:$0xff]  ;;  %v504_v23 = vld [vmem:[%s1886_s2 + $0x540] sm:$0xff]  ;;  %694 = vmatpush1.msra.mxu1 %v508_v19  ;;  %624 = vmatprep.subr.mxu0 %v377_v20 }
  0x17   : > { %v373_v24 = vld [vmem:[%s1886_s2 + $0x128] sm:$0xff]  ;;  %695 = vmatprep.subr.mxu1 %v505_v21  ;;  %v372_v26 = vld [vmem:[%s1886_s2 + $0x120] sm:$0xff]  ;;  %625 = vmatpush1.msra.mxu0 %v376_v22 }
  0x18   : > { %v501_v25 = vld [vmem:[%s1886_s2 + $0x528] sm:$0xff]  ;;  %v500_v27 = vld [vmem:[%s1886_s2 + $0x520] sm:$0xff]  ;;  %696 = vmatpush1.msra.mxu1 %v504_v23  ;;  %626 = vmatprep.subr.mxu0 %v373_v24 }
  0x19   : > { %v369_v28 = vld [vmem:[%s1886_s2 + $0x108] sm:$0xff]  ;;  %697 = vmatprep.subr.mxu1 %v501_v25  ;;  %v368_v30 = vld [vmem:[%s1886_s2 + $0x100] sm:$0xff]  ;;  %627 = vmatpush1.msra.mxu0 %v372_v26 }
  0x1a   : > { %v497_v29 = vld [vmem:[%s1886_s2 + $0x508] sm:$0xff]  ;;  %v496_v31 = vld [vmem:[%s1886_s2 + $0x500] sm:$0xff]  ;;  %698 = vmatpush1.msra.mxu1 %v500_v27  ;;  %628 = vmatprep.subr.mxu0 %v369_v28 }
  0x1b   : > { %v365_v32 = vld [vmem:[%s1886_s2 + $0xe8] sm:$0xff]  ;;  %699 = vmatprep.subr.mxu1 %v497_v29  ;;  %v364_v34 = vld [vmem:[%s1886_s2 + $0xe0] sm:$0xff]  ;;  %629 = vmatpush1.msra.mxu0 %v368_v30 }
  0x1c   : > { %v493_v33 = vld [vmem:[%s1886_s2 + $0x4e8] sm:$0xff]  ;;  %v492_v35 = vld [vmem:[%s1886_s2 + $0x4e0] sm:$0xff]  ;;  %700 = vmatpush1.msra.mxu1 %v496_v31  ;;  %630 = vmatprep.subr.mxu0 %v365_v32 }
  0x1d   : > { %v361_v36 = vld [vmem:[%s1886_s2 + $0xc8] sm:$0xff]  ;;  %701 = vmatprep.subr.mxu1 %v493_v33  ;;  %v360_v38 = vld [vmem:[%s1886_s2 + $0xc0] sm:$0xff]  ;;  %631 = vmatpush1.msra.mxu0 %v364_v34 }
  0x1e   : > { %v489_v37 = vld [vmem:[%s1886_s2 + $0x4c8] sm:$0xff]  ;;  %v488_v39 = vld [vmem:[%s1886_s2 + $0x4c0] sm:$0xff]  ;;  %702 = vmatpush1.msra.mxu1 %v492_v35  ;;  %632 = vmatprep.subr.mxu0 %v361_v36 }
  0x1f   : > { %v357_v40 = vld [vmem:[%s1886_s2 + $0xa8] sm:$0xff]  ;;  %703 = vmatprep.subr.mxu1 %v489_v37  ;;  %v356_v42 = vld [vmem:[%s1886_s2 + $0xa0] sm:$0xff]  ;;  %633 = vmatpush1.msra.mxu0 %v360_v38 }
  0x20   : > { %v485_v41 = vld [vmem:[%s1886_s2 + $0x4a8] sm:$0xff]  ;;  %v484_v43 = vld [vmem:[%s1886_s2 + $0x4a0] sm:$0xff]  ;;  %704 = vmatpush1.msra.mxu1 %v488_v39  ;;  %634 = vmatprep.subr.mxu0 %v357_v40 }
  0x21   : > { %v353_v44 = vld [vmem:[%s1886_s2 + $0x88] sm:$0xff]  ;;  %705 = vmatprep.subr.mxu1 %v485_v41  ;;  %v352_v46 = vld [vmem:[%s1886_s2 + $0x80] sm:$0xff]  ;;  %635 = vmatpush1.msra.mxu0 %v356_v42 }
  0x22   : > { %v481_v45 = vld [vmem:[%s1886_s2 + $0x488] sm:$0xff]  ;;  %v480_v47 = vld [vmem:[%s1886_s2 + $0x480] sm:$0xff]  ;;  %706 = vmatpush1.msra.mxu1 %v484_v43  ;;  %636 = vmatprep.subr.mxu0 %v353_v44 }
  0x23   : > { %v349_v48 = vld [vmem:[%s1886_s2 + $0x68] sm:$0xff]  ;;  %707 = vmatprep.subr.mxu1 %v481_v45  ;;  %v348_v50 = vld [vmem:[%s1886_s2 + $0x60] sm:$0xff]  ;;  %637 = vmatpush1.msra.mxu0 %v352_v46 }
  0x24   : > { %v477_v49 = vld [vmem:[%s1886_s2 + $0x468] sm:$0xff]  ;;  %v476_v51 = vld [vmem:[%s1886_s2 + $0x460] sm:$0xff]  ;;  %708 = vmatpush1.msra.mxu1 %v480_v47  ;;  %638 = vmatprep.subr.mxu0 %v349_v48 }
  0x25   : > { %v345_v52 = vld [vmem:[%s1886_s2 + $0x48] sm:$0xff]  ;;  %709 = vmatprep.subr.mxu1 %v477_v49  ;;  %v344_v54 = vld [vmem:[%s1886_s2 + $0x40] sm:$0xff]  ;;  %639 = vmatpush1.msra.mxu0 %v348_v50 }
  0x26   : > { %v473_v53 = vld [vmem:[%s1886_s2 + $0x448] sm:$0xff]  ;;  %v472_v55 = vld [vmem:[%s1886_s2 + $0x440] sm:$0xff]  ;;  %710 = vmatpush1.msra.mxu1 %v476_v51  ;;  %640 = vmatprep.subr.mxu0 %v345_v52 }
  0x27   : > { %v341_v56 = vld [vmem:[%s1886_s2 + $0x28] sm:$0xff]  ;;  %711 = vmatprep.subr.mxu1 %v473_v53  ;;  %v340_v58 = vld [vmem:[%s1886_s2 + $0x20] sm:$0xff]  ;;  %641 = vmatpush1.msra.mxu0 %v344_v54 }
  0x28   : > { %v469_v57 = vld [vmem:[%s1886_s2 + $0x428] sm:$0xff]  ;;  %v468_v59 = vld [vmem:[%s1886_s2 + $0x420] sm:$0xff]  ;;  %712 = vmatpush1.msra.mxu1 %v472_v55  ;;  %642 = vmatprep.subr.mxu0 %v341_v56 }
  0x29   : > { %v337_v60 = vld [vmem:[%s1886_s2 + $0x8] sm:$0xff]  ;;  %713 = vmatprep.subr.mxu1 %v469_v57  ;;  %v336_v62 = vld [vmem:[%s1886_s2] sm:$0xff]  ;;  %643 = vmatpush1.msra.mxu0 %v340_v58 }
  0x2a   : > { %v465_v61 = vld [vmem:[%s1886_s2 + $0x408] sm:$0xff]  ;;  %v464_v63 = vld [vmem:[%s1886_s2 + $0x400] sm:$0xff]  ;;  %714 = vmatpush1.msra.mxu1 %v468_v59  ;;  %644 = vmatprep.subr.mxu0 %v337_v60 }
  0x2b   : > { %v461_v0 = vld [vmem:[%s1886_s2 + $0x3e8] sm:$0xff]  ;;  %715 = vmatprep.subr.mxu1 %v465_v61  ;;  %v460_v2 = vld [vmem:[%s1886_s2 + $0x3e0] sm:$0xff]  ;;  %645 = vmatpush1.msra.mxu0 %v336_v62 }
  0x2c   : > { %v589_v1 = vld [vmem:[%s1886_s2 + $0x7e8] sm:$0xff]  ;;  %v588_v3 = vld [vmem:[%s1886_s2 + $0x7e0] sm:$0xff]  ;;  %716 = vmatpush1.msra.mxu1 %v464_v63  ;;  %646 = vmatprep.subr.mxu0 %v461_v0 }
  0x2d   : > { %v457_v4 = vld [vmem:[%s1886_s2 + $0x3c8] sm:$0xff]  ;;  %717 = vmatprep.subr.mxu1 %v589_v1  ;;  %v456_v6 = vld [vmem:[%s1886_s2 + $0x3c0] sm:$0xff]  ;;  %647 = vmatpush2.msra.mxu0 %v460_v2  ;;  %v1456_v2 = vld [vmem:[%s266_s25 + $0x18] sm:$0xff] }
  0x2e   : > { %v585_v5 = vld [vmem:[%s1886_s2 + $0x7c8] sm:$0xff]  ;;  %v584_v7 = vld [vmem:[%s1886_s2 + $0x7c0] sm:$0xff]  ;;  %718 = vmatpush2.msra.mxu1 %v588_v3  ;;  %648 = vmatprep.subr.mxu0 %v457_v4  ;;  %v399_v3 = vld [vmem:[%s1886_s2 + $0x1f8] sm:$0xff] }
  0x2f   : > { %v453_v8 = vld [vmem:[%s1886_s2 + $0x3a8] sm:$0xff]  ;;  %719 = vmatprep.subr.mxu1 %v585_v5  ;;  %v452_v10 = vld [vmem:[%s1886_s2 + $0x3a0] sm:$0xff]  ;;  %649 = vmatpush2.msra.mxu0 %v456_v6  ;;  %v527_v4 = vld [vmem:[%s1886_s2 + $0x5f8] sm:$0xff] }
  0x30   : > { %v581_v9 = vld [vmem:[%s1886_s2 + $0x7a8] sm:$0xff]  ;;  %v580_v11 = vld [vmem:[%s1886_s2 + $0x7a0] sm:$0xff]  ;;  %720 = vmatpush2.msra.mxu1 %v584_v7  ;;  %650 = vmatprep.subr.mxu0 %v453_v8  ;;  %v1465_v5 = vld [vmem:[%s266_s25 + $0x10] sm:$0xff] }
  0x31   : > { %v449_v12 = vld [vmem:[%s1886_s2 + $0x388] sm:$0xff]  ;;  %721 = vmatprep.subr.mxu1 %v581_v9  ;;  %v448_v14 = vld [vmem:[%s1886_s2 + $0x380] sm:$0xff]  ;;  %651 = vmatpush2.msra.mxu0 %v452_v10  ;;  %v398_v6 = vld [vmem:[%s1886_s2 + $0x1f0] sm:$0xff] }
  0x32   : > { %v577_v13 = vld [vmem:[%s1886_s2 + $0x788] sm:$0xff]  ;;  %v576_v15 = vld [vmem:[%s1886_s2 + $0x780] sm:$0xff]  ;;  %722 = vmatpush2.msra.mxu1 %v580_v11  ;;  %652 = vmatprep.subr.mxu0 %v449_v12  ;;  %v526_v7 = vld [vmem:[%s1886_s2 + $0x5f0] sm:$0xff] }
  0x33   : > { %v445_v16 = vld [vmem:[%s1886_s2 + $0x368] sm:$0xff]  ;;  %723 = vmatprep.subr.mxu1 %v577_v13  ;;  %v444_v18 = vld [vmem:[%s1886_s2 + $0x360] sm:$0xff]  ;;  %653 = vmatpush2.msra.mxu0 %v448_v14  ;;  %v395_v8 = vld [vmem:[%s1886_s2 + $0x1d8] sm:$0xff] }
  0x34   : > { %v573_v17 = vld [vmem:[%s1886_s2 + $0x768] sm:$0xff]  ;;  %v572_v19 = vld [vmem:[%s1886_s2 + $0x760] sm:$0xff]  ;;  %724 = vmatpush2.msra.mxu1 %v576_v15  ;;  %654 = vmatprep.subr.mxu0 %v445_v16  ;;  %v523_v9 = vld [vmem:[%s1886_s2 + $0x5d8] sm:$0xff] }
  0x35   : > { %v441_v20 = vld [vmem:[%s1886_s2 + $0x348] sm:$0xff]  ;;  %725 = vmatprep.subr.mxu1 %v573_v17  ;;  %v440_v22 = vld [vmem:[%s1886_s2 + $0x340] sm:$0xff]  ;;  %655 = vmatpush2.msra.mxu0 %v444_v18  ;;  %v394_v10 = vld [vmem:[%s1886_s2 + $0x1d0] sm:$0xff] }
  0x36   : > { %v569_v21 = vld [vmem:[%s1886_s2 + $0x748] sm:$0xff]  ;;  %v568_v23 = vld [vmem:[%s1886_s2 + $0x740] sm:$0xff]  ;;  %726 = vmatpush2.msra.mxu1 %v572_v19  ;;  %656 = vmatprep.subr.mxu0 %v441_v20  ;;  %v522_v11 = vld [vmem:[%s1886_s2 + $0x5d0] sm:$0xff] }
  0x37   : > { %v437_v24 = vld [vmem:[%s1886_s2 + $0x328] sm:$0xff]  ;;  %727 = vmatprep.subr.mxu1 %v569_v21  ;;  %v436_v26 = vld [vmem:[%s1886_s2 + $0x320] sm:$0xff]  ;;  %657 = vmatpush2.msra.mxu0 %v440_v22  ;;  %v391_v12 = vld [vmem:[%s1886_s2 + $0x1b8] sm:$0xff] }
  0x38   : > { %v565_v25 = vld [vmem:[%s1886_s2 + $0x728] sm:$0xff]  ;;  %v564_v27 = vld [vmem:[%s1886_s2 + $0x720] sm:$0xff]  ;;  %728 = vmatpush2.msra.mxu1 %v568_v23  ;;  %658 = vmatprep.subr.mxu0 %v437_v24  ;;  %v519_v13 = vld [vmem:[%s1886_s2 + $0x5b8] sm:$0xff] }
  0x39   : > { %v433_v28 = vld [vmem:[%s1886_s2 + $0x308] sm:$0xff]  ;;  %729 = vmatprep.subr.mxu1 %v565_v25  ;;  %v432_v30 = vld [vmem:[%s1886_s2 + $0x300] sm:$0xff]  ;;  %659 = vmatpush2.msra.mxu0 %v436_v26  ;;  %v390_v14 = vld [vmem:[%s1886_s2 + $0x1b0] sm:$0xff] }
  0x3a   : > { %v561_v29 = vld [vmem:[%s1886_s2 + $0x708] sm:$0xff]  ;;  %v560_v31 = vld [vmem:[%s1886_s2 + $0x700] sm:$0xff]  ;;  %730 = vmatpush2.msra.mxu1 %v564_v27  ;;  %660 = vmatprep.subr.mxu0 %v433_v28  ;;  %v518_v15 = vld [vmem:[%s1886_s2 + $0x5b0] sm:$0xff] }
  0x3b   : > { %v429_v32 = vld [vmem:[%s1886_s2 + $0x2e8] sm:$0xff]  ;;  %731 = vmatprep.subr.mxu1 %v561_v29  ;;  %v428_v34 = vld [vmem:[%s1886_s2 + $0x2e0] sm:$0xff]  ;;  %661 = vmatpush2.msra.mxu0 %v432_v30  ;;  %v387_v16 = vld [vmem:[%s1886_s2 + $0x198] sm:$0xff] }
  0x3c   : > { %v557_v33 = vld [vmem:[%s1886_s2 + $0x6e8] sm:$0xff]  ;;  %v556_v35 = vld [vmem:[%s1886_s2 + $0x6e0] sm:$0xff]  ;;  %732 = vmatpush2.msra.mxu1 %v560_v31  ;;  %662 = vmatprep.subr.mxu0 %v429_v32  ;;  %v515_v17 = vld [vmem:[%s1886_s2 + $0x598] sm:$0xff] }
  0x3d   : > { %v425_v36 = vld [vmem:[%s1886_s2 + $0x2c8] sm:$0xff]  ;;  %733 = vmatprep.subr.mxu1 %v557_v33  ;;  %v424_v38 = vld [vmem:[%s1886_s2 + $0x2c0] sm:$0xff]  ;;  %663 = vmatpush2.msra.mxu0 %v428_v34  ;;  %v386_v18 = vld [vmem:[%s1886_s2 + $0x190] sm:$0xff] }
  0x3e   : > { %v553_v37 = vld [vmem:[%s1886_s2 + $0x6c8] sm:$0xff]  ;;  %v552_v39 = vld [vmem:[%s1886_s2 + $0x6c0] sm:$0xff]  ;;  %734 = vmatpush2.msra.mxu1 %v556_v35  ;;  %664 = vmatprep.subr.mxu0 %v425_v36  ;;  %v514_v19 = vld [vmem:[%s1886_s2 + $0x590] sm:$0xff] }
  0x3f   : > { %v421_v40 = vld [vmem:[%s1886_s2 + $0x2a8] sm:$0xff]  ;;  %735 = vmatprep.subr.mxu1 %v553_v37  ;;  %v420_v42 = vld [vmem:[%s1886_s2 + $0x2a0] sm:$0xff]  ;;  %665 = vmatpush2.msra.mxu0 %v424_v38  ;;  %v383_v20 = vld [vmem:[%s1886_s2 + $0x178] sm:$0xff] }
  0x40   : > { %v549_v41 = vld [vmem:[%s1886_s2 + $0x6a8] sm:$0xff]  ;;  %v548_v43 = vld [vmem:[%s1886_s2 + $0x6a0] sm:$0xff]  ;;  %736 = vmatpush2.msra.mxu1 %v552_v39  ;;  %666 = vmatprep.subr.mxu0 %v421_v40  ;;  %v511_v21 = vld [vmem:[%s1886_s2 + $0x578] sm:$0xff] }
  0x41   : > { %v417_v44 = vld [vmem:[%s1886_s2 + $0x288] sm:$0xff]  ;;  %737 = vmatprep.subr.mxu1 %v549_v41  ;;  %v416_v46 = vld [vmem:[%s1886_s2 + $0x280] sm:$0xff]  ;;  %667 = vmatpush2.msra.mxu0 %v420_v42  ;;  %v382_v22 = vld [vmem:[%s1886_s2 + $0x170] sm:$0xff] }
  0x42   : > { %v545_v45 = vld [vmem:[%s1886_s2 + $0x688] sm:$0xff]  ;;  %v544_v47 = vld [vmem:[%s1886_s2 + $0x680] sm:$0xff]  ;;  %738 = vmatpush2.msra.mxu1 %v548_v43  ;;  %668 = vmatprep.subr.mxu0 %v417_v44  ;;  %v510_v23 = vld [vmem:[%s1886_s2 + $0x570] sm:$0xff] }
  0x43   : > { %v413_v48 = vld [vmem:[%s1886_s2 + $0x268] sm:$0xff]  ;;  %739 = vmatprep.subr.mxu1 %v545_v45  ;;  %v412_v50 = vld [vmem:[%s1886_s2 + $0x260] sm:$0xff]  ;;  %669 = vmatpush2.msra.mxu0 %v416_v46  ;;  %v379_v24 = vld [vmem:[%s1886_s2 + $0x158] sm:$0xff] }
  0x44   : > { %v541_v49 = vld [vmem:[%s1886_s2 + $0x668] sm:$0xff]  ;;  %v540_v51 = vld [vmem:[%s1886_s2 + $0x660] sm:$0xff]  ;;  %740 = vmatpush2.msra.mxu1 %v544_v47  ;;  %670 = vmatprep.subr.mxu0 %v413_v48  ;;  %v507_v25 = vld [vmem:[%s1886_s2 + $0x558] sm:$0xff] }
  0x45   : > { %v409_v52 = vld [vmem:[%s1886_s2 + $0x248] sm:$0xff]  ;;  %741 = vmatprep.subr.mxu1 %v541_v49  ;;  %v408_v54 = vld [vmem:[%s1886_s2 + $0x240] sm:$0xff]  ;;  %671 = vmatpush2.msra.mxu0 %v412_v50  ;;  %v378_v26 = vld [vmem:[%s1886_s2 + $0x150] sm:$0xff] }
  0x46   : > { %v537_v53 = vld [vmem:[%s1886_s2 + $0x648] sm:$0xff]  ;;  %v536_v55 = vld [vmem:[%s1886_s2 + $0x640] sm:$0xff]  ;;  %742 = vmatpush2.msra.mxu1 %v540_v51  ;;  %672 = vmatprep.subr.mxu0 %v409_v52  ;;  %v506_v27 = vld [vmem:[%s1886_s2 + $0x550] sm:$0xff] }
  0x47   : > { %v405_v56 = vld [vmem:[%s1886_s2 + $0x228] sm:$0xff]  ;;  %743 = vmatprep.subr.mxu1 %v537_v53  ;;  %v404_v58 = vld [vmem:[%s1886_s2 + $0x220] sm:$0xff]  ;;  %673 = vmatpush2.msra.mxu0 %v408_v54  ;;  %v375_v28 = vld [vmem:[%s1886_s2 + $0x138] sm:$0xff] }
  0x48   : > { %v533_v57 = vld [vmem:[%s1886_s2 + $0x628] sm:$0xff]  ;;  %v532_v59 = vld [vmem:[%s1886_s2 + $0x620] sm:$0xff]  ;;  %744 = vmatpush2.msra.mxu1 %v536_v55  ;;  %674 = vmatprep.subr.mxu0 %v405_v56  ;;  %v503_v29 = vld [vmem:[%s1886_s2 + $0x538] sm:$0xff] }
  0x49   : > { %v401_v60 = vld [vmem:[%s1886_s2 + $0x208] sm:$0xff]  ;;  %745 = vmatprep.subr.mxu1 %v533_v57  ;;  %v400_v62 = vld [vmem:[%s1886_s2 + $0x200] sm:$0xff]  ;;  %675 = vmatpush2.msra.mxu0 %v404_v58  ;;  %v374_v30 = vld [vmem:[%s1886_s2 + $0x130] sm:$0xff] }
  0x4a   : > { %v529_v61 = vld [vmem:[%s1886_s2 + $0x608] sm:$0xff]  ;;  %746 = vmatpush2.msra.mxu1 %v532_v59  ;;  %v528_v0 = vld [vmem:[%s1886_s2 + $0x600] sm:$0xff]  ;;  %676 = vmatprep.subr.mxu0 %v401_v60  ;;  %v502_v31 = vld [vmem:[%s1886_s2 + $0x530] sm:$0xff] }
  0x4b   : > { %v1449_v63 = vld [vmem:[%s266_s25 + $0x8] sm:$0xff]  ;;  %v1454_v1 = vld [vmem:[%s266_s25] sm:$0xff]  ;;  %747 = vmatprep.subr.mxu1 %v529_v61  ;;  %677 = vmatpush2.msra.mxu0 %v400_v62  ;;  %v371_v32 = vld [vmem:[%s1886_s2 + $0x118] sm:$0xff] }
  0x4c   : > { %678 = vmatprep.mubr.f32.mxu0 %v1449_v63  ;;  %748 = vmatpush2.msra.mxu1 %v528_v0  ;;  %v499_v33 = vld [vmem:[%s1886_s2 + $0x518] sm:$0xff]  ;;  %v370_v34 = vld [vmem:[%s1886_s2 + $0x110] sm:$0xff] }
  0x4d   : > { %679 = vmatmul.mubr.f32.vlgmr.msra.gmra.mxu0 %v1454_v1  ;;  %749 = vmatprep.mubr.f32.mxu1 %v1456_v2  ;;  %v498_v35 = vld [vmem:[%s1886_s2 + $0x510] sm:$0xff]  ;;  %v367_v36 = vld [vmem:[%s1886_s2 + $0xf8] sm:$0xff] }
  0x4e   : > { %756 = vmatprep.subr.mxu0 %v399_v3  ;;  %827 = vmatprep.subr.mxu1 %v527_v4  ;;  %v495_v37 = vld [vmem:[%s1886_s2 + $0x4f8] sm:$0xff]  ;;  %v366_v38 = vld [vmem:[%s1886_s2 + $0xf0] sm:$0xff] }
  0x4f   : > { %750 = vmatmul.mubr.f32.vlgmr.msra.gmra.mxu1 %v1465_v5  ;;  %757 = vmatpush1.msra.mxu0 %v398_v6  ;;  %v494_v39 = vld [vmem:[%s1886_s2 + $0x4f0] sm:$0xff]  ;;  %v363_v40 = vld [vmem:[%s1886_s2 + $0xd8] sm:$0xff] }
  0x50   : > { %828 = vmatpush1.msra.mxu1 %v526_v7  ;;  %758 = vmatprep.subr.mxu0 %v395_v8  ;;  %v491_v41 = vld [vmem:[%s1886_s2 + $0x4d8] sm:$0xff]  ;;  %v362_v42 = vld [vmem:[%s1886_s2 + $0xd0] sm:$0xff] }
  0x51   : > { %829 = vmatprep.subr.mxu1 %v523_v9  ;;  %759 = vmatpush1.msra.mxu0 %v394_v10  ;;  %v490_v43 = vld [vmem:[%s1886_s2 + $0x4d0] sm:$0xff]  ;;  %v359_v44 = vld [vmem:[%s1886_s2 + $0xb8] sm:$0xff] }
  0x52   : > { %830 = vmatpush1.msra.mxu1 %v522_v11  ;;  %760 = vmatprep.subr.mxu0 %v391_v12  ;;  %v487_v45 = vld [vmem:[%s1886_s2 + $0x4b8] sm:$0xff]  ;;  %v358_v46 = vld [vmem:[%s1886_s2 + $0xb0] sm:$0xff] }
  0x53   : > { %831 = vmatprep.subr.mxu1 %v519_v13  ;;  %761 = vmatpush1.msra.mxu0 %v390_v14  ;;  %v486_v47 = vld [vmem:[%s1886_s2 + $0x4b0] sm:$0xff]  ;;  %v355_v48 = vld [vmem:[%s1886_s2 + $0x98] sm:$0xff] }
  0x54   : > { %832 = vmatpush1.msra.mxu1 %v518_v15  ;;  %762 = vmatprep.subr.mxu0 %v387_v16  ;;  %v483_v49 = vld [vmem:[%s1886_s2 + $0x498] sm:$0xff]  ;;  %v354_v50 = vld [vmem:[%s1886_s2 + $0x90] sm:$0xff] }
  0x55   : > { %833 = vmatprep.subr.mxu1 %v515_v17  ;;  %763 = vmatpush1.msra.mxu0 %v386_v18  ;;  %v482_v51 = vld [vmem:[%s1886_s2 + $0x490] sm:$0xff]  ;;  %v351_v52 = vld [vmem:[%s1886_s2 + $0x78] sm:$0xff] }
  0x56   : > { %834 = vmatpush1.msra.mxu1 %v514_v19  ;;  %764 = vmatprep.subr.mxu0 %v383_v20  ;;  %v479_v53 = vld [vmem:[%s1886_s2 + $0x478] sm:$0xff]  ;;  %v350_v54 = vld [vmem:[%s1886_s2 + $0x70] sm:$0xff] }
  0x57   : > { %835 = vmatprep.subr.mxu1 %v511_v21  ;;  %765 = vmatpush1.msra.mxu0 %v382_v22  ;;  %v478_v55 = vld [vmem:[%s1886_s2 + $0x470] sm:$0xff]  ;;  %v347_v56 = vld [vmem:[%s1886_s2 + $0x58] sm:$0xff] }
  0x58   : > { %836 = vmatpush1.msra.mxu1 %v510_v23  ;;  %766 = vmatprep.subr.mxu0 %v379_v24  ;;  %v475_v57 = vld [vmem:[%s1886_s2 + $0x458] sm:$0xff]  ;;  %v346_v58 = vld [vmem:[%s1886_s2 + $0x50] sm:$0xff] }
  0x59   : > { %837 = vmatprep.subr.mxu1 %v507_v25  ;;  %767 = vmatpush1.msra.mxu0 %v378_v26  ;;  %v474_v59 = vld [vmem:[%s1886_s2 + $0x450] sm:$0xff]  ;;  %v343_v60 = vld [vmem:[%s1886_s2 + $0x38] sm:$0xff] }
  0x5a   : > { %838 = vmatpush1.msra.mxu1 %v506_v27  ;;  %768 = vmatprep.subr.mxu0 %v375_v28  ;;  %v471_v61 = vld [vmem:[%s1886_s2 + $0x438] sm:$0xff]  ;;  %v342_v62 = vld [vmem:[%s1886_s2 + $0x30] sm:$0xff] }
  0x5b   : > { %839 = vmatprep.subr.mxu1 %v503_v29  ;;  %769 = vmatpush1.msra.mxu0 %v374_v30  ;;  %v470_v0 = vld [vmem:[%s1886_s2 + $0x430] sm:$0xff]  ;;  %v339_v3 = vld [vmem:[%s1886_s2 + $0x18] sm:$0xff] }
  0x5c   : > { %840 = vmatpush1.msra.mxu1 %v502_v31  ;;  %770 = vmatprep.subr.mxu0 %v371_v32  ;;  %v467_v4 = vld [vmem:[%s1886_s2 + $0x418] sm:$0xff]  ;;  %v338_v6 = vld [vmem:[%s1886_s2 + $0x10] sm:$0xff] }
  0x5d   : > { %841 = vmatprep.subr.mxu1 %v499_v33  ;;  %771 = vmatpush1.msra.mxu0 %v370_v34  ;;  %v466_v7 = vld [vmem:[%s1886_s2 + $0x410] sm:$0xff]  ;;  %v463_v8 = vld [vmem:[%s1886_s2 + $0x3f8] sm:$0xff] }
  0x5e   : > { %842 = vmatpush1.msra.mxu1 %v498_v35  ;;  %772 = vmatprep.subr.mxu0 %v367_v36  ;;  %v591_v9 = vld [vmem:[%s1886_s2 + $0x7f8] sm:$0xff]  ;;  %v462_v10 = vld [vmem:[%s1886_s2 + $0x3f0] sm:$0xff] }
  0x5f   : > { %843 = vmatprep.subr.mxu1 %v495_v37  ;;  %773 = vmatpush1.msra.mxu0 %v366_v38  ;;  %v590_v11 = vld [vmem:[%s1886_s2 + $0x7f0] sm:$0xff]  ;;  %v459_v12 = vld [vmem:[%s1886_s2 + $0x3d8] sm:$0xff] }
  0x60   : > { %844 = vmatpush1.msra.mxu1 %v494_v39  ;;  %774 = vmatprep.subr.mxu0 %v363_v40  ;;  %v587_v13 = vld [vmem:[%s1886_s2 + $0x7d8] sm:$0xff]  ;;  %v458_v14 = vld [vmem:[%s1886_s2 + $0x3d0] sm:$0xff] }
  0x61   : > { %845 = vmatprep.subr.mxu1 %v491_v41  ;;  %775 = vmatpush1.msra.mxu0 %v362_v42  ;;  %v586_v15 = vld [vmem:[%s1886_s2 + $0x7d0] sm:$0xff]  ;;  %v455_v16 = vld [vmem:[%s1886_s2 + $0x3b8] sm:$0xff] }
  0x62   : > { %846 = vmatpush1.msra.mxu1 %v490_v43  ;;  %776 = vmatprep.subr.mxu0 %v359_v44  ;;  %v583_v17 = vld [vmem:[%s1886_s2 + $0x7b8] sm:$0xff]  ;;  %v454_v18 = vld [vmem:[%s1886_s2 + $0x3b0] sm:$0xff] }
  0x63   : > { %847 = vmatprep.subr.mxu1 %v487_v45  ;;  %777 = vmatpush1.msra.mxu0 %v358_v46  ;;  %v582_v19 = vld [vmem:[%s1886_s2 + $0x7b0] sm:$0xff]  ;;  %v451_v20 = vld [vmem:[%s1886_s2 + $0x398] sm:$0xff] }
  0x64   : > { %848 = vmatpush1.msra.mxu1 %v486_v47  ;;  %778 = vmatprep.subr.mxu0 %v355_v48  ;;  %v579_v21 = vld [vmem:[%s1886_s2 + $0x798] sm:$0xff]  ;;  %v450_v22 = vld [vmem:[%s1886_s2 + $0x390] sm:$0xff] }
  0x65   : > { %849 = vmatprep.subr.mxu1 %v483_v49  ;;  %779 = vmatpush1.msra.mxu0 %v354_v50  ;;  %v578_v23 = vld [vmem:[%s1886_s2 + $0x790] sm:$0xff]  ;;  %v447_v24 = vld [vmem:[%s1886_s2 + $0x378] sm:$0xff] }
  0x66   : > { %850 = vmatpush1.msra.mxu1 %v482_v51  ;;  %780 = vmatprep.subr.mxu0 %v351_v52  ;;  %v575_v25 = vld [vmem:[%s1886_s2 + $0x778] sm:$0xff]  ;;  %v446_v26 = vld [vmem:[%s1886_s2 + $0x370] sm:$0xff] }
  0x67   : > { %851 = vmatprep.subr.mxu1 %v479_v53  ;;  %781 = vmatpush1.msra.mxu0 %v350_v54  ;;  %v574_v27 = vld [vmem:[%s1886_s2 + $0x770] sm:$0xff]  ;;  %v443_v28 = vld [vmem:[%s1886_s2 + $0x358] sm:$0xff] }
  0x68   : > { %852 = vmatpush1.msra.mxu1 %v478_v55  ;;  %782 = vmatprep.subr.mxu0 %v347_v56  ;;  %v571_v29 = vld [vmem:[%s1886_s2 + $0x758] sm:$0xff]  ;;  %v442_v30 = vld [vmem:[%s1886_s2 + $0x350] sm:$0xff] }
  0x69   : > { %853 = vmatprep.subr.mxu1 %v475_v57  ;;  %783 = vmatpush1.msra.mxu0 %v346_v58  ;;  %v570_v31 = vld [vmem:[%s1886_s2 + $0x750] sm:$0xff]  ;;  %v439_v32 = vld [vmem:[%s1886_s2 + $0x338] sm:$0xff] }
  0x6a   : > { %854 = vmatpush1.msra.mxu1 %v474_v59  ;;  %784 = vmatprep.subr.mxu0 %v343_v60  ;;  %v567_v33 = vld [vmem:[%s1886_s2 + $0x738] sm:$0xff]  ;;  %v438_v34 = vld [vmem:[%s1886_s2 + $0x330] sm:$0xff] }
  0x6b   : > { %855 = vmatprep.subr.mxu1 %v471_v61  ;;  %785 = vmatpush1.msra.mxu0 %v342_v62  ;;  %v566_v35 = vld [vmem:[%s1886_s2 + $0x730] sm:$0xff]  ;;  %v435_v36 = vld [vmem:[%s1886_s2 + $0x318] sm:$0xff] }
  0x6c   : > { %856 = vmatpush1.msra.mxu1 %v470_v0  ;;  %786 = vmatprep.subr.mxu0 %v339_v3  ;;  %v563_v37 = vld [vmem:[%s1886_s2 + $0x718] sm:$0xff]  ;;  %v434_v38 = vld [vmem:[%s1886_s2 + $0x310] sm:$0xff] }
  0x6d   : > { %857 = vmatprep.subr.mxu1 %v467_v4  ;;  %787 = vmatpush1.msra.mxu0 %v338_v6  ;;  %v562_v39 = vld [vmem:[%s1886_s2 + $0x710] sm:$0xff]  ;;  %v431_v40 = vld [vmem:[%s1886_s2 + $0x2f8] sm:$0xff] }
  0x6e   : > { %858 = vmatpush1.msra.mxu1 %v466_v7  ;;  %788 = vmatprep.subr.mxu0 %v463_v8  ;;  %v559_v41 = vld [vmem:[%s1886_s2 + $0x6f8] sm:$0xff]  ;;  %v430_v42 = vld [vmem:[%s1886_s2 + $0x2f0] sm:$0xff] }
  0x6f   : > { %859 = vmatprep.subr.mxu1 %v591_v9  ;;  %789 = vmatpush2.msra.mxu0 %v462_v10  ;;  %v558_v43 = vld [vmem:[%s1886_s2 + $0x6f0] sm:$0xff]  ;;  %v427_v44 = vld [vmem:[%s1886_s2 + $0x2d8] sm:$0xff] }
  0x70   : > { %860 = vmatpush2.msra.mxu1 %v590_v11  ;;  %790 = vmatprep.subr.mxu0 %v459_v12  ;;  %v555_v45 = vld [vmem:[%s1886_s2 + $0x6d8] sm:$0xff]  ;;  %v426_v46 = vld [vmem:[%s1886_s2 + $0x2d0] sm:$0xff]  ;;  %v278_v12 = vlaneseq }
  0x71   : > { %861 = vmatprep.subr.mxu1 %v587_v13  ;;  %791 = vmatpush2.msra.mxu0 %v458_v14  ;;  %v554_v47 = vld [vmem:[%s1886_s2 + $0x6d0] sm:$0xff]  ;;  %v423_v48 = vld [vmem:[%s1886_s2 + $0x2b8] sm:$0xff] }
  0x72   : > { %862 = vmatpush2.msra.mxu1 %v586_v15  ;;  %792 = vmatprep.subr.mxu0 %v455_v16  ;;  %v551_v49 = vld [vmem:[%s1886_s2 + $0x6b8] sm:$0xff]  ;;  %v422_v50 = vld [vmem:[%s1886_s2 + $0x2b0] sm:$0xff]  ;;  %v279_v13 = vshrl.u32 %v278_v12, 7  ;;  %v276_v15 = vld [vmem:[%s1888_s4] sm:$0xf] }
  0x73   : > { %863 = vmatprep.subr.mxu1 %v583_v17  ;;  %793 = vmatpush2.msra.mxu0 %v454_v18  ;;  %v550_v51 = vld [vmem:[%s1886_s2 + $0x6b0] sm:$0xff]  ;;  %v419_v52 = vld [vmem:[%s1886_s2 + $0x298] sm:$0xff]  ;;  %v272_v16 = vld [vmem:[%s1859_s14] sm:$0xff] }
  0x74   : > { %864 = vmatpush2.msra.mxu1 %v582_v19  ;;  %794 = vmatprep.subr.mxu0 %v451_v20  ;;  %v547_v53 = vld [vmem:[%s1886_s2 + $0x698] sm:$0xff]  ;;  %v418_v54 = vld [vmem:[%s1886_s2 + $0x290] sm:$0xff]  ;;  %v280_v14 = vsub.s32 0, %v279_v13  ;;  %v273_v17 = vld [vmem:[%s1859_s14 + $0x8] sm:$0xff] }
  0x75   : > { %865 = vmatprep.subr.mxu1 %v579_v21  ;;  %795 = vmatpush2.msra.mxu0 %v450_v22  ;;  %v546_v55 = vld [vmem:[%s1886_s2 + $0x690] sm:$0xff]  ;;  %v415_v56 = vld [vmem:[%s1886_s2 + $0x278] sm:$0xff]  ;;  %v592_v20 = vld [vmem:[%s1887_s3] sm:$0xf] }
  0x76   : > { %866 = vmatpush2.msra.mxu1 %v578_v23  ;;  %796 = vmatprep.subr.mxu0 %v447_v24  ;;  %v543_v57 = vld [vmem:[%s1886_s2 + $0x678] sm:$0xff]  ;;  %v414_v58 = vld [vmem:[%s1886_s2 + $0x270] sm:$0xff]  ;;  %v597_v23 = vrot.slane %v592_v20, %v280_v14 }
  0x77   : > { %867 = vmatprep.subr.mxu1 %v575_v25  ;;  %797 = vmatpush2.msra.mxu0 %v446_v26  ;;  %v542_v59 = vld [vmem:[%s1886_s2 + $0x670] sm:$0xff]  ;;  %v411_v60 = vld [vmem:[%s1886_s2 + $0x258] sm:$0xff] }
  0x78   : > { %868 = vmatpush2.msra.mxu1 %v574_v27  ;;  %798 = vmatprep.subr.mxu0 %v443_v28  ;;  %v539_v61 = vld [vmem:[%s1886_s2 + $0x658] sm:$0xff]  ;;  %v410_v62 = vld [vmem:[%s1886_s2 + $0x250] sm:$0xff] }
  0x79   : > { %869 = vmatprep.subr.mxu1 %v571_v29  ;;  %799 = vmatpush2.msra.mxu0 %v442_v30  ;;  %v538_v0 = vld [vmem:[%s1886_s2 + $0x650] sm:$0xff]  ;;  %v407_v3 = vld [vmem:[%s1886_s2 + $0x238] sm:$0xff] }
  0x7a   : > { %870 = vmatpush2.msra.mxu1 %v570_v31  ;;  %800 = vmatprep.subr.mxu0 %v439_v32  ;;  %v535_v4 = vld [vmem:[%s1886_s2 + $0x638] sm:$0xff]  ;;  %v406_v6 = vld [vmem:[%s1886_s2 + $0x230] sm:$0xff] }
  0x7b   : > { %871 = vmatprep.subr.mxu1 %v567_v33  ;;  %801 = vmatpush2.msra.mxu0 %v438_v34  ;;  %v534_v7 = vld [vmem:[%s1886_s2 + $0x630] sm:$0xff]  ;;  %v403_v8 = vld [vmem:[%s1886_s2 + $0x218] sm:$0xff] }
  0x7c   : > { %872 = vmatpush2.msra.mxu1 %v566_v35  ;;  %802 = vmatprep.subr.mxu0 %v435_v36  ;;  %v531_v9 = vld [vmem:[%s1886_s2 + $0x618] sm:$0xff]  ;;  %v402_v10 = vld [vmem:[%s1886_s2 + $0x210] sm:$0xff] }
  0x7d   : > { %873 = vmatprep.subr.mxu1 %v563_v37  ;;  %803 = vmatpush2.msra.mxu0 %v434_v38  ;;  %v530_v11 = vld [vmem:[%s1886_s2 + $0x610] sm:$0xff] }
  0x7e   : > { %874 = vmatpush2.msra.mxu1 %v562_v39  ;;  %804 = vmatprep.subr.mxu0 %v431_v40 }
  0x7f   : > { %875 = vmatprep.subr.mxu1 %v559_v41  ;;  %805 = vmatpush2.msra.mxu0 %v430_v42  ;;  %v288_v41 = vsub.s32 2, %v279_v13  ;;  %v292_v42 = vsub.s32 3, %v279_v13 }
  0x80   : > { %876 = vmatpush2.msra.mxu1 %v558_v43  ;;  %806 = vmatprep.subr.mxu0 %v427_v44  ;;  %v274_v44 = vld [vmem:[%s1859_s14 + $0x10] sm:$0xff] }
  0x81   : > { %877 = vmatprep.subr.mxu1 %v555_v45  ;;  %807 = vmatpush2.msra.mxu0 %v426_v46  ;;  %v289_v43 = vrot.slane %v276_v15, %v288_v41  ;;  %v293_v45 = vrot.slane %v276_v15, %v292_v42  ;;  %v275_v46 = vld [vmem:[%s1859_s14 + $0x18] sm:$0xff] }
  0x82   : > { %878 = vmatpush2.msra.mxu1 %v554_v47  ;;  %808 = vmatprep.subr.mxu0 %v423_v48 }
  0x83   : > { %879 = vmatprep.subr.mxu1 %v551_v49  ;;  %809 = vmatpush2.msra.mxu0 %v422_v50  ;;  %v300_v47 = vmul.f32 %v289_v43, %v274_v44  ;;  %v301_v49 = vmul.f32 %v293_v45, %v275_v46 }
  0x84   : > { %880 = vmatpush2.msra.mxu1 %v550_v51  ;;  %810 = vmatprep.subr.mxu0 %v419_v52  ;;  %v605_v51 = vrot.slane %v592_v20, %v288_v41 }
  0x85   : > { %881 = vmatprep.subr.mxu1 %v547_v53  ;;  %811 = vmatpush2.msra.mxu0 %v418_v54  ;;  %v609_v53 = vrot.slane %v592_v20, %v292_v42 }
  0x86   : > { %882 = vmatpush2.msra.mxu1 %v546_v55  ;;  %812 = vmatprep.subr.mxu0 %v415_v56 }
  0x87   : > { %883 = vmatprep.subr.mxu1 %v543_v57  ;;  %813 = vmatpush2.msra.mxu0 %v414_v58 }
  0x88   : > { %884 = vmatpush2.msra.mxu1 %v542_v59  ;;  %814 = vmatprep.subr.mxu0 %v411_v60 }
  0x89   : > { %885 = vmatprep.subr.mxu1 %v539_v61  ;;  %815 = vmatpush2.msra.mxu0 %v410_v62 }
  0x8a   : > { %886 = vmatpush2.msra.mxu1 %v538_v0  ;;  %816 = vmatprep.subr.mxu0 %v407_v3 }
  0x8b   : > { %887 = vmatprep.subr.mxu1 %v535_v4  ;;  %817 = vmatpush2.msra.mxu0 %v406_v6 }
  0x8c   : > { %888 = vmatpush2.msra.mxu1 %v534_v7  ;;  %818 = vmatprep.subr.mxu0 %v403_v8 }
  0x8d   : > { %889 = vmatprep.subr.mxu1 %v531_v9  ;;  %819 = vmatpush2.msra.mxu0 %v402_v10 }
  0x8e   : > { %820 = vmatprep.mubr.f32.mxu0 %v1449_v63  ;;  %890 = vmatpush2.msra.mxu1 %v530_v11  ;;  %v284_v63 = vsub.s32 1, %v279_v13 }
  0x8f   : > { %891 = vmatprep.mubr.f32.mxu1 %v1456_v2  ;;  %821 = vmatmul.mubr.f32.vlgmr.msra.gmra.mxu0 %v1454_v1  ;;  %v281_v2 = vrot.slane %v276_v15, %v280_v14  ;;  %v302_v1 = vld [vmem:[%s1889_s5] sm:$0xf] }
  0x90   : > { %892 = vmatmul.mubr.f32.vlgmr.msra.gmra.mxu1 %v1465_v5  ;;  %v285_v5 = vrot.slane %v276_v15, %v284_v63  ;;  %v307_v19 = vrot.slane %v302_v1, %v280_v14  ;;  %v311_v22 = vrot.slane %v302_v1, %v284_v63  ;;  %v601_v25 = vrot.slane %v592_v20, %v284_v63 }
  0x91   : > { %v298_v18 = vmul.f32 %v281_v2, %v272_v16  ;;  %v315_v48 = vrot.slane %v302_v1, %v288_v41  ;;  %v319_v50 = vrot.slane %v302_v1, %v292_v42 }
  0x92   : > { %v299_v21 = vmul.f32 %v285_v5, %v273_v17 }
  0x93   : > { %v324_v24 = vadd.f32 %v307_v19, %v298_v18  ;;  %v326_v52 = vadd.f32 %v315_v48, %v300_v47  ;;  %v327_v54 = vadd.f32 %v319_v50, %v301_v49 }
  0x94   : > { %v325_v26 = vadd.f32 %v311_v22, %v299_v21 }
  0x95   : > { %v328_v29 = vmax.f32 %v324_v24, 0.0  ;;  %v330_v58 = vmax.f32 %v326_v52, 0.0  ;;  %v331_v62 = vmax.f32 %v327_v54, 0.0 }
  0x96   : > { %v329_v34 = vmax.f32 %v325_v26, 0.0 }
 0x10d   : > { %v680_v27 = vpop.f32.mrf.mxu0 }
 0x10e   : > { %v681_v28 = vadd.f32 %v680_v27, %v597_v23 }
 0x10f   : > { %v751_v30 = vpop.f32.mrf.mxu1  ;;  %v682_v31 = vpop.f32.mrf.mxu0 }
 0x110   : > { %v752_v32 = vadd.f32 %v751_v30, %v681_v28  ;;  %v683_v33 = vadd.f32 %v682_v31, %v601_v25 }
 0x111   : > { %v753_v35 = vpop.f32.mrf.mxu1 }
 0x112   : > { %v898_v36 = vadd.f32 %v752_v32, %v328_v29  ;;  %v754_v37 = vadd.f32 %v753_v35, %v683_v33 }
 0x114   : > { %v902_v38 = vmax.f32 %v898_v36, 0.0  ;;  %v899_v39 = vadd.f32 %v754_v37, %v329_v34 }
 0x116   : > { %906 = vst [vmem:[%s1873_s20] sm:$0xff] %v902_v38  ;;  %v903_v40 = vmax.f32 %v899_v39, 0.0 }
 0x118   : > { %907 = vst [vmem:[%s1873_s20 + $0x8] sm:$0xff] %v903_v40 }
 0x14f   : > { %v822_v55 = vpop.f32.mrf.mxu0 }
 0x150   : > { %v893_v56 = vpop.f32.mrf.mxu1  ;;  %v823_v57 = vadd.f32 %v822_v55, %v605_v51 }
 0x151   : > { %v824_v59 = vpop.f32.mrf.mxu0 }
 0x152   : > { %v894_v60 = vadd.f32 %v893_v56, %v823_v57  ;;  %v825_v61 = vadd.f32 %v824_v59, %v609_v53  ;;  %v895_v0 = vpop.f32.mrf.mxu1 }
 0x154   : > { %v900_v3 = vadd.f32 %v894_v60, %v330_v58  ;;  %v896_v4 = vadd.f32 %v895_v0, %v825_v61 }
 0x156   : > { %v904_v6 = vmax.f32 %v900_v3, 0.0  ;;  %v901_v7 = vadd.f32 %v896_v4, %v331_v62 }
 0x158   : > { %908 = vst [vmem:[%s1873_s20 + $0x10] sm:$0xff] %v904_v6  ;;  %v905_v8 = vmax.f32 %v901_v7, 0.0 }
 0x15a   : > { %909 = vst [vmem:[%s1873_s20 + $0x18] sm:$0xff] %v905_v8 }
 0x15b PF: > { %s16_s21 = sadd.s32 1, %s1007_s21  }
 0x15c   : > { %p13_p4 = scmp.ge.s32.totalorder %s16_s21, 4  }
 0x15e   :  { %15 = sbr.rel (!%p13_p4) target bundleno = 1 (0x1), region = 77 }

</bundles_post_ra>
